<compile_context>
chip_gen: v7x
topology: tpu7x:2x2x1
jax: 0.10.0
libtpu: 0.0.40
codegen_flags: <defaults>
</compile_context>

<pallas_src>
import functools
import math

import jax
import jax.numpy as jnp
from jax.experimental import pallas as pl
from jax.experimental.pallas import tpu as pltpu

LANE = 128                    # TPU lane width; tiny output layers pad to this
F32 = jnp.float32
BF16 = jnp.bfloat16
WEIGHT_DTYPE = jnp.bfloat16   # MXU operand dtype for MLP weights (f32 accumulate)
CONST_DTYPE = jnp.bfloat16    # one-hot gather/scatter matrices (0/1 exact in bf16)


# ----------------------------------------------------------------------------
# Index maps (scalar-prefetch aware: every index_map gets (t, sched_ref)).
# ----------------------------------------------------------------------------
def _const_index(t, sched_ref, nd):
    return (0,) * nd


def _sched_index(t, sched_ref, nd):
    # Leading (step) axis selected by the iteration->layer schedule; repeated
    # indices (cycle > 1) let Pallas skip the weight re-DMA.
    return (sched_ref[t],) + (0,) * (nd - 1)


def _const_spec(x):
    return pl.BlockSpec(x.shape, functools.partial(_const_index, nd=x.ndim))


def _step_spec(x):
    return pl.BlockSpec((1,) + x.shape[1:],
                        functools.partial(_sched_index, nd=x.ndim))


# ----------------------------------------------------------------------------
# In-kernel building blocks.
# ----------------------------------------------------------------------------
def _dot(a, w):
    return jnp.dot(a, w, preferred_element_type=F32)


def _mlp_tail(h, tail, last_relu=True, stacked=False):
    """Remaining Linear(+ReLU) layers of an MLP.  `stacked` refs carry a
    leading step axis of block-size 1 (read with [0])."""
    n = len(tail)
    for i, lyr in enumerate(tail):
        w = lyr['w'][0] if stacked else lyr['w'][...]
        b = lyr['b'][0] if stacked else lyr['b'][...]
        h = _dot(h.astype(w.dtype), w) + b
        if last_relu or i < n - 1:
            h = jnp.maximum(h, 0.0)
    return h


# ----------------------------------------------------------------------------
# The fused kernel: one grid step == one message-passing iteration.
# ----------------------------------------------------------------------------
def _forward_kernel(sched_ref, *refs, treedef, n_in):
    del sched_ref                           # only used by the index maps
    p = jax.tree.unflatten(treedef, refs[:n_in])
    out_ref = refs[n_in]
    x_s, e_s, u_s, pos_s = refs[n_in + 1:]  # VMEM-resident state across the grid

    t = pl.program_id(0)
    c = p['const']
    S, R = c['S'][...], c['R'][...]                       # bf16 one-hots
    GE, GN = c['GE'][...], c['GN'][...]
    agg_s, agg_r = c['AggS'][...], c['AggR'][...]
    agg_n, agg_e = c['AggN'][...], c['AggE'][...]
    D, P = c['D'][...], c['P'][...]                       # f32 geometry operators

    # ---- step 0: load the initial (lane-padded) positions --------------------
    @pl.when(t == 0)
    def _():
        pos_s[...] = p['pos0'][...]

    pos = pos_s[...]                                      # [N, LANE] f32

    # ---- attr_init on the current geometry -----------------------------------
    d = _dot(D, pos)                                      # pos[src] - pos[dst]
    dist_e = jnp.sqrt(jnp.sum(d * d, axis=1, keepdims=True))   # [E, 1] f32

    pose = p['pose']
    ee = pose['ee']                                       # fan_in == 1 -> broadcast
    e_ext = _mlp_tail(jnp.maximum(dist_e * ee['w0'][...] + ee['b0'][...], 0.0),
                      ee['tail'])
    en = pose['en']       # first layer in edge space (pre-tiled W0), per-src sum
    h = _dot(agg_s, (dist_e * en['w0t'][...]).astype(BF16)) + en['b0'][...]
    n_ext = _mlp_tail(jnp.maximum(h, 0.0), en['tail'])
    eg = pose['eg']       # same trick, summed per graph
    h = _dot(agg_e, (dist_e * eg['w0t'][...]).astype(BF16)) + eg['b0'][...]
    u_ext = _mlp_tail(jnp.maximum(h, 0.0), eg['tail'])

    # Step 0 folds the module's pre-loop attr_init (same conforms => x0 = 2*ext0).
    @pl.when(t == 0)
    def _():
        x_s[...] = n_ext
        e_s[...] = e_ext
        u_s[...] = u_ext

    x = x_s[...] + n_ext
    e = e_s[...] + e_ext
    u = u_s[...] + u_ext
    xb, eb, ub = x.astype(BF16), e.astype(BF16), u.astype(BF16)  # hoisted casts

    st = p['step']                        # stacked per-step weights (index [0])

    # ---- MetaLayer: edge model (project first, then gather) -------------------
    em = st['edge']
    w_e, w_xs, w_xr, w_ug = (em['w0'][i][0] for i in range(4))
    xs = _dot(xb, w_xs).astype(BF16)                      # x @ W_sent   [N, H]
    xr = _dot(xb, w_xr).astype(BF16)                      # x @ W_recv   [N, H]
    ug = _dot(ub, w_ug).astype(BF16)                      # u @ W_u      [BP, H]
    h = (_dot(eb, w_e) + _dot(S, xs) + _dot(R, xr) + _dot(GE, ug) + em['b0'][0])
    e_new = _mlp_tail(jnp.maximum(h, 0.0), em['tail'], stacked=True)
    e_new_b = e_new.astype(BF16)

    # ---- node model ------------------------------------------------------------
    nm = st['node']
    w_x, w_sa, w_ra, w_un = (nm['w0'][i][0] for i in range(4))
    sent_agg = _dot(agg_s, e_new_b).astype(BF16)          # sum over edges by src
    recv_agg = _dot(agg_r, e_new_b).astype(BF16)          # sum over edges by dst
    un = _dot(ub, w_un).astype(BF16)                      # project u, then gather
    h = (_dot(xb, w_x) + _dot(sent_agg, w_sa) + _dot(recv_agg, w_ra)
         + _dot(GN, un) + nm['b0'][0])
    x_new = _mlp_tail(jnp.maximum(h, 0.0), nm['tail'], stacked=True)
    x_new_b = x_new.astype(BF16)

    # ---- global model ----------------------------------------------------------
    gm = st['glob']
    w_gu, w_gn, w_ge = (gm['w0'][i][0] for i in range(3))
    node_agg = _dot(agg_n, x_new_b).astype(BF16)          # global_add_pool(x)
    edge_agg = _dot(agg_e, e_new_b).astype(BF16)          # global_add_pool(e)
    h = (_dot(ub, w_gu) + _dot(node_agg, w_gn) + _dot(edge_agg, w_ge)
         + gm['b0'][0])
    u_new = _mlp_tail(jnp.maximum(h, 0.0), gm['tail'], stacked=True)

    # ---- residuals (dropout == identity at inference) --------------------------
    x = x + x_new
    e = e + e_new
    u = u + u_new
    x_s[...] = x
    e_s[...] = e
    u_s[...] = u

    # ---- pos_update (MLPwoLastAct) + move2origin (P @ pos) ---------------------
    pu = st['posup']
    hp = jnp.maximum(_dot(x.astype(BF16), pu['w0'][0]) + pu['b0'][0], 0.0)
    delta = _dot(hp.astype(BF16), pu['w1'][0]) + pu['b1'][0]  # cols >= 3 stay 0
    pos_s[...] = _dot(P, pos + delta)

    # ---- final global readout, folded into the last grid step ------------------
    @pl.when(t == pl.num_programs(0) - 1)
    def _():
        # `MLP` semantics: ReLU after every Linear, including the scalar readout.
        out_ref[...] = _mlp_tail(u, p['final'], last_relu=True)


# ----------------------------------------------------------------------------
# Parameters (deterministic, nn.Linear-style uniform init).
# ----------------------------------------------------------------------------
def init_params(key, B, n, latent, hidden, mlp_layers, num_steps,
                wdtype=WEIGHT_DTYPE):
    hs = [hidden] * mlp_layers + [latent]

    def linear(k, fan_in, fan_out):
        kw, kb = jax.random.split(k)
        bound = 1.0 / math.sqrt(fan_in)
        w = jax.random.uniform(kw, (fan_in, fan_out), F32, -bound, bound)
        b = jax.random.uniform(kb, (1, fan_out), F32, -bound, bound)
        return w, b

    def tail(k, in_size, sizes):
        layers = []
        for s in sizes:
            k, sub = jax.random.split(k)
            w, b = linear(sub, in_size, s)
            layers.append({'w': w.astype(wdtype), 'b': b})
            in_size = s
        return layers

    def split_first(k, n_parts, block, out):
        """nn.Linear(n_parts*block, out) split into per-block weights so the
        kernel skips the torch.cat and sums partial matmuls instead."""
        kw, kb = jax.random.split(k)
        bound = 1.0 / math.sqrt(n_parts * block)
        w = jax.random.uniform(kw, (n_parts * block, out), F32, -bound, bound)
        b = jax.random.uniform(kb, (1, out), F32, -bound, bound)
        return ([w[i * block:(i + 1) * block].astype(wdtype)
                 for i in range(n_parts)], b)

    keys = jax.random.split(key, 4 + 2 * num_steps)
    it = iter(keys)

    # positional encoders (shared across steps, VMEM-resident) ------------------
    k0, k1 = jax.random.split(next(it))
    w, b = linear(k0, n - 1, hs[0])
    en = {'w0t': jnp.tile(w, (B * n, 1)).astype(wdtype), 'b0': b,
          'tail': tail(k1, hs[0], hs[1:])}
    k0, k1 = jax.random.split(next(it))
    w, b = linear(k0, 1, hs[0])
    ee = {'w0': w, 'b0': b, 'tail': tail(k1, hs[0], hs[1:])}
    k0, k1 = jax.random.split(next(it))
    w, b = linear(k0, n * (n - 1), hs[0])
    eg = {'w0t': jnp.tile(w, (B, 1)).astype(wdtype), 'b0': b,
          'tail': tail(k1, hs[0], hs[1:])}
    pose = {'en': en, 'ee': ee, 'eg': eg}

    # per-step MetaLayer + pos_update weights -----------------------------------
    steps = []
    for _ in range(num_steps):
        ke, kn, kg, ke2, kn2, kg2 = jax.random.split(next(it), 6)
        e_w0, e_b0 = split_first(ke, 4, latent, hs[0])
        n_w0, n_b0 = split_first(kn, 4, latent, hs[0])
        g_w0, g_b0 = split_first(kg, 3, latent, hs[0])
        k0, k1 = jax.random.split(next(it))
        pw0, pb0 = linear(k0, latent, latent)
        pw1, pb1 = linear(k1, latent, 3)
        steps.append({
            'edge': {'w0': e_w0, 'b0': e_b0, 'tail': tail(ke2, hs[0], hs[1:])},
            'node': {'w0': n_w0, 'b0': n_b0, 'tail': tail(kn2, hs[0], hs[1:])},
            'glob': {'w0': g_w0, 'b0': g_b0, 'tail': tail(kg2, hs[0], hs[1:])},
            'posup': {
                'w0': pw0.astype(wdtype), 'b0': pb0,
                # zero-pad the 3-wide output to a full lane: lane-dense store
                # and pos[:, 3:] stays exactly zero forever.
                'w1': jnp.pad(pw1, ((0, 0), (0, LANE - 3))).astype(wdtype),
                'b1': jnp.pad(pb1, ((0, 0), (0, LANE - 3))),
            },
        })
    # stack per-step weights along a leading step axis (selected via schedule)
    step = jax.tree.map(lambda *xs: jnp.stack(xs, axis=0), *steps)

    # final global readout --------------------------------------------------------
    kf = jax.random.split(next(it), mlp_layers + 1)
    final, in_size = [], latent
    dims = [hidden] * mlp_layers + [1]
    for j, s in enumerate(dims):
        w, b = linear(kf[j], in_size, s)
        if j == len(dims) - 1 and s < LANE:   # pad the 1-wide readout to a lane
            w = jnp.pad(w, ((0, 0), (0, LANE - s)))
            b = jnp.pad(b, ((0, 0), (0, LANE - s)))
        final.append({'w': w.astype(wdtype), 'b': b})
        in_size = s
    return {'pose': pose, 'step': step, 'final': final}


def build_constants(B, n, bp):
    """One-hot gather / scatter-add matrices for the static fully connected
    graph (get_edges_batch ordering: per batch, per source i, targets j != i),
    plus fused distance (D = S - R) and centering (P = I - GN GNt / n) ops."""
    N = B * n
    e_per = n * (n - 1)
    E = B * e_per
    row_local = [i for i in range(n) for j in range(n) if j != i]
    col_local = [j for i in range(n) for j in range(n) if j != i]
    row = jnp.asarray([b * n + r for b in range(B) for r in row_local], jnp.int32)
    col = jnp.asarray([b * n + c for b in range(B) for c in col_local], jnp.int32)
    S = jax.nn.one_hot(row, N, dtype=F32)                      # [E, N] edge->src
    R = jax.nn.one_hot(col, N, dtype=F32)                      # [E, N] edge->dst
    GN = jax.nn.one_hot(jnp.arange(N) // n, bp, dtype=F32)     # [N, BP]
    GE = jax.nn.one_hot(jnp.arange(E) // e_per, bp, dtype=F32) # [E, BP]
    P = jnp.eye(N, dtype=F32) - (GN @ GN.T) / n                # move2origin
    # TODO(synk): for much larger B*n the dense ExN one-hots outgrow VMEM first
    # on v7x (64 MiB); switch to block-diagonal per-graph constants with a batch
    # grid axis, or a scalar-prefetch-driven DMA gather, before scaling up.
    return {'D': S - R, 'P': P,
            'S': S.astype(CONST_DTYPE), 'R': R.astype(CONST_DTYPE),
            'AggS': S.T.astype(CONST_DTYPE), 'AggR': R.T.astype(CONST_DTYPE),
            'GN': GN.astype(CONST_DTYPE), 'AggN': GN.T.astype(CONST_DTYPE),
            'GE': GE.astype(CONST_DTYPE), 'AggE': GE.T.astype(CONST_DTYPE)}


# ----------------------------------------------------------------------------
# Forward pass: one fused pallas_call for the whole network.
# ----------------------------------------------------------------------------
def make_forward(params, consts, B, n, num_steps, cycle, latent, hidden):
    N = B * n
    E = B * n * (n - 1)
    BP = consts['GN'].shape[1]                 # batch rows padded to >= 8
    T = (num_steps - 1) + cycle                # total message-passing iterations
    # iteration -> layer index (last layer repeated `cycle` times)
    schedule = jnp.concatenate([
        jnp.arange(num_steps - 1, dtype=jnp.int32),
        jnp.full((cycle,), num_steps - 1, dtype=jnp.int32)])

    # rough advisory cost of the whole fused call
    mm = 2 * latent * hidden
    flops = T * mm * (6 * E + 9 * N + 8 * BP)
    bytes_accessed = sum(int(a.size) * a.dtype.itemsize
                         for a in jax.tree.leaves((params, consts)))
    cost = pl.CostEstimate(flops=int(flops), transcendentals=int(T * E),
                           bytes_accessed=int(bytes_accessed))

    @jax.jit
    def forward(conforms):
        pos0 = jnp.pad(conforms.reshape(N, 3).astype(F32),
                       ((0, 0), (0, LANE - 3)))
        inputs = {'pos0': pos0, 'const': consts, 'pose': params['pose'],
                  'step': params['step'], 'final': params['final']}
        flat, treedef = jax.tree.flatten(inputs)
        spec_tree = {'pos0': _const_spec(pos0),
                     'const': jax.tree.map(_const_spec, consts),
                     'pose': jax.tree.map(_const_spec, params['pose']),
                     'step': jax.tree.map(_step_spec, params['step']),
                     'final': jax.tree.map(_const_spec, params['final'])}
        in_specs = jax.tree.leaves(
            spec_tree, is_leaf=lambda s: isinstance(s, pl.BlockSpec))

        grid_spec = pltpu.PrefetchScalarGridSpec(
            num_scalar_prefetch=1,
            grid=(T,),
            in_specs=in_specs,
            out_specs=pl.BlockSpec((BP, LANE), lambda t, sched: (0, 0)),
            scratch_shapes=[pltpu.VMEM((N, latent), F32),    # node_attr
                            pltpu.VMEM((E, latent), F32),    # edge_attr
                            pltpu.VMEM((BP, latent), F32),   # global_attr
                            pltpu.VMEM((N, LANE), F32)])     # pos (lane-padded)

        out = pl.pallas_call(
            functools.partial(_forward_kernel, treedef=treedef, n_in=len(flat)),
            grid_spec=grid_spec,
            out_shape=jax.ShapeDtypeStruct((BP, LANE), F32),
            compiler_params=pltpu.CompilerParams(
                dimension_semantics=("arbitrary",)),
            cost_estimate=cost,
        )(schedule, *flat)
        return out[:B, :1]

    return forward


# ----------------------------------------------------------------------------
if __name__ == "__main__":
    # Small but module-consistent configuration.
    B = 2
    NUM_ATOMS = 8
    LATENT = 128
    HIDDEN = 128
    MLP_LAYERS = 2
    NUM_STEPS = 3       # num_message_passing_steps (module default 12; small demo)
    CYCLE = 1

    key = jax.random.PRNGKey(0)
    kp, kx = jax.random.split(key)
    params = init_params(kp, B, NUM_ATOMS, LATENT, HIDDEN, MLP_LAYERS, NUM_STEPS)
    consts = build_constants(B, NUM_ATOMS, bp=max(B, 8))
    conforms = jax.random.normal(kx, (B, NUM_ATOMS, 3), jnp.float32)

    forward = make_forward(params, consts, B, NUM_ATOMS, NUM_STEPS, CYCLE,
                           LATENT, HIDDEN)
    out = jax.block_until_ready(forward(conforms))

    assert out.shape == (B, 1), out.shape
    assert bool(jnp.all(jnp.isfinite(out)))
    print("KERNEL_OK")
</pallas_src>

<mosaic_0001>
module attributes {stable_mosaic.version = 11 : i64} {
  func.func @_forward_kernel(%arg0: i32, %arg1: memref<3xi32, #tpu.memory_space<smem>>, %arg2: memref<8x112xbf16, #tpu.memory_space<vmem>>, %arg3: memref<8x16xbf16, #tpu.memory_space<vmem>>, %arg4: memref<16x112xbf16, #tpu.memory_space<vmem>>, %arg5: memref<16x112xbf16, #tpu.memory_space<vmem>>, %arg6: memref<112x16xf32, #tpu.memory_space<vmem>>, %arg7: memref<112x8xbf16, #tpu.memory_space<vmem>>, %arg8: memref<16x8xbf16, #tpu.memory_space<vmem>>, %arg9: memref<16x16xf32, #tpu.memory_space<vmem>>, %arg10: memref<112x16xbf16, #tpu.memory_space<vmem>>, %arg11: memref<112x16xbf16, #tpu.memory_space<vmem>>, %arg12: memref<1x128xf32, #tpu.memory_space<vmem>>, %arg13: memref<128x128xbf16, #tpu.memory_space<vmem>>, %arg14: memref<1x128xf32, #tpu.memory_space<vmem>>, %arg15: memref<128x128xbf16, #tpu.memory_space<vmem>>, %arg16: memref<1x128xf32, #tpu.memory_space<vmem>>, %arg17: memref<128x128xbf16, #tpu.memory_space<vmem>>, %arg18: memref<16x128xf32, #tpu.memory_space<vmem>>, %arg19: memref<1x128xf32, #tpu.memory_space<vmem>>, %arg20: memref<1x128xf32, #tpu.memory_space<vmem>>, %arg21: memref<128x128xbf16, #tpu.memory_space<vmem>>, %arg22: memref<1x128xf32, #tpu.memory_space<vmem>>, %arg23: memref<128x128xbf16, #tpu.memory_space<vmem>>, %arg24: memref<1x128xf32, #tpu.memory_space<vmem>>, %arg25: memref<1x128xf32, #tpu.memory_space<vmem>>, %arg26: memref<1x128xf32, #tpu.memory_space<vmem>>, %arg27: memref<128x128xbf16, #tpu.memory_space<vmem>>, %arg28: memref<1x128xf32, #tpu.memory_space<vmem>>, %arg29: memref<128x128xbf16, #tpu.memory_space<vmem>>, %arg30: memref<112x128xbf16, #tpu.memory_space<vmem>>, %arg31: memref<1x128xf32, #tpu.memory_space<vmem>>, %arg32: memref<1x128xf32, #tpu.memory_space<vmem>>, %arg33: memref<128x128xbf16, #tpu.memory_space<vmem>>, %arg34: memref<1x128xf32, #tpu.memory_space<vmem>>, %arg35: memref<128x128xbf16, #tpu.memory_space<vmem>>, %arg36: memref<112x128xbf16, #tpu.memory_space<vmem>>, %arg37: memref<1x1x128xf32, #tpu.memory_space<vmem>>, %arg38: memref<1x1x128xf32, #tpu.memory_space<vmem>>, %arg39: memref<1x128x128xbf16, #tpu.memory_space<vmem>>, %arg40: memref<1x1x128xf32, #tpu.memory_space<vmem>>, %arg41: memref<1x128x128xbf16, #tpu.memory_space<vmem>>, %arg42: memref<1x128x128xbf16, #tpu.memory_space<vmem>>, %arg43: memref<1x128x128xbf16, #tpu.memory_space<vmem>>, %arg44: memref<1x128x128xbf16, #tpu.memory_space<vmem>>, %arg45: memref<1x128x128xbf16, #tpu.memory_space<vmem>>, %arg46: memref<1x1x128xf32, #tpu.memory_space<vmem>>, %arg47: memref<1x1x128xf32, #tpu.memory_space<vmem>>, %arg48: memref<1x128x128xbf16, #tpu.memory_space<vmem>>, %arg49: memref<1x1x128xf32, #tpu.memory_space<vmem>>, %arg50: memref<1x128x128xbf16, #tpu.memory_space<vmem>>, %arg51: memref<1x128x128xbf16, #tpu.memory_space<vmem>>, %arg52: memref<1x128x128xbf16, #tpu.memory_space<vmem>>, %arg53: memref<1x128x128xbf16, #tpu.memory_space<vmem>>, %arg54: memref<1x1x128xf32, #tpu.memory_space<vmem>>, %arg55: memref<1x1x128xf32, #tpu.memory_space<vmem>>, %arg56: memref<1x128x128xbf16, #tpu.memory_space<vmem>>, %arg57: memref<1x1x128xf32, #tpu.memory_space<vmem>>, %arg58: memref<1x128x128xbf16, #tpu.memory_space<vmem>>, %arg59: memref<1x128x128xbf16, #tpu.memory_space<vmem>>, %arg60: memref<1x128x128xbf16, #tpu.memory_space<vmem>>, %arg61: memref<1x128x128xbf16, #tpu.memory_space<vmem>>, %arg62: memref<1x128x128xbf16, #tpu.memory_space<vmem>>, %arg63: memref<1x1x128xf32, #tpu.memory_space<vmem>>, %arg64: memref<1x1x128xf32, #tpu.memory_space<vmem>>, %arg65: memref<1x128x128xbf16, #tpu.memory_space<vmem>>, %arg66: memref<1x128x128xbf16, #tpu.memory_space<vmem>>, %arg67: memref<8x128xf32, #tpu.memory_space<vmem>>, %arg68: memref<16x128xf32, #tpu.memory_space<vmem>>, %arg69: memref<112x128xf32, #tpu.memory_space<vmem>>, %arg70: memref<8x128xf32, #tpu.memory_space<vmem>>, %arg71: memref<16x128xf32, #tpu.memory_space<vmem>>) attributes {dimension_semantics = [#tpu.dimension_semantics<arbitrary>], iteration_bounds = array<i64: 3>, scalar_prefetch = 1 : i64, scratch_operands = 4 : i64, tpu.core_type = #tpu.core_type<tc>, window_params = [{pipeline_mode = #tpu.pipeline_mode<synchronous>, transform_indices = @transform_0, window_bounds = array<i64: 8, 112>}, {pipeline_mode = #tpu.pipeline_mode<synchronous>, transform_indices = @transform_1, window_bounds = array<i64: 8, 16>}, {pipeline_mode = #tpu.pipeline_mode<synchronous>, transform_indices = @transform_2, window_bounds = array<i64: 16, 112>}, {pipeline_mode = #tpu.pipeline_mode<synchronous>, transform_indices = @transform_3, window_bounds = array<i64: 16, 112>}, {pipeline_mode = #tpu.pipeline_mode<synchronous>, transform_indices = @transform_4, window_bounds = array<i64: 112, 16>}, {pipeline_mode = #tpu.pipeline_mode<synchronous>, transform_indices = @transform_5, window_bounds = array<i64: 112, 8>}, {pipeline_mode = #tpu.pipeline_mode<synchronous>, transform_indices = @transform_6, window_bounds = array<i64: 16, 8>}, {pipeline_mode = #tpu.pipeline_mode<synchronous>, transform_indices = @transform_7, window_bounds = array<i64: 16, 16>}, {pipeline_mode = #tpu.pipeline_mode<synchronous>, transform_indices = @transform_8, window_bounds = array<i64: 112, 16>}, {pipeline_mode = #tpu.pipeline_mode<synchronous>, transform_indices = @transform_9, window_bounds = array<i64: 112, 16>}, {pipeline_mode = #tpu.pipeline_mode<synchronous>, transform_indices = @transform_10, window_bounds = array<i64: 1, 128>}, {pipeline_mode = #tpu.pipeline_mode<synchronous>, transform_indices = @transform_11, window_bounds = array<i64: 128, 128>}, {pipeline_mode = #tpu.pipeline_mode<synchronous>, transform_indices = @transform_12, window_bounds = array<i64: 1, 128>}, {pipeline_mode = #tpu.pipeline_mode<synchronous>, transform_indices = @transform_13, window_bounds = array<i64: 128, 128>}, {pipeline_mode = #tpu.pipeline_mode<synchronous>, transform_indices = @transform_14, window_bounds = array<i64: 1, 128>}, {pipeline_mode = #tpu.pipeline_mode<synchronous>, transform_indices = @transform_15, window_bounds = array<i64: 128, 128>}, {pipeline_mode = #tpu.pipeline_mode<synchronous>, transform_indices = @transform_16, window_bounds = array<i64: 16, 128>}, {pipeline_mode = #tpu.pipeline_mode<synchronous>, transform_indices = @transform_17, window_bounds = array<i64: 1, 128>}, {pipeline_mode = #tpu.pipeline_mode<synchronous>, transform_indices = @transform_18, window_bounds = array<i64: 1, 128>}, {pipeline_mode = #tpu.pipeline_mode<synchronous>, transform_indices = @transform_19, window_bounds = array<i64: 128, 128>}, {pipeline_mode = #tpu.pipeline_mode<synchronous>, transform_indices = @transform_20, window_bounds = array<i64: 1, 128>}, {pipeline_mode = #tpu.pipeline_mode<synchronous>, transform_indices = @transform_21, window_bounds = array<i64: 128, 128>}, {pipeline_mode = #tpu.pipeline_mode<synchronous>, transform_indices = @transform_22, window_bounds = array<i64: 1, 128>}, {pipeline_mode = #tpu.pipeline_mode<synchronous>, transform_indices = @transform_23, window_bounds = array<i64: 1, 128>}, {pipeline_mode = #tpu.pipeline_mode<synchronous>, transform_indices = @transform_24, window_bounds = array<i64: 1, 128>}, {pipeline_mode = #tpu.pipeline_mode<synchronous>, transform_indices = @transform_25, window_bounds = array<i64: 128, 128>}, {pipeline_mode = #tpu.pipeline_mode<synchronous>, transform_indices = @transform_26, window_bounds = array<i64: 1, 128>}, {pipeline_mode = #tpu.pipeline_mode<synchronous>, transform_indices = @transform_27, window_bounds = array<i64: 128, 128>}, {pipeline_mode = #tpu.pipeline_mode<synchronous>, transform_indices = @transform_28, window_bounds = array<i64: 112, 128>}, {pipeline_mode = #tpu.pipeline_mode<synchronous>, transform_indices = @transform_29, window_bounds = array<i64: 1, 128>}, {pipeline_mode = #tpu.pipeline_mode<synchronous>, transform_indices = @transform_30, window_bounds = array<i64: 1, 128>}, {pipeline_mode = #tpu.pipeline_mode<synchronous>, transform_indices = @transform_31, window_bounds = array<i64: 128, 128>}, {pipeline_mode = #tpu.pipeline_mode<synchronous>, transform_indices = @transform_32, window_bounds = array<i64: 1, 128>}, {pipeline_mode = #tpu.pipeline_mode<synchronous>, transform_indices = @transform_33, window_bounds = array<i64: 128, 128>}, {pipeline_mode = #tpu.pipeline_mode<synchronous>, transform_indices = @transform_34, window_bounds = array<i64: 112, 128>}, {transform_indices = @transform_35, window_bounds = array<i64: 1, 1, 128>}, {transform_indices = @transform_36, window_bounds = array<i64: 1, 1, 128>}, {transform_indices = @transform_37, window_bounds = array<i64: 1, 128, 128>}, {transform_indices = @transform_38, window_bounds = array<i64: 1, 1, 128>}, {transform_indices = @transform_39, window_bounds = array<i64: 1, 128, 128>}, {transform_indices = @transform_40, window_bounds = array<i64: 1, 128, 128>}, {transform_indices = @transform_41, window_bounds = array<i64: 1, 128, 128>}, {transform_indices = @transform_42, window_bounds = array<i64: 1, 128, 128>}, {transform_indices = @transform_43, window_bounds = array<i64: 1, 128, 128>}, {transform_indices = @transform_44, window_bounds = array<i64: 1, 1, 128>}, {transform_indices = @transform_45, window_bounds = array<i64: 1, 1, 128>}, {transform_indices = @transform_46, window_bounds = array<i64: 1, 128, 128>}, {transform_indices = @transform_47, window_bounds = array<i64: 1, 1, 128>}, {transform_indices = @transform_48, window_bounds = array<i64: 1, 128, 128>}, {transform_indices = @transform_49, window_bounds = array<i64: 1, 128, 128>}, {transform_indices = @transform_50, window_bounds = array<i64: 1, 128, 128>}, {transform_indices = @transform_51, window_bounds = array<i64: 1, 128, 128>}, {transform_indices = @transform_52, window_bounds = array<i64: 1, 1, 128>}, {transform_indices = @transform_53, window_bounds = array<i64: 1, 1, 128>}, {transform_indices = @transform_54, window_bounds = array<i64: 1, 128, 128>}, {transform_indices = @transform_55, window_bounds = array<i64: 1, 1, 128>}, {transform_indices = @transform_56, window_bounds = array<i64: 1, 128, 128>}, {transform_indices = @transform_57, window_bounds = array<i64: 1, 128, 128>}, {transform_indices = @transform_58, window_bounds = array<i64: 1, 128, 128>}, {transform_indices = @transform_59, window_bounds = array<i64: 1, 128, 128>}, {transform_indices = @transform_60, window_bounds = array<i64: 1, 128, 128>}, {transform_indices = @transform_61, window_bounds = array<i64: 1, 1, 128>}, {transform_indices = @transform_62, window_bounds = array<i64: 1, 1, 128>}, {transform_indices = @transform_63, window_bounds = array<i64: 1, 128, 128>}, {transform_indices = @transform_64, window_bounds = array<i64: 1, 128, 128>}, {pipeline_mode = #tpu.pipeline_mode<synchronous>, transform_indices = @transform_65, window_bounds = array<i64: 8, 128>}]} {
    %c0 = arith.constant 0 : index
    %c0_0 = arith.constant 0 : index
    %0 = vector.load %arg11[%c0, %c0_0] : memref<112x16xbf16, #tpu.memory_space<vmem>>, vector<112x16xbf16>
    %c0_1 = arith.constant 0 : index
    %c0_2 = arith.constant 0 : index
    %1 = vector.load %arg10[%c0_1, %c0_2] : memref<112x16xbf16, #tpu.memory_space<vmem>>, vector<112x16xbf16>
    %c0_3 = arith.constant 0 : index
    %c0_4 = arith.constant 0 : index
    %2 = vector.load %arg7[%c0_3, %c0_4] : memref<112x8xbf16, #tpu.memory_space<vmem>>, vector<112x8xbf16>
    %c0_5 = arith.constant 0 : index
    %c0_6 = arith.constant 0 : index
    %3 = vector.load %arg8[%c0_5, %c0_6] : memref<16x8xbf16, #tpu.memory_space<vmem>>, vector<16x8xbf16>
    %c0_7 = arith.constant 0 : index
    %c0_8 = arith.constant 0 : index
    %4 = vector.load %arg5[%c0_7, %c0_8] : memref<16x112xbf16, #tpu.memory_space<vmem>>, vector<16x112xbf16>
    %c0_9 = arith.constant 0 : index
    %c0_10 = arith.constant 0 : index
    %5 = vector.load %arg4[%c0_9, %c0_10] : memref<16x112xbf16, #tpu.memory_space<vmem>>, vector<16x112xbf16>
    %c0_11 = arith.constant 0 : index
    %c0_12 = arith.constant 0 : index
    %6 = vector.load %arg3[%c0_11, %c0_12] : memref<8x16xbf16, #tpu.memory_space<vmem>>, vector<8x16xbf16>
    %c0_13 = arith.constant 0 : index
    %c0_14 = arith.constant 0 : index
    %7 = vector.load %arg2[%c0_13, %c0_14] : memref<8x112xbf16, #tpu.memory_space<vmem>>, vector<8x112xbf16>
    %c0_15 = arith.constant 0 : index
    %c0_16 = arith.constant 0 : index
    %8 = vector.load %arg6[%c0_15, %c0_16] : memref<112x16xf32, #tpu.memory_space<vmem>>, vector<112x16xf32>
    %c0_17 = arith.constant 0 : index
    %c0_18 = arith.constant 0 : index
    %9 = vector.load %arg9[%c0_17, %c0_18] : memref<16x16xf32, #tpu.memory_space<vmem>>, vector<16x16xf32>
    %c0_i32 = arith.constant 0 : i32
    %10 = arith.cmpi eq, %arg0, %c0_i32 : i32
    %11 = arith.extui %10 : i1 to i32
    %c0_i32_19 = arith.constant 0 : i32
    %12 = arith.cmpi ne, %11, %c0_i32_19 : i32
    scf.if %12 {
      %c0_221 = arith.constant 0 : index
      %c0_222 = arith.constant 0 : index
      %277 = vector.load %arg18[%c0_221, %c0_222] : memref<16x128xf32, #tpu.memory_space<vmem>>, vector<16x128xf32>
      %c0_223 = arith.constant 0 : index
      %c0_224 = arith.constant 0 : index
      %278 = vector.load %arg71[%c0_223, %c0_224] : memref<16x128xf32, #tpu.memory_space<vmem>>, vector<16x128xf32>
      tpu.vector_store %arg71[%c0_223, %c0_224], %277 {strides = array<i32>} : memref<16x128xf32, #tpu.memory_space<vmem>>, vector<16x128xf32>,
    } else {
    }
    %c0_20 = arith.constant 0 : index
    %c0_21 = arith.constant 0 : index
    %13 = vector.load %arg71[%c0_20, %c0_21] : memref<16x128xf32, #tpu.memory_space<vmem>>, vector<16x128xf32>
    %cst = arith.constant dense<0.000000e+00> : vector<112x128xf32>
    %14 = tpu.matmul %8, %13, %cst {dimension_numbers = #tpu.dot_dimension_numbers<[1], [0], [0], [1], [0, 0, 1, 1], [], []>} : vector<112x16xf32>, vector<16x128xf32>, vector<112x128xf32> -> vector<112x128xf32>
    %15 = arith.mulf %14, %14 : vector<112x128xf32>
    %cst_22 = arith.constant dense<0.000000e+00> : vector<112xf32>
    %16 = vector.multi_reduction <add>, %15, %cst_22 [1] : vector<112x128xf32> to vector<112xf32>
    %17 = vector.shape_cast %16 : vector<112xf32> to vector<112x1xf32>
    %18 = math.sqrt %17 : vector<112x1xf32>
    %c0_23 = arith.constant 0 : index
    %c0_24 = arith.constant 0 : index
    %19 = vector.load %arg24[%c0_23, %c0_24] : memref<1x128xf32, #tpu.memory_space<vmem>>, vector<1x128xf32>
    %20 = vector.broadcast %18 : vector<112x1xf32> to vector<112x128xf32>
    %21 = vector.broadcast %19 : vector<1x128xf32> to vector<112x128xf32>
    %22 = arith.mulf %20, %21 : vector<112x128xf32>
    %c0_25 = arith.constant 0 : index
    %c0_26 = arith.constant 0 : index
    %23 = vector.load %arg19[%c0_25, %c0_26] : memref<1x128xf32, #tpu.memory_space<vmem>>, vector<1x128xf32>
    %24 = vector.broadcast %23 : vector<1x128xf32> to vector<112x128xf32>
    %25 = arith.addf %22, %24 : vector<112x128xf32>
    %cst_27 = arith.constant 0.000000e+00 : f32
    %26 = vector.broadcast %cst_27 : f32 to vector<112x128xf32>
    %27 = arith.maximumf %25, %26 : vector<112x128xf32>
    %c0_28 = arith.constant 0 : index
    %c0_29 = arith.constant 0 : index
    %28 = vector.load %arg21[%c0_28, %c0_29] : memref<128x128xbf16, #tpu.memory_space<vmem>>, vector<128x128xbf16>
    %c0_30 = arith.constant 0 : index
    %c0_31 = arith.constant 0 : index
    %29 = vector.load %arg20[%c0_30, %c0_31] : memref<1x128xf32, #tpu.memory_space<vmem>>, vector<1x128xf32>
    %30 = arith.truncf %27 : vector<112x128xf32> to vector<112x128xbf16>
    %cst_32 = arith.constant dense<0.000000e+00> : vector<112x128xf32>
    %31 = tpu.matmul %30, %28, %cst_32 {dimension_numbers = #tpu.dot_dimension_numbers<[1], [0], [0], [1], [0, 0, 1, 1], [], []>} : vector<112x128xbf16>, vector<128x128xbf16>, vector<112x128xf32> -> vector<112x128xf32>
    %32 = vector.broadcast %29 : vector<1x128xf32> to vector<112x128xf32>
    %33 = arith.addf %31, %32 : vector<112x128xf32>
    %cst_33 = arith.constant 0.000000e+00 : f32
    %34 = vector.broadcast %cst_33 : f32 to vector<112x128xf32>
    %35 = arith.maximumf %33, %34 : vector<112x128xf32>
    %c0_34 = arith.constant 0 : index
    %c0_35 = arith.constant 0 : index
    %36 = vector.load %arg23[%c0_34, %c0_35] : memref<128x128xbf16, #tpu.memory_space<vmem>>, vector<128x128xbf16>
    %c0_36 = arith.constant 0 : index
    %c0_37 = arith.constant 0 : index
    %37 = vector.load %arg22[%c0_36, %c0_37] : memref<1x128xf32, #tpu.memory_space<vmem>>, vector<1x128xf32>
    %38 = arith.truncf %35 : vector<112x128xf32> to vector<112x128xbf16>
    %cst_38 = arith.constant dense<0.000000e+00> : vector<112x128xf32>
    %39 = tpu.matmul %38, %36, %cst_38 {dimension_numbers = #tpu.dot_dimension_numbers<[1], [0], [0], [1], [0, 0, 1, 1], [], []>} : vector<112x128xbf16>, vector<128x128xbf16>, vector<112x128xf32> -> vector<112x128xf32>
    %40 = vector.broadcast %37 : vector<1x128xf32> to vector<112x128xf32>
    %41 = arith.addf %39, %40 : vector<112x128xf32>
    %cst_39 = arith.constant 0.000000e+00 : f32
    %42 = vector.broadcast %cst_39 : f32 to vector<112x128xf32>
    %43 = arith.maximumf %41, %42 : vector<112x128xf32>
    %c0_40 = arith.constant 0 : index
    %c0_41 = arith.constant 0 : index
    %44 = vector.load %arg36[%c0_40, %c0_41] : memref<112x128xbf16, #tpu.memory_space<vmem>>, vector<112x128xbf16>
    %45 = arith.extf %44 : vector<112x128xbf16> to vector<112x128xf32>
    %46 = vector.broadcast %18 : vector<112x1xf32> to vector<112x128xf32>
    %47 = arith.mulf %46, %45 : vector<112x128xf32>
    %48 = arith.truncf %47 : vector<112x128xf32> to vector<112x128xbf16>
    %cst_42 = arith.constant dense<0.000000e+00> : vector<16x128xf32>
    %49 = tpu.matmul %4, %48, %cst_42 {dimension_numbers = #tpu.dot_dimension_numbers<[1], [0], [0], [1], [0, 0, 1, 1], [], []>} : vector<16x112xbf16>, vector<112x128xbf16>, vector<16x128xf32> -> vector<16x128xf32>
    %c0_43 = arith.constant 0 : index
    %c0_44 = arith.constant 0 : index
    %50 = vector.load %arg31[%c0_43, %c0_44] : memref<1x128xf32, #tpu.memory_space<vmem>>, vector<1x128xf32>
    %51 = vector.broadcast %50 : vector<1x128xf32> to vector<16x128xf32>
    %52 = arith.addf %49, %51 : vector<16x128xf32>
    %cst_45 = arith.constant 0.000000e+00 : f32
    %53 = vector.broadcast %cst_45 : f32 to vector<16x128xf32>
    %54 = arith.maximumf %52, %53 : vector<16x128xf32>
    %c0_46 = arith.constant 0 : index
    %c0_47 = arith.constant 0 : index
    %55 = vector.load %arg33[%c0_46, %c0_47] : memref<128x128xbf16, #tpu.memory_space<vmem>>, vector<128x128xbf16>
    %c0_48 = arith.constant 0 : index
    %c0_49 = arith.constant 0 : index
    %56 = vector.load %arg32[%c0_48, %c0_49] : memref<1x128xf32, #tpu.memory_space<vmem>>, vector<1x128xf32>
    %57 = arith.truncf %54 : vector<16x128xf32> to vector<16x128xbf16>
    %cst_50 = arith.constant dense<0.000000e+00> : vector<16x128xf32>
    %58 = tpu.matmul %57, %55, %cst_50 {dimension_numbers = #tpu.dot_dimension_numbers<[1], [0], [0], [1], [0, 0, 1, 1], [], []>} : vector<16x128xbf16>, vector<128x128xbf16>, vector<16x128xf32> -> vector<16x128xf32>
    %59 = vector.broadcast %56 : vector<1x128xf32> to vector<16x128xf32>
    %60 = arith.addf %58, %59 : vector<16x128xf32>
    %cst_51 = arith.constant 0.000000e+00 : f32
    %61 = vector.broadcast %cst_51 : f32 to vector<16x128xf32>
    %62 = arith.maximumf %60, %61 : vector<16x128xf32>
    %c0_52 = arith.constant 0 : index
    %c0_53 = arith.constant 0 : index
    %63 = vector.load %arg35[%c0_52, %c0_53] : memref<128x128xbf16, #tpu.memory_space<vmem>>, vector<128x128xbf16>
    %c0_54 = arith.constant 0 : index
    %c0_55 = arith.constant 0 : index
    %64 = vector.load %arg34[%c0_54, %c0_55] : memref<1x128xf32, #tpu.memory_space<vmem>>, vector<1x128xf32>
    %65 = arith.truncf %62 : vector<16x128xf32> to vector<16x128xbf16>
    %cst_56 = arith.constant dense<0.000000e+00> : vector<16x128xf32>
    %66 = tpu.matmul %65, %63, %cst_56 {dimension_numbers = #tpu.dot_dimension_numbers<[1], [0], [0], [1], [0, 0, 1, 1], [], []>} : vector<16x128xbf16>, vector<128x128xbf16>, vector<16x128xf32> -> vector<16x128xf32>
    %67 = vector.broadcast %64 : vector<1x128xf32> to vector<16x128xf32>
    %68 = arith.addf %66, %67 : vector<16x128xf32>
    %cst_57 = arith.constant 0.000000e+00 : f32
    %69 = vector.broadcast %cst_57 : f32 to vector<16x128xf32>
    %70 = arith.maximumf %68, %69 : vector<16x128xf32>
    %c0_58 = arith.constant 0 : index
    %c0_59 = arith.constant 0 : index
    %71 = vector.load %arg30[%c0_58, %c0_59] : memref<112x128xbf16, #tpu.memory_space<vmem>>, vector<112x128xbf16>
    %72 = arith.extf %71 : vector<112x128xbf16> to vector<112x128xf32>
    %73 = vector.broadcast %18 : vector<112x1xf32> to vector<112x128xf32>
    %74 = arith.mulf %73, %72 : vector<112x128xf32>
    %75 = arith.truncf %74 : vector<112x128xf32> to vector<112x128xbf16>
    %cst_60 = arith.constant dense<0.000000e+00> : vector<8x128xf32>
    %76 = tpu.matmul %7, %75, %cst_60 {dimension_numbers = #tpu.dot_dimension_numbers<[1], [0], [0], [1], [0, 0, 1, 1], [], []>} : vector<8x112xbf16>, vector<112x128xbf16>, vector<8x128xf32> -> vector<8x128xf32>
    %c0_61 = arith.constant 0 : index
    %c0_62 = arith.constant 0 : index
    %77 = vector.load %arg25[%c0_61, %c0_62] : memref<1x128xf32, #tpu.memory_space<vmem>>, vector<1x128xf32>
    %78 = vector.broadcast %77 : vector<1x128xf32> to vector<8x128xf32>
    %79 = arith.addf %76, %78 : vector<8x128xf32>
    %cst_63 = arith.constant 0.000000e+00 : f32
    %80 = vector.broadcast %cst_63 : f32 to vector<8x128xf32>
    %81 = arith.maximumf %79, %80 : vector<8x128xf32>
    %c0_64 = arith.constant 0 : index
    %c0_65 = arith.constant 0 : index
    %82 = vector.load %arg27[%c0_64, %c0_65] : memref<128x128xbf16, #tpu.memory_space<vmem>>, vector<128x128xbf16>
    %c0_66 = arith.constant 0 : index
    %c0_67 = arith.constant 0 : index
    %83 = vector.load %arg26[%c0_66, %c0_67] : memref<1x128xf32, #tpu.memory_space<vmem>>, vector<1x128xf32>
    %84 = arith.truncf %81 : vector<8x128xf32> to vector<8x128xbf16>
    %cst_68 = arith.constant dense<0.000000e+00> : vector<8x128xf32>
    %85 = tpu.matmul %84, %82, %cst_68 {dimension_numbers = #tpu.dot_dimension_numbers<[1], [0], [0], [1], [0, 0, 1, 1], [], []>} : vector<8x128xbf16>, vector<128x128xbf16>, vector<8x128xf32> -> vector<8x128xf32>
    %86 = vector.broadcast %83 : vector<1x128xf32> to vector<8x128xf32>
    %87 = arith.addf %85, %86 : vector<8x128xf32>
    %cst_69 = arith.constant 0.000000e+00 : f32
    %88 = vector.broadcast %cst_69 : f32 to vector<8x128xf32>
    %89 = arith.maximumf %87, %88 : vector<8x128xf32>
    %c0_70 = arith.constant 0 : index
    %c0_71 = arith.constant 0 : index
    %90 = vector.load %arg29[%c0_70, %c0_71] : memref<128x128xbf16, #tpu.memory_space<vmem>>, vector<128x128xbf16>
    %c0_72 = arith.constant 0 : index
    %c0_73 = arith.constant 0 : index
    %91 = vector.load %arg28[%c0_72, %c0_73] : memref<1x128xf32, #tpu.memory_space<vmem>>, vector<1x128xf32>
    %92 = arith.truncf %89 : vector<8x128xf32> to vector<8x128xbf16>
    %cst_74 = arith.constant dense<0.000000e+00> : vector<8x128xf32>
    %93 = tpu.matmul %92, %90, %cst_74 {dimension_numbers = #tpu.dot_dimension_numbers<[1], [0], [0], [1], [0, 0, 1, 1], [], []>} : vector<8x128xbf16>, vector<128x128xbf16>, vector<8x128xf32> -> vector<8x128xf32>
    %94 = vector.broadcast %91 : vector<1x128xf32> to vector<8x128xf32>
    %95 = arith.addf %93, %94 : vector<8x128xf32>
    %cst_75 = arith.constant 0.000000e+00 : f32
    %96 = vector.broadcast %cst_75 : f32 to vector<8x128xf32>
    %97 = arith.maximumf %95, %96 : vector<8x128xf32>
    %c0_i32_76 = arith.constant 0 : i32
    %98 = arith.cmpi eq, %arg0, %c0_i32_76 : i32
    %99 = arith.extui %98 : i1 to i32
    %c0_i32_77 = arith.constant 0 : i32
    %100 = arith.cmpi ne, %99, %c0_i32_77 : i32
    scf.if %100 {
      %c0_221 = arith.constant 0 : index
      %c0_222 = arith.constant 0 : index
      %277 = vector.load %arg68[%c0_221, %c0_222] : memref<16x128xf32, #tpu.memory_space<vmem>>, vector<16x128xf32>
      tpu.vector_store %arg68[%c0_221, %c0_222], %70 {strides = array<i32>} : memref<16x128xf32, #tpu.memory_space<vmem>>, vector<16x128xf32>,
      %c0_223 = arith.constant 0 : index
      %c0_224 = arith.constant 0 : index
      %278 = vector.load %arg69[%c0_223, %c0_224] : memref<112x128xf32, #tpu.memory_space<vmem>>, vector<112x128xf32>
      tpu.vector_store %arg69[%c0_223, %c0_224], %43 {strides = array<i32>} : memref<112x128xf32, #tpu.memory_space<vmem>>, vector<112x128xf32>,
      %c0_225 = arith.constant 0 : index
      %c0_226 = arith.constant 0 : index
      %279 = vector.load %arg70[%c0_225, %c0_226] : memref<8x128xf32, #tpu.memory_space<vmem>>, vector<8x128xf32>
      tpu.vector_store %arg70[%c0_225, %c0_226], %97 {strides = array<i32>} : memref<8x128xf32, #tpu.memory_space<vmem>>, vector<8x128xf32>,
    } else {
    }
    %c0_78 = arith.constant 0 : index
    %c0_79 = arith.constant 0 : index
    %101 = vector.load %arg68[%c0_78, %c0_79] : memref<16x128xf32, #tpu.memory_space<vmem>>, vector<16x128xf32>
    %102 = arith.addf %101, %70 : vector<16x128xf32>
    %c0_80 = arith.constant 0 : index
    %c0_81 = arith.constant 0 : index
    %103 = vector.load %arg69[%c0_80, %c0_81] : memref<112x128xf32, #tpu.memory_space<vmem>>, vector<112x128xf32>
    %104 = arith.addf %103, %43 : vector<112x128xf32>
    %c0_82 = arith.constant 0 : index
    %c0_83 = arith.constant 0 : index
    %105 = vector.load %arg70[%c0_82, %c0_83] : memref<8x128xf32, #tpu.memory_space<vmem>>, vector<8x128xf32>
    %106 = arith.addf %105, %97 : vector<8x128xf32>
    %107 = arith.truncf %102 : vector<16x128xf32> to vector<16x128xbf16>
    %108 = arith.truncf %104 : vector<112x128xf32> to vector<112x128xbf16>
    %109 = arith.truncf %106 : vector<8x128xf32> to vector<8x128xbf16>
    %c0_84 = arith.constant 0 : index
    %c0_85 = arith.constant 0 : index
    %c0_86 = arith.constant 0 : index
    %110 = vector.load %arg42[%c0_84, %c0_85, %c0_86] : memref<1x128x128xbf16, #tpu.memory_space<vmem>>, vector<1x128x128xbf16>
    %111 = vector.shape_cast %110 : vector<1x128x128xbf16> to vector<128x128xbf16>
    %c0_87 = arith.constant 0 : index
    %c0_88 = arith.constant 0 : index
    %c0_89 = arith.constant 0 : index
    %112 = vector.load %arg43[%c0_87, %c0_88, %c0_89] : memref<1x128x128xbf16, #tpu.memory_space<vmem>>, vector<1x128x128xbf16>
    %113 = vector.shape_cast %112 : vector<1x128x128xbf16> to vector<128x128xbf16>
    %c0_90 = arith.constant 0 : index
    %c0_91 = arith.constant 0 : index
    %c0_92 = arith.constant 0 : index
    %114 = vector.load %arg44[%c0_90, %c0_91, %c0_92] : memref<1x128x128xbf16, #tpu.memory_space<vmem>>, vector<1x128x128xbf16>
    %115 = vector.shape_cast %114 : vector<1x128x128xbf16> to vector<128x128xbf16>
    %c0_93 = arith.constant 0 : index
    %c0_94 = arith.constant 0 : index
    %c0_95 = arith.constant 0 : index
    %116 = vector.load %arg45[%c0_93, %c0_94, %c0_95] : memref<1x128x128xbf16, #tpu.memory_space<vmem>>, vector<1x128x128xbf16>
    %117 = vector.shape_cast %116 : vector<1x128x128xbf16> to vector<128x128xbf16>
    %cst_96 = arith.constant dense<0.000000e+00> : vector<16x128xf32>
    %118 = tpu.matmul %107, %113, %cst_96 {dimension_numbers = #tpu.dot_dimension_numbers<[1], [0], [0], [1], [0, 0, 1, 1], [], []>} : vector<16x128xbf16>, vector<128x128xbf16>, vector<16x128xf32> -> vector<16x128xf32>
    %119 = arith.truncf %118 : vector<16x128xf32> to vector<16x128xbf16>
    %cst_97 = arith.constant dense<0.000000e+00> : vector<16x128xf32>
    %120 = tpu.matmul %107, %115, %cst_97 {dimension_numbers = #tpu.dot_dimension_numbers<[1], [0], [0], [1], [0, 0, 1, 1], [], []>} : vector<16x128xbf16>, vector<128x128xbf16>, vector<16x128xf32> -> vector<16x128xf32>
    %121 = arith.truncf %120 : vector<16x128xf32> to vector<16x128xbf16>
    %cst_98 = arith.constant dense<0.000000e+00> : vector<8x128xf32>
    %122 = tpu.matmul %109, %117, %cst_98 {dimension_numbers = #tpu.dot_dimension_numbers<[1], [0], [0], [1], [0, 0, 1, 1], [], []>} : vector<8x128xbf16>, vector<128x128xbf16>, vector<8x128xf32> -> vector<8x128xf32>
    %123 = arith.truncf %122 : vector<8x128xf32> to vector<8x128xbf16>
    %cst_99 = arith.constant dense<0.000000e+00> : vector<112x128xf32>
    %124 = tpu.matmul %108, %111, %cst_99 {dimension_numbers = #tpu.dot_dimension_numbers<[1], [0], [0], [1], [0, 0, 1, 1], [], []>} : vector<112x128xbf16>, vector<128x128xbf16>, vector<112x128xf32> -> vector<112x128xf32>
    %cst_100 = arith.constant dense<0.000000e+00> : vector<112x128xf32>
    %125 = tpu.matmul %0, %119, %cst_100 {dimension_numbers = #tpu.dot_dimension_numbers<[1], [0], [0], [1], [0, 0, 1, 1], [], []>} : vector<112x16xbf16>, vector<16x128xbf16>, vector<112x128xf32> -> vector<112x128xf32>
    %126 = arith.addf %124, %125 : vector<112x128xf32>
    %cst_101 = arith.constant dense<0.000000e+00> : vector<112x128xf32>
    %127 = tpu.matmul %1, %121, %cst_101 {dimension_numbers = #tpu.dot_dimension_numbers<[1], [0], [0], [1], [0, 0, 1, 1], [], []>} : vector<112x16xbf16>, vector<16x128xbf16>, vector<112x128xf32> -> vector<112x128xf32>
    %128 = arith.addf %126, %127 : vector<112x128xf32>
    %cst_102 = arith.constant dense<0.000000e+00> : vector<112x128xf32>
    %129 = tpu.matmul %2, %123, %cst_102 {dimension_numbers = #tpu.dot_dimension_numbers<[1], [0], [0], [1], [0, 0, 1, 1], [], []>} : vector<112x8xbf16>, vector<8x128xbf16>, vector<112x128xf32> -> vector<112x128xf32>
    %130 = arith.addf %128, %129 : vector<112x128xf32>
    %c0_103 = arith.constant 0 : index
    %c0_104 = arith.constant 0 : index
    %c0_105 = arith.constant 0 : index
    %131 = vector.load %arg37[%c0_103, %c0_104, %c0_105] : memref<1x1x128xf32, #tpu.memory_space<vmem>>, vector<1x1x128xf32>
    %132 = vector.shape_cast %131 : vector<1x1x128xf32> to vector<1x128xf32>
    %133 = vector.broadcast %132 : vector<1x128xf32> to vector<112x128xf32>
    %134 = arith.addf %130, %133 : vector<112x128xf32>
    %cst_106 = arith.constant 0.000000e+00 : f32
    %135 = vector.broadcast %cst_106 : f32 to vector<112x128xf32>
    %136 = arith.maximumf %134, %135 : vector<112x128xf32>
    %c0_107 = arith.constant 0 : index
    %c0_108 = arith.constant 0 : index
    %c0_109 = arith.constant 0 : index
    %137 = vector.load %arg39[%c0_107, %c0_108, %c0_109] : memref<1x128x128xbf16, #tpu.memory_space<vmem>>, vector<1x128x128xbf16>
    %138 = vector.shape_cast %137 : vector<1x128x128xbf16> to vector<128x128xbf16>
    %c0_110 = arith.constant 0 : index
    %c0_111 = arith.constant 0 : index
    %c0_112 = arith.constant 0 : index
    %139 = vector.load %arg38[%c0_110, %c0_111, %c0_112] : memref<1x1x128xf32, #tpu.memory_space<vmem>>, vector<1x1x128xf32>
    %140 = vector.shape_cast %139 : vector<1x1x128xf32> to vector<1x128xf32>
    %141 = arith.truncf %136 : vector<112x128xf32> to vector<112x128xbf16>
    %cst_113 = arith.constant dense<0.000000e+00> : vector<112x128xf32>
    %142 = tpu.matmul %141, %138, %cst_113 {dimension_numbers = #tpu.dot_dimension_numbers<[1], [0], [0], [1], [0, 0, 1, 1], [], []>} : vector<112x128xbf16>, vector<128x128xbf16>, vector<112x128xf32> -> vector<112x128xf32>
    %143 = vector.broadcast %140 : vector<1x128xf32> to vector<112x128xf32>
    %144 = arith.addf %142, %143 : vector<112x128xf32>
    %cst_114 = arith.constant 0.000000e+00 : f32
    %145 = vector.broadcast %cst_114 : f32 to vector<112x128xf32>
    %146 = arith.maximumf %144, %145 : vector<112x128xf32>
    %c0_115 = arith.constant 0 : index
    %c0_116 = arith.constant 0 : index
    %c0_117 = arith.constant 0 : index
    %147 = vector.load %arg41[%c0_115, %c0_116, %c0_117] : memref<1x128x128xbf16, #tpu.memory_space<vmem>>, vector<1x128x128xbf16>
    %148 = vector.shape_cast %147 : vector<1x128x128xbf16> to vector<128x128xbf16>
    %c0_118 = arith.constant 0 : index
    %c0_119 = arith.constant 0 : index
    %c0_120 = arith.constant 0 : index
    %149 = vector.load %arg40[%c0_118, %c0_119, %c0_120] : memref<1x1x128xf32, #tpu.memory_space<vmem>>, vector<1x1x128xf32>
    %150 = vector.shape_cast %149 : vector<1x1x128xf32> to vector<1x128xf32>
    %151 = arith.truncf %146 : vector<112x128xf32> to vector<112x128xbf16>
    %cst_121 = arith.constant dense<0.000000e+00> : vector<112x128xf32>
    %152 = tpu.matmul %151, %148, %cst_121 {dimension_numbers = #tpu.dot_dimension_numbers<[1], [0], [0], [1], [0, 0, 1, 1], [], []>} : vector<112x128xbf16>, vector<128x128xbf16>, vector<112x128xf32> -> vector<112x128xf32>
    %153 = vector.broadcast %150 : vector<1x128xf32> to vector<112x128xf32>
    %154 = arith.addf %152, %153 : vector<112x128xf32>
    %cst_122 = arith.constant 0.000000e+00 : f32
    %155 = vector.broadcast %cst_122 : f32 to vector<112x128xf32>
    %156 = arith.maximumf %154, %155 : vector<112x128xf32>
    %157 = arith.truncf %156 : vector<112x128xf32> to vector<112x128xbf16>
    %c0_123 = arith.constant 0 : index
    %c0_124 = arith.constant 0 : index
    %c0_125 = arith.constant 0 : index
    %158 = vector.load %arg59[%c0_123, %c0_124, %c0_125] : memref<1x128x128xbf16, #tpu.memory_space<vmem>>, vector<1x128x128xbf16>
    %159 = vector.shape_cast %158 : vector<1x128x128xbf16> to vector<128x128xbf16>
    %c0_126 = arith.constant 0 : index
    %c0_127 = arith.constant 0 : index
    %c0_128 = arith.constant 0 : index
    %160 = vector.load %arg60[%c0_126, %c0_127, %c0_128] : memref<1x128x128xbf16, #tpu.memory_space<vmem>>, vector<1x128x128xbf16>
    %161 = vector.shape_cast %160 : vector<1x128x128xbf16> to vector<128x128xbf16>
    %c0_129 = arith.constant 0 : index
    %c0_130 = arith.constant 0 : index
    %c0_131 = arith.constant 0 : index
    %162 = vector.load %arg61[%c0_129, %c0_130, %c0_131] : memref<1x128x128xbf16, #tpu.memory_space<vmem>>, vector<1x128x128xbf16>
    %163 = vector.shape_cast %162 : vector<1x128x128xbf16> to vector<128x128xbf16>
    %c0_132 = arith.constant 0 : index
    %c0_133 = arith.constant 0 : index
    %c0_134 = arith.constant 0 : index
    %164 = vector.load %arg62[%c0_132, %c0_133, %c0_134] : memref<1x128x128xbf16, #tpu.memory_space<vmem>>, vector<1x128x128xbf16>
    %165 = vector.shape_cast %164 : vector<1x128x128xbf16> to vector<128x128xbf16>
    %cst_135 = arith.constant dense<0.000000e+00> : vector<16x128xf32>
    %166 = tpu.matmul %4, %157, %cst_135 {dimension_numbers = #tpu.dot_dimension_numbers<[1], [0], [0], [1], [0, 0, 1, 1], [], []>} : vector<16x112xbf16>, vector<112x128xbf16>, vector<16x128xf32> -> vector<16x128xf32>
    %167 = arith.truncf %166 : vector<16x128xf32> to vector<16x128xbf16>
    %cst_136 = arith.constant dense<0.000000e+00> : vector<16x128xf32>
    %168 = tpu.matmul %5, %157, %cst_136 {dimension_numbers = #tpu.dot_dimension_numbers<[1], [0], [0], [1], [0, 0, 1, 1], [], []>} : vector<16x112xbf16>, vector<112x128xbf16>, vector<16x128xf32> -> vector<16x128xf32>
    %169 = arith.truncf %168 : vector<16x128xf32> to vector<16x128xbf16>
    %cst_137 = arith.constant dense<0.000000e+00> : vector<8x128xf32>
    %170 = tpu.matmul %109, %165, %cst_137 {dimension_numbers = #tpu.dot_dimension_numbers<[1], [0], [0], [1], [0, 0, 1, 1], [], []>} : vector<8x128xbf16>, vector<128x128xbf16>, vector<8x128xf32> -> vector<8x128xf32>
    %171 = arith.truncf %170 : vector<8x128xf32> to vector<8x128xbf16>
    %cst_138 = arith.constant dense<0.000000e+00> : vector<16x128xf32>
    %172 = tpu.matmul %107, %159, %cst_138 {dimension_numbers = #tpu.dot_dimension_numbers<[1], [0], [0], [1], [0, 0, 1, 1], [], []>} : vector<16x128xbf16>, vector<128x128xbf16>, vector<16x128xf32> -> vector<16x128xf32>
    %cst_139 = arith.constant dense<0.000000e+00> : vector<16x128xf32>
    %173 = tpu.matmul %167, %161, %cst_139 {dimension_numbers = #tpu.dot_dimension_numbers<[1], [0], [0], [1], [0, 0, 1, 1], [], []>} : vector<16x128xbf16>, vector<128x128xbf16>, vector<16x128xf32> -> vector<16x128xf32>
    %174 = arith.addf %172, %173 : vector<16x128xf32>
    %cst_140 = arith.constant dense<0.000000e+00> : vector<16x128xf32>
    %175 = tpu.matmul %169, %163, %cst_140 {dimension_numbers = #tpu.dot_dimension_numbers<[1], [0], [0], [1], [0, 0, 1, 1], [], []>} : vector<16x128xbf16>, vector<128x128xbf16>, vector<16x128xf32> -> vector<16x128xf32>
    %176 = arith.addf %174, %175 : vector<16x128xf32>
    %cst_141 = arith.constant dense<0.000000e+00> : vector<16x128xf32>
    %177 = tpu.matmul %3, %171, %cst_141 {dimension_numbers = #tpu.dot_dimension_numbers<[1], [0], [0], [1], [0, 0, 1, 1], [], []>} : vector<16x8xbf16>, vector<8x128xbf16>, vector<16x128xf32> -> vector<16x128xf32>
    %178 = arith.addf %176, %177 : vector<16x128xf32>
    %c0_142 = arith.constant 0 : index
    %c0_143 = arith.constant 0 : index
    %c0_144 = arith.constant 0 : index
    %179 = vector.load %arg54[%c0_142, %c0_143, %c0_144] : memref<1x1x128xf32, #tpu.memory_space<vmem>>, vector<1x1x128xf32>
    %180 = vector.shape_cast %179 : vector<1x1x128xf32> to vector<1x128xf32>
    %181 = vector.broadcast %180 : vector<1x128xf32> to vector<16x128xf32>
    %182 = arith.addf %178, %181 : vector<16x128xf32>
    %cst_145 = arith.constant 0.000000e+00 : f32
    %183 = vector.broadcast %cst_145 : f32 to vector<16x128xf32>
    %184 = arith.maximumf %182, %183 : vector<16x128xf32>
    %c0_146 = arith.constant 0 : index
    %c0_147 = arith.constant 0 : index
    %c0_148 = arith.constant 0 : index
    %185 = vector.load %arg56[%c0_146, %c0_147, %c0_148] : memref<1x128x128xbf16, #tpu.memory_space<vmem>>, vector<1x128x128xbf16>
    %186 = vector.shape_cast %185 : vector<1x128x128xbf16> to vector<128x128xbf16>
    %c0_149 = arith.constant 0 : index
    %c0_150 = arith.constant 0 : index
    %c0_151 = arith.constant 0 : index
    %187 = vector.load %arg55[%c0_149, %c0_150, %c0_151] : memref<1x1x128xf32, #tpu.memory_space<vmem>>, vector<1x1x128xf32>
    %188 = vector.shape_cast %187 : vector<1x1x128xf32> to vector<1x128xf32>
    %189 = arith.truncf %184 : vector<16x128xf32> to vector<16x128xbf16>
    %cst_152 = arith.constant dense<0.000000e+00> : vector<16x128xf32>
    %190 = tpu.matmul %189, %186, %cst_152 {dimension_numbers = #tpu.dot_dimension_numbers<[1], [0], [0], [1], [0, 0, 1, 1], [], []>} : vector<16x128xbf16>, vector<128x128xbf16>, vector<16x128xf32> -> vector<16x128xf32>
    %191 = vector.broadcast %188 : vector<1x128xf32> to vector<16x128xf32>
    %192 = arith.addf %190, %191 : vector<16x128xf32>
    %cst_153 = arith.constant 0.000000e+00 : f32
    %193 = vector.broadcast %cst_153 : f32 to vector<16x128xf32>
    %194 = arith.maximumf %192, %193 : vector<16x128xf32>
    %c0_154 = arith.constant 0 : index
    %c0_155 = arith.constant 0 : index
    %c0_156 = arith.constant 0 : index
    %195 = vector.load %arg58[%c0_154, %c0_155, %c0_156] : memref<1x128x128xbf16, #tpu.memory_space<vmem>>, vector<1x128x128xbf16>
    %196 = vector.shape_cast %195 : vector<1x128x128xbf16> to vector<128x128xbf16>
    %c0_157 = arith.constant 0 : index
    %c0_158 = arith.constant 0 : index
    %c0_159 = arith.constant 0 : index
    %197 = vector.load %arg57[%c0_157, %c0_158, %c0_159] : memref<1x1x128xf32, #tpu.memory_space<vmem>>, vector<1x1x128xf32>
    %198 = vector.shape_cast %197 : vector<1x1x128xf32> to vector<1x128xf32>
    %199 = arith.truncf %194 : vector<16x128xf32> to vector<16x128xbf16>
    %cst_160 = arith.constant dense<0.000000e+00> : vector<16x128xf32>
    %200 = tpu.matmul %199, %196, %cst_160 {dimension_numbers = #tpu.dot_dimension_numbers<[1], [0], [0], [1], [0, 0, 1, 1], [], []>} : vector<16x128xbf16>, vector<128x128xbf16>, vector<16x128xf32> -> vector<16x128xf32>
    %201 = vector.broadcast %198 : vector<1x128xf32> to vector<16x128xf32>
    %202 = arith.addf %200, %201 : vector<16x128xf32>
    %cst_161 = arith.constant 0.000000e+00 : f32
    %203 = vector.broadcast %cst_161 : f32 to vector<16x128xf32>
    %204 = arith.maximumf %202, %203 : vector<16x128xf32>
    %205 = arith.truncf %204 : vector<16x128xf32> to vector<16x128xbf16>
    %c0_162 = arith.constant 0 : index
    %c0_163 = arith.constant 0 : index
    %c0_164 = arith.constant 0 : index
    %206 = vector.load %arg51[%c0_162, %c0_163, %c0_164] : memref<1x128x128xbf16, #tpu.memory_space<vmem>>, vector<1x128x128xbf16>
    %207 = vector.shape_cast %206 : vector<1x128x128xbf16> to vector<128x128xbf16>
    %c0_165 = arith.constant 0 : index
    %c0_166 = arith.constant 0 : index
    %c0_167 = arith.constant 0 : index
    %208 = vector.load %arg52[%c0_165, %c0_166, %c0_167] : memref<1x128x128xbf16, #tpu.memory_space<vmem>>, vector<1x128x128xbf16>
    %209 = vector.shape_cast %208 : vector<1x128x128xbf16> to vector<128x128xbf16>
    %c0_168 = arith.constant 0 : index
    %c0_169 = arith.constant 0 : index
    %c0_170 = arith.constant 0 : index
    %210 = vector.load %arg53[%c0_168, %c0_169, %c0_170] : memref<1x128x128xbf16, #tpu.memory_space<vmem>>, vector<1x128x128xbf16>
    %211 = vector.shape_cast %210 : vector<1x128x128xbf16> to vector<128x128xbf16>
    %cst_171 = arith.constant dense<0.000000e+00> : vector<8x128xf32>
    %212 = tpu.matmul %6, %205, %cst_171 {dimension_numbers = #tpu.dot_dimension_numbers<[1], [0], [0], [1], [0, 0, 1, 1], [], []>} : vector<8x16xbf16>, vector<16x128xbf16>, vector<8x128xf32> -> vector<8x128xf32>
    %213 = arith.truncf %212 : vector<8x128xf32> to vector<8x128xbf16>
    %cst_172 = arith.constant dense<0.000000e+00> : vector<8x128xf32>
    %214 = tpu.matmul %7, %157, %cst_172 {dimension_numbers = #tpu.dot_dimension_numbers<[1], [0], [0], [1], [0, 0, 1, 1], [], []>} : vector<8x112xbf16>, vector<112x128xbf16>, vector<8x128xf32> -> vector<8x128xf32>
    %215 = arith.truncf %214 : vector<8x128xf32> to vector<8x128xbf16>
    %cst_173 = arith.constant dense<0.000000e+00> : vector<8x128xf32>
    %216 = tpu.matmul %109, %207, %cst_173 {dimension_numbers = #tpu.dot_dimension_numbers<[1], [0], [0], [1], [0, 0, 1, 1], [], []>} : vector<8x128xbf16>, vector<128x128xbf16>, vector<8x128xf32> -> vector<8x128xf32>
    %cst_174 = arith.constant dense<0.000000e+00> : vector<8x128xf32>
    %217 = tpu.matmul %213, %209, %cst_174 {dimension_numbers = #tpu.dot_dimension_numbers<[1], [0], [0], [1], [0, 0, 1, 1], [], []>} : vector<8x128xbf16>, vector<128x128xbf16>, vector<8x128xf32> -> vector<8x128xf32>
    %218 = arith.addf %216, %217 : vector<8x128xf32>
    %cst_175 = arith.constant dense<0.000000e+00> : vector<8x128xf32>
    %219 = tpu.matmul %215, %211, %cst_175 {dimension_numbers = #tpu.dot_dimension_numbers<[1], [0], [0], [1], [0, 0, 1, 1], [], []>} : vector<8x128xbf16>, vector<128x128xbf16>, vector<8x128xf32> -> vector<8x128xf32>
    %220 = arith.addf %218, %219 : vector<8x128xf32>
    %c0_176 = arith.constant 0 : index
    %c0_177 = arith.constant 0 : index
    %c0_178 = arith.constant 0 : index
    %221 = vector.load %arg46[%c0_176, %c0_177, %c0_178] : memref<1x1x128xf32, #tpu.memory_space<vmem>>, vector<1x1x128xf32>
    %222 = vector.shape_cast %221 : vector<1x1x128xf32> to vector<1x128xf32>
    %223 = vector.broadcast %222 : vector<1x128xf32> to vector<8x128xf32>
    %224 = arith.addf %220, %223 : vector<8x128xf32>
    %cst_179 = arith.constant 0.000000e+00 : f32
    %225 = vector.broadcast %cst_179 : f32 to vector<8x128xf32>
    %226 = arith.maximumf %224, %225 : vector<8x128xf32>
    %c0_180 = arith.constant 0 : index
    %c0_181 = arith.constant 0 : index
    %c0_182 = arith.constant 0 : index
    %227 = vector.load %arg48[%c0_180, %c0_181, %c0_182] : memref<1x128x128xbf16, #tpu.memory_space<vmem>>, vector<1x128x128xbf16>
    %228 = vector.shape_cast %227 : vector<1x128x128xbf16> to vector<128x128xbf16>
    %c0_183 = arith.constant 0 : index
    %c0_184 = arith.constant 0 : index
    %c0_185 = arith.constant 0 : index
    %229 = vector.load %arg47[%c0_183, %c0_184, %c0_185] : memref<1x1x128xf32, #tpu.memory_space<vmem>>, vector<1x1x128xf32>
    %230 = vector.shape_cast %229 : vector<1x1x128xf32> to vector<1x128xf32>
    %231 = arith.truncf %226 : vector<8x128xf32> to vector<8x128xbf16>
    %cst_186 = arith.constant dense<0.000000e+00> : vector<8x128xf32>
    %232 = tpu.matmul %231, %228, %cst_186 {dimension_numbers = #tpu.dot_dimension_numbers<[1], [0], [0], [1], [0, 0, 1, 1], [], []>} : vector<8x128xbf16>, vector<128x128xbf16>, vector<8x128xf32> -> vector<8x128xf32>
    %233 = vector.broadcast %230 : vector<1x128xf32> to vector<8x128xf32>
    %234 = arith.addf %232, %233 : vector<8x128xf32>
    %cst_187 = arith.constant 0.000000e+00 : f32
    %235 = vector.broadcast %cst_187 : f32 to vector<8x128xf32>
    %236 = arith.maximumf %234, %235 : vector<8x128xf32>
    %c0_188 = arith.constant 0 : index
    %c0_189 = arith.constant 0 : index
    %c0_190 = arith.constant 0 : index
    %237 = vector.load %arg50[%c0_188, %c0_189, %c0_190] : memref<1x128x128xbf16, #tpu.memory_space<vmem>>, vector<1x128x128xbf16>
    %238 = vector.shape_cast %237 : vector<1x128x128xbf16> to vector<128x128xbf16>
    %c0_191 = arith.constant 0 : index
    %c0_192 = arith.constant 0 : index
    %c0_193 = arith.constant 0 : index
    %239 = vector.load %arg49[%c0_191, %c0_192, %c0_193] : memref<1x1x128xf32, #tpu.memory_space<vmem>>, vector<1x1x128xf32>
    %240 = vector.shape_cast %239 : vector<1x1x128xf32> to vector<1x128xf32>
    %241 = arith.truncf %236 : vector<8x128xf32> to vector<8x128xbf16>
    %cst_194 = arith.constant dense<0.000000e+00> : vector<8x128xf32>
    %242 = tpu.matmul %241, %238, %cst_194 {dimension_numbers = #tpu.dot_dimension_numbers<[1], [0], [0], [1], [0, 0, 1, 1], [], []>} : vector<8x128xbf16>, vector<128x128xbf16>, vector<8x128xf32> -> vector<8x128xf32>
    %243 = vector.broadcast %240 : vector<1x128xf32> to vector<8x128xf32>
    %244 = arith.addf %242, %243 : vector<8x128xf32>
    %cst_195 = arith.constant 0.000000e+00 : f32
    %245 = vector.broadcast %cst_195 : f32 to vector<8x128xf32>
    %246 = arith.maximumf %244, %245 : vector<8x128xf32>
    %247 = arith.addf %102, %204 : vector<16x128xf32>
    %248 = arith.addf %104, %156 : vector<112x128xf32>
    %249 = arith.addf %106, %246 : vector<8x128xf32>
    %c0_196 = arith.constant 0 : index
    %c0_197 = arith.constant 0 : index
    %250 = vector.load %arg68[%c0_196, %c0_197] : memref<16x128xf32, #tpu.memory_space<vmem>>, vector<16x128xf32>
    tpu.vector_store %arg68[%c0_196, %c0_197], %247 {strides = array<i32>} : memref<16x128xf32, #tpu.memory_space<vmem>>, vector<16x128xf32>,
    %c0_198 = arith.constant 0 : index
    %c0_199 = arith.constant 0 : index
    %251 = vector.load %arg69[%c0_198, %c0_199] : memref<112x128xf32, #tpu.memory_space<vmem>>, vector<112x128xf32>
    tpu.vector_store %arg69[%c0_198, %c0_199], %248 {strides = array<i32>} : memref<112x128xf32, #tpu.memory_space<vmem>>, vector<112x128xf32>,
    %c0_200 = arith.constant 0 : index
    %c0_201 = arith.constant 0 : index
    %252 = vector.load %arg70[%c0_200, %c0_201] : memref<8x128xf32, #tpu.memory_space<vmem>>, vector<8x128xf32>
    tpu.vector_store %arg70[%c0_200, %c0_201], %249 {strides = array<i32>} : memref<8x128xf32, #tpu.memory_space<vmem>>, vector<8x128xf32>,
    %253 = arith.truncf %247 : vector<16x128xf32> to vector<16x128xbf16>
    %c0_202 = arith.constant 0 : index
    %c0_203 = arith.constant 0 : index
    %c0_204 = arith.constant 0 : index
    %254 = vector.load %arg65[%c0_202, %c0_203, %c0_204] : memref<1x128x128xbf16, #tpu.memory_space<vmem>>, vector<1x128x128xbf16>
    %255 = vector.shape_cast %254 : vector<1x128x128xbf16> to vector<128x128xbf16>
    %cst_205 = arith.constant dense<0.000000e+00> : vector<16x128xf32>
    %256 = tpu.matmul %253, %255, %cst_205 {dimension_numbers = #tpu.dot_dimension_numbers<[1], [0], [0], [1], [0, 0, 1, 1], [], []>} : vector<16x128xbf16>, vector<128x128xbf16>, vector<16x128xf32> -> vector<16x128xf32>
    %c0_206 = arith.constant 0 : index
    %c0_207 = arith.constant 0 : index
    %c0_208 = arith.constant 0 : index
    %257 = vector.load %arg63[%c0_206, %c0_207, %c0_208] : memref<1x1x128xf32, #tpu.memory_space<vmem>>, vector<1x1x128xf32>
    %258 = vector.shape_cast %257 : vector<1x1x128xf32> to vector<1x128xf32>
    %259 = vector.broadcast %258 : vector<1x128xf32> to vector<16x128xf32>
    %260 = arith.addf %256, %259 : vector<16x128xf32>
    %cst_209 = arith.constant 0.000000e+00 : f32
    %261 = vector.broadcast %cst_209 : f32 to vector<16x128xf32>
    %262 = arith.maximumf %260, %261 : vector<16x128xf32>
    %263 = arith.truncf %262 : vector<16x128xf32> to vector<16x128xbf16>
    %c0_210 = arith.constant 0 : index
    %c0_211 = arith.constant 0 : index
    %c0_212 = arith.constant 0 : index
    %264 = vector.load %arg66[%c0_210, %c0_211, %c0_212] : memref<1x128x128xbf16, #tpu.memory_space<vmem>>, vector<1x128x128xbf16>
    %265 = vector.shape_cast %264 : vector<1x128x128xbf16> to vector<128x128xbf16>
    %cst_213 = arith.constant dense<0.000000e+00> : vector<16x128xf32>
    %266 = tpu.matmul %263, %265, %cst_213 {dimension_numbers = #tpu.dot_dimension_numbers<[1], [0], [0], [1], [0, 0, 1, 1], [], []>} : vector<16x128xbf16>, vector<128x128xbf16>, vector<16x128xf32> -> vector<16x128xf32>
    %c0_214 = arith.constant 0 : index
    %c0_215 = arith.constant 0 : index
    %c0_216 = arith.constant 0 : index
    %267 = vector.load %arg64[%c0_214, %c0_215, %c0_216] : memref<1x1x128xf32, #tpu.memory_space<vmem>>, vector<1x1x128xf32>
    %268 = vector.shape_cast %267 : vector<1x1x128xf32> to vector<1x128xf32>
    %269 = vector.broadcast %268 : vector<1x128xf32> to vector<16x128xf32>
    %270 = arith.addf %266, %269 : vector<16x128xf32>
    %271 = arith.addf %13, %270 : vector<16x128xf32>
    %cst_217 = arith.constant dense<0.000000e+00> : vector<16x128xf32>
    %272 = tpu.matmul %9, %271, %cst_217 {dimension_numbers = #tpu.dot_dimension_numbers<[1], [0], [0], [1], [0, 0, 1, 1], [], []>} : vector<16x16xf32>, vector<16x128xf32>, vector<16x128xf32> -> vector<16x128xf32>
    %c0_218 = arith.constant 0 : index
    %c0_219 = arith.constant 0 : index
    %273 = vector.load %arg71[%c0_218, %c0_219] : memref<16x128xf32, #tpu.memory_space<vmem>>, vector<16x128xf32>
    tpu.vector_store %arg71[%c0_218, %c0_219], %272 {strides = array<i32>} : memref<16x128xf32, #tpu.memory_space<vmem>>, vector<16x128xf32>,
    %c2_i32 = arith.constant 2 : i32
    %274 = arith.cmpi eq, %arg0, %c2_i32 : i32
    %275 = arith.extui %274 : i1 to i32
    %c0_i32_220 = arith.constant 0 : i32
    %276 = arith.cmpi ne, %275, %c0_i32_220 : i32
    scf.if %276 {
      %c0_221 = arith.constant 0 : index
      %c0_222 = arith.constant 0 : index
      %277 = vector.load %arg13[%c0_221, %c0_222] : memref<128x128xbf16, #tpu.memory_space<vmem>>, vector<128x128xbf16>
      %c0_223 = arith.constant 0 : index
      %c0_224 = arith.constant 0 : index
      %278 = vector.load %arg12[%c0_223, %c0_224] : memref<1x128xf32, #tpu.memory_space<vmem>>, vector<1x128xf32>
      %279 = arith.truncf %249 : vector<8x128xf32> to vector<8x128xbf16>
      %cst_225 = arith.constant dense<0.000000e+00> : vector<8x128xf32>
      %280 = tpu.matmul %279, %277, %cst_225 {dimension_numbers = #tpu.dot_dimension_numbers<[1], [0], [0], [1], [0, 0, 1, 1], [], []>} : vector<8x128xbf16>, vector<128x128xbf16>, vector<8x128xf32> -> vector<8x128xf32>
      %281 = vector.broadcast %278 : vector<1x128xf32> to vector<8x128xf32>
      %282 = arith.addf %280, %281 : vector<8x128xf32>
      %cst_226 = arith.constant 0.000000e+00 : f32
      %283 = vector.broadcast %cst_226 : f32 to vector<8x128xf32>
      %284 = arith.maximumf %282, %283 : vector<8x128xf32>
      %c0_227 = arith.constant 0 : index
      %c0_228 = arith.constant 0 : index
      %285 = vector.load %arg15[%c0_227, %c0_228] : memref<128x128xbf16, #tpu.memory_space<vmem>>, vector<128x128xbf16>
      %c0_229 = arith.constant 0 : index
      %c0_230 = arith.constant 0 : index
      %286 = vector.load %arg14[%c0_229, %c0_230] : memref<1x128xf32, #tpu.memory_space<vmem>>, vector<1x128xf32>
      %287 = arith.truncf %284 : vector<8x128xf32> to vector<8x128xbf16>
      %cst_231 = arith.constant dense<0.000000e+00> : vector<8x128xf32>
      %288 = tpu.matmul %287, %285, %cst_231 {dimension_numbers = #tpu.dot_dimension_numbers<[1], [0], [0], [1], [0, 0, 1, 1], [], []>} : vector<8x128xbf16>, vector<128x128xbf16>, vector<8x128xf32> -> vector<8x128xf32>
      %289 = vector.broadcast %286 : vector<1x128xf32> to vector<8x128xf32>
      %290 = arith.addf %288, %289 : vector<8x128xf32>
      %cst_232 = arith.constant 0.000000e+00 : f32
      %291 = vector.broadcast %cst_232 : f32 to vector<8x128xf32>
      %292 = arith.maximumf %290, %291 : vector<8x128xf32>
      %c0_233 = arith.constant 0 : index
      %c0_234 = arith.constant 0 : index
      %293 = vector.load %arg17[%c0_233, %c0_234] : memref<128x128xbf16, #tpu.memory_space<vmem>>, vector<128x128xbf16>
      %c0_235 = arith.constant 0 : index
      %c0_236 = arith.constant 0 : index
      %294 = vector.load %arg16[%c0_235, %c0_236] : memref<1x128xf32, #tpu.memory_space<vmem>>, vector<1x128xf32>
      %295 = arith.truncf %292 : vector<8x128xf32> to vector<8x128xbf16>
      %cst_237 = arith.constant dense<0.000000e+00> : vector<8x128xf32>
      %296 = tpu.matmul %295, %293, %cst_237 {dimension_numbers = #tpu.dot_dimension_numbers<[1], [0], [0], [1], [0, 0, 1, 1], [], []>} : vector<8x128xbf16>, vector<128x128xbf16>, vector<8x128xf32> -> vector<8x128xf32>
      %297 = vector.broadcast %294 : vector<1x128xf32> to vector<8x128xf32>
      %298 = arith.addf %296, %297 : vector<8x128xf32>
      %cst_238 = arith.constant 0.000000e+00 : f32
      %299 = vector.broadcast %cst_238 : f32 to vector<8x128xf32>
      %300 = arith.maximumf %298, %299 : vector<8x128xf32>
      %c0_239 = arith.constant 0 : index
      %c0_240 = arith.constant 0 : index
      %301 = vector.load %arg67[%c0_239, %c0_240] : memref<8x128xf32, #tpu.memory_space<vmem>>, vector<8x128xf32>
      tpu.vector_store %arg67[%c0_239, %c0_240], %300 {strides = array<i32>} : memref<8x128xf32, #tpu.memory_space<vmem>>, vector<8x128xf32>,
    } else {
    }
    return
  }
  func.func @transform_0(%arg0: i32, %arg1: memref<3xi32, #tpu.memory_space<smem>>) -> (i32, i32) {
    %c0_i32 = arith.constant 0 : i32
    %c0_i32_0 = arith.constant 0 : i32
    %c0_i32_1 = arith.constant 0 : i32
    return %c0_i32, %c0_i32_0 : i32, i32
  }
  func.func @transform_1(%arg0: i32, %arg1: memref<3xi32, #tpu.memory_space<smem>>) -> (i32, i32) {
    %c0_i32 = arith.constant 0 : i32
    %c0_i32_0 = arith.constant 0 : i32
    %c0_i32_1 = arith.constant 0 : i32
    return %c0_i32, %c0_i32_0 : i32, i32
  }
  func.func @transform_2(%arg0: i32, %arg1: memref<3xi32, #tpu.memory_space<smem>>) -> (i32, i32) {
    %c0_i32 = arith.constant 0 : i32
    %c0_i32_0 = arith.constant 0 : i32
    %c0_i32_1 = arith.constant 0 : i32
    return %c0_i32, %c0_i32_0 : i32, i32
  }
  func.func @transform_3(%arg0: i32, %arg1: memref<3xi32, #tpu.memory_space<smem>>) -> (i32, i32) {
    %c0_i32 = arith.constant 0 : i32
    %c0_i32_0 = arith.constant 0 : i32
    %c0_i32_1 = arith.constant 0 : i32
    return %c0_i32, %c0_i32_0 : i32, i32
  }
  func.func @transform_4(%arg0: i32, %arg1: memref<3xi32, #tpu.memory_space<smem>>) -> (i32, i32) {
    %c0_i32 = arith.constant 0 : i32
    %c0_i32_0 = arith.constant 0 : i32
    %c0_i32_1 = arith.constant 0 : i32
    return %c0_i32, %c0_i32_0 : i32, i32
  }
  func.func @transform_5(%arg0: i32, %arg1: memref<3xi32, #tpu.memory_space<smem>>) -> (i32, i32) {
    %c0_i32 = arith.constant 0 : i32
    %c0_i32_0 = arith.constant 0 : i32
    %c0_i32_1 = arith.constant 0 : i32
    return %c0_i32, %c0_i32_0 : i32, i32
  }
  func.func @transform_6(%arg0: i32, %arg1: memref<3xi32, #tpu.memory_space<smem>>) -> (i32, i32) {
    %c0_i32 = arith.constant 0 : i32
    %c0_i32_0 = arith.constant 0 : i32
    %c0_i32_1 = arith.constant 0 : i32
    return %c0_i32, %c0_i32_0 : i32, i32
  }
  func.func @transform_7(%arg0: i32, %arg1: memref<3xi32, #tpu.memory_space<smem>>) -> (i32, i32) {
    %c0_i32 = arith.constant 0 : i32
    %c0_i32_0 = arith.constant 0 : i32
    %c0_i32_1 = arith.constant 0 : i32
    return %c0_i32, %c0_i32_0 : i32, i32
  }
  func.func @transform_8(%arg0: i32, %arg1: memref<3xi32, #tpu.memory_space<smem>>) -> (i32, i32) {
    %c0_i32 = arith.constant 0 : i32
    %c0_i32_0 = arith.constant 0 : i32
    %c0_i32_1 = arith.constant 0 : i32
    return %c0_i32, %c0_i32_0 : i32, i32
  }
  func.func @transform_9(%arg0: i32, %arg1: memref<3xi32, #tpu.memory_space<smem>>) -> (i32, i32) {
    %c0_i32 = arith.constant 0 : i32
    %c0_i32_0 = arith.constant 0 : i32
    %c0_i32_1 = arith.constant 0 : i32
    return %c0_i32, %c0_i32_0 : i32, i32
  }
  func.func @transform_10(%arg0: i32, %arg1: memref<3xi32, #tpu.memory_space<smem>>) -> (i32, i32) {
    %c0_i32 = arith.constant 0 : i32
    %c0_i32_0 = arith.constant 0 : i32
    %c0_i32_1 = arith.constant 0 : i32
    return %c0_i32, %c0_i32_0 : i32, i32
  }
  func.func @transform_11(%arg0: i32, %arg1: memref<3xi32, #tpu.memory_space<smem>>) -> (i32, i32) {
    %c0_i32 = arith.constant 0 : i32
    %c0_i32_0 = arith.constant 0 : i32
    %c0_i32_1 = arith.constant 0 : i32
    return %c0_i32, %c0_i32_0 : i32, i32
  }
  func.func @transform_12(%arg0: i32, %arg1: memref<3xi32, #tpu.memory_space<smem>>) -> (i32, i32) {
    %c0_i32 = arith.constant 0 : i32
    %c0_i32_0 = arith.constant 0 : i32
    %c0_i32_1 = arith.constant 0 : i32
    return %c0_i32, %c0_i32_0 : i32, i32
  }
  func.func @transform_13(%arg0: i32, %arg1: memref<3xi32, #tpu.memory_space<smem>>) -> (i32, i32) {
    %c0_i32 = arith.constant 0 : i32
    %c0_i32_0 = arith.constant 0 : i32
    %c0_i32_1 = arith.constant 0 : i32
    return %c0_i32, %c0_i32_0 : i32, i32
  }
  func.func @transform_14(%arg0: i32, %arg1: memref<3xi32, #tpu.memory_space<smem>>) -> (i32, i32) {
    %c0_i32 = arith.constant 0 : i32
    %c0_i32_0 = arith.constant 0 : i32
    %c0_i32_1 = arith.constant 0 : i32
    return %c0_i32, %c0_i32_0 : i32, i32
  }
  func.func @transform_15(%arg0: i32, %arg1: memref<3xi32, #tpu.memory_space<smem>>) -> (i32, i32) {
    %c0_i32 = arith.constant 0 : i32
    %c0_i32_0 = arith.constant 0 : i32
    %c0_i32_1 = arith.constant 0 : i32
    return %c0_i32, %c0_i32_0 : i32, i32
  }
  func.func @transform_16(%arg0: i32, %arg1: memref<3xi32, #tpu.memory_space<smem>>) -> (i32, i32) {
    %c0_i32 = arith.constant 0 : i32
    %c0_i32_0 = arith.constant 0 : i32
    %c0_i32_1 = arith.constant 0 : i32
    return %c0_i32, %c0_i32_0 : i32, i32
  }
  func.func @transform_17(%arg0: i32, %arg1: memref<3xi32, #tpu.memory_space<smem>>) -> (i32, i32) {
    %c0_i32 = arith.constant 0 : i32
    %c0_i32_0 = arith.constant 0 : i32
    %c0_i32_1 = arith.constant 0 : i32
    return %c0_i32, %c0_i32_0 : i32, i32
  }
  func.func @transform_18(%arg0: i32, %arg1: memref<3xi32, #tpu.memory_space<smem>>) -> (i32, i32) {
    %c0_i32 = arith.constant 0 : i32
    %c0_i32_0 = arith.constant 0 : i32
    %c0_i32_1 = arith.constant 0 : i32
    return %c0_i32, %c0_i32_0 : i32, i32
  }
  func.func @transform_19(%arg0: i32, %arg1: memref<3xi32, #tpu.memory_space<smem>>) -> (i32, i32) {
    %c0_i32 = arith.constant 0 : i32
    %c0_i32_0 = arith.constant 0 : i32
    %c0_i32_1 = arith.constant 0 : i32
    return %c0_i32, %c0_i32_0 : i32, i32
  }
  func.func @transform_20(%arg0: i32, %arg1: memref<3xi32, #tpu.memory_space<smem>>) -> (i32, i32) {
    %c0_i32 = arith.constant 0 : i32
    %c0_i32_0 = arith.constant 0 : i32
    %c0_i32_1 = arith.constant 0 : i32
    return %c0_i32, %c0_i32_0 : i32, i32
  }
  func.func @transform_21(%arg0: i32, %arg1: memref<3xi32, #tpu.memory_space<smem>>) -> (i32, i32) {
    %c0_i32 = arith.constant 0 : i32
    %c0_i32_0 = arith.constant 0 : i32
    %c0_i32_1 = arith.constant 0 : i32
    return %c0_i32, %c0_i32_0 : i32, i32
  }
  func.func @transform_22(%arg0: i32, %arg1: memref<3xi32, #tpu.memory_space<smem>>) -> (i32, i32) {
    %c0_i32 = arith.constant 0 : i32
    %c0_i32_0 = arith.constant 0 : i32
    %c0_i32_1 = arith.constant 0 : i32
    return %c0_i32, %c0_i32_0 : i32, i32
  }
  func.func @transform_23(%arg0: i32, %arg1: memref<3xi32, #tpu.memory_space<smem>>) -> (i32, i32) {
    %c0_i32 = arith.constant 0 : i32
    %c0_i32_0 = arith.constant 0 : i32
    %c0_i32_1 = arith.constant 0 : i32
    return %c0_i32, %c0_i32_0 : i32, i32
  }
  func.func @transform_24(%arg0: i32, %arg1: memref<3xi32, #tpu.memory_space<smem>>) -> (i32, i32) {
    %c0_i32 = arith.constant 0 : i32
    %c0_i32_0 = arith.constant 0 : i32
    %c0_i32_1 = arith.constant 0 : i32
    return %c0_i32, %c0_i32_0 : i32, i32
  }
  func.func @transform_25(%arg0: i32, %arg1: memref<3xi32, #tpu.memory_space<smem>>) -> (i32, i32) {
    %c0_i32 = arith.constant 0 : i32
    %c0_i32_0 = arith.constant 0 : i32
    %c0_i32_1 = arith.constant 0 : i32
    return %c0_i32, %c0_i32_0 : i32, i32
  }
  func.func @transform_26(%arg0: i32, %arg1: memref<3xi32, #tpu.memory_space<smem>>) -> (i32, i32) {
    %c0_i32 = arith.constant 0 : i32
    %c0_i32_0 = arith.constant 0 : i32
    %c0_i32_1 = arith.constant 0 : i32
    return %c0_i32, %c0_i32_0 : i32, i32
  }
  func.func @transform_27(%arg0: i32, %arg1: memref<3xi32, #tpu.memory_space<smem>>) -> (i32, i32) {
    %c0_i32 = arith.constant 0 : i32
    %c0_i32_0 = arith.constant 0 : i32
    %c0_i32_1 = arith.constant 0 : i32
    return %c0_i32, %c0_i32_0 : i32, i32
  }
  func.func @transform_28(%arg0: i32, %arg1: memref<3xi32, #tpu.memory_space<smem>>) -> (i32, i32) {
    %c0_i32 = arith.constant 0 : i32
    %c0_i32_0 = arith.constant 0 : i32
    %c0_i32_1 = arith.constant 0 : i32
    return %c0_i32, %c0_i32_0 : i32, i32
  }
  func.func @transform_29(%arg0: i32, %arg1: memref<3xi32, #tpu.memory_space<smem>>) -> (i32, i32) {
    %c0_i32 = arith.constant 0 : i32
    %c0_i32_0 = arith.constant 0 : i32
    %c0_i32_1 = arith.constant 0 : i32
    return %c0_i32, %c0_i32_0 : i32, i32
  }
  func.func @transform_30(%arg0: i32, %arg1: memref<3xi32, #tpu.memory_space<smem>>) -> (i32, i32) {
    %c0_i32 = arith.constant 0 : i32
    %c0_i32_0 = arith.constant 0 : i32
    %c0_i32_1 = arith.constant 0 : i32
    return %c0_i32, %c0_i32_0 : i32, i32
  }
  func.func @transform_31(%arg0: i32, %arg1: memref<3xi32, #tpu.memory_space<smem>>) -> (i32, i32) {
    %c0_i32 = arith.constant 0 : i32
    %c0_i32_0 = arith.constant 0 : i32
    %c0_i32_1 = arith.constant 0 : i32
    return %c0_i32, %c0_i32_0 : i32, i32
  }
  func.func @transform_32(%arg0: i32, %arg1: memref<3xi32, #tpu.memory_space<smem>>) -> (i32, i32) {
    %c0_i32 = arith.constant 0 : i32
    %c0_i32_0 = arith.constant 0 : i32
    %c0_i32_1 = arith.constant 0 : i32
    return %c0_i32, %c0_i32_0 : i32, i32
  }
  func.func @transform_33(%arg0: i32, %arg1: memref<3xi32, #tpu.memory_space<smem>>) -> (i32, i32) {
    %c0_i32 = arith.constant 0 : i32
    %c0_i32_0 = arith.constant 0 : i32
    %c0_i32_1 = arith.constant 0 : i32
    return %c0_i32, %c0_i32_0 : i32, i32
  }
  func.func @transform_34(%arg0: i32, %arg1: memref<3xi32, #tpu.memory_space<smem>>) -> (i32, i32) {
    %c0_i32 = arith.constant 0 : i32
    %c0_i32_0 = arith.constant 0 : i32
    %c0_i32_1 = arith.constant 0 : i32
    return %c0_i32, %c0_i32_0 : i32, i32
  }
  func.func @transform_35(%arg0: i32, %arg1: memref<3xi32, #tpu.memory_space<smem>>) -> (i32, i32, i32) {
    %0 = arith.index_cast %arg0 : i32 to index
    %1 = memref.load %arg1[%0] : memref<3xi32, #tpu.memory_space<smem>>
    %c0_i32 = arith.constant 0 : i32
    %c0_i32_0 = arith.constant 0 : i32
    %c0_i32_1 = arith.constant 0 : i32
    return %1, %c0_i32, %c0_i32_0 : i32, i32, i32
  }
  func.func @transform_36(%arg0: i32, %arg1: memref<3xi32, #tpu.memory_space<smem>>) -> (i32, i32, i32) {
    %0 = arith.index_cast %arg0 : i32 to index
    %1 = memref.load %arg1[%0] : memref<3xi32, #tpu.memory_space<smem>>
    %c0_i32 = arith.constant 0 : i32
    %c0_i32_0 = arith.constant 0 : i32
    %c0_i32_1 = arith.constant 0 : i32
    return %1, %c0_i32, %c0_i32_0 : i32, i32, i32
  }
  func.func @transform_37(%arg0: i32, %arg1: memref<3xi32, #tpu.memory_space<smem>>) -> (i32, i32, i32) {
    %0 = arith.index_cast %arg0 : i32 to index
    %1 = memref.load %arg1[%0] : memref<3xi32, #tpu.memory_space<smem>>
    %c0_i32 = arith.constant 0 : i32
    %c0_i32_0 = arith.constant 0 : i32
    %c0_i32_1 = arith.constant 0 : i32
    return %1, %c0_i32, %c0_i32_0 : i32, i32, i32
  }
  func.func @transform_38(%arg0: i32, %arg1: memref<3xi32, #tpu.memory_space<smem>>) -> (i32, i32, i32) {
    %0 = arith.index_cast %arg0 : i32 to index
    %1 = memref.load %arg1[%0] : memref<3xi32, #tpu.memory_space<smem>>
    %c0_i32 = arith.constant 0 : i32
    %c0_i32_0 = arith.constant 0 : i32
    %c0_i32_1 = arith.constant 0 : i32
    return %1, %c0_i32, %c0_i32_0 : i32, i32, i32
  }
  func.func @transform_39(%arg0: i32, %arg1: memref<3xi32, #tpu.memory_space<smem>>) -> (i32, i32, i32) {
    %0 = arith.index_cast %arg0 : i32 to index
    %1 = memref.load %arg1[%0] : memref<3xi32, #tpu.memory_space<smem>>
    %c0_i32 = arith.constant 0 : i32
    %c0_i32_0 = arith.constant 0 : i32
    %c0_i32_1 = arith.constant 0 : i32
    return %1, %c0_i32, %c0_i32_0 : i32, i32, i32
  }
  func.func @transform_40(%arg0: i32, %arg1: memref<3xi32, #tpu.memory_space<smem>>) -> (i32, i32, i32) {
    %0 = arith.index_cast %arg0 : i32 to index
    %1 = memref.load %arg1[%0] : memref<3xi32, #tpu.memory_space<smem>>
    %c0_i32 = arith.constant 0 : i32
    %c0_i32_0 = arith.constant 0 : i32
    %c0_i32_1 = arith.constant 0 : i32
    return %1, %c0_i32, %c0_i32_0 : i32, i32, i32
  }
  func.func @transform_41(%arg0: i32, %arg1: memref<3xi32, #tpu.memory_space<smem>>) -> (i32, i32, i32) {
    %0 = arith.index_cast %arg0 : i32 to index
    %1 = memref.load %arg1[%0] : memref<3xi32, #tpu.memory_space<smem>>
    %c0_i32 = arith.constant 0 : i32
    %c0_i32_0 = arith.constant 0 : i32
    %c0_i32_1 = arith.constant 0 : i32
    return %1, %c0_i32, %c0_i32_0 : i32, i32, i32
  }
  func.func @transform_42(%arg0: i32, %arg1: memref<3xi32, #tpu.memory_space<smem>>) -> (i32, i32, i32) {
    %0 = arith.index_cast %arg0 : i32 to index
    %1 = memref.load %arg1[%0] : memref<3xi32, #tpu.memory_space<smem>>
    %c0_i32 = arith.constant 0 : i32
    %c0_i32_0 = arith.constant 0 : i32
    %c0_i32_1 = arith.constant 0 : i32
    return %1, %c0_i32, %c0_i32_0 : i32, i32, i32
  }
  func.func @transform_43(%arg0: i32, %arg1: memref<3xi32, #tpu.memory_space<smem>>) -> (i32, i32, i32) {
    %0 = arith.index_cast %arg0 : i32 to index
    %1 = memref.load %arg1[%0] : memref<3xi32, #tpu.memory_space<smem>>
    %c0_i32 = arith.constant 0 : i32
    %c0_i32_0 = arith.constant 0 : i32
    %c0_i32_1 = arith.constant 0 : i32
    return %1, %c0_i32, %c0_i32_0 : i32, i32, i32
  }
  func.func @transform_44(%arg0: i32, %arg1: memref<3xi32, #tpu.memory_space<smem>>) -> (i32, i32, i32) {
    %0 = arith.index_cast %arg0 : i32 to index
    %1 = memref.load %arg1[%0] : memref<3xi32, #tpu.memory_space<smem>>
    %c0_i32 = arith.constant 0 : i32
    %c0_i32_0 = arith.constant 0 : i32
    %c0_i32_1 = arith.constant 0 : i32
    return %1, %c0_i32, %c0_i32_0 : i32, i32, i32
  }
  func.func @transform_45(%arg0: i32, %arg1: memref<3xi32, #tpu.memory_space<smem>>) -> (i32, i32, i32) {
    %0 = arith.index_cast %arg0 : i32 to index
    %1 = memref.load %arg1[%0] : memref<3xi32, #tpu.memory_space<smem>>
    %c0_i32 = arith.constant 0 : i32
    %c0_i32_0 = arith.constant 0 : i32
    %c0_i32_1 = arith.constant 0 : i32
    return %1, %c0_i32, %c0_i32_0 : i32, i32, i32
  }
  func.func @transform_46(%arg0: i32, %arg1: memref<3xi32, #tpu.memory_space<smem>>) -> (i32, i32, i32) {
    %0 = arith.index_cast %arg0 : i32 to index
    %1 = memref.load %arg1[%0] : memref<3xi32, #tpu.memory_space<smem>>
    %c0_i32 = arith.constant 0 : i32
    %c0_i32_0 = arith.constant 0 : i32
    %c0_i32_1 = arith.constant 0 : i32
    return %1, %c0_i32, %c0_i32_0 : i32, i32, i32
  }
  func.func @transform_47(%arg0: i32, %arg1: memref<3xi32, #tpu.memory_space<smem>>) -> (i32, i32, i32) {
    %0 = arith.index_cast %arg0 : i32 to index
    %1 = memref.load %arg1[%0] : memref<3xi32, #tpu.memory_space<smem>>
    %c0_i32 = arith.constant 0 : i32
    %c0_i32_0 = arith.constant 0 : i32
    %c0_i32_1 = arith.constant 0 : i32
    return %1, %c0_i32, %c0_i32_0 : i32, i32, i32
  }
  func.func @transform_48(%arg0: i32, %arg1: memref<3xi32, #tpu.memory_space<smem>>) -> (i32, i32, i32) {
    %0 = arith.index_cast %arg0 : i32 to index
    %1 = memref.load %arg1[%0] : memref<3xi32, #tpu.memory_space<smem>>
    %c0_i32 = arith.constant 0 : i32
    %c0_i32_0 = arith.constant 0 : i32
    %c0_i32_1 = arith.constant 0 : i32
    return %1, %c0_i32, %c0_i32_0 : i32, i32, i32
  }
  func.func @transform_49(%arg0: i32, %arg1: memref<3xi32, #tpu.memory_space<smem>>) -> (i32, i32, i32) {
    %0 = arith.index_cast %arg0 : i32 to index
    %1 = memref.load %arg1[%0] : memref<3xi32, #tpu.memory_space<smem>>
    %c0_i32 = arith.constant 0 : i32
    %c0_i32_0 = arith.constant 0 : i32
    %c0_i32_1 = arith.constant 0 : i32
    return %1, %c0_i32, %c0_i32_0 : i32, i32, i32
  }
  func.func @transform_50(%arg0: i32, %arg1: memref<3xi32, #tpu.memory_space<smem>>) -> (i32, i32, i32) {
    %0 = arith.index_cast %arg0 : i32 to index
    %1 = memref.load %arg1[%0] : memref<3xi32, #tpu.memory_space<smem>>
    %c0_i32 = arith.constant 0 : i32
    %c0_i32_0 = arith.constant 0 : i32
    %c0_i32_1 = arith.constant 0 : i32
    return %1, %c0_i32, %c0_i32_0 : i32, i32, i32
  }
  func.func @transform_51(%arg0: i32, %arg1: memref<3xi32, #tpu.memory_space<smem>>) -> (i32, i32, i32) {
    %0 = arith.index_cast %arg0 : i32 to index
    %1 = memref.load %arg1[%0] : memref<3xi32, #tpu.memory_space<smem>>
    %c0_i32 = arith.constant 0 : i32
    %c0_i32_0 = arith.constant 0 : i32
    %c0_i32_1 = arith.constant 0 : i32
    return %1, %c0_i32, %c0_i32_0 : i32, i32, i32
  }
  func.func @transform_52(%arg0: i32, %arg1: memref<3xi32, #tpu.memory_space<smem>>) -> (i32, i32, i32) {
    %0 = arith.index_cast %arg0 : i32 to index
    %1 = memref.load %arg1[%0] : memref<3xi32, #tpu.memory_space<smem>>
    %c0_i32 = arith.constant 0 : i32
    %c0_i32_0 = arith.constant 0 : i32
    %c0_i32_1 = arith.constant 0 : i32
    return %1, %c0_i32, %c0_i32_0 : i32, i32, i32
  }
  func.func @transform_53(%arg0: i32, %arg1: memref<3xi32, #tpu.memory_space<smem>>) -> (i32, i32, i32) {
    %0 = arith.index_cast %arg0 : i32 to index
    %1 = memref.load %arg1[%0] : memref<3xi32, #tpu.memory_space<smem>>
    %c0_i32 = arith.constant 0 : i32
    %c0_i32_0 = arith.constant 0 : i32
    %c0_i32_1 = arith.constant 0 : i32
    return %1, %c0_i32, %c0_i32_0 : i32, i32, i32
  }
  func.func @transform_54(%arg0: i32, %arg1: memref<3xi32, #tpu.memory_space<smem>>) -> (i32, i32, i32) {
    %0 = arith.index_cast %arg0 : i32 to index
    %1 = memref.load %arg1[%0] : memref<3xi32, #tpu.memory_space<smem>>
    %c0_i32 = arith.constant 0 : i32
    %c0_i32_0 = arith.constant 0 : i32
    %c0_i32_1 = arith.constant 0 : i32
    return %1, %c0_i32, %c0_i32_0 : i32, i32, i32
  }
  func.func @transform_55(%arg0: i32, %arg1: memref<3xi32, #tpu.memory_space<smem>>) -> (i32, i32, i32) {
    %0 = arith.index_cast %arg0 : i32 to index
    %1 = memref.load %arg1[%0] : memref<3xi32, #tpu.memory_space<smem>>
    %c0_i32 = arith.constant 0 : i32
    %c0_i32_0 = arith.constant 0 : i32
    %c0_i32_1 = arith.constant 0 : i32
    return %1, %c0_i32, %c0_i32_0 : i32, i32, i32
  }
  func.func @transform_56(%arg0: i32, %arg1: memref<3xi32, #tpu.memory_space<smem>>) -> (i32, i32, i32) {
    %0 = arith.index_cast %arg0 : i32 to index
    %1 = memref.load %arg1[%0] : memref<3xi32, #tpu.memory_space<smem>>
    %c0_i32 = arith.constant 0 : i32
    %c0_i32_0 = arith.constant 0 : i32
    %c0_i32_1 = arith.constant 0 : i32
    return %1, %c0_i32, %c0_i32_0 : i32, i32, i32
  }
  func.func @transform_57(%arg0: i32, %arg1: memref<3xi32, #tpu.memory_space<smem>>) -> (i32, i32, i32) {
    %0 = arith.index_cast %arg0 : i32 to index
    %1 = memref.load %arg1[%0] : memref<3xi32, #tpu.memory_space<smem>>
    %c0_i32 = arith.constant 0 : i32
    %c0_i32_0 = arith.constant 0 : i32
    %c0_i32_1 = arith.constant 0 : i32
    return %1, %c0_i32, %c0_i32_0 : i32, i32, i32
  }
  func.func @transform_58(%arg0: i32, %arg1: memref<3xi32, #tpu.memory_space<smem>>) -> (i32, i32, i32) {
    %0 = arith.index_cast %arg0 : i32 to index
    %1 = memref.load %arg1[%0] : memref<3xi32, #tpu.memory_space<smem>>
    %c0_i32 = arith.constant 0 : i32
    %c0_i32_0 = arith.constant 0 : i32
    %c0_i32_1 = arith.constant 0 : i32
    return %1, %c0_i32, %c0_i32_0 : i32, i32, i32
  }
  func.func @transform_59(%arg0: i32, %arg1: memref<3xi32, #tpu.memory_space<smem>>) -> (i32, i32, i32) {
    %0 = arith.index_cast %arg0 : i32 to index
    %1 = memref.load %arg1[%0] : memref<3xi32, #tpu.memory_space<smem>>
    %c0_i32 = arith.constant 0 : i32
    %c0_i32_0 = arith.constant 0 : i32
    %c0_i32_1 = arith.constant 0 : i32
    return %1, %c0_i32, %c0_i32_0 : i32, i32, i32
  }
  func.func @transform_60(%arg0: i32, %arg1: memref<3xi32, #tpu.memory_space<smem>>) -> (i32, i32, i32) {
    %0 = arith.index_cast %arg0 : i32 to index
    %1 = memref.load %arg1[%0] : memref<3xi32, #tpu.memory_space<smem>>
    %c0_i32 = arith.constant 0 : i32
    %c0_i32_0 = arith.constant 0 : i32
    %c0_i32_1 = arith.constant 0 : i32
    return %1, %c0_i32, %c0_i32_0 : i32, i32, i32
  }
  func.func @transform_61(%arg0: i32, %arg1: memref<3xi32, #tpu.memory_space<smem>>) -> (i32, i32, i32) {
    %0 = arith.index_cast %arg0 : i32 to index
    %1 = memref.load %arg1[%0] : memref<3xi32, #tpu.memory_space<smem>>
    %c0_i32 = arith.constant 0 : i32
    %c0_i32_0 = arith.constant 0 : i32
    %c0_i32_1 = arith.constant 0 : i32
    return %1, %c0_i32, %c0_i32_0 : i32, i32, i32
  }
  func.func @transform_62(%arg0: i32, %arg1: memref<3xi32, #tpu.memory_space<smem>>) -> (i32, i32, i32) {
    %0 = arith.index_cast %arg0 : i32 to index
    %1 = memref.load %arg1[%0] : memref<3xi32, #tpu.memory_space<smem>>
    %c0_i32 = arith.constant 0 : i32
    %c0_i32_0 = arith.constant 0 : i32
    %c0_i32_1 = arith.constant 0 : i32
    return %1, %c0_i32, %c0_i32_0 : i32, i32, i32
  }
  func.func @transform_63(%arg0: i32, %arg1: memref<3xi32, #tpu.memory_space<smem>>) -> (i32, i32, i32) {
    %0 = arith.index_cast %arg0 : i32 to index
    %1 = memref.load %arg1[%0] : memref<3xi32, #tpu.memory_space<smem>>
    %c0_i32 = arith.constant 0 : i32
    %c0_i32_0 = arith.constant 0 : i32
    %c0_i32_1 = arith.constant 0 : i32
    return %1, %c0_i32, %c0_i32_0 : i32, i32, i32
  }
  func.func @transform_64(%arg0: i32, %arg1: memref<3xi32, #tpu.memory_space<smem>>) -> (i32, i32, i32) {
    %0 = arith.index_cast %arg0 : i32 to index
    %1 = memref.load %arg1[%0] : memref<3xi32, #tpu.memory_space<smem>>
    %c0_i32 = arith.constant 0 : i32
    %c0_i32_0 = arith.constant 0 : i32
    %c0_i32_1 = arith.constant 0 : i32
    return %1, %c0_i32, %c0_i32_0 : i32, i32, i32
  }
  func.func @transform_65(%arg0: i32, %arg1: memref<3xi32, #tpu.memory_space<smem>>) -> (i32, i32) {
    %c0_i32 = arith.constant 0 : i32
    %c0_i32_0 = arith.constant 0 : i32
    %c0_i32_1 = arith.constant 0 : i32
    return %c0_i32, %c0_i32_0 : i32, i32
  }
}

</mosaic_0001>

<bundles_post_ra>
// kernel: forward.1
= control target key start
LH: loop header
LB: loop body
LE: loop exit
PB: predicated region body
PF: predicated region fallthrough
CT: control target
= control target key end

     0   :  { %s15229_s6 = smov 1   ;;  %s15230_s10 = smov 2   ;;  %s20490_s0 = inlined_call_operand.smem [shape: u32[67], index: -1, kind: input, shape index: {}] }
   0x1   :  { %s15375_s5 = sld [smem:[%s20490_s0]]   ;;  %s15231_s14 = smov 3  }
   0x2   :  { %s15380_s9 = sld [smem:[%s20490_s0 + %s15229_s6]]   ;;  %s15232_s18 = smov 4  }
   0x3   :  { %s15385_s13 = sld [smem:[%s20490_s0 + %s15230_s10]]   ;;  %s15233_s22 = smov 5  }
   0x4   :  { %s15390_s17 = sld [smem:[%s20490_s0 + %s15231_s14]]   ;;  %s15234_s26 = smov 6  }
   0x5   :  { %s15395_s21 = sld [smem:[%s20490_s0 + %s15232_s18]]   ;;  %s15235_s30 = smov 7  }
   0x6   :  { %s15400_s25 = sld [smem:[%s20490_s0 + %s15233_s22]]   ;;  %s15236_s4 = smov 8  }
   0x7   :  { %s15405_s29 = sld [smem:[%s20490_s0 + %s15234_s26]]   ;;  %s15237_s10 = smov 9  }
   0x8   :  { %20872 = sst [smem:[#allocation174_spill]] %s15380_s9  ;;  %s15238_s15 = smov 10  }
   0x9   :  { %20873 = sst [smem:[#allocation175_spill]] %s15385_s13  ;;  %s15239_s20 = smov 11  }
   0xa   :  { %20874 = sst [smem:[#allocation176_spill]] %s15390_s17  ;;  %s15240_s26 = smov 12  }
   0xb   :  { %20875 = sst [smem:[#allocation177_spill]] %s15395_s21  ;;  %s15241_s1 = smov 13  }
   0xc   :  { %20876 = sst [smem:[#allocation178_spill]] %s15400_s25  ;;  %s15242_s7 = smov 14  }
   0xd   :  { %20877 = sst [smem:[#allocation179_spill]] %s15405_s29  ;;  %s15244_s22 = smov 16  }
   0xe   :  { %s15410_s3 = sld [smem:[%s20490_s0 + %s15235_s30]]   ;;  %s15245_s28 = smov 17  }
   0xf   :  { %s15415_s8 = sld [smem:[%s20490_s0 + %s15236_s4]]  }
  0x10   :  { %s15420_s14 = sld [smem:[%s20490_s0 + %s15237_s10]]  }
  0x11   :  { %s15425_s19 = sld [smem:[%s20490_s0 + %s15238_s15]]   ;;  %s15243_s15 = smov 15  }
  0x12   :  { %s15430_s24 = sld [smem:[%s20490_s0 + %s15239_s20]]  }
  0x13   :  { %s15435_s30 = sld [smem:[%s20490_s0 + %s15240_s26]]  }
  0x14   :  { %20878 = sst [smem:[#allocation180_spill]] %s15410_s3 }
  0x15   :  { %20879 = sst [smem:[#allocation181_spill]] %s15415_s8 }
  0x16   :  { %20880 = sst [smem:[#allocation182_spill]] %s15420_s14 }
  0x17   :  { %20881 = sst [smem:[#allocation183_spill]] %s15425_s19 }
  0x18   :  { %20882 = sst [smem:[#allocation184_spill]] %s15430_s24 }
  0x19   :  { %20883 = sst [smem:[#allocation185_spill]] %s15435_s30 }
  0x1a   :  { %s15440_s6 = sld [smem:[%s20490_s0 + %s15241_s1]]  }
  0x1b   :  { %s15445_s12 = sld [smem:[%s20490_s0 + %s15242_s7]]   ;;  %s15246_s7 = smov 18  }
  0x1c   :  { %s15450_s20 = sld [smem:[%s20490_s0 + %s15243_s15]]   ;;  %s15247_s15 = smov 19  }
  0x1d   :  { %s15455_s27 = sld [smem:[%s20490_s0 + %s15244_s22]]   ;;  %s15248_s22 = smov 20  }
  0x1e   :  { %s15460_s4 = sld [smem:[%s20490_s0 + %s15245_s28]]   ;;  %s15249_s28 = smov 21  }
  0x1f   :  { %s15465_s17 = sld [smem:[%s20490_s0 + %s15246_s7]]   ;;  %s15250_s7 = smov 22  }
  0x20   :  { %20884 = sst [smem:[#allocation186_spill]] %s15440_s6 }
  0x21   :  { %20885 = sst [smem:[#allocation187_spill]] %s15445_s12 }
  0x22   :  { %20886 = sst [smem:[#allocation188_spill]] %s15450_s20 }
  0x23   :  { %20887 = sst [smem:[#allocation189_spill]] %s15455_s27 }
  0x24   :  { %20888 = sst [smem:[#allocation190_spill]] %s15460_s4 }
  0x25   :  { %20889 = sst [smem:[#allocation191_spill]] %s15465_s17 }
  0x26   :  { %s15470_s12 = sld [smem:[%s20490_s0 + %s15247_s15]]   ;;  %s15251_s15 = smov 23  }
  0x27   :  { %s15475_s27 = sld [smem:[%s20490_s0 + %s15248_s22]]   ;;  %s15252_s22 = smov 24  }
  0x28   :  { %s15480_s4 = sld [smem:[%s20490_s0 + %s15249_s28]]   ;;  %s15253_s28 = smov 25  }
  0x29   :  { %s15485_s30 = sld [smem:[%s20490_s0 + %s15250_s7]]   ;;  %s15254_s7 = smov 26  }
  0x2a   :  { %s15495_s19 = sld [smem:[%s20490_s0 + %s15252_s22]]   ;;  %s15256_s22 = smov 28  }
  0x2b   :  { %s15505_s8 = sld [smem:[%s20490_s0 + %s15254_s7]]   ;;  %s15258_s7 = smov 30  }
  0x2c   :  { %20890 = sst [smem:[#allocation192_spill]] %s15470_s12 }
  0x2d   :  { %20891 = sst [smem:[#allocation193_spill]] %s15475_s27 }
  0x2e   :  { %20892 = sst [smem:[#allocation194_spill]] %s15480_s4 }
  0x2f   :  { %20893 = sst [smem:[#allocation195_spill]] %s15485_s30 }
  0x30   :  { %s15490_s12 = sld [smem:[%s20490_s0 + %s15251_s15]]   ;;  %s15255_s15 = smov 27  }
  0x31   :  { %20895 = sst [smem:[#allocation197_spill]] %s15495_s19 }
  0x32   :  { %s15500_s4 = sld [smem:[%s20490_s0 + %s15253_s28]]   ;;  %s15257_s28 = smov 29  }
  0x33   :  { %20897 = sst [smem:[#allocation199_spill]] %s15505_s8 }
  0x34   :  { %s15515_s29 = sld [smem:[%s20490_s0 + %s15256_s22]]   ;;  %s15260_s22 = smov 32  }
  0x35   :  { %s15525_s21 = sld [smem:[%s20490_s0 + %s15258_s7]]   ;;  %s15262_s7 = smov 34  }
  0x36   :  { %20894 = sst [smem:[#allocation196_spill]] %s15490_s12 }
  0x37   :  { %s15510_s12 = sld [smem:[%s20490_s0 + %s15255_s15]]   ;;  %s15259_s15 = smov 31  }
  0x38   :  { %20896 = sst [smem:[#allocation198_spill]] %s15500_s4 }
  0x39   :  { %s15520_s4 = sld [smem:[%s20490_s0 + %s15257_s28]]   ;;  %s15261_s28 = smov 33  }
  0x3a   :  { %20899 = sst [smem:[#allocation201_spill]] %s15515_s29 }
  0x3b   :  { %20901 = sst [smem:[#allocation203_spill]] %s15525_s21 }
  0x3c   :  { %s15535_s9 = sld [smem:[%s20490_s0 + %s15260_s22]]   ;;  %s15264_s22 = smov 36  }
  0x3d   :  { %20898 = sst [smem:[#allocation200_spill]] %s15510_s12 }
  0x3e   :  { %s15530_s12 = sld [smem:[%s20490_s0 + %s15259_s15]]   ;;  %s15263_s15 = smov 35  }
  0x3f   :  { %20900 = sst [smem:[#allocation202_spill]] %s15520_s4 }
  0x40   :  { %s15540_s4 = sld [smem:[%s20490_s0 + %s15261_s28]]   ;;  %s15265_s28 = smov 37  }
  0x41   :  { %s15545_s21 = sld [smem:[%s20490_s0 + %s15262_s7]]   ;;  %s15266_s7 = smov 38  }
  0x42   :  { %20903 = sst [smem:[#allocation205_spill]] %s15535_s9 }
  0x43   :  { %s15555_s9 = sld [smem:[%s20490_s0 + %s15264_s22]]   ;;  %s15268_s22 = smov 40  }
  0x44   :  { %20902 = sst [smem:[#allocation204_spill]] %s15530_s12 }
  0x45   :  { %s15550_s12 = sld [smem:[%s20490_s0 + %s15263_s15]]   ;;  %s15267_s15 = smov 39  }
  0x46   :  { %20904 = sst [smem:[#allocation206_spill]] %s15540_s4 }
  0x47   :  { %20905 = sst [smem:[#allocation207_spill]] %s15545_s21 }
  0x48   :  { %s15560_s4 = sld [smem:[%s20490_s0 + %s15265_s28]]   ;;  %s15269_s28 = smov 41  }
  0x49   :  { %20907 = sst [smem:[#allocation209_spill]] %s15555_s9 }
  0x4a   :  { %s15565_s21 = sld [smem:[%s20490_s0 + %s15266_s7]]   ;;  %s15270_s7 = smov 42  }
  0x4b   :  { %20906 = sst [smem:[#allocation208_spill]] %s15550_s12 }
  0x4c   :  { %s15570_s12 = sld [smem:[%s20490_s0 + %s15267_s15]]   ;;  %s15271_s15 = smov 43  }
  0x4d   :  { %s15575_s9 = sld [smem:[%s20490_s0 + %s15268_s22]]   ;;  %s15272_s22 = smov 44  }
  0x4e   :  { %20908 = sst [smem:[#allocation210_spill]] %s15560_s4 }
  0x4f   :  { %s15580_s4 = sld [smem:[%s20490_s0 + %s15269_s28]]   ;;  %s15273_s28 = smov 45  }
  0x50   :  { %20909 = sst [smem:[#allocation211_spill]] %s15565_s21 }
  0x51   :  { %s15585_s21 = sld [smem:[%s20490_s0 + %s15270_s7]]   ;;  %s15274_s7 = smov 46  }
  0x52   :  { %20910 = sst [smem:[#allocation212_spill]] %s15570_s12 }
  0x53   :  { %20911 = sst [smem:[#allocation213_spill]] %s15575_s9 }
  0x54   :  { %s15590_s12 = sld [smem:[%s20490_s0 + %s15271_s15]]   ;;  %s15275_s15 = smov 47  }
  0x55   :  { %20912 = sst [smem:[#allocation214_spill]] %s15580_s4 }
  0x56   :  { %s15595_s9 = sld [smem:[%s20490_s0 + %s15272_s22]]   ;;  %s15276_s22 = smov 48  }
  0x57   :  { %20913 = sst [smem:[#allocation215_spill]] %s15585_s21 }
  0x58   :  { %s15600_s4 = sld [smem:[%s20490_s0 + %s15273_s28]]   ;;  %s15277_s28 = smov 49  }
  0x59   :  { %s15605_s21 = sld [smem:[%s20490_s0 + %s15274_s7]]   ;;  %s15278_s7 = smov 50  }
  0x5a   :  { %20914 = sst [smem:[#allocation216_spill]] %s15590_s12 }
  0x5b   :  { %s15610_s12 = sld [smem:[%s20490_s0 + %s15275_s15]]   ;;  %s15279_s15 = smov 51  }
  0x5c   :  { %20915 = sst [smem:[#allocation217_spill]] %s15595_s9 }
  0x5d   :  { %s15615_s9 = sld [smem:[%s20490_s0 + %s15276_s22]]   ;;  %s15280_s22 = smov 52  }
  0x5e   :  { %20916 = sst [smem:[#allocation218_spill]] %s15600_s4 }
  0x5f   :  { %20917 = sst [smem:[#allocation219_spill]] %s15605_s21 }
  0x60   :  { %s15620_s4 = sld [smem:[%s20490_s0 + %s15277_s28]]   ;;  %s15281_s28 = smov 53  }
  0x61   :  { %20918 = sst [smem:[#allocation220_spill]] %s15610_s12 }
  0x62   :  { %s15625_s21 = sld [smem:[%s20490_s0 + %s15278_s7]]   ;;  %s15282_s7 = smov 54  }
  0x63   :  { %20919 = sst [smem:[#allocation221_spill]] %s15615_s9 }
  0x64   :  { %s15630_s12 = sld [smem:[%s20490_s0 + %s15279_s15]]   ;;  %s15283_s15 = smov 55  }
  0x65   :  { %s15635_s9 = sld [smem:[%s20490_s0 + %s15280_s22]]   ;;  %s15284_s22 = smov 56  }
  0x66   :  { %20920 = sst [smem:[#allocation222_spill]] %s15620_s4 }
  0x67   :  { %s15640_s4 = sld [smem:[%s20490_s0 + %s15281_s28]]   ;;  %s15285_s28 = smov 57  }
  0x68   :  { %20921 = sst [smem:[#allocation223_spill]] %s15625_s21 }
  0x69   :  { %s15645_s21 = sld [smem:[%s20490_s0 + %s15282_s7]]   ;;  %s15286_s7 = smov 58  }
  0x6a   :  { %20922 = sst [smem:[#allocation224_spill]] %s15630_s12 }
  0x6b   :  { %20923 = sst [smem:[#allocation225_spill]] %s15635_s9 }
  0x6c   :  { %s15650_s12 = sld [smem:[%s20490_s0 + %s15283_s15]]   ;;  %s15287_s15 = smov 59  }
  0x6d   :  { %20924 = sst [smem:[#allocation226_spill]] %s15640_s4 }
  0x6e   :  { %s15655_s9 = sld [smem:[%s20490_s0 + %s15284_s22]]   ;;  %s15288_s22 = smov 60  }
  0x6f   :  { %20925 = sst [smem:[#allocation227_spill]] %s15645_s21 }
  0x70   :  { %s15660_s4 = sld [smem:[%s20490_s0 + %s15285_s28]]   ;;  %s15289_s28 = smov 61  }
  0x71   :  { %s15665_s21 = sld [smem:[%s20490_s0 + %s15286_s7]]   ;;  %s15290_s7 = smov 62  }
  0x72   :  { %20926 = sst [smem:[#allocation228_spill]] %s15650_s12  ;;  %s15292_s12 = smov 64  }
  0x73   :  { %s15670_s23 = sld [smem:[%s20490_s0 + %s15287_s15]]   ;;  %s15291_s15 = smov 63  }
  0x74   :  { %20927 = sst [smem:[#allocation229_spill]] %s15655_s9 }
  0x75   :  { %s15675_s1 = sld [smem:[%s20490_s0 + %s15288_s22]]  }
  0x76   :  { %20928 = sst [smem:[#allocation230_spill]] %s15660_s4  ;;  %s15293_s4 = smov 65  }
  0x77   :  { %20929 = sst [smem:[#allocation231_spill]] %s15665_s21  ;;  %s15294_s21 = smov 66  }
  0x78   :  { %s15680_s10 = sld [smem:[%s20490_s0 + %s15289_s28]]  }
  0x79   :  { %20930 = sst [smem:[#allocation232_spill]] %s15670_s23  ;;  %s138_s23 = sshll.u32 %s15375_s5, 4  ;;  %s139_s23 = int_to_ptr.vmem [resolvable:$true] %s138_s23 }
  0x7a   :  { %s15685_s16 = sld [smem:[%s20490_s0 + %s15290_s7]]   ;;  %p12718_p1 = scmp.lt.s32.totalorder %s139_s23, %s139_s23 }
  0x7b   :  { %20931 = sst [smem:[#allocation233_spill]] %s15675_s1 }
  0x7c   :  { %s15690_s9 = sld [smem:[%s20490_s0 + %s15291_s15]]   ;;  %s12713_s15 = scalar_lea.vmem %s139_s23, 16 }
  0x7d   :  { %s15695_s1 = sld [smem:[%s20490_s0 + %s15292_s12]]   ;;  %p12714_p0 = scmp.ne.s32.totalorder %s139_s23, %s12713_s15 }
  0x7e   :  { %20932 = sst [smem:[#allocation234_spill]] %s15680_s10  ;;  %p12719_p2 = scmp.lt.s32.totalorder %s12713_s15, %s12713_s15 }
  0x7f   :  { %s15700_s10 = sld [smem:[%s20490_s0 + %s15293_s4]]  }
  0x80   :  { %20933 = sst [smem:[#allocation235_spill]] %s15685_s16  ;;  %p12720_p3 = por %p12719_p2, %p12718_p1 }
  0x81   :  { %s15705_s16 = sld [smem:[%s20490_s0 + %s15294_s21]]  }
  0x82   :  { %20934 = sst [smem:[#allocation236_spill]] %s15690_s9  ;;  %p12721_p4 = pnand %p12720_p3, %p12714_p0 }
  0x83   :  { %20935 = sst [smem:[#allocation237_spill]] %s15695_s1 }
  0x85   :  { %20936 = sst [smem:[#allocation238_spill]] %s15700_s10 }
  0x87   :  { %20937 = sst [smem:[#allocation239_spill]] %s15705_s16 }
  0x88   :  { %12724 = shalt.err (!%p12721_p4)  }
  0x89   :  { %s15295_s18 = smov [#allocation7]  }
  0x8a   :  { %141 = dma.vmem_to_smem %s139_s23, 16, %s15295_s18, [#allocation6] }
  0x8b   :  { %14707 = dma.done.wait [#allocation6], 16 }
  0x8c   :  { %14708 = vsyncadd [#allocation6], 4294967280 }
  0x8d   :  { %143 = sfence }
  0x8e   :  { %144 = vsyncpa [#allocation9], 0 }
  0x8f   :  { %145 = vsyncpa [#allocation11], 0 }
  0x90   :  { %146 = vsyncpa [#allocation14], 0 }
  0x91   :  { %147 = vsyncpa [#allocation17], 0 }
  0x92   :  { %148 = vsyncpa [#allocation20], 0 }
  0x93   :  { %149 = vsyncpa [#allocation23], 0 }
  0x94   :  { %150 = vsyncpa [#allocation26], 0 }
  0x95   :  { %151 = vsyncpa [#allocation29], 0 }
  0x96   :  { %152 = vsyncpa [#allocation32], 0 }
  0x97   :  { %153 = vsyncpa [#allocation35], 0 }
  0x98   :  { %154 = vsyncpa [#allocation38], 0 }
  0x99   :  { %155 = vsyncpa [#allocation41], 0 }
  0x9a   :  { %156 = vsyncpa [#allocation44], 0 }
  0x9b   :  { %157 = vsyncpa [#allocation47], 0 }
  0x9c   :  { %158 = vsyncpa [#allocation50], 0 }
  0x9d   :  { %159 = vsyncpa [#allocation53], 0 }
  0x9e   :  { %160 = vsyncpa [#allocation56], 0 }
  0x9f   :  { %161 = vsyncpa [#allocation59], 0 }
  0xa0   :  { %163 = vsyncpa [#allocation59 + $0x1], 0 }
  0xa1   :  { %164 = vsyncpa [#allocation62], 0 }
  0xa2   :  { %166 = vsyncpa [#allocation62 + $0x1], 0 }
  0xa3   :  { %167 = vsyncpa [#allocation65], 0 }
  0xa4   :  { %169 = vsyncpa [#allocation65 + $0x1], 0 }
  0xa5   :  { %170 = vsyncpa [#allocation68], 0 }
  0xa6   :  { %172 = vsyncpa [#allocation68 + $0x1], 0 }
  0xa7   :  { %173 = vsyncpa [#allocation71], 0 }
  0xa8   :  { %175 = vsyncpa [#allocation71 + $0x1], 0 }
  0xa9   :  { %176 = vsyncpa [#allocation74], 0 }
  0xaa   :  { %178 = vsyncpa [#allocation74 + $0x1], 0 }
  0xab   :  { %179 = vsyncpa [#allocation77], 0 }
  0xac   :  { %181 = vsyncpa [#allocation77 + $0x1], 0 }
  0xad   :  { %182 = vsyncpa [#allocation80], 0 }
  0xae   :  { %184 = vsyncpa [#allocation80 + $0x1], 0 }
  0xaf   :  { %185 = vsyncpa [#allocation83], 0 }
  0xb0   :  { %187 = vsyncpa [#allocation83 + $0x1], 0 }
  0xb1   :  { %188 = vsyncpa [#allocation86], 0 }
  0xb2   :  { %190 = vsyncpa [#allocation86 + $0x1], 0 }
  0xb3   :  { %191 = vsyncpa [#allocation89], 0 }
  0xb4   :  { %193 = vsyncpa [#allocation89 + $0x1], 0 }
  0xb5   :  { %194 = vsyncpa [#allocation92], 0 }
  0xb6   :  { %196 = vsyncpa [#allocation92 + $0x1], 0 }
  0xb7   :  { %197 = vsyncpa [#allocation95], 0 }
  0xb8   :  { %199 = vsyncpa [#allocation95 + $0x1], 0 }
  0xb9   :  { %200 = vsyncpa [#allocation98], 0 }
  0xba   :  { %202 = vsyncpa [#allocation98 + $0x1], 0  ;;  %s15708_s0 = smov 0   ;;  %s15710_s5 = smov 0  }
  0xbb   :  { %s15712_s12 = smov 0   ;;  %s15714_s22 = smov 0  }
  0xbc   :  { %s15716_s26 = smov 0   ;;  %s15718_s4 = smov 0  }
  0xbd   :  { %s15720_s28 = smov 0   ;;  %s15722_s2 = smov 0  }
  0xbe   :  { %s15724_s21 = smov 0   ;;  %s15726_s7 = smov 0  }
  0xbf   :  { %20938 = sst [smem:[#allocation240_spill]] %s15724_s21  ;;  %s15728_s11 = smov 0  }
  0xc0   :  { %20939 = sst [smem:[#allocation241_spill]] %s15726_s7  ;;  %s15730_s23 = smov 0  }
  0xc1   :  { %20940 = sst [smem:[#allocation242_spill]] %s15728_s11  ;;  %s15732_s15 = smov 0  }
  0xc2   :  { %20941 = sst [smem:[#allocation243_spill]] %s15730_s23  ;;  %s15734_s18 = smov 0  }
  0xc3   :  { %20942 = sst [smem:[#allocation244_spill]] %s15732_s15  ;;  %s15736_s16 = smov 0  }
  0xc4   :  { %20943 = sst [smem:[#allocation245_spill]] %s15734_s18  ;;  %s15738_s10 = smov 0  }
  0xc5   :  { %20944 = sst [smem:[#allocation246_spill]] %s15736_s16  ;;  %s15740_s9 = smov 0  }
  0xc6   :  { %20945 = sst [smem:[#allocation247_spill]] %s15738_s10  ;;  %s15742_s1 = smov 0  }
  0xc7   :  { %20946 = sst [smem:[#allocation248_spill]] %s15740_s9  ;;  %s15744_s29 = smov 0  }
  0xc8   :  { %20947 = sst [smem:[#allocation249_spill]] %s15742_s1  ;;  %s15746_s8 = smov 0  }
  0xc9   :  { %20948 = sst [smem:[#allocation250_spill]] %s15744_s29  ;;  %s15748_s19 = smov 0  }
  0xca   :  { %20949 = sst [smem:[#allocation251_spill]] %s15746_s8  ;;  %s15750_s30 = smov 0  }
  0xcb   :  { %20950 = sst [smem:[#allocation252_spill]] %s15748_s19  ;;  %s15752_s27 = smov 0  }
  0xcc   :  { %20951 = sst [smem:[#allocation253_spill]] %s15750_s30  ;;  %s15754_s17 = smov 0  }
  0xcd   :  { %20952 = sst [smem:[#allocation254_spill]] %s15752_s27  ;;  %s15756_s20 = smov 0  }
  0xce   :  { %20953 = sst [smem:[#allocation255_spill]] %s15754_s17  ;;  %s15758_s6 = smov 0  }
  0xcf   :  { %20954 = sst [smem:[#allocation256_spill]] %s15756_s20  ;;  %s15760_s24 = smov 0  }
  0xd0   :  { %20955 = sst [smem:[#allocation257_spill]] %s15758_s6  ;;  %s15762_s14 = smov 0  }
  0xd1   :  { %20956 = sst [smem:[#allocation258_spill]] %s15760_s24  ;;  %s15764_s3 = smov 0  }
  0xd2   :  { %20957 = sst [smem:[#allocation259_spill]] %s15762_s14  ;;  %s15766_s25 = smov 0  }
  0xd3   :  { %20958 = sst [smem:[#allocation260_spill]] %s15764_s3  ;;  %s15768_s13 = smov 0  }
  0xd4   :  { %20959 = sst [smem:[#allocation261_spill]] %s15766_s25  ;;  %s15770_s19 = smov 0  }
  0xd5   :  { %20960 = sst [smem:[#allocation262_spill]] %s15768_s13  ;;  %s15772_s30 = smov 0  }
  0xd6   :  { %20961 = sst [smem:[#allocation263_spill]] %s15770_s19  ;;  %s15774_s27 = smov 0  }
  0xd7   :  { %20962 = sst [smem:[#allocation264_spill]] %s15772_s30  ;;  %s15776_s17 = smov 0  }
  0xd8   :  { %20963 = sst [smem:[#allocation265_spill]] %s15774_s27  ;;  %s15778_s20 = smov 0  }
  0xd9   :  { %20964 = sst [smem:[#allocation266_spill]] %s15776_s17  ;;  %s15780_s6 = smov 0  }
  0xda   :  { %20965 = sst [smem:[#allocation267_spill]] %s15778_s20  ;;  %s15782_s24 = smov 0  }
  0xdb   :  { %20966 = sst [smem:[#allocation268_spill]] %s15780_s6  ;;  %s15784_s14 = smov 0  }
  0xdc   :  { %20967 = sst [smem:[#allocation269_spill]] %s15782_s24  ;;  %s15786_s3 = smov 0  }
  0xdd   :  { %20968 = sst [smem:[#allocation270_spill]] %s15784_s14  ;;  %s15788_s25 = smov 0  }
  0xde   :  { %20969 = sst [smem:[#allocation271_spill]] %s15786_s3  ;;  %s15790_s13 = smov 0  }
  0xdf   :  { %20970 = sst [smem:[#allocation272_spill]] %s15788_s25  ;;  %s15792_s19 = smov 0  }
  0xe0   :  { %20971 = sst [smem:[#allocation273_spill]] %s15790_s13  ;;  %s15794_s30 = smov 0  }
  0xe1   :  { %20972 = sst [smem:[#allocation274_spill]] %s15792_s19  ;;  %s15796_s27 = smov 0  }
  0xe2   :  { %20973 = sst [smem:[#allocation275_spill]] %s15794_s30  ;;  %s15798_s17 = smov 0  }
  0xe3   :  { %20974 = sst [smem:[#allocation276_spill]] %s15796_s27  ;;  %s15800_s20 = smov 0  }
  0xe4   :  { %20975 = sst [smem:[#allocation277_spill]] %s15798_s17  ;;  %s15802_s6 = smov 0  }
  0xe5   :  { %20976 = sst [smem:[#allocation278_spill]] %s15800_s20  ;;  %s15804_s24 = smov 0  }
  0xe6   :  { %20977 = sst [smem:[#allocation279_spill]] %s15802_s6  ;;  %s15806_s14 = smov 0  }
  0xe7   :  { %20978 = sst [smem:[#allocation280_spill]] %s15804_s24  ;;  %s15808_s3 = smov 0  }
  0xe8   :  { %20979 = sst [smem:[#allocation281_spill]] %s15806_s14  ;;  %s15810_s25 = smov 0  }
  0xe9   :  { %20980 = sst [smem:[#allocation282_spill]] %s15808_s3  ;;  %s15812_s13 = smov 0  }
  0xea   :  { %20981 = sst [smem:[#allocation283_spill]] %s15810_s25  ;;  %s15814_s19 = smov 0  }
  0xeb   :  { %20982 = sst [smem:[#allocation284_spill]] %s15812_s13  ;;  %s15816_s30 = smov 0  }
  0xec   :  { %20983 = sst [smem:[#allocation285_spill]] %s15814_s19  ;;  %s15818_s27 = smov 0  }
  0xed   :  { %20984 = sst [smem:[#allocation286_spill]] %s15816_s30  ;;  %s15820_s17 = smov 0  }
  0xee   :  { %20985 = sst [smem:[#allocation287_spill]] %s15818_s27  ;;  %s15822_s20 = smov 0  }
  0xef   :  { %20986 = sst [smem:[#allocation288_spill]] %s15820_s17  ;;  %s15824_s6 = smov 0  }
  0xf0   :  { %20987 = sst [smem:[#allocation289_spill]] %s15822_s20  ;;  %s15826_s24 = smov 0  }
  0xf1   :  { %20988 = sst [smem:[#allocation290_spill]] %s15824_s6  ;;  %s15828_s14 = smov 0  }
  0xf2   :  { %20989 = sst [smem:[#allocation291_spill]] %s15826_s24  ;;  %s15830_s3 = smov 0  }
  0xf3   :  { %20990 = sst [smem:[#allocation292_spill]] %s15828_s14  ;;  %s15832_s25 = smov 0  }
  0xf4   :  { %20991 = sst [smem:[#allocation293_spill]] %s15830_s3  ;;  %s15834_s13 = smov 0  }
  0xf5   :  { %20992 = sst [smem:[#allocation294_spill]] %s15832_s25  ;;  %s15836_s19 = smov 0  }
  0xf6   :  { %20993 = sst [smem:[#allocation295_spill]] %s15834_s13  ;;  %s15838_s30 = smov 0  }
  0xf7   :  { %20994 = sst [smem:[#allocation296_spill]] %s15836_s19  ;;  %s15840_s27 = smov 0  }
  0xf8   :  { %20995 = sst [smem:[#allocation297_spill]] %s15838_s30  ;;  %s15842_s17 = smov 0  }
  0xf9   :  { %20996 = sst [smem:[#allocation298_spill]] %s15840_s27  ;;  %s15844_s20 = smov 0  }
  0xfa   :  { %20997 = sst [smem:[#allocation299_spill]] %s15842_s17  ;;  %s15846_s6 = smov 0  }
  0xfb   :  { %20998 = sst [smem:[#allocation300_spill]] %s15844_s20  ;;  %s15848_s24 = smov 0  }
  0xfc   :  { %20999 = sst [smem:[#allocation301_spill]] %s15846_s6  ;;  %s15850_s14 = smov 0  }
  0xfd   :  { %21000 = sst [smem:[#allocation302_spill]] %s15848_s24  ;;  %s15852_s3 = smov 0  }
  0xfe   :  { %21001 = sst [smem:[#allocation303_spill]] %s15850_s14  ;;  %s15854_s25 = smov 0  }
  0xff   :  { %21002 = sst [smem:[#allocation304_spill]] %s15852_s3  ;;  %s15856_s13 = smov 0  }
 0x100   :  { %21003 = sst [smem:[#allocation305_spill]] %s15854_s25  ;;  %s15858_s19 = smov 0  }
 0x101   :  { %21004 = sst [smem:[#allocation306_spill]] %s15858_s19  ;;  %s15860_s30 = smov 0  }
 0x102   :  { %21005 = sst [smem:[#allocation307_spill]] %s15860_s30  ;;  %s15862_s27 = smov 0  }
 0x103   :  { %21006 = sst [smem:[#allocation308_spill]] %s15862_s27  ;;  %s15864_s17 = smov 0  }
 0x104   :  { %21007 = sst [smem:[#allocation309_spill]] %s15864_s17  ;;  %s15866_s20 = smov 0  }
 0x105   :  { %21008 = sst [smem:[#allocation310_spill]] %s15866_s20  ;;  %s15868_s6 = smov 0  }
 0x106   :  { %21009 = sst [smem:[#allocation311_spill]] %s15868_s6  ;;  %s15870_s24 = smov 0  }
 0x107   :  { %21010 = sst [smem:[#allocation312_spill]] %s15870_s24  ;;  %s15872_s14 = smov 0  }
 0x108   :  { %21011 = sst [smem:[#allocation313_spill]] %s15872_s14  ;;  %s15874_s3 = smov 0  }
 0x109   :  { %21012 = sst [smem:[#allocation314_spill]] %s15874_s3  ;;  %s15876_s25 = smov 0  }
 0x10a   :  { %21013 = sst [smem:[#allocation315_spill]] %s15876_s25 }
 0x10b LB: > { %s21090_s21 = sld [smem:[#allocation240_spill]]  ;;  %s21091_s7 = sld [smem:[#allocation241_spill]]  ;;  %s15187_s13 = sphi %s15856_s13, %s22049_s13   ;;  %s14919_s2 = sphi %s15722_s2, %s21931_s2   ;;  %s14915_s28 = sphi %s15720_s28, %s21930_s28   ;;  %s14911_s4 = sphi %s15718_s4, %s21929_s4   ;;  %s14907_s26 = sphi %s15716_s26, %s21928_s26   ;;  %s14903_s22 = sphi %s15714_s22, %s21927_s22   ;;  %s14899_s12 = sphi %s15712_s12, %s21926_s12   ;;  %s14895_s5 = sphi %s15710_s5, %s21925_s5   ;;  %s14891_s0 = sphi %s15708_s0, %s21924_s0  }
 0x10c   : > { %s21092_s11 = sld [smem:[#allocation242_spill]]  ;;  %s21093_s23 = sld [smem:[#allocation243_spill]] }
 0x10d   : > { %s21094_s15 = sld [smem:[#allocation244_spill]]  ;;  %s21095_s18 = sld [smem:[#allocation245_spill]] }
 0x10e   : > { %s21096_s16 = sld [smem:[#allocation246_spill]]  ;;  %s21097_s10 = sld [smem:[#allocation247_spill]] }
 0x10f   : > { %21098 = sst [smem:[#allocation240_spill]] %s14891_s0  ;;  %s21101_s1 = sld [smem:[#allocation249_spill]] }
 0x110   : > { %s21099_s9 = sld [smem:[#allocation248_spill]]  ;;  %21100 = sst [smem:[#allocation241_spill]] %s14895_s5 }
 0x111   : > { %21102 = sst [smem:[#allocation242_spill]] %s14899_s12  ;;  %s21105_s8 = sld [smem:[#allocation251_spill]] }
 0x112   : > { %s21103_s29 = sld [smem:[#allocation250_spill]]  ;;  %21104 = sst [smem:[#allocation243_spill]] %s14903_s22 }
 0x113   : > { %21106 = sst [smem:[#allocation244_spill]] %s14907_s26  ;;  %s21109_s3 = sld [smem:[#allocation253_spill]] }
 0x114   : > { %s21107_s25 = sld [smem:[#allocation252_spill]]  ;;  %21108 = sst [smem:[#allocation245_spill]] %s14911_s4 }
 0x115   : > { %21110 = sst [smem:[#allocation246_spill]] %s14915_s28  ;;  %s21113_s0 = sld [smem:[#allocation255_spill]] }
 0x116   : > { %s21111_s14 = sld [smem:[#allocation254_spill]]  ;;  %21112 = sst [smem:[#allocation247_spill]] %s14919_s2 }
 0x117   : > { %21114 = sst [smem:[#allocation248_spill]] %s21090_s21  ;;  %s21117_s12 = sld [smem:[#allocation257_spill]] }
 0x118   : > { %s21115_s5 = sld [smem:[#allocation256_spill]]  ;;  %21116 = sst [smem:[#allocation249_spill]] %s21091_s7 }
 0x119   : > { %21118 = sst [smem:[#allocation250_spill]] %s21092_s11  ;;  %s21121_s26 = sld [smem:[#allocation259_spill]] }
 0x11a   : > { %s21119_s22 = sld [smem:[#allocation258_spill]]  ;;  %21120 = sst [smem:[#allocation251_spill]] %s21093_s23 }
 0x11b   : > { %21122 = sst [smem:[#allocation252_spill]] %s21094_s15  ;;  %s21125_s28 = sld [smem:[#allocation261_spill]] }
 0x11c   : > { %s21123_s4 = sld [smem:[#allocation260_spill]]  ;;  %21124 = sst [smem:[#allocation253_spill]] %s21095_s18 }
 0x11d   : > { %21126 = sst [smem:[#allocation254_spill]] %s21096_s16  ;;  %s21129_s21 = sld [smem:[#allocation263_spill]] }
 0x11e   : > { %s21127_s2 = sld [smem:[#allocation262_spill]]  ;;  %21128 = sst [smem:[#allocation255_spill]] %s21097_s10 }
 0x11f   : > { %21130 = sst [smem:[#allocation256_spill]] %s21099_s9  ;;  %s21133_s11 = sld [smem:[#allocation265_spill]] }
 0x120   : > { %s21131_s7 = sld [smem:[#allocation264_spill]]  ;;  %21132 = sst [smem:[#allocation257_spill]] %s21101_s1 }
 0x121   : > { %21134 = sst [smem:[#allocation258_spill]] %s21103_s29  ;;  %s21137_s15 = sld [smem:[#allocation267_spill]] }
 0x122   : > { %s21135_s23 = sld [smem:[#allocation266_spill]]  ;;  %21136 = sst [smem:[#allocation259_spill]] %s21105_s8 }
 0x123   : > { %21138 = sst [smem:[#allocation260_spill]] %s21107_s25  ;;  %s21141_s16 = sld [smem:[#allocation269_spill]] }
 0x124   : > { %s21139_s18 = sld [smem:[#allocation268_spill]]  ;;  %21140 = sst [smem:[#allocation261_spill]] %s21109_s3 }
 0x125   : > { %21142 = sst [smem:[#allocation262_spill]] %s21111_s14  ;;  %s21145_s24 = sld [smem:[#allocation271_spill]] }
 0x126   : > { %s21143_s10 = sld [smem:[#allocation270_spill]]  ;;  %21144 = sst [smem:[#allocation263_spill]] %s21113_s0 }
 0x127   : > { %21146 = sst [smem:[#allocation264_spill]] %s21115_s5  ;;  %s21149_s6 = sld [smem:[#allocation273_spill]] }
 0x128   : > { %s21147_s1 = sld [smem:[#allocation272_spill]]  ;;  %21148 = sst [smem:[#allocation265_spill]] %s21117_s12 }
 0x129   : > { %21150 = sst [smem:[#allocation266_spill]] %s21119_s22  ;;  %s21153_s25 = sld [smem:[#allocation275_spill]] }
 0x12a   : > { %s21151_s20 = sld [smem:[#allocation274_spill]]  ;;  %21152 = sst [smem:[#allocation267_spill]] %s21121_s26 }
 0x12b   : > { %21154 = sst [smem:[#allocation268_spill]] %s21123_s4  ;;  %s21157_s27 = sld [smem:[#allocation277_spill]] }
 0x12c   : > { %s21155_s17 = sld [smem:[#allocation276_spill]]  ;;  %21156 = sst [smem:[#allocation269_spill]] %s21125_s28 }
 0x12d   : > { %21158 = sst [smem:[#allocation270_spill]] %s21127_s2  ;;  %s21161_s5 = sld [smem:[#allocation279_spill]] }
 0x12e   : > { %s21159_s0 = sld [smem:[#allocation278_spill]]  ;;  %21160 = sst [smem:[#allocation271_spill]] %s21129_s21 }
 0x12f   : > { %21162 = sst [smem:[#allocation272_spill]] %s21131_s7  ;;  %s21165_s22 = sld [smem:[#allocation281_spill]] }
 0x130   : > { %s21163_s12 = sld [smem:[#allocation280_spill]]  ;;  %21164 = sst [smem:[#allocation273_spill]] %s21133_s11 }
 0x131   : > { %21166 = sst [smem:[#allocation274_spill]] %s21135_s23  ;;  %s21169_s4 = sld [smem:[#allocation283_spill]] }
 0x132   : > { %s21167_s26 = sld [smem:[#allocation282_spill]]  ;;  %21168 = sst [smem:[#allocation275_spill]] %s21137_s15 }
 0x133   : > { %21170 = sst [smem:[#allocation276_spill]] %s21139_s18  ;;  %s21173_s2 = sld [smem:[#allocation285_spill]] }
 0x134   : > { %s21171_s28 = sld [smem:[#allocation284_spill]]  ;;  %21172 = sst [smem:[#allocation277_spill]] %s21141_s16 }
 0x135   : > { %21174 = sst [smem:[#allocation278_spill]] %s21143_s10  ;;  %s21177_s7 = sld [smem:[#allocation287_spill]] }
 0x136   : > { %s21175_s21 = sld [smem:[#allocation286_spill]]  ;;  %21176 = sst [smem:[#allocation279_spill]] %s21145_s24 }
 0x137   : > { %21178 = sst [smem:[#allocation280_spill]] %s21147_s1  ;;  %s21181_s23 = sld [smem:[#allocation289_spill]] }
 0x138   : > { %s21179_s9 = sld [smem:[#allocation288_spill]]  ;;  %21180 = sst [smem:[#allocation281_spill]] %s21149_s6 }
 0x139   : > { %21182 = sst [smem:[#allocation282_spill]] %s21151_s20  ;;  %s21185_s29 = sld [smem:[#allocation291_spill]] }
 0x13a   : > { %s21183_s15 = sld [smem:[#allocation290_spill]]  ;;  %21184 = sst [smem:[#allocation283_spill]] %s21153_s25 }
 0x13b   : > { %21186 = sst [smem:[#allocation284_spill]] %s21155_s17  ;;  %s21189_s10 = sld [smem:[#allocation293_spill]] }
 0x13c   : > { %s21187_s16 = sld [smem:[#allocation292_spill]]  ;;  %21188 = sst [smem:[#allocation285_spill]] %s21157_s27 }
 0x13d   : > { %21190 = sst [smem:[#allocation286_spill]] %s21159_s0  ;;  %s21193_s1 = sld [smem:[#allocation295_spill]] }
 0x13e   : > { %s21191_s11 = sld [smem:[#allocation294_spill]]  ;;  %21192 = sst [smem:[#allocation287_spill]] %s21161_s5 }
 0x13f   : > { %21194 = sst [smem:[#allocation288_spill]] %s21163_s12  ;;  %s21197_s18 = sld [smem:[#allocation297_spill]] }
 0x140   : > { %s21195_s8 = sld [smem:[#allocation296_spill]]  ;;  %21196 = sst [smem:[#allocation289_spill]] %s21165_s22 }
 0x141   : > { %21198 = sst [smem:[#allocation290_spill]] %s21167_s26  ;;  %s21201_s6 = sld [smem:[#allocation299_spill]] }
 0x142   : > { %s21199_s19 = sld [smem:[#allocation298_spill]]  ;;  %21200 = sst [smem:[#allocation291_spill]] %s21169_s4 }
 0x143   : > { %21202 = sst [smem:[#allocation292_spill]] %s21171_s28  ;;  %s21205_s0 = sld [smem:[#allocation301_spill]] }
 0x144   : > { %s21203_s25 = sld [smem:[#allocation300_spill]]  ;;  %21204 = sst [smem:[#allocation293_spill]] %s21173_s2 }
 0x145   : > { %21206 = sst [smem:[#allocation294_spill]] %s21175_s21  ;;  %s21209_s3 = sld [smem:[#allocation303_spill]] }
 0x146   : > { %s21207_s5 = sld [smem:[#allocation302_spill]]  ;;  %21208 = sst [smem:[#allocation295_spill]] %s21177_s7 }
 0x147   : > { %21210 = sst [smem:[#allocation296_spill]] %s21179_s9  ;;  %s21212_s26 = sld [smem:[#allocation305_spill]] }
 0x148   : > { %s21211_s22 = sld [smem:[#allocation304_spill]]  ;;  %21213 = sst [smem:[#allocation305_spill]] %s21183_s15 }
 0x149   : > { %21214 = sst [smem:[#allocation304_spill]] %s21185_s29  ;;  %s21215_s28 = sld [smem:[#allocation306_spill]] }
 0x14a   : > { %s21216_s2 = sld [smem:[#allocation307_spill]]  ;;  %s21218_s12 = sld [smem:[#allocation308_spill]] }
 0x14b   : > { %21217 = sst [smem:[#allocation307_spill]] %s21189_s10  ;;  %s21220_s7 = sld [smem:[#allocation309_spill]] }
 0x14c   : > { %21219 = sst [smem:[#allocation308_spill]] %s21191_s11  ;;  %s21221_s9 = sld [smem:[#allocation310_spill]] }
 0x14d   : > { %21222 = sst [smem:[#allocation310_spill]] %s21195_s8  ;;  %s21223_s4 = sld [smem:[#allocation311_spill]] }
 0x14e   : > { %21224 = sst [smem:[#allocation311_spill]] %s21197_s18  ;;  %s21225_s15 = sld [smem:[#allocation312_spill]] }
 0x14f   : > { %21226 = sst [smem:[#allocation312_spill]] %s21199_s19  ;;  %s21227_s29 = sld [smem:[#allocation313_spill]] }
 0x150   : > { %21228 = sst [smem:[#allocation313_spill]] %s21201_s6  ;;  %s21229_s21 = sld [smem:[#allocation314_spill]] }
 0x151   : > { %21230 = sst [smem:[#allocation314_spill]] %s21203_s25  ;;  %s21231_s10 = sld [smem:[#allocation315_spill]] }
 0x152   : > { %21232 = sst [smem:[#allocation315_spill]] %s21207_s5  ;;  %s21233_s30 = smov %s21207_s5 }
 0x153   : > { %21234 = sst [smem:[#allocation309_spill]] %s21209_s3  ;;  %s21236_s24 = smov %s21212_s26 }
 0x154   : > { %21235 = sst [smem:[#allocation306_spill]] %s21212_s26  ;;  %s21239_s20 = smov %s21216_s2 }
 0x155   : > { %21237 = sst [smem:[#allocation297_spill]] %s15187_s13  ;;  %s21241_s17 = smov %s21218_s12 }
 0x156   : > { %21238 = sst [smem:[#allocation298_spill]] %s21216_s2  ;;  %s21243_s27 = smov %s21221_s9 }
 0x157   : > { %21240 = sst [smem:[#allocation299_spill]] %s21218_s12  ;;  %s21245_s14 = smov %s21223_s4 }
 0x158   : > { %21242 = sst [smem:[#allocation300_spill]] %s21221_s9  ;;  %s21247_s19 = smov %s21227_s29 }
 0x159   : > { %21244 = sst [smem:[#allocation303_spill]] %s21223_s4  ;;  %s21249_s6 = smov %s21229_s21 }
 0x15a   : > { %21246 = sst [smem:[#allocation301_spill]] %s21227_s29  ;;  %s16132_s8 = sadd.s32 4294967295, %s21231_s10  }
 0x15b   : > { %21248 = sst [smem:[#allocation302_spill]] %s21229_s21  ;;  %s16135_s11 = sadd.s32 1, %s21231_s10  }
 0x15c   : > { %21250 = sst [smem:[#allocation316_spill]] %s16132_s8  ;;  %s21252_s25 = smov %s16135_s11 }
 0x15d   : > { %21251 = sst [smem:[#allocation317_spill]] %s16135_s11  ;;  %s952_s4 = sadd.s32 1, %s21249_s6 }
 0x15e   : > { %s947_s18 = sld [smem:[#allocation7 + %s21231_s10]]  ;;  %p959_p5 = scmp.ne.s32.totalorder %s21249_s6, %s21247_s19 }
 0x15f   : > { %s948_s12 = sld [smem:[#allocation7 + %s21252_s25]]  ;;  %p20621_p6 = scmp.eq.s32.totalorder %s21231_s10, 0 }
 0x160   : > { %p965_p7 = scmp.ne.s32.totalorder %s21247_s19, %s21225_s15  ;;  %p20809_p8 = scmp.eq.s32.totalorder %s16132_s8, 0 }
 0x161   : > { %s975_s21 = sld [smem:[#allocation7 + %s21231_s10]]  ;;  %p16148_p9 = por %p20621_p6, %p959_p5 }
 0x162   : > { %s976_s26 = sld [smem:[#allocation7 + %s21252_s25]]  ;;  %p16155_p10 = por %p20809_p8, %p965_p7 }
 0x163   : > { %s21253_s5 = scalar_select %p16148_p9, 1, 0 }
 0x164   : > { %s21255_s2 = scalar_select %p16155_p10, 1, 0 }
 0x165   : > { %21254 = sst [smem:[#allocation318_spill]] %s21253_s5  ;;  %s980_s9 = sadd.s32 1, %s21245_s14 }
 0x166   : > { %21256 = sst [smem:[#allocation319_spill]] %s21255_s2  ;;  %s949_s15 = ssub.s32 %s947_s18, %s948_s12 }
 0x167   : > { %p987_p11 = scmp.ne.s32.totalorder %s21245_s14, %s21243_s27  ;;  %p950_p12 = scmp.eq.s32.totalorder %s949_s15, 0 }
 0x168   : > { %p993_p13 = scmp.ne.s32.totalorder %s21243_s27, %s21220_s7  ;;  %s1031_s11 = sld [smem:[#allocation7 + %s21231_s10]] }
 0x169   : > { %p16166_p0 = por %p987_p11, %p20621_p6  ;;  %s977_s5 = ssub.s32 %s975_s21, %s976_s26 }
 0x16a   : > { %s16172_s2 = scalar_select %p950_p12, %s21249_s6, %s952_s4  }
 0x16b   : > { %s21257_s29 = scalar_select %p16166_p0, 1, 0 }
 0x16c   : > { %21259 = sst [smem:[#allocation321_spill]] %s16172_s2  ;;  %p16176_p1 = por %p993_p13, %p20809_p8 }
 0x16d   : > { %21258 = sst [smem:[#allocation320_spill]] %s21257_s29  ;;  %p978_p2 = scmp.eq.s32.totalorder %s977_s5, 0 }
 0x16e   : > { %s21260_s18 = scalar_select %p16176_p1, 1, 0 }
 0x16f   : > { %s1032_s7 = sld [smem:[#allocation7 + %s21252_s25]]  ;;  %s1036_s12 = sadd.s32 1, %s21241_s17 }
 0x170   : > { %21261 = sst [smem:[#allocation322_spill]] %s21260_s18  ;;  %p1043_p3 = scmp.ne.s32.totalorder %s21241_s17, %s21239_s20 }
 0x171   : > { %s16185_s15 = scalar_select %p978_p2, %s21245_s14, %s980_s9  }
 0x172   : > { %p16189_p4 = por %p1043_p3, %p20621_p6  ;;  %p1049_p5 = scmp.ne.s32.totalorder %s21239_s20, %s21215_s28 }
 0x173   : > { %21262 = sst [smem:[#allocation323_spill]] %s16185_s15  ;;  %s1092_s2 = sadd.s32 1, %s15187_s13 }
 0x174   : > { %s21263_s4 = scalar_select %p16189_p4, 1, 0 }
 0x175   : > { %s1087_s21 = sld [smem:[#allocation7 + %s21231_s10]]  ;;  %p16199_p7 = por %p1049_p5, %p20809_p8 }
 0x176   : > { %s1088_s5 = sld [smem:[#allocation7 + %s21252_s25]]  ;;  %s1033_s9 = ssub.s32 %s1031_s11, %s1032_s7 }
 0x177   : > { %s21264_s26 = scalar_select %p16199_p7, 1, 0 }
 0x178   : > { %p1099_p11 = scmp.ne.s32.totalorder %s15187_s13, %s21236_s24  ;;  %p1034_p12 = scmp.eq.s32.totalorder %s1033_s9, 0 }
 0x179   : > { %21265 = sst [smem:[#allocation324_spill]] %s21264_s26  ;;  %p1105_p13 = scmp.ne.s32.totalorder %s21236_s24, %s21211_s22 }
 0x17a   : > { %s21266_s28 = sld [smem:[#allocation314_spill]]  ;;  %p16210_p2 = por %p1099_p11, %p20621_p6 }
 0x17b   : > { %s1115_s19 = sld [smem:[#allocation7 + %s21231_s10]]  ;;  %p16220_p3 = por %p1105_p13, %p20809_p8 }
 0x17c   : > { %s21267_s15 = scalar_select %p16210_p2, 1, 0 }
 0x17d   : > { %s21269_s27 = sld [smem:[#allocation313_spill]]  ;;  %s1089_s18 = ssub.s32 %s1087_s21, %s1088_s5 }
 0x17e   : > { %21268 = sst [smem:[#allocation325_spill]] %s21267_s15  ;;  %s21271_s11 = sld [smem:[#allocation312_spill]] }
 0x17f   : > { %s16216_s26 = scalar_select %p1034_p12, %s21241_s17, %s1036_s12  }
 0x180   : > { %s21272_s7 = scalar_select %p16220_p3, 1, 0 }
 0x181   : > { %21270 = sst [smem:[#allocation326_spill]] %s16216_s26  ;;  %p1090_p5 = scmp.eq.s32.totalorder %s1089_s18, 0 }
 0x182   : > { %21273 = sst [smem:[#allocation312_spill]] %s21272_s7  ;;  %s1120_s9 = sadd.s32 1, %s21209_s3 }
 0x183   : > { %s1116_s22 = sld [smem:[#allocation7 + %s21252_s25]]  ;;  %p1127_p11 = scmp.ne.s32.totalorder %s21209_s3, %s21233_s30 }
 0x184   : > { %s16229_s24 = scalar_select %p1090_p5, %s15187_s13, %s1092_s2  }
 0x185   : > { %p16233_p12 = por %p1127_p11, %p20621_p6  ;;  %p1133_p13 = scmp.ne.s32.totalorder %s21233_s30, %s21205_s0 }
 0x186   : > { %21274 = sst [smem:[#allocation327_spill]] %s16229_s24  ;;  %s21276_s21 = sld [smem:[#allocation311_spill]] }
 0x187   : > { %s21275_s12 = scalar_select %p16233_p12, 1, 0 }
 0x188   : > { %s1143_s5 = sld [smem:[#allocation7 + %s21231_s10]]  ;;  %p16243_p3 = por %p1133_p13, %p20809_p8 }
 0x189   : > { %s21277_s26 = sld [smem:[#allocation310_spill]]  ;;  %s1148_s2 = sadd.s32 1, %s21266_s28 }
 0x18a   : > { %s1144_s18 = sld [smem:[#allocation7 + %s21252_s25]]  ;;  %s1117_s24 = ssub.s32 %s1115_s19, %s1116_s22 }
 0x18b   : > { %s21278_s20 = scalar_select %p16243_p3, 1, 0 }
 0x18c   : > { %p1155_p5 = scmp.ne.s32.totalorder %s21266_s28, %s21269_s27  ;;  %p1118_p11 = scmp.eq.s32.totalorder %s1117_s24, 0 }
 0x18d   : > { %21279 = sst [smem:[#allocation328_spill]] %s21278_s20  ;;  %p1161_p6 = scmp.ne.s32.totalorder %s21269_s27, %s21271_s11 }
 0x18e   : > { %p21280_p7 = scmp.eq.s32.totalorder %s21231_s10, 0  ;;  %s21281_s0 = sld [smem:[#allocation308_spill]] }
 0x18f   : > { %s1171_s7 = sld [smem:[#allocation7 + %s21231_s10]]  ;;  %p16264_p13 = por %p1161_p6, %p20809_p8 }
 0x190   : > { %p16254_p1 = por %p1155_p5, %p21280_p7  ;;  %s21284_s15 = sld [smem:[#allocation307_spill]] }
 0x191   : > { %s16260_s20 = scalar_select %p1118_p11, %s21209_s3, %s1120_s9  }
 0x192   : > { %s21282_s30 = scalar_select %p16254_p1, 1, 0 }
 0x193   : > { %21285 = sst [smem:[#allocation330_spill]] %s16260_s20  ;;  %s1145_s13 = ssub.s32 %s1143_s5, %s1144_s18 }
 0x194   : > { %21283 = sst [smem:[#allocation329_spill]] %s21282_s30  ;;  %p1146_p3 = scmp.eq.s32.totalorder %s1145_s13, 0 }
 0x195   : > { %s21286_s19 = scalar_select %p16264_p13, 1, 0 }
 0x196   : > { %s1172_s24 = sld [smem:[#allocation7 + %s21252_s25]]  ;;  %s1176_s27 = sadd.s32 1, %s21276_s21 }
 0x197   : > { %21287 = sst [smem:[#allocation331_spill]] %s21286_s19  ;;  %p1183_p7 = scmp.ne.s32.totalorder %s21276_s21, %s21277_s26 }
 0x198   : > { %s22086_s28 = smov (!%p1146_p3, %s21266_s28), %s1148_s2  ;;  %p21289_p5 = scmp.eq.s32.totalorder %s21231_s10, 0 }
 0x199   : > { %21288 = sst [smem:[#allocation332_spill]] %s22086_s28  ;;  %p1189_p6 = scmp.ne.s32.totalorder %s21277_s26, %s21193_s1 }
 0x19a   : > { %p16277_p11 = por %p1183_p7, %p21289_p5  ;;  %s21291_s22 = sld [smem:[#allocation304_spill]] }
 0x19b   : > { %s1199_s9 = sld [smem:[#allocation7 + %s21231_s10]]  ;;  %p16287_p13 = por %p1189_p6, %p20809_p8 }
 0x19c   : > { %s21290_s11 = scalar_select %p16277_p11, 1, 0 }
 0x19d   : > { %s21292_s5 = sld [smem:[#allocation305_spill]]  ;;  %s1204_s28 = sadd.s32 1, %s21281_s0 }
 0x19e   : > { %s1200_s13 = sld [smem:[#allocation7 + %s21252_s25]]  ;;  %s1173_s2 = ssub.s32 %s1171_s7, %s1172_s24 }
 0x19f   : > { %s21293_s18 = scalar_select %p16287_p13, 1, 0 }
 0x1a0   : > { %p1211_p3 = scmp.ne.s32.totalorder %s21281_s0, %s21284_s15  ;;  %p1174_p7 = scmp.eq.s32.totalorder %s1173_s2, 0 }
 0x1a1   : > { %21294 = sst [smem:[#allocation333_spill]] %s21293_s18  ;;  %p1217_p5 = scmp.ne.s32.totalorder %s21284_s15, %s21187_s16 }
 0x1a2   : > { %p21295_p10 = scmp.eq.s32.totalorder %s21231_s10, 0  ;;  %s21296_s1 = sld [smem:[#allocation296_spill]] }
 0x1a3   : > { %s1227_s20 = sld [smem:[#allocation7 + %s21231_s10]]  ;;  %s22088_s21 = smov (!%p1174_p7, %s21276_s21), %s1176_s27 }
 0x1a4   : > { %p16298_p1 = por %p1211_p3, %p21295_p10  ;;  %s21299_s30 = sld [smem:[#allocation295_spill]] }
 0x1a5   : > { %21300 = sst [smem:[#allocation335_spill]] %s22088_s21  ;;  %s1201_s18 = ssub.s32 %s1199_s9, %s1200_s13 }
 0x1a6   : > { %s21297_s26 = scalar_select %p16298_p1, 1, 0 }
 0x1a7   : > { %s21301_s7 = sld [smem:[#allocation294_spill]]  ;;  %p16308_p6 = por %p1217_p5, %p20809_p8 }
 0x1a8   : > { %21298 = sst [smem:[#allocation334_spill]] %s21297_s26  ;;  %p1202_p13 = scmp.eq.s32.totalorder %s1201_s18, 0 }
 0x1a9   : > { %s21302_s24 = scalar_select %p16308_p6, 1, 0 }
 0x1aa   : > { %s1228_s16 = sld [smem:[#allocation7 + %s21252_s25]]  ;;  %s1232_s15 = sadd.s32 1, %s21291_s22 }
 0x1ab   : > { %21303 = sst [smem:[#allocation294_spill]] %s21302_s24  ;;  %p1239_p10 = scmp.ne.s32.totalorder %s21291_s22, %s21292_s5 }
 0x1ac   : > { %s22090_s0 = smov (!%p1202_p13, %s21281_s0), %s1204_s28  ;;  %p21305_p3 = scmp.eq.s32.totalorder %s21231_s10, 0 }
 0x1ad   : > { %21304 = sst [smem:[#allocation336_spill]] %s22090_s0  ;;  %p1245_p5 = scmp.ne.s32.totalorder %s21292_s5, %s21181_s23 }
 0x1ae   : > { %p16321_p7 = por %p1239_p10, %p21305_p3  ;;  %s21307_s27 = sld [smem:[#allocation293_spill]] }
 0x1af   : > { %s1255_s9 = sld [smem:[#allocation7 + %s21231_s10]]  ;;  %p16331_p6 = por %p1245_p5, %p20809_p8 }
 0x1b0   : > { %s21306_s21 = scalar_select %p16321_p7, 1, 0 }
 0x1b1   : > { %s21308_s13 = sld [smem:[#allocation292_spill]]  ;;  %s1260_s0 = sadd.s32 1, %s21296_s1 }
 0x1b2   : > { %s1256_s18 = sld [smem:[#allocation7 + %s21252_s25]]  ;;  %s1229_s19 = ssub.s32 %s1227_s20, %s1228_s16 }
 0x1b3   : > { %s21309_s2 = scalar_select %p16331_p6, 1, 0 }
 0x1b4   : > { %s21311_s28 = sld [smem:[#allocation291_spill]]  ;;  %p1267_p13 = scmp.ne.s32.totalorder %s21296_s1, %s21299_s30 }
 0x1b5   : > { %21310 = sst [smem:[#allocation337_spill]] %s21309_s2  ;;  %p1230_p10 = scmp.eq.s32.totalorder %s1229_s19, 0 }
 0x1b6   : > { %p1273_p3 = scmp.ne.s32.totalorder %s21299_s30, %s21301_s7  ;;  %p21312_p1 = scmp.eq.s32.totalorder %s21231_s10, 0 }
 0x1b7   : > { %s21313_s23 = sld [smem:[#allocation290_spill]]  ;;  %s21316_s24 = sld [smem:[#allocation289_spill]] }
 0x1b8   : > { %p16342_p2 = por %p1267_p13, %p21312_p1  ;;  %s1283_s14 = sld [smem:[#allocation7 + %s21231_s10]] }
 0x1b9   : > { %s22092_s22 = smov (!%p1230_p10, %s21291_s22), %s1232_s15  ;;  %s1257_s2 = ssub.s32 %s1255_s9, %s1256_s18 }
 0x1ba   : > { %s21314_s5 = scalar_select %p16342_p2, 1, 0 }
 0x1bb   : > { %21317 = sst [smem:[#allocation338_spill]] %s22092_s22  ;;  %s21318_s20 = sld [smem:[#allocation288_spill]] }
 0x1bc   : > { %21315 = sst [smem:[#allocation291_spill]] %s21314_s5  ;;  %p16352_p5 = por %p1273_p3, %p20809_p8 }
 0x1bd   : > { %p1258_p6 = scmp.eq.s32.totalorder %s1257_s2, 0  ;;  %s1284_s30 = sld [smem:[#allocation7 + %s21252_s25]] }
 0x1be   : > { %s21319_s16 = scalar_select %p16352_p5, 1, 0 }
 0x1bf   : > { %s1288_s19 = sadd.s32 1, %s21307_s27  ;;  %p1295_p1 = scmp.ne.s32.totalorder %s21307_s27, %s21308_s13 }
 0x1c0   : > { %21320 = sst [smem:[#allocation288_spill]] %s21319_s16  ;;  %s22094_s1 = smov (!%p1258_p6, %s21296_s1), %s1260_s0 }
 0x1c1   : > { %21321 = sst [smem:[#allocation339_spill]] %s22094_s1  ;;  %p21322_p13 = scmp.eq.s32.totalorder %s21231_s10, 0 }
 0x1c2   : > { %p1301_p3 = scmp.ne.s32.totalorder %s21308_s13, %s21311_s28  ;;  %s21324_s7 = sld [smem:[#allocation287_spill]] }
 0x1c3   : > { %p16365_p10 = por %p1295_p1, %p21322_p13  ;;  %s1311_s15 = sld [smem:[#allocation7 + %s21231_s10]] }
 0x1c4   : > { %s21325_s9 = sld [smem:[#allocation286_spill]]  ;;  %p16375_p5 = por %p1301_p3, %p20809_p8 }
 0x1c5   : > { %s21323_s22 = scalar_select %p16365_p10, 1, 0 }
 0x1c6   : > { %s1312_s18 = sld [smem:[#allocation7 + %s21252_s25]]  ;;  %s1316_s1 = sadd.s32 1, %s21313_s23 }
 0x1c7   : > { %s21326_s2 = scalar_select %p16375_p5, 1, 0 }
 0x1c8   : > { %s21328_s0 = sld [smem:[#allocation285_spill]]  ;;  %s1285_s3 = ssub.s32 %s1283_s14, %s1284_s30 }
 0x1c9   : > { %21327 = sst [smem:[#allocation340_spill]] %s21326_s2  ;;  %p1323_p6 = scmp.ne.s32.totalorder %s21313_s23, %s21316_s24 }
 0x1ca   : > { %p1286_p1 = scmp.eq.s32.totalorder %s1285_s3, 0  ;;  %p1329_p13 = scmp.ne.s32.totalorder %s21316_s24, %s21318_s20 }
 0x1cb   : > { %p21329_p2 = scmp.eq.s32.totalorder %s21231_s10, 0  ;;  %s21330_s13 = sld [smem:[#allocation284_spill]] }
 0x1cc   : > { %s1339_s17 = sld [smem:[#allocation7 + %s21231_s10]]  ;;  %s22096_s27 = smov (!%p1286_p1, %s21307_s27), %s1288_s19 }
 0x1cd   : > { %p16386_p0 = por %p1323_p6, %p21329_p2  ;;  %s21333_s16 = sld [smem:[#allocation283_spill]] }
 0x1ce   : > { %21334 = sst [smem:[#allocation341_spill]] %s22096_s27  ;;  %s1313_s2 = ssub.s32 %s1311_s15, %s1312_s18 }
 0x1cf   : > { %s21331_s28 = scalar_select %p16386_p0, 1, 0 }
 0x1d0   : > { %s21335_s14 = sld [smem:[#allocation282_spill]]  ;;  %p16396_p3 = por %p1329_p13, %p20809_p8 }
 0x1d1   : > { %21332 = sst [smem:[#allocation285_spill]] %s21331_s28  ;;  %p1314_p5 = scmp.eq.s32.totalorder %s1313_s2, 0 }
 0x1d2   : > { %s21336_s30 = scalar_select %p16396_p3, 1, 0 }
 0x1d3   : > { %s1340_s3 = sld [smem:[#allocation7 + %s21252_s25]]  ;;  %s1344_s24 = sadd.s32 1, %s21324_s7 }
 0x1d4   : > { %21337 = sst [smem:[#allocation282_spill]] %s21336_s30  ;;  %p1351_p2 = scmp.ne.s32.totalorder %s21324_s7, %s21325_s9 }
 0x1d5   : > { %s22098_s23 = smov (!%p1314_p5, %s21313_s23), %s1316_s1  ;;  %p21339_p6 = scmp.eq.s32.totalorder %s21231_s10, 0 }
 0x1d6   : > { %21338 = sst [smem:[#allocation342_spill]] %s22098_s23  ;;  %p1357_p13 = scmp.ne.s32.totalorder %s21325_s9, %s21328_s0 }
 0x1d7   : > { %p16409_p1 = por %p1351_p2, %p21339_p6  ;;  %s21342_s15 = sld [smem:[#allocation281_spill]] }
 0x1d8   : > { %s1367_s18 = sld [smem:[#allocation7 + %s21231_s10]]  ;;  %p16419_p3 = por %p1357_p13, %p20809_p8 }
 0x1d9   : > { %s21340_s19 = scalar_select %p16409_p1, 1, 0 }
 0x1da   : > { %s21343_s27 = sld [smem:[#allocation280_spill]]  ;;  %s1372_s23 = sadd.s32 1, %s21330_s13 }
 0x1db   : > { %21341 = sst [smem:[#allocation343_spill]] %s21340_s19  ;;  %s21346_s1 = sld [smem:[#allocation279_spill]] }
 0x1dc   : > { %s1368_s2 = sld [smem:[#allocation7 + %s21252_s25]]  ;;  %s1341_s20 = ssub.s32 %s1339_s17, %s1340_s3 }
 0x1dd   : > { %s21344_s30 = scalar_select %p16419_p3, 1, 0 }
 0x1de   : > { %p1379_p5 = scmp.ne.s32.totalorder %s21330_s13, %s21333_s16  ;;  %p1342_p2 = scmp.eq.s32.totalorder %s1341_s20, 0 }
 0x1df   : > { %21345 = sst [smem:[#allocation344_spill]] %s21344_s30  ;;  %p1385_p6 = scmp.ne.s32.totalorder %s21333_s16, %s21335_s14 }
 0x1e0   : > { %p21347_p0 = scmp.eq.s32.totalorder %s21231_s10, 0  ;;  %s21348_s9 = sld [smem:[#allocation278_spill]] }
 0x1e1   : > { %s1395_s28 = sld [smem:[#allocation7 + %s21231_s10]]  ;;  %s22100_s7 = smov (!%p1342_p2, %s21324_s7), %s1344_s24 }
 0x1e2   : > { %p16430_p1 = por %p1379_p5, %p21347_p0  ;;  %s21351_s5 = sld [smem:[#allocation277_spill]] }
 0x1e3   : > { %21352 = sst [smem:[#allocation345_spill]] %s22100_s7  ;;  %s1369_s26 = ssub.s32 %s1367_s18, %s1368_s2 }
 0x1e4   : > { %s21349_s0 = scalar_select %p16430_p1, 1, 0 }
 0x1e5   : > { %s21353_s17 = sld [smem:[#allocation276_spill]]  ;;  %p16440_p13 = por %p1385_p6, %p20809_p8 }
 0x1e6   : > { %21350 = sst [smem:[#allocation279_spill]] %s21349_s0  ;;  %p1370_p3 = scmp.eq.s32.totalorder %s1369_s26, 0 }
 0x1e7   : > { %s21354_s3 = scalar_select %p16440_p13, 1, 0 }
 0x1e8   : > { %s1396_s16 = sld [smem:[#allocation7 + %s21252_s25]]  ;;  %s1400_s14 = sadd.s32 1, %s21342_s15 }
 0x1e9   : > { %21355 = sst [smem:[#allocation276_spill]] %s21354_s3  ;;  %p1407_p0 = scmp.ne.s32.totalorder %s21342_s15, %s21343_s27 }
 0x1ea   : > { %s22102_s13 = smov (!%p1370_p3, %s21330_s13), %s1372_s23  ;;  %p21357_p5 = scmp.eq.s32.totalorder %s21231_s10, 0 }
 0x1eb   : > { %21356 = sst [smem:[#allocation346_spill]] %s22102_s13  ;;  %p1413_p6 = scmp.ne.s32.totalorder %s21343_s27, %s21346_s1 }
 0x1ec   : > { %p16453_p2 = por %p1407_p0, %p21357_p5  ;;  %s21359_s24 = sld [smem:[#allocation275_spill]] }
 0x1ed   : > { %s1423_s20 = sld [smem:[#allocation7 + %s21231_s10]]  ;;  %p16463_p13 = por %p1413_p6, %p20809_p8 }
 0x1ee   : > { %s21358_s7 = scalar_select %p16453_p2, 1, 0 }
 0x1ef   : > { %s21360_s18 = sld [smem:[#allocation274_spill]]  ;;  %s1428_s23 = sadd.s32 1, %s21348_s9 }
 0x1f0   : > { %s1424_s26 = sld [smem:[#allocation7 + %s21252_s25]]  ;;  %s1397_s13 = ssub.s32 %s1395_s28, %s1396_s16 }
 0x1f1   : > { %s21361_s2 = scalar_select %p16463_p13, 1, 0 }
 0x1f2   : > { %s21363_s30 = sld [smem:[#allocation273_spill]]  ;;  %p1435_p3 = scmp.ne.s32.totalorder %s21348_s9, %s21351_s5 }
 0x1f3   : > { %21362 = sst [smem:[#allocation347_spill]] %s21361_s2  ;;  %p1398_p0 = scmp.eq.s32.totalorder %s1397_s13, 0 }
 0x1f4   : > { %p1441_p5 = scmp.ne.s32.totalorder %s21351_s5, %s21353_s17  ;;  %p21364_p1 = scmp.eq.s32.totalorder %s21231_s10, 0 }
 0x1f5   : > { %s21365_s27 = sld [smem:[#allocation272_spill]]  ;;  %s21368_s0 = sld [smem:[#allocation271_spill]] }
 0x1f6   : > { %p16474_p2 = por %p1435_p3, %p21364_p1  ;;  %s1451_s3 = sld [smem:[#allocation7 + %s21231_s10]] }
 0x1f7   : > { %s22104_s15 = smov (!%p1398_p0, %s21342_s15), %s1400_s14  ;;  %s1425_s2 = ssub.s32 %s1423_s20, %s1424_s26 }
 0x1f8   : > { %s21366_s1 = scalar_select %p16474_p2, 1, 0 }
 0x1f9   : > { %21369 = sst [smem:[#allocation348_spill]] %s22104_s15  ;;  %s21370_s28 = sld [smem:[#allocation270_spill]] }
 0x1fa   : > { %21367 = sst [smem:[#allocation273_spill]] %s21366_s1  ;;  %p16484_p6 = por %p1441_p5, %p20809_p8 }
 0x1fb   : > { %p1426_p13 = scmp.eq.s32.totalorder %s1425_s2, 0  ;;  %s1452_s5 = sld [smem:[#allocation7 + %s21252_s25]] }
 0x1fc   : > { %s21371_s16 = scalar_select %p16484_p6, 1, 0 }
 0x1fd   : > { %s1456_s13 = sadd.s32 1, %s21359_s24  ;;  %p1463_p1 = scmp.ne.s32.totalorder %s21359_s24, %s21360_s18 }
 0x1fe   : > { %21372 = sst [smem:[#allocation270_spill]] %s21371_s16  ;;  %s22106_s9 = smov (!%p1426_p13, %s21348_s9), %s1428_s23 }
 0x1ff   : > { %21373 = sst [smem:[#allocation349_spill]] %s22106_s9  ;;  %p21374_p3 = scmp.eq.s32.totalorder %s21231_s10, 0 }
 0x200   : > { %p1469_p5 = scmp.ne.s32.totalorder %s21360_s18, %s21363_s30  ;;  %s21376_s14 = sld [smem:[#allocation269_spill]] }
 0x201   : > { %p16497_p0 = por %p1463_p1, %p21374_p3  ;;  %s1479_s20 = sld [smem:[#allocation7 + %s21231_s10]] }
 0x202   : > { %s21377_s26 = sld [smem:[#allocation268_spill]]  ;;  %p16507_p6 = por %p1469_p5, %p20809_p8 }
 0x203   : > { %s21375_s15 = scalar_select %p16497_p0, 1, 0 }
 0x204   : > { %s1480_s2 = sld [smem:[#allocation7 + %s21252_s25]]  ;;  %s1484_s9 = sadd.s32 1, %s21365_s27 }
 0x205   : > { %s21378_s19 = scalar_select %p16507_p6, 1, 0 }
 0x206   : > { %s21380_s23 = sld [smem:[#allocation267_spill]]  ;;  %s1453_s17 = ssub.s32 %s1451_s3, %s1452_s5 }
 0x207   : > { %21379 = sst [smem:[#allocation350_spill]] %s21378_s19  ;;  %p1491_p13 = scmp.ne.s32.totalorder %s21365_s27, %s21368_s0 }
 0x208   : > { %p1454_p1 = scmp.eq.s32.totalorder %s1453_s17, 0  ;;  %p1497_p3 = scmp.ne.s32.totalorder %s21368_s0, %s21370_s28 }
 0x209   : > { %p21381_p2 = scmp.eq.s32.totalorder %s21231_s10, 0  ;;  %s21382_s30 = sld [smem:[#allocation266_spill]] }
 0x20a   : > { %s1507_s16 = sld [smem:[#allocation7 + %s21231_s10]]  ;;  %s22108_s24 = smov (!%p1454_p1, %s21359_s24), %s1456_s13 }
 0x20b   : > { %p16518_p0 = por %p1491_p13, %p21381_p2  ;;  %s21385_s1 = sld [smem:[#allocation265_spill]] }
 0x20c   : > { %21386 = sst [smem:[#allocation351_spill]] %s22108_s24  ;;  %s1481_s19 = ssub.s32 %s1479_s20, %s1480_s2 }
 0x20d   : > { %s21383_s18 = scalar_select %p16518_p0, 1, 0 }
 0x20e   : > { %s21387_s3 = sld [smem:[#allocation264_spill]]  ;;  %p16528_p5 = por %p1497_p3, %p20809_p8 }
 0x20f   : > { %21384 = sst [smem:[#allocation267_spill]] %s21383_s18  ;;  %p1482_p6 = scmp.eq.s32.totalorder %s1481_s19, 0 }
 0x210   : > { %s21388_s5 = scalar_select %p16528_p5, 1, 0 }
 0x211   : > { %s1508_s0 = sld [smem:[#allocation7 + %s21252_s25]]  ;;  %s1512_s28 = sadd.s32 1, %s21376_s14 }
 0x212   : > { %21389 = sst [smem:[#allocation264_spill]] %s21388_s5  ;;  %p1519_p2 = scmp.ne.s32.totalorder %s21376_s14, %s21377_s26 }
 0x213   : > { %s22110_s27 = smov (!%p1482_p6, %s21365_s27), %s1484_s9  ;;  %p21391_p13 = scmp.eq.s32.totalorder %s21231_s10, 0 }
 0x214   : > { %21390 = sst [smem:[#allocation352_spill]] %s22110_s27  ;;  %p1525_p3 = scmp.ne.s32.totalorder %s21377_s26, %s21380_s23 }
 0x215   : > { %p16541_p1 = por %p1519_p2, %p21391_p13  ;;  %s21393_s17 = sld [smem:[#allocation263_spill]] }
 0x216   : > { %s1535_s20 = sld [smem:[#allocation7 + %s21231_s10]]  ;;  %p16551_p5 = por %p1525_p3, %p20809_p8 }
 0x217   : > { %s21392_s13 = scalar_select %p16541_p1, 1, 0 }
 0x218   : > { %s21394_s2 = sld [smem:[#allocation262_spill]]  ;;  %s1540_s9 = sadd.s32 1, %s21382_s30 }
 0x219   : > { %s1536_s19 = sld [smem:[#allocation7 + %s21252_s25]]  ;;  %s1509_s5 = ssub.s32 %s1507_s16, %s1508_s0 }
 0x21a   : > { %s21395_s24 = scalar_select %p16551_p5, 1, 0 }
 0x21b   : > { %s21397_s27 = sld [smem:[#allocation261_spill]]  ;;  %p1547_p6 = scmp.ne.s32.totalorder %s21382_s30, %s21385_s1 }
 0x21c   : > { %21396 = sst [smem:[#allocation353_spill]] %s21395_s24  ;;  %p1510_p2 = scmp.eq.s32.totalorder %s1509_s5, 0 }
 0x21d   : > { %p1553_p13 = scmp.ne.s32.totalorder %s21385_s1, %s21387_s3  ;;  %p21398_p0 = scmp.eq.s32.totalorder %s21231_s10, 0 }
 0x21e   : > { %s21399_s26 = sld [smem:[#allocation260_spill]]  ;;  %s21402_s29 = sld [smem:[#allocation259_spill]] }
 0x21f   : > { %p16562_p1 = por %p1547_p6, %p21398_p0  ;;  %s1563_s18 = sld [smem:[#allocation7 + %s21231_s10]] }
 0x220   : > { %s22112_s14 = smov (!%p1510_p2, %s21376_s14), %s1512_s28  ;;  %s1537_s24 = ssub.s32 %s1535_s20, %s1536_s19 }
 0x221   : > { %s21400_s23 = scalar_select %p16562_p1, 1, 0 }
 0x222   : > { %21403 = sst [smem:[#allocation354_spill]] %s22112_s14  ;;  %s21404_s16 = sld [smem:[#allocation258_spill]] }
 0x223   : > { %21401 = sst [smem:[#allocation261_spill]] %s21400_s23  ;;  %p16572_p3 = por %p1553_p13, %p20809_p8 }
 0x224   : > { %p1538_p5 = scmp.eq.s32.totalorder %s1537_s24, 0  ;;  %s1564_s1 = sld [smem:[#allocation7 + %s21252_s25]] }
 0x225   : > { %s21405_s0 = scalar_select %p16572_p3, 1, 0 }
 0x226   : > { %s1568_s3 = sadd.s32 1, %s21393_s17  ;;  %p1575_p0 = scmp.ne.s32.totalorder %s21393_s17, %s21394_s2 }
 0x227   : > { %21406 = sst [smem:[#allocation258_spill]] %s21405_s0  ;;  %s22114_s30 = smov (!%p1538_p5, %s21382_s30), %s1540_s9 }
 0x228   : > { %21407 = sst [smem:[#allocation355_spill]] %s22114_s30  ;;  %p21408_p6 = scmp.eq.s32.totalorder %s21231_s10, 0 }
 0x229   : > { %p1581_p13 = scmp.ne.s32.totalorder %s21394_s2, %s21397_s27  ;;  %s21411_s28 = sld [smem:[#allocation257_spill]] }
 0x22a   : > { %p16585_p2 = por %p1575_p0, %p21408_p6  ;;  %s1591_s20 = sld [smem:[#allocation7 + %s21231_s10]] }
 0x22b   : > { %s21412_s19 = sld [smem:[#allocation256_spill]]  ;;  %p16595_p3 = por %p1581_p13, %p20809_p8 }
 0x22c   : > { %s21409_s5 = scalar_select %p16585_p2, 1, 0 }
 0x22d   : > { %s1592_s24 = sld [smem:[#allocation7 + %s21252_s25]]  ;;  %s1596_s9 = sadd.s32 1, %s21399_s26 }
 0x22e   : > { %21410 = sst [smem:[#allocation356_spill]] %s21409_s5  ;;  %s21415_s30 = sld [smem:[#allocation255_spill]] }
 0x22f   : > { %s21413_s14 = scalar_select %p16595_p3, 1, 0 }
 0x230   : > { %s1565_s0 = ssub.s32 %s1563_s18, %s1564_s1  ;;  %p1603_p5 = scmp.ne.s32.totalorder %s21399_s26, %s21402_s29 }
 0x231   : > { %21414 = sst [smem:[#allocation357_spill]] %s21413_s14  ;;  %p1566_p0 = scmp.eq.s32.totalorder %s1565_s0, 0 }
 0x232   : > { %p1609_p6 = scmp.ne.s32.totalorder %s21402_s29, %s21404_s16  ;;  %p21416_p1 = scmp.eq.s32.totalorder %s21231_s10, 0 }
 0x233   : > { %s21417_s27 = sld [smem:[#allocation254_spill]]  ;;  %s21420_s5 = sld [smem:[#allocation253_spill]] }
 0x234   : > { %p16606_p2 = por %p1603_p5, %p21416_p1  ;;  %s1619_s23 = sld [smem:[#allocation7 + %s21231_s10]] }
 0x235   : > { %s22116_s17 = smov (!%p1566_p0, %s21393_s17), %s1568_s3  ;;  %s1593_s14 = ssub.s32 %s1591_s20, %s1592_s24 }
 0x236   : > { %s21418_s2 = scalar_select %p16606_p2, 1, 0 }
 0x237   : > { %21421 = sst [smem:[#allocation358_spill]] %s22116_s17  ;;  %s21422_s18 = sld [smem:[#allocation252_spill]] }
 0x238   : > { %21419 = sst [smem:[#allocation255_spill]] %s21418_s2  ;;  %p16616_p13 = por %p1609_p6, %p20809_p8 }
 0x239   : > { %p1594_p3 = scmp.eq.s32.totalorder %s1593_s14, 0  ;;  %s1620_s29 = sld [smem:[#allocation7 + %s21252_s25]] }
 0x23a   : > { %s21423_s1 = scalar_select %p16616_p13, 1, 0 }
 0x23b   : > { %s1624_s16 = sadd.s32 1, %s21411_s28  ;;  %p1631_p1 = scmp.ne.s32.totalorder %s21411_s28, %s21412_s19 }
 0x23c   : > { %21424 = sst [smem:[#allocation252_spill]] %s21423_s1  ;;  %s22118_s26 = smov (!%p1594_p3, %s21399_s26), %s1596_s9 }
 0x23d   : > { %21425 = sst [smem:[#allocation359_spill]] %s22118_s26  ;;  %p21426_p5 = scmp.eq.s32.totalorder %s21231_s10, 0 }
 0x23e   : > { %p1637_p6 = scmp.ne.s32.totalorder %s21412_s19, %s21415_s30  ;;  %s21429_s3 = sld [smem:[#allocation251_spill]] }
 0x23f   : > { %p16629_p0 = por %p1631_p1, %p21426_p5  ;;  %s1647_s20 = sld [smem:[#allocation7 + %s21231_s10]] }
 0x240   : > { %s21430_s24 = sld [smem:[#allocation250_spill]]  ;;  %p16639_p13 = por %p1637_p6, %p20809_p8 }
 0x241   : > { %s21427_s0 = scalar_select %p16629_p0, 1, 0 }
 0x242   : > { %s1648_s14 = sld [smem:[#allocation7 + %s21252_s25]]  ;;  %s1652_s26 = sadd.s32 1, %s21417_s27 }
 0x243   : > { %21428 = sst [smem:[#allocation360_spill]] %s21427_s0  ;;  %s21433_s9 = sld [smem:[#allocation249_spill]] }
 0x244   : > { %s21431_s17 = scalar_select %p16639_p13, 1, 0 }
 0x245   : > { %s1621_s2 = ssub.s32 %s1619_s23, %s1620_s29  ;;  %p1659_p3 = scmp.ne.s32.totalorder %s21417_s27, %s21420_s5 }
 0x246   : > { %21432 = sst [smem:[#allocation361_spill]] %s21431_s17  ;;  %p1622_p1 = scmp.eq.s32.totalorder %s1621_s2, 0 }
 0x247   : > { %p1665_p5 = scmp.ne.s32.totalorder %s21420_s5, %s21422_s18  ;;  %p21434_p2 = scmp.eq.s32.totalorder %s21231_s10, 0 }
 0x248   : > { %s21435_s30 = sld [smem:[#allocation248_spill]]  ;;  %s21438_s0 = sld [smem:[#allocation247_spill]] }
 0x249   : > { %p16650_p0 = por %p1659_p3, %p21434_p2  ;;  %s1675_s1 = sld [smem:[#allocation7 + %s21231_s10]] }
 0x24a   : > { %s22120_s28 = smov (!%p1622_p1, %s21411_s28), %s1624_s16  ;;  %s1649_s17 = ssub.s32 %s1647_s20, %s1648_s14 }
 0x24b   : > { %s21436_s19 = scalar_select %p16650_p0, 1, 0 }
 0x24c   : > { %21439 = sst [smem:[#allocation362_spill]] %s22120_s28  ;;  %s21440_s23 = sld [smem:[#allocation246_spill]] }
 0x24d   : > { %21437 = sst [smem:[#allocation249_spill]] %s21436_s19  ;;  %p16660_p6 = por %p1665_p5, %p20809_p8 }
 0x24e   : > { %p1650_p13 = scmp.eq.s32.totalorder %s1649_s17, 0  ;;  %s1676_s5 = sld [smem:[#allocation7 + %s21252_s25]] }
 0x24f   : > { %s21441_s29 = scalar_select %p16660_p6, 1, 0 }
 0x250   : > { %s1680_s2 = sadd.s32 1, %s21429_s3  ;;  %p1687_p2 = scmp.ne.s32.totalorder %s21429_s3, %s21430_s24 }
 0x251   : > { %21442 = sst [smem:[#allocation246_spill]] %s21441_s29  ;;  %s22122_s27 = smov (!%p1650_p13, %s21417_s27), %s1652_s26 }
 0x252   : > { %21443 = sst [smem:[#allocation363_spill]] %s22122_s27  ;;  %p21444_p3 = scmp.eq.s32.totalorder %s21231_s10, 0 }
 0x253   : > { %p1693_p5 = scmp.ne.s32.totalorder %s21430_s24, %s21433_s9  ;;  %s21447_s16 = sld [smem:[#allocation245_spill]] }
 0x254   : > { %p16673_p1 = por %p1687_p2, %p21444_p3  ;;  %s1703_s20 = sld [smem:[#allocation7 + %s21231_s10]] }
 0x255   : > { %s21448_s14 = sld [smem:[#allocation244_spill]]  ;;  %p16683_p6 = por %p1693_p5, %p20809_p8 }
 0x256   : > { %s21445_s18 = scalar_select %p16673_p1, 1, 0 }
 0x257   : > { %s1704_s17 = sld [smem:[#allocation7 + %s21252_s25]]  ;;  %s1708_s26 = sadd.s32 1, %s21435_s30 }
 0x258   : > { %21446 = sst [smem:[#allocation364_spill]] %s21445_s18  ;;  %s21451_s27 = sld [smem:[#allocation243_spill]] }
 0x259   : > { %s21449_s28 = scalar_select %p16683_p6, 1, 0 }
 0x25a   : > { %s1677_s29 = ssub.s32 %s1675_s1, %s1676_s5  ;;  %p1715_p13 = scmp.ne.s32.totalorder %s21435_s30, %s21438_s0 }
 0x25b   : > { %21450 = sst [smem:[#allocation365_spill]] %s21449_s28  ;;  %p1678_p2 = scmp.eq.s32.totalorder %s1677_s29, 0 }
 0x25c   : > { %p1721_p3 = scmp.ne.s32.totalorder %s21438_s0, %s21440_s23  ;;  %p21452_p0 = scmp.eq.s32.totalorder %s21231_s10, 0 }
 0x25d   : > { %s21453_s24 = sld [smem:[#allocation242_spill]]  ;;  %s21455_s18 = sld [smem:[#allocation241_spill]] }
 0x25e   : > { %p16694_p1 = por %p1715_p13, %p21452_p0  ;;  %s1731_s19 = sld [smem:[#allocation7 + %s21231_s10]] }
 0x25f   : > { %s22124_s3 = smov (!%p1678_p2, %s21429_s3), %s1680_s2  ;;  %s1705_s28 = ssub.s32 %s1703_s20, %s1704_s17 }
 0x260   : > { %s21454_s9 = scalar_select %p16694_p1, 1, 0 }
 0x261   : > { %21456 = sst [smem:[#allocation243_spill]] %s22124_s3  ;;  %s21457_s1 = sld [smem:[#allocation240_spill]] }
 0x262   : > { %p16704_p5 = por %p1721_p3, %p20809_p8  ;;  %p1706_p6 = scmp.eq.s32.totalorder %s1705_s28, 0 }
 0x263   : > { %s1732_s0 = sld [smem:[#allocation7 + %s21252_s25]]  ;;  %s1736_s23 = sadd.s32 1, %s21447_s16 }
 0x264   : > { %s21458_s5 = scalar_select %p16704_p5, 1, 0 }
 0x265   : > { %p1743_p0 = scmp.ne.s32.totalorder %s21447_s16, %s21448_s14  ;;  %s22126_s30 = smov (!%p1706_p6, %s21435_s30), %s1708_s26 }
 0x266   : > { %21459 = sst [smem:[#allocation240_spill]] %s21458_s5  ;;  %p21461_p13 = scmp.eq.s32.totalorder %s21231_s10, 0 }
 0x267   : > { %21460 = sst [smem:[#allocation366_spill]] %s22126_s30  ;;  %p1749_p3 = scmp.ne.s32.totalorder %s21448_s14, %s21451_s27 }
 0x268   : > { %p16717_p2 = por %p1743_p0, %p21461_p13  ;;  %s1759_s2 = sld [smem:[#allocation7 + %s21231_s10]] }
 0x269   : > { %s1760_s20 = sld [smem:[#allocation7 + %s21252_s25]]  ;;  %p16727_p5 = por %p1749_p3, %p20809_p8 }
 0x26a   : > { %s21462_s29 = scalar_select %p16717_p2, 1, 0 }
 0x26b   : > { %s21463_s28 = scalar_select %p16727_p5, 1, 0 }
 0x26c   : > { %s1764_s17 = sadd.s32 1, %s21453_s24  ;;  %s1733_s3 = ssub.s32 %s1731_s19, %s1732_s0 }
 0x26d   : > { %21464 = sst [smem:[#allocation367_spill]] %s21463_s28  ;;  %p1771_p1 = scmp.ne.s32.totalorder %s21453_s24, %s21455_s18 }
 0x26e   : > { %p1734_p6 = scmp.eq.s32.totalorder %s1733_s3, 0  ;;  %p1777_p10 = scmp.ne.s32.totalorder %s21455_s18, %s21457_s1 }
 0x26f   : > { %p21465_p7 = pmov %p21461_p13  ;;  %p9519_p13 = scmp.ge.s32.totalorder %s21231_s10, 1 }
 0x270   : > { %s22128_s16 = smov (!%p1734_p6, %s21447_s16), %s1736_s23  ;;  %s1761_s27 = ssub.s32 %s1759_s2, %s1760_s20 }
 0x271   : > { %p16738_p0 = por %p1771_p1, %p21465_p7  ;;  %21467 = sst [smem:[#allocation368_spill]] %s22128_s16 }
 0x272   : > { %p16748_p2 = por %p1777_p10, %p20809_p8  ;;  %p1762_p3 = scmp.eq.s32.totalorder %s1761_s27, 0 }
 0x273   : > { %s21466_s26 = scalar_select %p16738_p0, 1, 0 }
 0x274   : > { %s21468_s14 = scalar_select %p16748_p2, 1, 0 }
 0x275   : > { %p1809_p5 = scmp.lt.s32.totalorder %s21231_s10, 4  ;;  %s22130_s24 = smov (!%p1762_p3, %s21453_s24), %s1764_s17 }
 0x276   : > { %21469 = sst [smem:[#allocation369_spill]] %s21468_s14 }
 0x277   : > { %21470 = sst [smem:[#allocation370_spill]] %s22130_s24  ;;  %p16756_p11 = pnand %p9519_p13, %p1809_p5 }
 0x278   : > { %s15296_s19 = smov (!%p16756_p11), [#allocation10]   ;;  %s21473_s18 = sld [smem:[#allocation175_spill]] (!%p16756_p11) }
 0x279   : > { %s21471_s3 = scalar_select %p16756_p11, 1, 0 }
 0x27a   : > { %1813 = sbr.rel (%p16756_p11) target bundleno = 1493 (0x5d5), region = 12  ;;  %s1833_s1 = sshll.u32 (!%p16756_p11), %s15296_s19, 4  ;;  %s1834_s1 = int_to_ptr.vmem [resolvable:$true] %s1833_s1 }
 0x27b   : > { %21472 = sst [smem:[#allocation371_spill]] %s21471_s3  ;;  %s15297_s0 = smov (!%p16756_p11), [#allocation13]  }
 0x27c   : > { %s1859_s23 = sshll.u32 (!%p16756_p11), %s15297_s0, 4  ;;  %s16762_s23 = int_to_ptr.vmem [resolvable:$true] %s1859_s23 }
 0x27e   : > { %s21474_s30 = smov (!%p16756_p11), %s21473_s18  ;;  %s12725_s2 = scalar_lea.hbm (!%p16756_p11), %s21473_s18, 64 }
 0x27f   : > { %p12726_p7 = scmp.ne.s32.totalorder (!%p16756_p11), %s21474_s30, %s12725_s2  ;;  %p12731_p5 = scmp.lt.u32.totalorder (!%p16756_p11), %s12725_s2, %s21474_s30 }
 0x281   : > { %p12727_p10 = pnand %p12726_p7, %p20809_p8 }
 0x283   : > { %p12728_p1 = pneg %p12727_p10 }
 0x285   : > { %p12733_p6 = pnand %p12731_p5, %p12728_p1 }
 0x287   : > { %12736 = shalt.err (!%p12733_p6)
}
 0x288   : > { %s12737_s20 = scalar_lea.vmem %s1834_s1, 64  ;;  %p12744_p11 = scmp.lt.s32.totalorder %s1834_s1, %s1834_s1 }
 0x289   : > { %p12738_p13 = scmp.ne.s32.totalorder %s1834_s1, %s12737_s20  ;;  %p12745_p0 = scmp.lt.s32.totalorder %s12737_s20, %s12737_s20 }
 0x28b   : > { %p12739_p3 = pnand %p12738_p13, %p20809_p8  ;;  %p12746_p12 = por %p12745_p0, %p12744_p11 }
 0x28d   : > { %p12740_p2 = pneg %p12739_p3 }
 0x28f   : > { %p12747_p4 = pnand %p12746_p12, %p12740_p2 }
 0x291   : > { %12750 = shalt.err (!%p12747_p4)
}
 0x292   : > { %s21475_s17 = sld [smem:[#allocation178_spill]] }
 0x293   : > { %11364 = dma.hbm_to_vmem [thread:$0]  (%p20809_p8), %s21474_s30, 64, %s1834_s1, [#allocation11]  }
 0x298   : > { %s12751_s27 = scalar_lea.hbm %s21475_s17, 1792 }
 0x299   : > { %p12752_p7 = scmp.ne.s32.totalorder %s21475_s17, %s12751_s27  ;;  %p12757_p5 = scmp.lt.u32.totalorder %s12751_s27, %s21475_s17 }
 0x29b   : > { %p12753_p10 = pnand %p12752_p7, %p20809_p8 }
 0x29d   : > { %p12754_p1 = pneg %p12753_p10 }
 0x29f   : > { %p12759_p6 = pnand %p12757_p5, %p12754_p1 }
 0x2a1   : > { %12762 = shalt.err (!%p12759_p6)
}
 0x2a2   : > { %s12763_s19 = scalar_lea.vmem %s16762_s23, 1792  ;;  %p12770_p2 = scmp.lt.s32.totalorder %s16762_s23, %s16762_s23 }
 0x2a3   : > { %p12764_p4 = scmp.ne.s32.totalorder %s16762_s23, %s12763_s19  ;;  %p12771_p0 = scmp.lt.s32.totalorder %s12763_s19, %s12763_s19 }
 0x2a5   : > { %p12765_p12 = pnand %p12764_p4, %p20809_p8  ;;  %p12772_p13 = por %p12771_p0, %p12770_p2 }
 0x2a7   : > { %p12766_p11 = pneg %p12765_p12 }
 0x2a9   : > { %p12773_p3 = pnand %p12772_p13, %p12766_p11 }
 0x2ab   : > { %12776 = shalt.err (!%p12773_p3)
}
 0x2ac   : > { %s20759_s18 = smov 128   ;;  %s21476_s1 = sld [smem:[#allocation180_spill]] }
 0x2ad   : > { %s20760_s0 = smov 8   ;;  %s15300_s2 = smov [#allocation16]  }
 0x2ae   : > { %11368 = dma.hbm_to_vmem [thread:$0]  (%p20809_p8), %s21475_s17, 1792, %s16762_s23, [#allocation14], %s20759_s18, %s20759_s18, %s20760_s0  }
 0x2af   : > { %s1885_s27 = sshll.u32 %s15300_s2, 4  ;;  %s15301_s19 = smov [#allocation19]   ;;  %s1886_s27 = int_to_ptr.vmem [resolvable:$true] %s1885_s27 }
 0x2b0   : > { %s1911_s30 = sshll.u32 %s15301_s19, 4  ;;  %s16792_s30 = int_to_ptr.vmem [resolvable:$true] %s1911_s30 }
 0x2b2   : > { %s21477_s20 = smov %s21476_s1  ;;  %s12777_s16 = scalar_lea.hbm %s21476_s1, 128 }
 0x2b3   : > { %p12778_p7 = scmp.ne.s32.totalorder %s21477_s20, %s12777_s16  ;;  %p12783_p5 = scmp.lt.u32.totalorder %s12777_s16, %s21477_s20 }
 0x2b5   : > { %p12779_p10 = pnand %p12778_p7, %p20809_p8 }
 0x2b7   : > { %p12780_p1 = pneg %p12779_p10 }
 0x2b9   : > { %p12785_p6 = pnand %p12783_p5, %p12780_p1 }
 0x2bb   : > { %12788 = shalt.err (!%p12785_p6)
}
 0x2bc   : > { %s12789_s24 = scalar_lea.vmem %s1886_s27, 128  ;;  %p12796_p2 = scmp.lt.s32.totalorder %s1886_s27, %s1886_s27 }
 0x2bd   : > { %p12790_p4 = scmp.ne.s32.totalorder %s1886_s27, %s12789_s24  ;;  %p12797_p0 = scmp.lt.s32.totalorder %s12789_s24, %s12789_s24 }
 0x2bf   : > { %p12791_p12 = pnand %p12790_p4, %p20809_p8  ;;  %p12798_p13 = por %p12797_p0, %p12796_p2 }
 0x2c1   : > { %p12792_p11 = pneg %p12791_p12 }
 0x2c3   : > { %p12799_p3 = pnand %p12798_p13, %p12792_p11 }
 0x2c5   : > { %12802 = shalt.err (!%p12799_p3)
}
 0x2c6   : > { %s20764_s23 = smov 64   ;;  %s21478_s1 = sld [smem:[#allocation182_spill]] }
 0x2c7   : > { %s20762_s16 = smov 4  }
 0x2c8   : > { %11372 = dma.hbm_to_vmem [thread:$0]  (%p20809_p8), %s21477_s20, 128, %s1886_s27, [#allocation17], %s20764_s23, %s20764_s23, %s20762_s16  }
 0x2cc   : > { %s21479_s19 = smov %s21478_s1  ;;  %s12803_s2 = scalar_lea.hbm %s21478_s1, 896 }
 0x2cd   : > { %p12804_p7 = scmp.ne.s32.totalorder %s21479_s19, %s12803_s2  ;;  %p12809_p5 = scmp.lt.u32.totalorder %s12803_s2, %s21479_s19 }
 0x2cf   : > { %p12805_p10 = pnand %p12804_p7, %p20809_p8 }
 0x2d1   : > { %p12806_p1 = pneg %p12805_p10 }
 0x2d3   : > { %p12811_p6 = pnand %p12809_p5, %p12806_p1 }
 0x2d5   : > { %12814 = shalt.err (!%p12811_p6)
}
 0x2d6   : > { %s12815_s24 = scalar_lea.vmem %s16792_s30, 896  ;;  %p12822_p2 = scmp.lt.s32.totalorder %s16792_s30, %s16792_s30 }
 0x2d7   : > { %p12816_p4 = scmp.ne.s32.totalorder %s16792_s30, %s12815_s24  ;;  %p12823_p0 = scmp.lt.s32.totalorder %s12815_s24, %s12815_s24 }
 0x2d9   : > { %p12817_p12 = pnand %p12816_p4, %p20809_p8  ;;  %p12824_p13 = por %p12823_p0, %p12822_p2 }
 0x2db   : > { %p12818_p11 = pneg %p12817_p12 }
 0x2dd   : > { %p12825_p3 = pnand %p12824_p13, %p12818_p11 }
 0x2df   : > { %12828 = shalt.err (!%p12825_p3)
}
 0x2e0   : > { %s21480_s27 = sld [smem:[#allocation184_spill]]  ;;  %s15304_s1 = smov [#allocation22]  }
 0x2e1   : > { %11376 = dma.hbm_to_vmem [thread:$0]  (%p20809_p8), %s21479_s19, 896, %s16792_s30, [#allocation20], %s20764_s23, %s20764_s23, %s20762_s16  }
 0x2e2   : > { %s1938_s2 = sshll.u32 %s15304_s1, 4  ;;  %s15305_s18 = smov [#allocation25]   ;;  %s1939_s2 = int_to_ptr.vmem [resolvable:$true] %s1938_s2 }
 0x2e3   : > { %s1962_s0 = sshll.u32 %s15305_s18, 4  ;;  %s16825_s0 = int_to_ptr.vmem [resolvable:$true] %s1962_s0 }
 0x2e6   : > { %s12829_s24 = scalar_lea.hbm %s21480_s27, 16 }
 0x2e7   : > { %p12830_p7 = scmp.ne.s32.totalorder %s21480_s27, %s12829_s24  ;;  %p12835_p5 = scmp.lt.u32.totalorder %s12829_s24, %s21480_s27 }
 0x2e9   : > { %p12831_p10 = pnand %p12830_p7, %p20809_p8 }
 0x2eb   : > { %p12832_p1 = pneg %p12831_p10 }
 0x2ed   : > { %p12837_p6 = pnand %p12835_p5, %p12832_p1 }
 0x2ef   : > { %12840 = shalt.err (!%p12837_p6)
}
 0x2f0   : > { %s12841_s17 = scalar_lea.vmem %s1939_s2, 16  ;;  %s12847_s30 = scalar_lea.vmem %s1939_s2, 32 }
 0x2f1   : > { %p12842_p4 = scmp.ne.s32.totalorder %s1939_s2, %s12841_s17  ;;  %p12848_p2 = scmp.lt.s32.totalorder %s1939_s2, %s1939_s2 }
 0x2f2   : > { %p12849_p0 = scmp.lt.s32.totalorder %s12847_s30, %s12841_s17 }
 0x2f3   : > { %p12843_p12 = pnand %p12842_p4, %p20809_p8 }
 0x2f4   : > { %p12850_p13 = por %p12849_p0, %p12848_p2 }
 0x2f5   : > { %p12844_p11 = pneg %p12843_p12 }
 0x2f7   : > { %p12851_p3 = pnand %p12850_p13, %p12844_p11 }
 0x2f9   : > { %12854 = shalt.err (!%p12851_p3)
}
 0x2fa   : > { %s21481_s18 = sld [smem:[#allocation186_spill]] }
 0x2fb   : > { %11380 = dma.hbm_to_vmem [thread:$0]  (%p20809_p8), %s21480_s27, 16, %s1939_s2, [#allocation23]  }
 0x300   : > { %s21482_s16 = smov %s21481_s18  ;;  %s12855_s1 = scalar_lea.hbm %s21481_s18, 16 }
 0x301   : > { %p12856_p7 = scmp.ne.s32.totalorder %s21482_s16, %s12855_s1  ;;  %p12861_p5 = scmp.lt.u32.totalorder %s12855_s1, %s21482_s16 }
 0x303   : > { %p12857_p10 = pnand %p12856_p7, %p20809_p8 }
 0x305   : > { %p12858_p1 = pneg %p12857_p10 }
 0x307   : > { %p12863_p6 = pnand %p12861_p5, %p12858_p1 }
 0x309   : > { %12866 = shalt.err (!%p12863_p6)
}
 0x30a   : > { %s12867_s17 = scalar_lea.vmem %s16825_s0, 16  ;;  %s12873_s24 = scalar_lea.vmem %s16825_s0, 32 }
 0x30b   : > { %p12868_p4 = scmp.ne.s32.totalorder %s16825_s0, %s12867_s17  ;;  %p12874_p2 = scmp.lt.s32.totalorder %s16825_s0, %s16825_s0 }
 0x30c   : > { %p12875_p0 = scmp.lt.s32.totalorder %s12873_s24, %s12867_s17 }
 0x30d   : > { %p12869_p12 = pnand %p12868_p4, %p20809_p8 }
 0x30e   : > { %p12876_p13 = por %p12875_p0, %p12874_p2 }
 0x30f   : > { %p12870_p11 = pneg %p12869_p12 }
 0x311   : > { %p12877_p3 = pnand %p12876_p13, %p12870_p11 }
 0x313   : > { %12880 = shalt.err (!%p12877_p3)
}
 0x314   : > { %s21483_s2 = sld [smem:[#allocation188_spill]]  ;;  %s15306_s18 = smov [#allocation28]  }
 0x315   : > { %11384 = dma.hbm_to_vmem [thread:$0]  (%p20809_p8), %s21482_s16, 16, %s16825_s0, [#allocation26]  }
 0x316   : > { %s1986_s1 = sshll.u32 %s15306_s18, 4  ;;  %s15307_s23 = smov [#allocation31]   ;;  %s1987_s1 = int_to_ptr.vmem [resolvable:$true] %s1986_s1 }
 0x317   : > { %s2013_s19 = sshll.u32 %s15307_s23, 4  ;;  %s16853_s19 = int_to_ptr.vmem [resolvable:$true] %s2013_s19 }
 0x31a   : > { %s21484_s30 = smov %s21483_s2  ;;  %s12881_s17 = scalar_lea.hbm %s21483_s2, 16 }
 0x31b   : > { %p12882_p7 = scmp.ne.s32.totalorder %s21484_s30, %s12881_s17  ;;  %p12887_p5 = scmp.lt.u32.totalorder %s12881_s17, %s21484_s30 }
 0x31d   : > { %p12883_p10 = pnand %p12882_p7, %p20809_p8 }
 0x31f   : > { %p12884_p1 = pneg %p12883_p10 }
 0x321   : > { %p12889_p6 = pnand %p12887_p5, %p12884_p1 }
 0x323   : > { %12892 = shalt.err (!%p12889_p6)
}
 0x324   : > { %s12893_s24 = scalar_lea.vmem %s1987_s1, 16  ;;  %s12899_s0 = scalar_lea.vmem %s1987_s1, 32 }
 0x325   : > { %p12894_p4 = scmp.ne.s32.totalorder %s1987_s1, %s12893_s24  ;;  %p12900_p2 = scmp.lt.s32.totalorder %s1987_s1, %s1987_s1 }
 0x326   : > { %p12901_p0 = scmp.lt.s32.totalorder %s12899_s0, %s12893_s24 }
 0x327   : > { %p12895_p12 = pnand %p12894_p4, %p20809_p8 }
 0x328   : > { %p12902_p13 = por %p12901_p0, %p12900_p2 }
 0x329   : > { %p12896_p11 = pneg %p12895_p12 }
 0x32b   : > { %p12903_p3 = pnand %p12902_p13, %p12896_p11 }
 0x32d   : > { %12906 = shalt.err (!%p12903_p3)
}
 0x32e   : > { %s21485_s23 = sld [smem:[#allocation191_spill]] }
 0x32f   : > { %11388 = dma.hbm_to_vmem [thread:$0]  (%p20809_p8), %s21484_s30, 16, %s1987_s1, [#allocation29]  }
 0x334   : > { %s21486_s16 = smov %s21485_s23  ;;  %s12907_s2 = scalar_lea.hbm %s21485_s23, 16 }
 0x335   : > { %p12908_p7 = scmp.ne.s32.totalorder %s21486_s16, %s12907_s2  ;;  %p12913_p5 = scmp.lt.u32.totalorder %s12907_s2, %s21486_s16 }
 0x337   : > { %p12909_p10 = pnand %p12908_p7, %p20809_p8 }
 0x339   : > { %p12910_p1 = pneg %p12909_p10 }
 0x33b   : > { %p12915_p6 = pnand %p12913_p5, %p12910_p1 }
 0x33d   : > { %12918 = shalt.err (!%p12915_p6)
}
 0x33e   : > { %s12919_s18 = scalar_lea.vmem %s16853_s19, 16  ;;  %s12925_s17 = scalar_lea.vmem %s16853_s19, 32 }
 0x33f   : > { %p12920_p4 = scmp.ne.s32.totalorder %s16853_s19, %s12919_s18  ;;  %p12926_p2 = scmp.lt.s32.totalorder %s16853_s19, %s16853_s19 }
 0x340   : > { %p12927_p0 = scmp.lt.s32.totalorder %s12925_s17, %s12919_s18 }
 0x341   : > { %p12921_p12 = pnand %p12920_p4, %p20809_p8 }
 0x342   : > { %p12928_p13 = por %p12927_p0, %p12926_p2 }
 0x343   : > { %p12922_p11 = pneg %p12921_p12 }
 0x345   : > { %p12929_p3 = pnand %p12928_p13, %p12922_p11 }
 0x347   : > { %12932 = shalt.err (!%p12929_p3)
}
 0x348   : > { %s21487_s1 = sld [smem:[#allocation193_spill]]  ;;  %s15308_s0 = smov [#allocation34]  }
 0x349   : > { %11392 = dma.hbm_to_vmem [thread:$0]  (%p20809_p8), %s21486_s16, 16, %s16853_s19, [#allocation32]  }
 0x34a   : > { %s2034_s23 = sshll.u32 %s15308_s0, 4  ;;  %s15309_s2 = smov [#allocation37]   ;;  %s2035_s23 = int_to_ptr.vmem [resolvable:$true] %s2034_s23 }
 0x34b   : > { %s2058_s20 = sshll.u32 %s15309_s2, 4  ;;  %s16881_s20 = int_to_ptr.vmem [resolvable:$true] %s2058_s20 }
 0x34e   : > { %s21488_s24 = smov %s21487_s1  ;;  %s12933_s18 = scalar_lea.hbm %s21487_s1, 1024 }
 0x34f   : > { %p12934_p7 = scmp.ne.s32.totalorder %s21488_s24, %s12933_s18  ;;  %p12939_p5 = scmp.lt.u32.totalorder %s12933_s18, %s21488_s24 }
 0x351   : > { %p12935_p10 = pnand %p12934_p7, %p20809_p8 }
 0x353   : > { %p12936_p1 = pneg %p12935_p10 }
 0x355   : > { %p12941_p6 = pnand %p12939_p5, %p12936_p1 }
 0x357   : > { %12944 = shalt.err (!%p12941_p6)
}
 0x358   : > { %s12945_s17 = scalar_lea.vmem %s2035_s23, 1024  ;;  %p12952_p2 = scmp.lt.s32.totalorder %s2035_s23, %s2035_s23 }
 0x359   : > { %p12946_p4 = scmp.ne.s32.totalorder %s2035_s23, %s12945_s17  ;;  %p12953_p0 = scmp.lt.s32.totalorder %s12945_s17, %s12945_s17 }
 0x35b   : > { %p12947_p12 = pnand %p12946_p4, %p20809_p8  ;;  %p12954_p13 = por %p12953_p0, %p12952_p2 }
 0x35d   : > { %p12948_p11 = pneg %p12947_p12 }
 0x35f   : > { %p12955_p3 = pnand %p12954_p13, %p12948_p11 }
 0x361   : > { %12958 = shalt.err (!%p12955_p3)
}
 0x362   : > { %s21489_s19 = smov 4   ;;  %s21490_s1 = smov 64  }
 0x363   : > { %s21491_s0 = sld [smem:[#allocation195_spill]] }
 0x364   : > { %11396 = dma.hbm_to_vmem [thread:$0]  (%p20809_p8), %s21488_s24, 1024, %s2035_s23, [#allocation35], %s21490_s1, %s21490_s1, %s21489_s19  }
 0x369   : > { %s21492_s16 = smov %s21491_s0  ;;  %s12959_s2 = scalar_lea.hbm %s21491_s0, 1024 }
 0x36a   : > { %p12960_p7 = scmp.ne.s32.totalorder %s21492_s16, %s12959_s2  ;;  %p12965_p5 = scmp.lt.u32.totalorder %s12959_s2, %s21492_s16 }
 0x36c   : > { %p12961_p10 = pnand %p12960_p7, %p20809_p8 }
 0x36e   : > { %p12962_p1 = pneg %p12961_p10 }
 0x370   : > { %p12967_p6 = pnand %p12965_p5, %p12962_p1 }
 0x372   : > { %12970 = shalt.err (!%p12967_p6)
}
 0x373   : > { %s12971_s18 = scalar_lea.vmem %s16881_s20, 1024  ;;  %p12978_p2 = scmp.lt.s32.totalorder %s16881_s20, %s16881_s20 }
 0x374   : > { %p12972_p4 = scmp.ne.s32.totalorder %s16881_s20, %s12971_s18  ;;  %p12979_p0 = scmp.lt.s32.totalorder %s12971_s18, %s12971_s18 }
 0x376   : > { %p12973_p12 = pnand %p12972_p4, %p20809_p8  ;;  %p12980_p13 = por %p12979_p0, %p12978_p2 }
 0x378   : > { %p12974_p11 = pneg %p12973_p12 }
 0x37a   : > { %p12981_p3 = pnand %p12980_p13, %p12974_p11 }
 0x37c   : > { %12984 = shalt.err (!%p12981_p3)
}
 0x37d   : > { %s21493_s23 = sld [smem:[#allocation197_spill]]  ;;  %s15310_s0 = smov [#allocation40]  }
 0x37e   : > { %11400 = dma.hbm_to_vmem [thread:$0]  (%p20809_p8), %s21492_s16, 1024, %s16881_s20, [#allocation38], %s21490_s1, %s21490_s1, %s21489_s19  }
 0x37f   : > { %s2083_s2 = sshll.u32 %s15310_s0, 4  ;;  %s15311_s24 = smov [#allocation43]   ;;  %s2084_s2 = int_to_ptr.vmem [resolvable:$true] %s2083_s2 }
 0x380   : > { %s2104_s27 = sshll.u32 %s15311_s24, 4  ;;  %s16914_s27 = int_to_ptr.vmem [resolvable:$true] %s2104_s27 }
 0x383   : > { %s21494_s17 = smov %s21493_s23  ;;  %s12985_s18 = scalar_lea.hbm %s21493_s23, 16 }
 0x384   : > { %p12986_p7 = scmp.ne.s32.totalorder %s21494_s17, %s12985_s18  ;;  %p12991_p5 = scmp.lt.u32.totalorder %s12985_s18, %s21494_s17 }
 0x386   : > { %p12987_p10 = pnand %p12986_p7, %p20809_p8 }
 0x388   : > { %p12988_p1 = pneg %p12987_p10 }
 0x38a   : > { %p12993_p6 = pnand %p12991_p5, %p12988_p1 }
 0x38c   : > { %12996 = shalt.err (!%p12993_p6)
}
 0x38d   : > { %s12997_s30 = scalar_lea.vmem %s2084_s2, 16  ;;  %s13003_s20 = scalar_lea.vmem %s2084_s2, 32 }
 0x38e   : > { %p12998_p4 = scmp.ne.s32.totalorder %s2084_s2, %s12997_s30  ;;  %p13004_p2 = scmp.lt.s32.totalorder %s2084_s2, %s2084_s2 }
 0x38f   : > { %p13005_p0 = scmp.lt.s32.totalorder %s13003_s20, %s12997_s30 }
 0x390   : > { %p12999_p12 = pnand %p12998_p4, %p20809_p8 }
 0x391   : > { %p13006_p13 = por %p13005_p0, %p13004_p2 }
 0x392   : > { %p13000_p11 = pneg %p12999_p12 }
 0x394   : > { %p13007_p3 = pnand %p13006_p13, %p13000_p11 }
 0x396   : > { %13010 = shalt.err (!%p13007_p3)
}
 0x397   : > { %s21495_s24 = sld [smem:[#allocation199_spill]] }
 0x398   : > { %11404 = dma.hbm_to_vmem [thread:$0]  (%p20809_p8), %s21494_s17, 16, %s2084_s2, [#allocation41]  }
 0x39d   : > { %s13011_s23 = scalar_lea.hbm %s21495_s24, 1024 }
 0x39e   : > { %p13012_p7 = scmp.ne.s32.totalorder %s21495_s24, %s13011_s23  ;;  %p13017_p5 = scmp.lt.u32.totalorder %s13011_s23, %s21495_s24 }
 0x3a0   : > { %p13013_p10 = pnand %p13012_p7, %p20809_p8 }
 0x3a2   : > { %p13014_p1 = pneg %p13013_p10 }
 0x3a4   : > { %p13019_p6 = pnand %p13017_p5, %p13014_p1 }
 0x3a6   : > { %13022 = shalt.err (!%p13019_p6)
}
 0x3a7   : > { %s13023_s30 = scalar_lea.vmem %s16914_s27, 1024  ;;  %p13030_p2 = scmp.lt.s32.totalorder %s16914_s27, %s16914_s27 }
 0x3a8   : > { %p13024_p4 = scmp.ne.s32.totalorder %s16914_s27, %s13023_s30  ;;  %p13031_p0 = scmp.lt.s32.totalorder %s13023_s30, %s13023_s30 }
 0x3aa   : > { %p13025_p12 = pnand %p13024_p4, %p20809_p8  ;;  %p13032_p13 = por %p13031_p0, %p13030_p2 }
 0x3ac   : > { %p13026_p11 = pneg %p13025_p12 }
 0x3ae   : > { %p13033_p3 = pnand %p13032_p13, %p13026_p11 }
 0x3b0   : > { %13036 = shalt.err (!%p13033_p3)
}
 0x3b1   : > { %s21496_s0 = sld [smem:[#allocation201_spill]]  ;;  %s15312_s2 = smov [#allocation46]  }
 0x3b2   : > { %11408 = dma.hbm_to_vmem [thread:$0]  (%p20809_p8), %s21495_s24, 1024, %s16914_s27, [#allocation44], %s21490_s1, %s21490_s1, %s21489_s19  }
 0x3b3   : > { %s2128_s18 = sshll.u32 %s15312_s2, 4  ;;  %s15313_s23 = smov [#allocation49]   ;;  %s2129_s18 = int_to_ptr.vmem [resolvable:$true] %s2128_s18 }
 0x3b4   : > { %s2155_s16 = sshll.u32 %s15313_s23, 4  ;;  %s16944_s16 = int_to_ptr.vmem [resolvable:$true] %s2155_s16 }
 0x3b7   : > { %s21497_s20 = smov %s21496_s0  ;;  %s13037_s30 = scalar_lea.hbm %s21496_s0, 1024 }
 0x3b8   : > { %p13038_p7 = scmp.ne.s32.totalorder %s21497_s20, %s13037_s30  ;;  %p13043_p5 = scmp.lt.u32.totalorder %s13037_s30, %s21497_s20 }
 0x3ba   : > { %p13039_p10 = pnand %p13038_p7, %p20809_p8 }
 0x3bc   : > { %p13040_p1 = pneg %p13039_p10 }
 0x3be   : > { %p13045_p6 = pnand %p13043_p5, %p13040_p1 }
 0x3c0   : > { %13048 = shalt.err (!%p13045_p6)
}
 0x3c1   : > { %s13049_s17 = scalar_lea.vmem %s2129_s18, 1024  ;;  %p13056_p2 = scmp.lt.s32.totalorder %s2129_s18, %s2129_s18 }
 0x3c2   : > { %p13050_p4 = scmp.ne.s32.totalorder %s2129_s18, %s13049_s17  ;;  %p13057_p0 = scmp.lt.s32.totalorder %s13049_s17, %s13049_s17 }
 0x3c4   : > { %p13051_p12 = pnand %p13050_p4, %p20809_p8  ;;  %p13058_p13 = por %p13057_p0, %p13056_p2 }
 0x3c6   : > { %p13052_p11 = pneg %p13051_p12 }
 0x3c8   : > { %p13059_p3 = pnand %p13058_p13, %p13052_p11 }
 0x3ca   : > { %13062 = shalt.err (!%p13059_p3)
}
 0x3cb   : > { %s21498_s27 = sld [smem:[#allocation203_spill]] }
 0x3cc   : > { %11412 = dma.hbm_to_vmem [thread:$0]  (%p20809_p8), %s21497_s20, 1024, %s2129_s18, [#allocation47], %s21490_s1, %s21490_s1, %s21489_s19  }
 0x3d1   : > { %s13063_s0 = scalar_lea.hbm %s21498_s27, 16 }
 0x3d2   : > { %p13064_p7 = scmp.ne.s32.totalorder %s21498_s27, %s13063_s0  ;;  %p13069_p5 = scmp.lt.u32.totalorder %s13063_s0, %s21498_s27 }
 0x3d4   : > { %p13065_p10 = pnand %p13064_p7, %p20809_p8 }
 0x3d6   : > { %p13066_p1 = pneg %p13065_p10 }
 0x3d8   : > { %p13071_p6 = pnand %p13069_p5, %p13066_p1 }
 0x3da   : > { %13074 = shalt.err (!%p13071_p6)
}
 0x3db   : > { %s13075_s17 = scalar_lea.vmem %s16944_s16, 16  ;;  %s13081_s2 = scalar_lea.vmem %s16944_s16, 32 }
 0x3dc   : > { %p13076_p4 = scmp.ne.s32.totalorder %s16944_s16, %s13075_s17  ;;  %p13082_p2 = scmp.lt.s32.totalorder %s16944_s16, %s16944_s16 }
 0x3dd   : > { %p13083_p0 = scmp.lt.s32.totalorder %s13081_s2, %s13075_s17 }
 0x3de   : > { %p13077_p12 = pnand %p13076_p4, %p20809_p8 }
 0x3df   : > { %p13084_p13 = por %p13083_p0, %p13082_p2 }
 0x3e0   : > { %p13078_p11 = pneg %p13077_p12 }
 0x3e2   : > { %p13085_p3 = pnand %p13084_p13, %p13078_p11 }
 0x3e4   : > { %13088 = shalt.err (!%p13085_p3)
}
 0x3e5   : > { %s21499_s18 = sld [smem:[#allocation205_spill]]  ;;  %s15314_s23 = smov [#allocation52]  }
 0x3e6   : > { %11416 = dma.hbm_to_vmem [thread:$0]  (%p20809_p8), %s21498_s27, 16, %s16944_s16, [#allocation50]  }
 0x3e7   : > { %s2176_s0 = sshll.u32 %s15314_s23, 4  ;;  %s15315_s20 = smov [#allocation55]   ;;  %s2177_s0 = int_to_ptr.vmem [resolvable:$true] %s2176_s0 }
 0x3e8   : > { %s2200_s24 = sshll.u32 %s15315_s20, 4  ;;  %s16975_s24 = int_to_ptr.vmem [resolvable:$true] %s2200_s24 }
 0x3eb   : > { %s21500_s30 = smov %s21499_s18  ;;  %s13089_s17 = scalar_lea.hbm %s21499_s18, 1024 }
 0x3ec   : > { %p13090_p7 = scmp.ne.s32.totalorder %s21500_s30, %s13089_s17  ;;  %p13095_p5 = scmp.lt.u32.totalorder %s13089_s17, %s21500_s30 }
 0x3ee   : > { %p13091_p10 = pnand %p13090_p7, %p20809_p8 }
 0x3f0   : > { %p13092_p1 = pneg %p13091_p10 }
 0x3f2   : > { %p13097_p6 = pnand %p13095_p5, %p13092_p1 }
 0x3f4   : > { %13100 = shalt.err (!%p13097_p6)
}
 0x3f5   : > { %s13101_s2 = scalar_lea.vmem %s2177_s0, 1024  ;;  %p13108_p2 = scmp.lt.s32.totalorder %s2177_s0, %s2177_s0 }
 0x3f6   : > { %p13102_p4 = scmp.ne.s32.totalorder %s2177_s0, %s13101_s2  ;;  %p13109_p0 = scmp.lt.s32.totalorder %s13101_s2, %s13101_s2 }
 0x3f8   : > { %p13103_p12 = pnand %p13102_p4, %p20809_p8  ;;  %p13110_p13 = por %p13109_p0, %p13108_p2 }
 0x3fa   : > { %p13104_p11 = pneg %p13103_p12 }
 0x3fc   : > { %p13111_p3 = pnand %p13110_p13, %p13104_p11 }
 0x3fe   : > { %13114 = shalt.err (!%p13111_p3)
}
 0x3ff   : > { %s21501_s16 = sld [smem:[#allocation207_spill]] }
 0x400   : > { %11420 = dma.hbm_to_vmem [thread:$0]  (%p20809_p8), %s21500_s30, 1024, %s2177_s0, [#allocation53], %s21490_s1, %s21490_s1, %s21489_s19  }
 0x405   : > { %s13115_s20 = scalar_lea.hbm %s21501_s16, 1024 }
 0x406   : > { %p13116_p7 = scmp.ne.s32.totalorder %s21501_s16, %s13115_s20  ;;  %p13121_p5 = scmp.lt.u32.totalorder %s13115_s20, %s21501_s16 }
 0x408   : > { %p13117_p10 = pnand %p13116_p7, %p20809_p8 }
 0x40a   : > { %p13118_p1 = pneg %p13117_p10 }
 0x40c   : > { %p13123_p6 = pnand %p13121_p5, %p13118_p1 }
 0x40e   : > { %13126 = shalt.err (!%p13123_p6)
}
 0x40f   : > { %s13127_s18 = scalar_lea.vmem %s16975_s24, 1024  ;;  %p13134_p2 = scmp.lt.s32.totalorder %s16975_s24, %s16975_s24 }
 0x410   : > { %p13128_p4 = scmp.ne.s32.totalorder %s16975_s24, %s13127_s18  ;;  %p13135_p0 = scmp.lt.s32.totalorder %s13127_s18, %s13127_s18 }
 0x412   : > { %p13129_p12 = pnand %p13128_p4, %p20809_p8  ;;  %p13136_p13 = por %p13135_p0, %p13134_p2 }
 0x414   : > { %p13130_p11 = pneg %p13129_p12 }
 0x416   : > { %p13137_p3 = pnand %p13136_p13, %p13130_p11 }
 0x418   : > { %13140 = shalt.err (!%p13137_p3)
}
 0x419   : > { %s21502_s23 = sld [smem:[#allocation174_spill]]  ;;  %s15316_s0 = smov [#allocation8]  }
 0x41a   : > { %11424 = dma.hbm_to_vmem [thread:$0]  (%p20809_p8), %s21501_s16, 1024, %s16975_s24, [#allocation56], %s21490_s1, %s21490_s1, %s21489_s19  }
 0x41b   : > { %s1822_s2 = sshll.u32 %s15316_s0, 4  ;;  %s15317_s20 = smov [#allocation12]   ;;  %s1823_s2 = int_to_ptr.vmem [resolvable:$true] %s1822_s2 }
 0x41c   : > { %s1846_s18 = sshll.u32 %s15317_s20, 4  ;;  %s1847_s18 = int_to_ptr.vmem [resolvable:$true] %s1846_s18 }
 0x41f   : > { %s21503_s17 = smov %s21502_s23  ;;  %s13141_s27 = scalar_lea.hbm %s21502_s23, 64 }
 0x420   : > { %p13142_p7 = scmp.ne.s32.totalorder %s21503_s17, %s13141_s27  ;;  %p13147_p5 = scmp.lt.u32.totalorder %s13141_s27, %s21503_s17 }
 0x422   : > { %p13143_p10 = pnand %p13142_p7, %p20809_p8 }
 0x424   : > { %p13144_p1 = pneg %p13143_p10 }
 0x426   : > { %p13149_p6 = pnand %p13147_p5, %p13144_p1 }
 0x428   : > { %13152 = shalt.err (!%p13149_p6)
}
 0x429   : > { %s13153_s30 = scalar_lea.vmem %s1823_s2, 64  ;;  %p13160_p2 = scmp.lt.s32.totalorder %s1823_s2, %s1823_s2 }
 0x42a   : > { %p13154_p4 = scmp.ne.s32.totalorder %s1823_s2, %s13153_s30  ;;  %p13161_p0 = scmp.lt.s32.totalorder %s13153_s30, %s13153_s30 }
 0x42c   : > { %p13155_p12 = pnand %p13154_p4, %p20809_p8  ;;  %p13162_p13 = por %p13161_p0, %p13160_p2 }
 0x42e   : > { %p13156_p11 = pneg %p13155_p12 }
 0x430   : > { %p13163_p3 = pnand %p13162_p13, %p13156_p11 }
 0x432   : > { %13166 = shalt.err (!%p13163_p3)
}
 0x433   : > { %s21504_s24 = sld [smem:[#allocation177_spill]] }
 0x434   : > { %11362 = dma.hbm_to_vmem [thread:$0]  (%p20809_p8), %s21503_s17, 64, %s1823_s2, [#allocation9]  }
 0x439   : > { %s13167_s27 = scalar_lea.hbm %s21504_s24, 128 }
 0x43a   : > { %p13168_p7 = scmp.ne.s32.totalorder %s21504_s24, %s13167_s27  ;;  %p13173_p5 = scmp.lt.u32.totalorder %s13167_s27, %s21504_s24 }
 0x43c   : > { %p13169_p10 = pnand %p13168_p7, %p20809_p8 }
 0x43e   : > { %p13170_p1 = pneg %p13169_p10 }
 0x440   : > { %p13175_p6 = pnand %p13173_p5, %p13170_p1 }
 0x442   : > { %13178 = shalt.err (!%p13175_p6)
}
 0x443   : > { %s13179_s30 = scalar_lea.vmem %s1847_s18, 128  ;;  %p13186_p2 = scmp.lt.s32.totalorder %s1847_s18, %s1847_s18 }
 0x444   : > { %p13180_p4 = scmp.ne.s32.totalorder %s1847_s18, %s13179_s30  ;;  %p13187_p0 = scmp.lt.s32.totalorder %s13179_s30, %s13179_s30 }
 0x446   : > { %p13181_p12 = pnand %p13180_p4, %p20809_p8  ;;  %p13188_p13 = por %p13187_p0, %p13186_p2 }
 0x448   : > { %p13182_p11 = pneg %p13181_p12 }
 0x44a   : > { %p13189_p3 = pnand %p13188_p13, %p13182_p11 }
 0x44c   : > { %13192 = shalt.err (!%p13189_p3)
}
 0x44d   : > { %s21505_s23 = sld [smem:[#allocation179_spill]]  ;;  %s15318_s0 = smov [#allocation15]  }
 0x44e   : > { %11366 = dma.hbm_to_vmem [thread:$0]  (%p20809_p8), %s21504_s24, 128, %s1847_s18, [#allocation11], %s21490_s1, %s21490_s1, %s21489_s19  }
 0x44f   : > { %s1872_s2 = sshll.u32 %s15318_s0, 4  ;;  %s15319_s27 = smov [#allocation18]   ;;  %s1873_s2 = int_to_ptr.vmem [resolvable:$true] %s1872_s2 }
 0x450   : > { %s1898_s16 = sshll.u32 %s15319_s27, 4  ;;  %s1899_s16 = int_to_ptr.vmem [resolvable:$true] %s1898_s16 }
 0x453   : > { %s21506_s20 = smov %s21505_s23  ;;  %s13193_s30 = scalar_lea.hbm %s21505_s23, 896 }
 0x454   : > { %p13194_p7 = scmp.ne.s32.totalorder %s21506_s20, %s13193_s30  ;;  %p13199_p5 = scmp.lt.u32.totalorder %s13193_s30, %s21506_s20 }
 0x456   : > { %p13195_p10 = pnand %p13194_p7, %p20809_p8 }
 0x458   : > { %p13196_p1 = pneg %p13195_p10 }
 0x45a   : > { %p13201_p6 = pnand %p13199_p5, %p13196_p1 }
 0x45c   : > { %13204 = shalt.err (!%p13201_p6)
}
 0x45d   : > { %s13205_s17 = scalar_lea.vmem %s1873_s2, 896  ;;  %p13212_p2 = scmp.lt.s32.totalorder %s1873_s2, %s1873_s2 }
 0x45e   : > { %p13206_p4 = scmp.ne.s32.totalorder %s1873_s2, %s13205_s17  ;;  %p13213_p0 = scmp.lt.s32.totalorder %s13205_s17, %s13205_s17 }
 0x460   : > { %p13207_p12 = pnand %p13206_p4, %p20809_p8  ;;  %p13214_p13 = por %p13213_p0, %p13212_p2 }
 0x462   : > { %p13208_p11 = pneg %p13207_p12 }
 0x464   : > { %p13215_p3 = pnand %p13214_p13, %p13208_p11 }
 0x466   : > { %13218 = shalt.err (!%p13215_p3)
}
 0x467   : > { %s21507_s18 = sld [smem:[#allocation181_spill]] }
 0x468   : > { %11370 = dma.hbm_to_vmem [thread:$0]  (%p20809_p8), %s21506_s20, 896, %s1873_s2, [#allocation14], %s21490_s1, %s21490_s1, %s21489_s19  }
 0x46d   : > { %s21508_s27 = smov %s21507_s18  ;;  %s13219_s23 = scalar_lea.hbm %s21507_s18, 256 }
 0x46e   : > { %p13220_p7 = scmp.ne.s32.totalorder %s21508_s27, %s13219_s23  ;;  %p13225_p5 = scmp.lt.u32.totalorder %s13219_s23, %s21508_s27 }
 0x470   : > { %p13221_p10 = pnand %p13220_p7, %p20809_p8 }
 0x472   : > { %p13222_p1 = pneg %p13221_p10 }
 0x474   : > { %p13227_p6 = pnand %p13225_p5, %p13222_p1 }
 0x476   : > { %13230 = shalt.err (!%p13227_p6)
}
 0x477   : > { %s13231_s17 = scalar_lea.vmem %s1899_s16, 256  ;;  %p13238_p2 = scmp.lt.s32.totalorder %s1899_s16, %s1899_s16 }
 0x478   : > { %p13232_p4 = scmp.ne.s32.totalorder %s1899_s16, %s13231_s17  ;;  %p13239_p0 = scmp.lt.s32.totalorder %s13231_s17, %s13231_s17 }
 0x47a   : > { %p13233_p12 = pnand %p13232_p4, %p20809_p8  ;;  %p13240_p13 = por %p13239_p0, %p13238_p2 }
 0x47c   : > { %p13234_p11 = pneg %p13233_p12 }
 0x47e   : > { %p13241_p3 = pnand %p13240_p13, %p13234_p11 }
 0x480   : > { %13244 = shalt.err (!%p13241_p3)
}
 0x481   : > { %s21509_s0 = smov 8   ;;  %s21510_s2 = smov 128  }
 0x482   : > { %s21511_s30 = sld [smem:[#allocation183_spill]]  ;;  %s15320_s18 = smov [#allocation21]  }
 0x483   : > { %11374 = dma.hbm_to_vmem [thread:$0]  (%p20809_p8), %s21508_s27, 256, %s1899_s16, [#allocation17], %s21510_s2, %s21510_s2, %s21509_s0  }
 0x484   : > { %s1924_s23 = sshll.u32 %s15320_s18, 4  ;;  %s15321_s20 = smov [#allocation24]   ;;  %s1925_s23 = int_to_ptr.vmem [resolvable:$true] %s1924_s23 }
 0x485   : > { %s1948_s24 = sshll.u32 %s15321_s20, 4  ;;  %s1949_s24 = int_to_ptr.vmem [resolvable:$true] %s1948_s24 }
 0x488   : > { %s13245_s17 = scalar_lea.hbm %s21511_s30, 896 }
 0x489   : > { %p13246_p7 = scmp.ne.s32.totalorder %s21511_s30, %s13245_s17  ;;  %p13251_p5 = scmp.lt.u32.totalorder %s13245_s17, %s21511_s30 }
 0x48b   : > { %p13247_p10 = pnand %p13246_p7, %p20809_p8 }
 0x48d   : > { %p13248_p1 = pneg %p13247_p10 }
 0x48f   : > { %p13253_p6 = pnand %p13251_p5, %p13248_p1 }
 0x491   : > { %13256 = shalt.err (!%p13253_p6)
}
 0x492   : > { %s13257_s25 = scalar_lea.vmem %s1925_s23, 896  ;;  %p13264_p2 = scmp.lt.s32.totalorder %s1925_s23, %s1925_s23 }
 0x493   : > { %p13258_p4 = scmp.ne.s32.totalorder %s1925_s23, %s13257_s25  ;;  %p13265_p0 = scmp.lt.s32.totalorder %s13257_s25, %s13257_s25 }
 0x495   : > { %p13259_p12 = pnand %p13258_p4, %p20809_p8  ;;  %p13266_p13 = por %p13265_p0, %p13264_p2 }
 0x497   : > { %p13260_p11 = pneg %p13259_p12 }
 0x499   : > { %p13267_p3 = pnand %p13266_p13, %p13260_p11 }
 0x49b   : > { %13270 = shalt.err (!%p13267_p3)
}
 0x49c   : > { %s21512_s16 = sld [smem:[#allocation185_spill]] }
 0x49d   : > { %11378 = dma.hbm_to_vmem [thread:$0]  (%p20809_p8), %s21511_s30, 896, %s1925_s23, [#allocation20], %s21490_s1, %s21490_s1, %s21489_s19  }
 0x4a2   : > { %s13271_s20 = scalar_lea.hbm %s21512_s16, 1024 }
 0x4a3   : > { %p13272_p7 = scmp.ne.s32.totalorder %s21512_s16, %s13271_s20  ;;  %p13277_p5 = scmp.lt.u32.totalorder %s13271_s20, %s21512_s16 }
 0x4a5   : > { %p13273_p10 = pnand %p13272_p7, %p20809_p8 }
 0x4a7   : > { %p13274_p1 = pneg %p13273_p10 }
 0x4a9   : > { %p13279_p6 = pnand %p13277_p5, %p13274_p1 }
 0x4ab   : > { %13282 = shalt.err (!%p13279_p6)
}
 0x4ac   : > { %s13283_s25 = scalar_lea.vmem %s1949_s24, 1024  ;;  %p13290_p2 = scmp.lt.s32.totalorder %s1949_s24, %s1949_s24 }
 0x4ad   : > { %p13284_p4 = scmp.ne.s32.totalorder %s1949_s24, %s13283_s25  ;;  %p13291_p0 = scmp.lt.s32.totalorder %s13283_s25, %s13283_s25 }
 0x4af   : > { %p13285_p12 = pnand %p13284_p4, %p20809_p8  ;;  %p13292_p13 = por %p13291_p0, %p13290_p2 }
 0x4b1   : > { %p13286_p11 = pneg %p13285_p12 }
 0x4b3   : > { %p13293_p3 = pnand %p13292_p13, %p13286_p11 }
 0x4b5   : > { %13296 = shalt.err (!%p13293_p3)
}
 0x4b6   : > { %s21513_s0 = sld [smem:[#allocation187_spill]]  ;;  %s15322_s2 = smov [#allocation27]  }
 0x4b7   : > { %11382 = dma.hbm_to_vmem [thread:$0]  (%p20809_p8), %s21512_s16, 1024, %s1949_s24, [#allocation23], %s21490_s1, %s21490_s1, %s21489_s19  }
 0x4b8   : > { %s1972_s18 = sshll.u32 %s15322_s2, 4  ;;  %s15323_s23 = smov [#allocation30]   ;;  %s1973_s18 = int_to_ptr.vmem [resolvable:$true] %s1972_s18 }
 0x4b9   : > { %s1996_s20 = sshll.u32 %s15323_s23, 4  ;;  %s1997_s20 = int_to_ptr.vmem [resolvable:$true] %s1996_s20 }
 0x4bc   : > { %s21514_s17 = smov %s21513_s0  ;;  %s13297_s25 = scalar_lea.hbm %s21513_s0, 1024 }
 0x4bd   : > { %p13298_p7 = scmp.ne.s32.totalorder %s21514_s17, %s13297_s25  ;;  %p13303_p5 = scmp.lt.u32.totalorder %s13297_s25, %s21514_s17 }
 0x4bf   : > { %p13299_p10 = pnand %p13298_p7, %p20809_p8 }
 0x4c1   : > { %p13300_p1 = pneg %p13299_p10 }
 0x4c3   : > { %p13305_p6 = pnand %p13303_p5, %p13300_p1 }
 0x4c5   : > { %13308 = shalt.err (!%p13305_p6)
}
 0x4c6   : > { %s13309_s27 = scalar_lea.vmem %s1973_s18, 1024  ;;  %p13316_p2 = scmp.lt.s32.totalorder %s1973_s18, %s1973_s18 }
 0x4c7   : > { %p13310_p4 = scmp.ne.s32.totalorder %s1973_s18, %s13309_s27  ;;  %p13317_p0 = scmp.lt.s32.totalorder %s13309_s27, %s13309_s27 }
 0x4c9   : > { %p13311_p12 = pnand %p13310_p4, %p20809_p8  ;;  %p13318_p13 = por %p13317_p0, %p13316_p2 }
 0x4cb   : > { %p13312_p11 = pneg %p13311_p12 }
 0x4cd   : > { %p13319_p3 = pnand %p13318_p13, %p13312_p11 }
 0x4cf   : > { %13322 = shalt.err (!%p13319_p3)
}
 0x4d0   : > { %s21515_s24 = sld [smem:[#allocation189_spill]] }
 0x4d1   : > { %11386 = dma.hbm_to_vmem [thread:$0]  (%p20809_p8), %s21514_s17, 1024, %s1973_s18, [#allocation26], %s21490_s1, %s21490_s1, %s21489_s19  }
 0x4d6   : > { %s13323_s0 = scalar_lea.hbm %s21515_s24, 1024 }
 0x4d7   : > { %p13324_p7 = scmp.ne.s32.totalorder %s21515_s24, %s13323_s0  ;;  %p13329_p5 = scmp.lt.u32.totalorder %s13323_s0, %s21515_s24 }
 0x4d9   : > { %p13325_p10 = pnand %p13324_p7, %p20809_p8 }
 0x4db   : > { %p13326_p1 = pneg %p13325_p10 }
 0x4dd   : > { %p13331_p6 = pnand %p13329_p5, %p13326_p1 }
 0x4df   : > { %13334 = shalt.err (!%p13331_p6)
}
 0x4e0   : > { %s13335_s27 = scalar_lea.vmem %s1997_s20, 1024  ;;  %p13342_p2 = scmp.lt.s32.totalorder %s1997_s20, %s1997_s20 }
 0x4e1   : > { %p13336_p4 = scmp.ne.s32.totalorder %s1997_s20, %s13335_s27  ;;  %p13343_p0 = scmp.lt.s32.totalorder %s13335_s27, %s13335_s27 }
 0x4e3   : > { %p13337_p12 = pnand %p13336_p4, %p20809_p8  ;;  %p13344_p13 = por %p13343_p0, %p13342_p2 }
 0x4e5   : > { %p13338_p11 = pneg %p13337_p12 }
 0x4e7   : > { %p13345_p3 = pnand %p13344_p13, %p13338_p11 }
 0x4e9   : > { %13348 = shalt.err (!%p13345_p3)
}
 0x4ea   : > { %s21516_s2 = sld [smem:[#allocation192_spill]]  ;;  %s15324_s18 = smov [#allocation33]  }
 0x4eb   : > { %11390 = dma.hbm_to_vmem [thread:$0]  (%p20809_p8), %s21515_s24, 1024, %s1997_s20, [#allocation29], %s21490_s1, %s21490_s1, %s21489_s19  }
 0x4ec   : > { %s2024_s23 = sshll.u32 %s15324_s18, 4  ;;  %s15325_s0 = smov [#allocation36]   ;;  %s2025_s23 = int_to_ptr.vmem [resolvable:$true] %s2024_s23 }
 0x4ed   : > { %s2048_s16 = sshll.u32 %s15325_s0, 4  ;;  %s2049_s16 = int_to_ptr.vmem [resolvable:$true] %s2048_s16 }
 0x4f0   : > { %s21517_s25 = smov %s21516_s2  ;;  %s13349_s27 = scalar_lea.hbm %s21516_s2, 16 }
 0x4f1   : > { %p13350_p7 = scmp.ne.s32.totalorder %s21517_s25, %s13349_s27  ;;  %p13355_p5 = scmp.lt.u32.totalorder %s13349_s27, %s21517_s25 }
 0x4f3   : > { %p13351_p10 = pnand %p13350_p7, %p20809_p8 }
 0x4f5   : > { %p13352_p1 = pneg %p13351_p10 }
 0x4f7   : > { %p13357_p6 = pnand %p13355_p5, %p13352_p1 }
 0x4f9   : > { %13360 = shalt.err (!%p13357_p6)
}
 0x4fa   : > { %s13361_s17 = scalar_lea.vmem %s2025_s23, 16  ;;  %s13367_s20 = scalar_lea.vmem %s2025_s23, 32 }
 0x4fb   : > { %p13362_p4 = scmp.ne.s32.totalorder %s2025_s23, %s13361_s17  ;;  %p13368_p2 = scmp.lt.s32.totalorder %s2025_s23, %s2025_s23 }
 0x4fc   : > { %p13369_p0 = scmp.lt.s32.totalorder %s13367_s20, %s13361_s17 }
 0x4fd   : > { %p13363_p12 = pnand %p13362_p4, %p20809_p8 }
 0x4fe   : > { %p13370_p13 = por %p13369_p0, %p13368_p2 }
 0x4ff   : > { %p13364_p11 = pneg %p13363_p12 }
 0x501   : > { %p13371_p3 = pnand %p13370_p13, %p13364_p11 }
 0x503   : > { %13374 = shalt.err (!%p13371_p3)
}
 0x504   : > { %s21518_s2 = sld [smem:[#allocation194_spill]] }
 0x505   : > { %11394 = dma.hbm_to_vmem [thread:$0]  (%p20809_p8), %s21517_s25, 16, %s2025_s23, [#allocation32]  }
 0x50a   : > { %s21519_s24 = smov %s21518_s2  ;;  %s13375_s18 = scalar_lea.hbm %s21518_s2, 16 }
 0x50b   : > { %p13376_p7 = scmp.ne.s32.totalorder %s21519_s24, %s13375_s18  ;;  %p13381_p5 = scmp.lt.u32.totalorder %s13375_s18, %s21519_s24 }
 0x50d   : > { %p13377_p10 = pnand %p13376_p7, %p20809_p8 }
 0x50f   : > { %p13378_p1 = pneg %p13377_p10 }
 0x511   : > { %p13383_p6 = pnand %p13381_p5, %p13378_p1 }
 0x513   : > { %13386 = shalt.err (!%p13383_p6)
}
 0x514   : > { %s13387_s17 = scalar_lea.vmem %s2049_s16, 16  ;;  %s13393_s0 = scalar_lea.vmem %s2049_s16, 32 }
 0x515   : > { %p13388_p4 = scmp.ne.s32.totalorder %s2049_s16, %s13387_s17  ;;  %p13394_p2 = scmp.lt.s32.totalorder %s2049_s16, %s2049_s16 }
 0x516   : > { %p13395_p0 = scmp.lt.s32.totalorder %s13393_s0, %s13387_s17 }
 0x517   : > { %p13389_p12 = pnand %p13388_p4, %p20809_p8 }
 0x518   : > { %p13396_p13 = por %p13395_p0, %p13394_p2 }
 0x519   : > { %p13390_p11 = pneg %p13389_p12 }
 0x51b   : > { %p13397_p3 = pnand %p13396_p13, %p13390_p11 }
 0x51d   : > { %13400 = shalt.err (!%p13397_p3)
}
 0x51e   : > { %s21520_s23 = sld [smem:[#allocation196_spill]]  ;;  %s15326_s20 = smov [#allocation39]  }
 0x51f   : > { %11398 = dma.hbm_to_vmem [thread:$0]  (%p20809_p8), %s21519_s24, 16, %s2049_s16, [#allocation35]  }
 0x520   : > { %s2072_s2 = sshll.u32 %s15326_s20, 4  ;;  %s15327_s18 = smov [#allocation42]   ;;  %s2073_s2 = int_to_ptr.vmem [resolvable:$true] %s2072_s2 }
 0x521   : > { %s2094_s25 = sshll.u32 %s15327_s18, 4  ;;  %s2095_s25 = int_to_ptr.vmem [resolvable:$true] %s2094_s25 }
 0x524   : > { %s21521_s27 = smov %s21520_s23  ;;  %s13401_s30 = scalar_lea.hbm %s21520_s23, 16 }
 0x525   : > { %p13402_p7 = scmp.ne.s32.totalorder %s21521_s27, %s13401_s30  ;;  %p13407_p5 = scmp.lt.u32.totalorder %s13401_s30, %s21521_s27 }
 0x527   : > { %p13403_p10 = pnand %p13402_p7, %p20809_p8 }
 0x529   : > { %p13404_p1 = pneg %p13403_p10 }
 0x52b   : > { %p13409_p6 = pnand %p13407_p5, %p13404_p1 }
 0x52d   : > { %13412 = shalt.err (!%p13409_p6)
}
 0x52e   : > { %s13413_s17 = scalar_lea.vmem %s2073_s2, 16  ;;  %s13419_s16 = scalar_lea.vmem %s2073_s2, 32 }
 0x52f   : > { %p13414_p4 = scmp.ne.s32.totalorder %s2073_s2, %s13413_s17  ;;  %p13420_p2 = scmp.lt.s32.totalorder %s2073_s2, %s2073_s2 }
 0x530   : > { %p13421_p0 = scmp.lt.s32.totalorder %s13419_s16, %s13413_s17 }
 0x531   : > { %p13415_p12 = pnand %p13414_p4, %p20809_p8 }
 0x532   : > { %p13422_p13 = por %p13421_p0, %p13420_p2 }
 0x533   : > { %p13416_p11 = pneg %p13415_p12 }
 0x535   : > { %p13423_p3 = pnand %p13422_p13, %p13416_p11 }
 0x537   : > { %13426 = shalt.err (!%p13423_p3)
}
 0x538   : > { %s21522_s0 = sld [smem:[#allocation198_spill]] }
 0x539   : > { %11402 = dma.hbm_to_vmem [thread:$0]  (%p20809_p8), %s21521_s27, 16, %s2073_s2, [#allocation38]  }
 0x53e   : > { %s21523_s20 = smov %s21522_s0  ;;  %s13427_s30 = scalar_lea.hbm %s21522_s0, 16 }
 0x53f   : > { %p13428_p7 = scmp.ne.s32.totalorder %s21523_s20, %s13427_s30  ;;  %p13433_p5 = scmp.lt.u32.totalorder %s13427_s30, %s21523_s20 }
 0x541   : > { %p13429_p10 = pnand %p13428_p7, %p20809_p8 }
 0x543   : > { %p13430_p1 = pneg %p13429_p10 }
 0x545   : > { %p13435_p6 = pnand %p13433_p5, %p13430_p1 }
 0x547   : > { %13438 = shalt.err (!%p13435_p6)
}
 0x548   : > { %s13439_s23 = scalar_lea.vmem %s2095_s25, 16  ;;  %s13445_s18 = scalar_lea.vmem %s2095_s25, 32 }
 0x549   : > { %p13440_p4 = scmp.ne.s32.totalorder %s2095_s25, %s13439_s23  ;;  %p13446_p2 = scmp.lt.s32.totalorder %s2095_s25, %s2095_s25 }
 0x54a   : > { %p13447_p0 = scmp.lt.s32.totalorder %s13445_s18, %s13439_s23 }
 0x54b   : > { %p13441_p12 = pnand %p13440_p4, %p20809_p8 }
 0x54c   : > { %p13448_p13 = por %p13447_p0, %p13446_p2 }
 0x54d   : > { %p13442_p11 = pneg %p13441_p12 }
 0x54f   : > { %p13449_p3 = pnand %p13448_p13, %p13442_p11 }
 0x551   : > { %13452 = shalt.err (!%p13449_p3)
}
 0x552   : > { %s21524_s2 = sld [smem:[#allocation200_spill]]  ;;  %s15328_s16 = smov [#allocation45]  }
 0x553   : > { %11406 = dma.hbm_to_vmem [thread:$0]  (%p20809_p8), %s21523_s20, 16, %s2095_s25, [#allocation41]  }
 0x554   : > { %s2118_s0 = sshll.u32 %s15328_s16, 4  ;;  %s15329_s30 = smov [#allocation48]   ;;  %s2119_s0 = int_to_ptr.vmem [resolvable:$true] %s2118_s0 }
 0x555   : > { %s2141_s24 = sshll.u32 %s15329_s30, 4  ;;  %s2142_s24 = int_to_ptr.vmem [resolvable:$true] %s2141_s24 }
 0x558   : > { %s21525_s17 = smov %s21524_s2  ;;  %s13453_s27 = scalar_lea.hbm %s21524_s2, 16 }
 0x559   : > { %p13454_p7 = scmp.ne.s32.totalorder %s21525_s17, %s13453_s27  ;;  %p13459_p5 = scmp.lt.u32.totalorder %s13453_s27, %s21525_s17 }
 0x55b   : > { %p13455_p10 = pnand %p13454_p7, %p20809_p8 }
 0x55d   : > { %p13456_p1 = pneg %p13455_p10 }
 0x55f   : > { %p13461_p6 = pnand %p13459_p5, %p13456_p1 }
 0x561   : > { %13464 = shalt.err (!%p13461_p6)
}
 0x562   : > { %s13465_s23 = scalar_lea.vmem %s2119_s0, 16  ;;  %s13471_s25 = scalar_lea.vmem %s2119_s0, 32 }
 0x563   : > { %p13466_p4 = scmp.ne.s32.totalorder %s2119_s0, %s13465_s23  ;;  %p13472_p2 = scmp.lt.s32.totalorder %s2119_s0, %s2119_s0 }
 0x564   : > { %p13473_p0 = scmp.lt.s32.totalorder %s13471_s25, %s13465_s23 }
 0x565   : > { %p13467_p12 = pnand %p13466_p4, %p20809_p8 }
 0x566   : > { %p13474_p13 = por %p13473_p0, %p13472_p2 }
 0x567   : > { %p13468_p11 = pneg %p13467_p12 }
 0x569   : > { %p13475_p3 = pnand %p13474_p13, %p13468_p11 }
 0x56b   : > { %13478 = shalt.err (!%p13475_p3)
}
 0x56c   : > { %s21526_s18 = sld [smem:[#allocation202_spill]] }
 0x56d   : > { %11410 = dma.hbm_to_vmem [thread:$0]  (%p20809_p8), %s21525_s17, 16, %s2119_s0, [#allocation44]  }
 0x572   : > { %s21527_s16 = smov %s21526_s18  ;;  %s13479_s27 = scalar_lea.hbm %s21526_s18, 896 }
 0x573   : > { %p13480_p7 = scmp.ne.s32.totalorder %s21527_s16, %s13479_s27  ;;  %p13485_p5 = scmp.lt.u32.totalorder %s13479_s27, %s21527_s16 }
 0x575   : > { %p13481_p10 = pnand %p13480_p7, %p20809_p8 }
 0x577   : > { %p13482_p1 = pneg %p13481_p10 }
 0x579   : > { %p13487_p6 = pnand %p13485_p5, %p13482_p1 }
 0x57b   : > { %13490 = shalt.err (!%p13487_p6)
}
 0x57c   : > { %s13491_s2 = scalar_lea.vmem %s2142_s24, 896  ;;  %p13498_p2 = scmp.lt.s32.totalorder %s2142_s24, %s2142_s24 }
 0x57d   : > { %p13492_p4 = scmp.ne.s32.totalorder %s2142_s24, %s13491_s2  ;;  %p13499_p0 = scmp.lt.s32.totalorder %s13491_s2, %s13491_s2 }
 0x57f   : > { %p13493_p12 = pnand %p13492_p4, %p20809_p8  ;;  %p13500_p13 = por %p13499_p0, %p13498_p2 }
 0x581   : > { %p13494_p11 = pneg %p13493_p12 }
 0x583   : > { %p13501_p3 = pnand %p13500_p13, %p13494_p11 }
 0x585   : > { %13504 = shalt.err (!%p13501_p3)
}
 0x586   : > { %s21528_s0 = sld [smem:[#allocation204_spill]]  ;;  %s15330_s23 = smov [#allocation51]  }
 0x587   : > { %11414 = dma.hbm_to_vmem [thread:$0]  (%p20809_p8), %s21527_s16, 896, %s2142_s24, [#allocation47], %s21490_s1, %s21490_s1, %s21489_s19  }
 0x588   : > { %s2166_s25 = sshll.u32 %s15330_s23, 4  ;;  %s15331_s18 = smov [#allocation54]   ;;  %s2167_s25 = int_to_ptr.vmem [resolvable:$true] %s2166_s25 }
 0x589   : > { %s2190_s27 = sshll.u32 %s15331_s18, 4  ;;  %s2191_s27 = int_to_ptr.vmem [resolvable:$true] %s2190_s27 }
 0x58c   : > { %s21529_s30 = smov %s21528_s0  ;;  %s13505_s2 = scalar_lea.hbm %s21528_s0, 16 }
 0x58d   : > { %p13506_p7 = scmp.ne.s32.totalorder %s21529_s30, %s13505_s2  ;;  %p13511_p5 = scmp.lt.u32.totalorder %s13505_s2, %s21529_s30 }
 0x58f   : > { %p13507_p10 = pnand %p13506_p7, %p20809_p8 }
 0x591   : > { %p13508_p1 = pneg %p13507_p10 }
 0x593   : > { %p13513_p6 = pnand %p13511_p5, %p13508_p1 }
 0x595   : > { %13516 = shalt.err (!%p13513_p6)
}
 0x596   : > { %s13517_s17 = scalar_lea.vmem %s2167_s25, 16  ;;  %s13523_s24 = scalar_lea.vmem %s2167_s25, 32 }
 0x597   : > { %p13518_p4 = scmp.ne.s32.totalorder %s2167_s25, %s13517_s17  ;;  %p13524_p2 = scmp.lt.s32.totalorder %s2167_s25, %s2167_s25 }
 0x598   : > { %p13525_p0 = scmp.lt.s32.totalorder %s13523_s24, %s13517_s17 }
 0x599   : > { %p13519_p12 = pnand %p13518_p4, %p20809_p8 }
 0x59a   : > { %p13526_p13 = por %p13525_p0, %p13524_p2 }
 0x59b   : > { %p13520_p11 = pneg %p13519_p12 }
 0x59d   : > { %p13527_p3 = pnand %p13526_p13, %p13520_p11 }
 0x59f   : > { %13530 = shalt.err (!%p13527_p3)
}
 0x5a0   : > { %s21530_s0 = sld [smem:[#allocation206_spill]] }
 0x5a1   : > { %11418 = dma.hbm_to_vmem [thread:$0]  (%p20809_p8), %s21529_s30, 16, %s2167_s25, [#allocation50]  }
 0x5a6   : > { %s21531_s16 = smov %s21530_s0  ;;  %s13531_s23 = scalar_lea.hbm %s21530_s0, 16 }
 0x5a7   : > { %p13532_p7 = scmp.ne.s32.totalorder %s21531_s16, %s13531_s23  ;;  %p13537_p5 = scmp.lt.u32.totalorder %s13531_s23, %s21531_s16 }
 0x5a9   : > { %p13533_p10 = pnand %p13532_p7, %p20809_p8 }
 0x5ab   : > { %p13534_p1 = pneg %p13533_p10 }
 0x5ad   : > { %p13539_p6 = pnand %p13537_p5, %p13534_p1 }
 0x5af   : > { %13542 = shalt.err (!%p13539_p6)
}
 0x5b0   : > { %s13543_s17 = scalar_lea.vmem %s2191_s27, 16  ;;  %s13549_s18 = scalar_lea.vmem %s2191_s27, 32 }
 0x5b1   : > { %p13544_p4 = scmp.ne.s32.totalorder %s2191_s27, %s13543_s17  ;;  %p13550_p2 = scmp.lt.s32.totalorder %s2191_s27, %s2191_s27 }
 0x5b2   : > { %p13551_p0 = scmp.lt.s32.totalorder %s13549_s18, %s13543_s17 }
 0x5b3   : > { %p13545_p12 = pnand %p13544_p4, %p20809_p8 }
 0x5b4   : > { %p13552_p13 = por %p13551_p0, %p13550_p2 }
 0x5b5   : > { %p13546_p11 = pneg %p13545_p12 }
 0x5b7   : > { %p13553_p3 = pnand %p13552_p13, %p13546_p11 }
 0x5b9   : > { %13556 = shalt.err (!%p13553_p3)
}
 0x5ba   : > { %s21532_s25 = sld [smem:[#allocation208_spill]]  ;;  %s15332_s2 = smov [#allocation57]  }
 0x5bb   : > { %11422 = dma.hbm_to_vmem [thread:$0]  (%p20809_p8), %s21531_s16, 16, %s2191_s27, [#allocation53]  }
 0x5bc   : > { %s2213_s24 = sshll.u32 %s15332_s2, 4  ;;  %s2214_s24 = int_to_ptr.vmem [resolvable:$true] %s2213_s24 }
 0x5c0   : > { %s13557_s0 = scalar_lea.hbm %s21532_s25, 896 }
 0x5c1   : > { %p13558_p7 = scmp.ne.s32.totalorder %s21532_s25, %s13557_s0  ;;  %p13563_p5 = scmp.lt.u32.totalorder %s13557_s0, %s21532_s25 }
 0x5c3   : > { %p13559_p10 = pnand %p13558_p7, %p20809_p8 }
 0x5c5   : > { %p13560_p1 = pneg %p13559_p10 }
 0x5c7   : > { %p13565_p6 = pnand %p13563_p5, %p13560_p1 }
 0x5c9   : > { %13568 = shalt.err (!%p13565_p6)
}
 0x5ca   : > { %s13569_s23 = scalar_lea.vmem %s2214_s24, 896  ;;  %p13576_p2 = scmp.lt.s32.totalorder %s2214_s24, %s2214_s24 }
 0x5cb   : > { %p13570_p4 = scmp.ne.s32.totalorder %s2214_s24, %s13569_s23  ;;  %p13577_p0 = scmp.lt.s32.totalorder %s13569_s23, %s13569_s23 }
 0x5cd   : > { %p13571_p12 = pnand %p13570_p4, %p20809_p8  ;;  %p13578_p13 = por %p13577_p0, %p13576_p2 }
 0x5cf   : > { %p13572_p11 = pneg %p13571_p12 }
 0x5d1   : > { %p13579_p3 = pnand %p13578_p13, %p13572_p11 }
 0x5d3   : > { %13582 = shalt.err (!%p13579_p3)
}
 0x5d4   : > { %11426 = dma.hbm_to_vmem [thread:$0]  (%p20809_p8), %s21532_s25, 896, %s2214_s24, [#allocation56], %s21490_s1, %s21490_s1, %s21489_s19  }
 0x5d5 PF: > { %p9553_p7 = scmp.ge.s32.totalorder %s21231_s10, 3 }
 0x5d6   : > { %s21534_s17 = sld [smem:[#allocation299_spill]] (!%p9553_p7)  ;;  %s21535_s18 = sld [smem:[#allocation209_spill]] (!%p9553_p7) }
 0x5d7   : > { %2223 = sbr.rel (%p9553_p7) target bundleno = 2385 (0x951), region = 156  ;;  %s2229_s2 = sand.u32 (!%p9553_p7), 1, %s21249_s6  }
 0x5d8   : > { %s17208_s0 = sand.u32 (!%p9553_p7), 1, %s21231_s10   ;;  %s2230_s24 = scalar_lea.vmem (!%p9553_p7), [#allocation58], %s2229_s2 }
 0x5d9   : > { %s2238_s23 = sshll.u32 (!%p9553_p7), %s2230_s24, 4  ;;  %p21537_p10 = scmp.ne.s32.totalorder (!%p9553_p7), %s21263_s4, 0  ;;  %s17215_s23 = int_to_ptr.vmem [resolvable:$true] %s2238_s23 }
 0x5da   : > { %s20813_s2 = scalar_lea.sflag (!%p9553_p7), [#allocation59], %s17208_s0 }
 0x5dc   : > { %s21536_s16 = smov (!%p9553_p7), %s21535_s18  ;;  %s2275_s25 = sand.u32 (!%p9553_p7), 1, %s21534_s17  }
 0x5dd   : > { %s17223_s14 = scalar_lea.vmem (!%p9553_p7), [#allocation61], %s2275_s25 }
 0x5de   : > { %s11427_s19 = scalar_select %p16148_p9, [#allocation7], [#allocation100] }
 0x5df   : > { %s11428_s1 = scalar_select %p16148_p9, %s21231_s10, 0 }
 0x5e0   : > { %s11433_s30 = scalar_select %p21537_p10, [#allocation7], [#allocation102] }
 0x5e1   : > { %s2231_s20 = sld [smem:[%s11427_s19 + %s11428_s1]]  ;;  %s2284_s28 = sshll.u32 %s17223_s14, 4  ;;  %s17246_s28 = int_to_ptr.vmem [resolvable:$true] %s2284_s28 }
 0x5e2   : > { %s11434_s6 = scalar_select %p21537_p10, %s21231_s10, 0 }
 0x5e3   : > { %s13587_s19 = scalar_lea.hbm %s21536_s16, 48 }
 0x5e4   : > { %s17226_s8 = sld [smem:[%s11433_s30 + %s11434_s6]] }
 0x5e7   : > { %s9554_s5 = sshll.u32 %s2231_s20, 4 }
 0x5e8   : > { %s2236_s3 = scalar_lea.hbm %s21535_s18, %s9554_s5 }
 0x5e9   : > { %s13583_s24 = scalar_lea.hbm %s2236_s3, 16  ;;  %p13588_p4 = scmp.lt.u32.totalorder %s2236_s3, %s21536_s16 }
 0x5ea   : > { %p13584_p1 = scmp.ne.s32.totalorder %s2236_s3, %s13583_s24  ;;  %p13589_p12 = scmp.lt.u32.totalorder %s13587_s19, %s13583_s24 }
 0x5eb   : > { %p13591_p2 = scmp.lt.u32.totalorder %s13583_s24, %s2236_s3 }
 0x5ec   : > { %p13585_p5 = pnand %p13584_p1, %p16148_p9  ;;  %p13590_p11 = por %p13589_p12, %p13588_p4 }
 0x5ee   : > { %p13586_p6 = pneg %p13585_p5  ;;  %p13592_p0 = por %p13591_p2, %p13590_p11 }
 0x5f0   : > { %p13593_p13 = pnand %p13592_p0, %p13586_p6 }
 0x5f2   : > { %13596 = shalt.err (!%p13593_p13)
}
 0x5f3   : > { %s13597_s6 = scalar_lea.vmem %s17215_s23, 16  ;;  %s15333_s5 = smov [#allocation58]  }
 0x5f4   : > { %p13598_p3 = scmp.ne.s32.totalorder %s17215_s23, %s13597_s6  ;;  %s13601_s20 = sshll.u32 %s15333_s5, 4  ;;  %s13602_s20 = int_to_ptr.vmem [resolvable:$false] %s13601_s20 }
 0x5f5   : > { %s13603_s30 = scalar_lea.vmem %s13602_s20, 32  ;;  %p13604_p1 = scmp.lt.s32.totalorder %s17215_s23, %s13602_s20 }
 0x5f6   : > { %p13599_p7 = pnand %p13598_p3, %p16148_p9  ;;  %p13605_p5 = scmp.lt.s32.totalorder %s13603_s30, %s13597_s6 }
 0x5f8   : > { %p13600_p8 = pneg %p13599_p7  ;;  %p13606_p4 = por %p13605_p5, %p13604_p1 }
 0x5fa   : > { %p13607_p12 = pnand %p13606_p4, %p13600_p8 }
 0x5fc   : > { %13610 = shalt.err (!%p13607_p12)
}
 0x5fd   : > { %s21538_s25 = sld [smem:[#allocation309_spill]]  ;;  %s21539_s17 = sld [smem:[#allocation311_spill]] }
 0x5fe   : > { %s21540_s18 = sld [smem:[#allocation212_spill]]  ;;  %s9556_s27 = sshll.u32 %s17226_s8, 4 }
 0x5ff   : > { %11429 = dma.hbm_to_vmem [thread:$0]  (%p16148_p9), %s2236_s3, 16, %s17215_s23, %s20813_s2  }
 0x600   : > { %s20812_s3 = scalar_lea.sflag [#allocation62], %s17208_s0 }
 0x603   : > { %s2325_s1 = sand.u32 1, %s21538_s25   ;;  %s2369_s6 = sand.u32 1, %s21539_s17  }
 0x604   : > { %s21541_s24 = smov %s21540_s18  ;;  %s9560_s19 = sshll.u32 %s2325_s1, 6 }
 0x605   : > { %s17251_s5 = sshll.u32 %s2369_s6, 6  ;;  %s17254_s20 = scalar_lea.hbm %s21540_s18, %s9556_s27 }
 0x606   : > { %s2327_s30 = scalar_lea.vmem [#allocation64], %s9560_s19  ;;  %s13611_s14 = scalar_lea.hbm %s17254_s20, 16 }
 0x607   : > { %s17256_s16 = sshll.u32 %s2327_s30, 4  ;;  %p13612_p8 = scmp.ne.s32.totalorder %s17254_s20, %s13611_s14  ;;  %s17284_s16 = int_to_ptr.vmem [resolvable:$true] %s17256_s16 }
 0x608   : > { %s13615_s23 = scalar_lea.hbm %s21541_s24, 48  ;;  %p13616_p11 = scmp.lt.u32.totalorder %s17254_s20, %s21541_s24 }
 0x609   : > { %p13613_p9 = pnand %p13612_p8, %p21537_p10  ;;  %p13617_p2 = scmp.lt.u32.totalorder %s13615_s23, %s13611_s14 }
 0x60a   : > { %p13619_p13 = scmp.lt.u32.totalorder %s13611_s14, %s17254_s20 }
 0x60b   : > { %p13614_p6 = pneg %p13613_p9  ;;  %p13618_p0 = por %p13617_p2, %p13616_p11 }
 0x60d   : > { %p13620_p3 = por %p13619_p13, %p13618_p0 }
 0x60f   : > { %p13621_p7 = pnand %p13620_p3, %p13614_p6 }
 0x611   : > { %13624 = shalt.err (!%p13621_p7)
}
 0x612   : > { %s13625_s8 = scalar_lea.vmem %s17246_s28, 16  ;;  %s15334_s25 = smov [#allocation61]  }
 0x613   : > { %p13626_p1 = scmp.ne.s32.totalorder %s17246_s28, %s13625_s8  ;;  %s13629_s17 = sshll.u32 %s15334_s25, 4  ;;  %s13630_s17 = int_to_ptr.vmem [resolvable:$false] %s13629_s17 }
 0x614   : > { %s13631_s18 = scalar_lea.vmem %s13630_s17, 32  ;;  %p13632_p12 = scmp.lt.s32.totalorder %s17246_s28, %s13630_s17 }
 0x615   : > { %p13627_p5 = pnand %p13626_p1, %p21537_p10  ;;  %p13633_p8 = scmp.lt.s32.totalorder %s13631_s18, %s13625_s8 }
 0x617   : > { %p13628_p4 = pneg %p13627_p5  ;;  %p13634_p9 = por %p13633_p8, %p13632_p12 }
 0x619   : > { %p13635_p11 = pnand %p13634_p9, %p13628_p4 }
 0x61b   : > { %13638 = shalt.err (!%p13635_p11)
}
 0x61c   : > { %s21542_s1 = sld [smem:[#allocation304_spill]]  ;;  %s21543_s19 = sld [smem:[#allocation215_spill]] }
 0x61d   : > { %11435 = dma.hbm_to_vmem [thread:$0]  (%p21537_p10), %s17254_s20, 16, %s17246_s28, %s20812_s3  }
 0x61e   : > { %p21544_p6 = scmp.ne.s32.totalorder %s21275_s12, 0  ;;  %p21545_p2 = scmp.ne.s32.totalorder %s21290_s11, 0 }
 0x61f   : > { %s2371_s23 = scalar_lea.vmem [#allocation67], %s17251_s5  ;;  %p21546_p10 = scmp.ne.s32.totalorder %s21306_s21, 0 }
 0x620   : > { %s11439_s6 = scalar_select %p21544_p6, [#allocation7], [#allocation104] }
 0x621   : > { %s11440_s4 = scalar_select %p21544_p6, %s21231_s10, 0 }
 0x622   : > { %s11445_s30 = scalar_select %p21545_p2, [#allocation7], [#allocation106] }
 0x623   : > { %s2328_s27 = sld [smem:[%s11439_s6 + %s11440_s4]]  ;;  %s2379_s8 = sshll.u32 %s2371_s23, 4  ;;  %s17297_s8 = int_to_ptr.vmem [resolvable:$true] %s2379_s8 }
 0x624   : > { %s11446_s14 = scalar_select %p21545_p2, %s21231_s10, 0 }
 0x625   : > { %s2409_s25 = sand.u32 1, %s21542_s1   ;;  %s20814_s4 = scalar_lea.sflag [#allocation65], %s17208_s0 }
 0x626   : > { %s17293_s17 = sld [smem:[%s11445_s30 + %s11446_s14]]  ;;  %s17302_s6 = scalar_lea.vmem [#allocation70], %s2409_s25 }
 0x627   : > { %s11451_s28 = scalar_select %p21546_p10, [#allocation7], [#allocation108] }
 0x628   : > { %s2418_s5 = sshll.u32 %s17302_s6, 4  ;;  %s13643_s1 = scalar_lea.hbm %s21543_s19, 3072  ;;  %s17334_s5 = int_to_ptr.vmem [resolvable:$true] %s2418_s5 }
 0x629   : > { %s9993_s20 = sshll.u32 %s2328_s27, 10 }
 0x62a   : > { %s17300_s18 = scalar_lea.hbm %s21543_s19, %s9993_s20 }
 0x62b   : > { %s13639_s23 = scalar_lea.hbm %s17300_s18, 1024  ;;  %p13644_p7 = scmp.lt.u32.totalorder %s17300_s18, %s21543_s19 }
 0x62c   : > { %p13640_p0 = scmp.ne.s32.totalorder %s17300_s18, %s13639_s23  ;;  %p13645_p1 = scmp.lt.u32.totalorder %s13643_s1, %s13639_s23 }
 0x62d   : > { %p13647_p4 = scmp.lt.u32.totalorder %s13639_s23, %s17300_s18 }
 0x62e   : > { %p13641_p13 = pnand %p13640_p0, %p21544_p6  ;;  %p13646_p5 = por %p13645_p1, %p13644_p7 }
 0x630   : > { %p13642_p3 = pneg %p13641_p13  ;;  %p13648_p12 = por %p13647_p4, %p13646_p5 }
 0x632   : > { %p13649_p8 = pnand %p13648_p12, %p13642_p3 }
 0x634   : > { %13652 = shalt.err (!%p13649_p8)
}
 0x635   : > { %s13653_s27 = scalar_lea.vmem %s17284_s16, 1024  ;;  %s15335_s30 = smov [#allocation64]  }
 0x636   : > { %p13654_p9 = scmp.ne.s32.totalorder %s17284_s16, %s13653_s27  ;;  %s13657_s14 = sshll.u32 %s15335_s30, 4  ;;  %s13658_s14 = int_to_ptr.vmem [resolvable:$false] %s13657_s14 }
 0x637   : > { %s13659_s25 = scalar_lea.vmem %s13658_s14, 2048  ;;  %p13660_p0 = scmp.lt.s32.totalorder %s17284_s16, %s13658_s14 }
 0x638   : > { %p13655_p11 = pnand %p13654_p9, %p21544_p6  ;;  %p13661_p13 = scmp.lt.s32.totalorder %s13659_s25, %s13653_s27 }
 0x63a   : > { %p13656_p2 = pneg %p13655_p11  ;;  %p13662_p7 = por %p13661_p13, %p13660_p0 }
 0x63c   : > { %p13663_p1 = pnand %p13662_p7, %p13656_p2 }
 0x63e   : > { %13666 = shalt.err (!%p13663_p1)
}
 0x63f   : > { %s20818_s20 = smov 64   ;;  %s21547_s23 = sld [smem:[#allocation217_spill]] }
 0x640   : > { %s20822_s1 = smov 4   ;;  %s9995_s30 = sshll.u32 %s17293_s17, 10 }
 0x641   : > { %11441 = dma.hbm_to_vmem [thread:$0]  (%p21544_p6), %s17300_s18, 1024, %s17284_s16, %s20814_s4, %s20818_s20, %s20818_s20, %s20822_s1  }
 0x642   : > { %s11452_s27 = scalar_select %p21546_p10, %s21231_s10, 0 }
 0x643   : > { %s20816_s25 = scalar_lea.sflag [#allocation68], %s17208_s0  ;;  %p21549_p6 = scmp.ne.s32.totalorder %s21290_s11, 0 }
 0x644   : > { %s17342_s12 = sld [smem:[%s11451_s28 + %s11452_s27]] }
 0x645   : > { %s21548_s3 = smov %s21547_s23  ;;  %s17337_s14 = scalar_lea.hbm %s21547_s23, %s9995_s30 }
 0x646   : > { %s13667_s2 = scalar_lea.hbm %s17337_s14, 1024  ;;  %s13671_s16 = scalar_lea.hbm %s21548_s3, 3072 }
 0x647   : > { %p13668_p2 = scmp.ne.s32.totalorder %s17337_s14, %s13667_s2  ;;  %p13672_p4 = scmp.lt.u32.totalorder %s17337_s14, %s21548_s3 }
 0x648   : > { %p13673_p12 = scmp.lt.u32.totalorder %s13671_s16, %s13667_s2  ;;  %p13675_p9 = scmp.lt.u32.totalorder %s13667_s2, %s17337_s14 }
 0x649   : > { %p13669_p3 = pnand %p13668_p2, %p21549_p6 }
 0x64a   : > { %p13674_p8 = por %p13673_p12, %p13672_p4 }
 0x64b   : > { %p13670_p5 = pneg %p13669_p3 }
 0x64c   : > { %p13676_p11 = por %p13675_p9, %p13674_p8 }
 0x64e   : > { %p13677_p0 = pnand %p13676_p11, %p13670_p5 }
 0x650   : > { %13680 = shalt.err (!%p13677_p0)
}
 0x651   : > { %s13681_s17 = scalar_lea.vmem %s17297_s8, 1024  ;;  %s15338_s28 = smov [#allocation67]  }
 0x652   : > { %p13682_p13 = scmp.ne.s32.totalorder %s17297_s8, %s13681_s17  ;;  %s13685_s18 = sshll.u32 %s15338_s28, 4  ;;  %s13686_s18 = int_to_ptr.vmem [resolvable:$false] %s13685_s18 }
 0x653   : > { %s13687_s6 = scalar_lea.vmem %s13686_s18, 2048  ;;  %p13688_p2 = scmp.lt.s32.totalorder %s17297_s8, %s13686_s18 }
 0x654   : > { %p13683_p7 = pnand %p13682_p13, %p21549_p6  ;;  %p13689_p3 = scmp.lt.s32.totalorder %s13687_s6, %s13681_s17 }
 0x656   : > { %p13684_p1 = pneg %p13683_p7  ;;  %p13690_p4 = por %p13689_p3, %p13688_p2 }
 0x658   : > { %p13691_p12 = pnand %p13690_p4, %p13684_p1 }
 0x65a   : > { %13694 = shalt.err (!%p13691_p12)
}
 0x65b   : > { %s21550_s2 = sld [smem:[#allocation293_spill]]  ;;  %s21551_s23 = sld [smem:[#allocation287_spill]] }
 0x65c   : > { %s21552_s27 = sld [smem:[#allocation219_spill]]  ;;  %p21553_p5 = scmp.ne.s32.totalorder %s21323_s22, 0 }
 0x65d   : > { %11447 = dma.hbm_to_vmem [thread:$0]  (%p21549_p6), %s17337_s14, 1024, %s17297_s8, %s20816_s25, %s20818_s20, %s20818_s20, %s20822_s1  }
 0x65e   : > { %s11457_s16 = scalar_select %p21553_p5, [#allocation7], [#allocation110] }
 0x65f   : > { %s11458_s17 = scalar_select %p21553_p5, %s21231_s10, 0 }
 0x660   : > { %s9570_s28 = sshll.u32 %s17342_s12, 4  ;;  %s20817_s8 = scalar_lea.sflag [#allocation71], %s17208_s0 }
 0x661   : > { %s2449_s11 = sand.u32 1, %s21550_s2   ;;  %s2489_s30 = sand.u32 1, %s21551_s23  }
 0x662   : > { %s17375_s18 = scalar_lea.vmem [#allocation73], %s2449_s11  ;;  %s17379_s4 = scalar_lea.hbm %s21552_s27, %s9570_s28 }
 0x663   : > { %s2458_s6 = sshll.u32 %s17375_s18, 4  ;;  %s17381_s3 = sld [smem:[%s11457_s16 + %s11458_s17]]  ;;  %s17407_s6 = int_to_ptr.vmem [resolvable:$true] %s2458_s6 }
 0x664   : > { %s13695_s14 = scalar_lea.hbm %s17379_s4, 16  ;;  %s13699_s2 = scalar_lea.hbm %s21552_s27, 48 }
 0x665   : > { %p13696_p6 = scmp.ne.s32.totalorder %s17379_s4, %s13695_s14  ;;  %p13700_p11 = scmp.lt.u32.totalorder %s17379_s4, %s21552_s27 }
 0x666   : > { %p13701_p0 = scmp.lt.u32.totalorder %s13699_s2, %s13695_s14  ;;  %p13703_p7 = scmp.lt.u32.totalorder %s13695_s14, %s17379_s4 }
 0x667   : > { %p13697_p8 = pnand %p13696_p6, %p21546_p10 }
 0x668   : > { %p13702_p13 = por %p13701_p0, %p13700_p11 }
 0x669   : > { %p13698_p9 = pneg %p13697_p8 }
 0x66a   : > { %p13704_p1 = por %p13703_p7, %p13702_p13 }
 0x66c   : > { %p13705_p2 = pnand %p13704_p1, %p13698_p9 }
 0x66e   : > { %13708 = shalt.err (!%p13705_p2)
}
 0x66f   : > { %s13709_s12 = scalar_lea.vmem %s17334_s5, 16  ;;  %s15339_s11 = smov [#allocation70]  }
 0x670   : > { %p13710_p3 = scmp.ne.s32.totalorder %s17334_s5, %s13709_s12  ;;  %s13713_s16 = sshll.u32 %s15339_s11, 4  ;;  %s13714_s16 = int_to_ptr.vmem [resolvable:$false] %s13713_s16 }
 0x671   : > { %s13715_s17 = scalar_lea.vmem %s13714_s16, 32  ;;  %p13716_p6 = scmp.lt.s32.totalorder %s17334_s5, %s13714_s16 }
 0x672   : > { %p13711_p4 = pnand %p13710_p3, %p21546_p10  ;;  %p13717_p8 = scmp.lt.s32.totalorder %s13715_s17, %s13709_s12 }
 0x674   : > { %p13712_p12 = pneg %p13711_p4  ;;  %p13718_p11 = por %p13717_p8, %p13716_p6 }
 0x676   : > { %p13719_p0 = pnand %p13718_p11, %p13712_p12 }
 0x678   : > { %13722 = shalt.err (!%p13719_p0)
}
 0x679   : > { %s21554_s28 = sld [smem:[#allocation343_spill]]  ;;  %s21555_s14 = sld [smem:[#allocation221_spill]] }
 0x67a   : > { %11453 = dma.hbm_to_vmem [thread:$0]  (%p21546_p10), %s17379_s4, 16, %s17334_s5, %s20817_s8  }
 0x67b   : > { %s9578_s2 = sshll.u32 %s2489_s30, 6  ;;  %s9574_s11 = sshll.u32 %s17381_s3, 4 }
 0x67c   : > { %s2491_s16 = scalar_lea.vmem [#allocation76], %s9578_s2  ;;  %s20820_s4 = scalar_lea.sflag [#allocation74], %s17208_s0 }
 0x67d   : > { %s17415_s17 = sshll.u32 %s2491_s16, 4  ;;  %s17444_s17 = int_to_ptr.vmem [resolvable:$true] %s17415_s17 }
 0x67f   : > { %p21556_p9 = scmp.ne.s32.totalorder %s21554_s28, 0  ;;  %s17418_s25 = scalar_lea.hbm %s21555_s14, %s9574_s11 }
 0x680   : > { %s13723_s23 = scalar_lea.hbm %s17418_s25, 16  ;;  %s13727_s30 = scalar_lea.hbm %s21555_s14, 48 }
 0x681   : > { %s11463_s21 = scalar_select %p21556_p9, [#allocation7], [#allocation112] }
 0x682   : > { %s11464_s12 = scalar_select %p21556_p9, %s21231_s10, 0 }
 0x683   : > { %p13724_p10 = scmp.ne.s32.totalorder %s17418_s25, %s13723_s23  ;;  %p13728_p1 = scmp.lt.u32.totalorder %s17418_s25, %s21555_s14 }
 0x684   : > { %s17420_s5 = sld [smem:[%s11463_s21 + %s11464_s12]]  ;;  %p13729_p2 = scmp.lt.u32.totalorder %s13727_s30, %s13723_s23 }
 0x685   : > { %p13725_p13 = pnand %p13724_p10, %p21553_p5  ;;  %p13731_p4 = scmp.lt.u32.totalorder %s13723_s23, %s17418_s25 }
 0x686   : > { %p13730_p3 = por %p13729_p2, %p13728_p1 }
 0x687   : > { %p13726_p7 = pneg %p13725_p13 }
 0x688   : > { %p13732_p12 = por %p13731_p4, %p13730_p3 }
 0x68a   : > { %p13733_p6 = pnand %p13732_p12, %p13726_p7 }
 0x68c   : > { %13736 = shalt.err (!%p13733_p6)
}
 0x68d   : > { %s13737_s3 = scalar_lea.vmem %s17407_s6, 16  ;;  %s15340_s18 = smov [#allocation73]  }
 0x68e   : > { %p13738_p8 = scmp.ne.s32.totalorder %s17407_s6, %s13737_s3  ;;  %s13741_s2 = sshll.u32 %s15340_s18, 4  ;;  %s13742_s2 = int_to_ptr.vmem [resolvable:$false] %s13741_s2 }
 0x68f   : > { %s13743_s21 = scalar_lea.vmem %s13742_s2, 32  ;;  %p13744_p10 = scmp.lt.s32.totalorder %s17407_s6, %s13742_s2 }
 0x690   : > { %p13739_p11 = pnand %p13738_p8, %p21553_p5  ;;  %p13745_p13 = scmp.lt.s32.totalorder %s13743_s21, %s13737_s3 }
 0x692   : > { %p13740_p0 = pneg %p13739_p11  ;;  %p13746_p1 = por %p13745_p13, %p13744_p10 }
 0x694   : > { %p13747_p2 = pnand %p13746_p1, %p13740_p0 }
 0x696   : > { %13750 = shalt.err (!%p13747_p2)
}
 0x697   : > { %s21557_s12 = sld [smem:[#allocation281_spill]]  ;;  %s21558_s11 = sld [smem:[#allocation275_spill]] }
 0x698   : > { %s21559_s16 = sld [smem:[#allocation223_spill]]  ;;  %p21560_p7 = scmp.ne.s32.totalorder %s21358_s7, 0 }
 0x699   : > { %11459 = dma.hbm_to_vmem [thread:$0]  (%p21553_p5), %s17418_s25, 16, %s17407_s6, %s20820_s4  }
 0x69a   : > { %s11469_s22 = scalar_select %p21560_p7, [#allocation7], [#allocation114] }
 0x69b   : > { %s9998_s3 = sshll.u32 %s17420_s5, 10  ;;  %s20821_s20 = scalar_lea.sflag [#allocation77], %s17208_s0 }
 0x69d   : > { %s2533_s23 = sand.u32 1, %s21557_s12   ;;  %s2573_s18 = sand.u32 1, %s21558_s11  }
 0x69e   : > { %s9584_s30 = sshll.u32 %s2533_s23, 6  ;;  %s17451_s2 = scalar_lea.hbm %s21559_s16, %s9998_s3 }
 0x69f   : > { %s2535_s21 = scalar_lea.vmem [#allocation79], %s9584_s30  ;;  %s13751_s25 = scalar_lea.hbm %s17451_s2, 1024 }
 0x6a0   : > { %s17453_s8 = sshll.u32 %s2535_s21, 4  ;;  %p13752_p5 = scmp.ne.s32.totalorder %s17451_s2, %s13751_s25  ;;  %s17482_s8 = int_to_ptr.vmem [resolvable:$true] %s17453_s8 }
 0x6a1   : > { %s13755_s6 = scalar_lea.hbm %s21559_s16, 3072  ;;  %p13756_p12 = scmp.lt.u32.totalorder %s17451_s2, %s21559_s16 }
 0x6a2   : > { %p13753_p3 = pnand %p13752_p5, %p21556_p9  ;;  %p13757_p6 = scmp.lt.u32.totalorder %s13755_s6, %s13751_s25 }
 0x6a3   : > { %p13759_p11 = scmp.lt.u32.totalorder %s13751_s25, %s17451_s2 }
 0x6a4   : > { %p13754_p4 = pneg %p13753_p3  ;;  %p13758_p8 = por %p13757_p6, %p13756_p12 }
 0x6a6   : > { %p13760_p0 = por %p13759_p11, %p13758_p8 }
 0x6a8   : > { %p13761_p10 = pnand %p13760_p0, %p13754_p4 }
 0x6aa   : > { %13764 = shalt.err (!%p13761_p10)
}
 0x6ab   : > { %s13765_s5 = scalar_lea.vmem %s17444_s17, 1024  ;;  %s15341_s12 = smov [#allocation76]  }
 0x6ac   : > { %p13766_p13 = scmp.ne.s32.totalorder %s17444_s17, %s13765_s5  ;;  %s13769_s23 = sshll.u32 %s15341_s12, 4  ;;  %s13770_s23 = int_to_ptr.vmem [resolvable:$false] %s13769_s23 }
 0x6ad   : > { %s13771_s30 = scalar_lea.vmem %s13770_s23, 2048  ;;  %p13772_p5 = scmp.lt.s32.totalorder %s17444_s17, %s13770_s23 }
 0x6ae   : > { %p13767_p1 = pnand %p13766_p13, %p21556_p9  ;;  %p13773_p3 = scmp.lt.s32.totalorder %s13771_s30, %s13765_s5 }
 0x6b0   : > { %p13768_p2 = pneg %p13767_p1  ;;  %p13774_p12 = por %p13773_p3, %p13772_p5 }
 0x6b2   : > { %p13775_p6 = pnand %p13774_p12, %p13768_p2 }
 0x6b4   : > { %13778 = shalt.err (!%p13775_p6)
}
 0x6b5   : > { %s21561_s3 = smov 64   ;;  %s21562_s21 = sld [smem:[#allocation269_spill]] }
 0x6b6   : > { %s21563_s25 = sld [smem:[#allocation225_spill]]  ;;  %p21564_p4 = scmp.ne.s32.totalorder %s21375_s15, 0 }
 0x6b7   : > { %11465 = dma.hbm_to_vmem [thread:$0]  (%p21556_p9), %s17451_s2, 1024, %s17444_s17, %s20821_s20, %s21561_s3, %s21561_s3, %s20822_s1  }
 0x6b8   : > { %s11470_s28 = scalar_select %p21560_p7, %s21231_s10, 0 }
 0x6b9   : > { %s11475_s5 = scalar_select %p21564_p4, [#allocation7], [#allocation116] }
 0x6ba   : > { %s2536_s6 = sld [smem:[%s11469_s22 + %s11470_s28]]  ;;  %s2574_s23 = scalar_lea.vmem [#allocation82], %s2573_s18 }
 0x6bb   : > { %s11476_s12 = scalar_select %p21564_p4, %s21231_s10, 0 }
 0x6bc   : > { %s2582_s30 = sshll.u32 %s2574_s23, 4  ;;  %s2613_s4 = sand.u32 1, %s21562_s21   ;;  %s17499_s30 = int_to_ptr.vmem [resolvable:$true] %s2582_s30 }
 0x6bd   : > { %s17495_s17 = sld [smem:[%s11475_s5 + %s11476_s12]]  ;;  %p21565_p9 = scmp.ne.s32.totalorder %s21392_s13, 0 }
 0x6be   : > { %s17504_s22 = scalar_lea.vmem [#allocation85], %s2613_s4  ;;  %s20825_s18 = scalar_lea.sflag [#allocation80], %s17208_s0 }
 0x6bf   : > { %s11481_s2 = scalar_select %p21565_p9, [#allocation7], [#allocation118] }
 0x6c0   : > { %s10000_s20 = sshll.u32 %s2536_s6, 10  ;;  %s13783_s21 = scalar_lea.hbm %s21563_s25, 3072 }
 0x6c1   : > { %s17502_s1 = scalar_lea.hbm %s21563_s25, %s10000_s20 }
 0x6c2   : > { %s13779_s28 = scalar_lea.hbm %s17502_s1, 1024  ;;  %p13784_p10 = scmp.lt.u32.totalorder %s17502_s1, %s21563_s25 }
 0x6c3   : > { %p13780_p8 = scmp.ne.s32.totalorder %s17502_s1, %s13779_s28  ;;  %p13785_p13 = scmp.lt.u32.totalorder %s13783_s21, %s13779_s28 }
 0x6c4   : > { %p13787_p2 = scmp.lt.u32.totalorder %s13779_s28, %s17502_s1 }
 0x6c5   : > { %p13781_p11 = pnand %p13780_p8, %p21560_p7  ;;  %p13786_p1 = por %p13785_p13, %p13784_p10 }
 0x6c7   : > { %p13782_p0 = pneg %p13781_p11  ;;  %p13788_p5 = por %p13787_p2, %p13786_p1 }
 0x6c9   : > { %p13789_p3 = pnand %p13788_p5, %p13782_p0 }
 0x6cb   : > { %13792 = shalt.err (!%p13789_p3)
}
 0x6cc   : > { %s13793_s20 = scalar_lea.vmem %s17482_s8, 1024  ;;  %s15342_s4 = smov [#allocation79]  }
 0x6cd   : > { %p13794_p12 = scmp.ne.s32.totalorder %s17482_s8, %s13793_s20  ;;  %s13797_s6 = sshll.u32 %s15342_s4, 4  ;;  %s13798_s6 = int_to_ptr.vmem [resolvable:$false] %s13797_s6 }
 0x6ce   : > { %s13799_s5 = scalar_lea.vmem %s13798_s6, 2048  ;;  %p13800_p8 = scmp.lt.s32.totalorder %s17482_s8, %s13798_s6 }
 0x6cf   : > { %p13795_p6 = pnand %p13794_p12, %p21560_p7  ;;  %p13801_p11 = scmp.lt.s32.totalorder %s13799_s5, %s13793_s20 }
 0x6d1   : > { %p13796_p4 = pneg %p13795_p6  ;;  %p13802_p10 = por %p13801_p11, %p13800_p8 }
 0x6d3   : > { %p13803_p13 = pnand %p13802_p10, %p13796_p4 }
 0x6d5   : > { %13806 = shalt.err (!%p13803_p13)
}
 0x6d6   : > { %s21566_s12 = smov 4   ;;  %s21567_s23 = sld [smem:[#allocation227_spill]] }
 0x6d7   : > { %11471 = dma.hbm_to_vmem [thread:$0]  (%p21560_p7), %s17502_s1, 1024, %s17482_s8, %s20825_s18, %s21561_s3, %s21561_s3, %s21566_s12  }
 0x6d8   : > { %s11482_s7 = scalar_select %p21565_p9, %s21231_s10, 0 }
 0x6d9   : > { %s9588_s28 = sshll.u32 %s17495_s17, 4  ;;  %s21569_s21 = sshll.u32 %s17504_s22, 4  ;;  %s17536_s21 = int_to_ptr.vmem [resolvable:$true] %s21569_s21 }
 0x6da   : > { %s17544_s4 = sld [smem:[%s11481_s2 + %s11482_s7]]  ;;  %s20833_s6 = scalar_lea.sflag [#allocation83], %s17208_s0 }
 0x6db   : > { %p21570_p7 = scmp.ne.s32.totalorder %s21375_s15, 0 }
 0x6dc   : > { %s21568_s11 = smov %s21567_s23  ;;  %s17539_s20 = scalar_lea.hbm %s21567_s23, %s9588_s28 }
 0x6dd   : > { %s13807_s5 = scalar_lea.hbm %s17539_s20, 16  ;;  %s13811_s1 = scalar_lea.hbm %s21568_s11, 48 }
 0x6de   : > { %p13808_p4 = scmp.ne.s32.totalorder %s17539_s20, %s13807_s5  ;;  %p13812_p2 = scmp.lt.u32.totalorder %s17539_s20, %s21568_s11 }
 0x6df   : > { %p13813_p5 = scmp.lt.u32.totalorder %s13811_s1, %s13807_s5  ;;  %p13815_p12 = scmp.lt.u32.totalorder %s13807_s5, %s17539_s20 }
 0x6e0   : > { %p13809_p0 = pnand %p13808_p4, %p21570_p7 }
 0x6e1   : > { %p13814_p3 = por %p13813_p5, %p13812_p2 }
 0x6e2   : > { %p13810_p1 = pneg %p13809_p0 }
 0x6e3   : > { %p13816_p6 = por %p13815_p12, %p13814_p3 }
 0x6e5   : > { %p13817_p8 = pnand %p13816_p6, %p13810_p1 }
 0x6e7   : > { %13820 = shalt.err (!%p13817_p8)
}
 0x6e8   : > { %s13821_s8 = scalar_lea.vmem %s17499_s30, 16  ;;  %s15343_s17 = smov [#allocation82]  }
 0x6e9   : > { %p13822_p11 = scmp.ne.s32.totalorder %s17499_s30, %s13821_s8  ;;  %s13825_s2 = sshll.u32 %s15343_s17, 4  ;;  %s13826_s2 = int_to_ptr.vmem [resolvable:$false] %s13825_s2 }
 0x6ea   : > { %s13827_s22 = scalar_lea.vmem %s13826_s2, 32  ;;  %p13828_p4 = scmp.lt.s32.totalorder %s17499_s30, %s13826_s2 }
 0x6eb   : > { %p13823_p10 = pnand %p13822_p11, %p21570_p7  ;;  %p13829_p0 = scmp.lt.s32.totalorder %s13827_s22, %s13821_s8 }
 0x6ed   : > { %p13824_p13 = pneg %p13823_p10  ;;  %p13830_p2 = por %p13829_p0, %p13828_p4 }
 0x6ef   : > { %p13831_p5 = pnand %p13830_p2, %p13824_p13 }
 0x6f1   : > { %13834 = shalt.err (!%p13831_p5)
}
 0x6f2   : > { %s21571_s23 = sld [smem:[#allocation263_spill]]  ;;  %s21572_s7 = sld [smem:[#allocation257_spill]] }
 0x6f3   : > { %s21573_s28 = sld [smem:[#allocation356_spill]]  ;;  %s21574_s5 = sld [smem:[#allocation229_spill]] }
 0x6f4   : > { %11477 = dma.hbm_to_vmem [thread:$0]  (%p21570_p7), %s17539_s20, 16, %s17499_s30, %s20833_s6  }
 0x6f5   : > { %s9592_s15 = sshll.u32 %s17544_s4, 4  ;;  %s20830_s19 = scalar_lea.sflag [#allocation86], %s17208_s0 }
 0x6f8   : > { %s2653_s1 = sand.u32 1, %s21571_s23   ;;  %s2697_s17 = sand.u32 1, %s21572_s7  }
 0x6f9   : > { %s21575_s18 = smov %s21574_s5  ;;  %s9596_s8 = sshll.u32 %s2653_s1, 6 }
 0x6fa   : > { %p21576_p1 = scmp.ne.s32.totalorder %s21573_s28, 0  ;;  %s17571_s22 = sshll.u32 %s2697_s17, 6 }
 0x6fb   : > { %s17574_s11 = scalar_lea.hbm %s21574_s5, %s9592_s15  ;;  %s2655_s14 = scalar_lea.vmem [#allocation88], %s9596_s8 }
 0x6fc   : > { %s11487_s2 = scalar_select %p21576_p1, [#allocation7], [#allocation120] }
 0x6fd   : > { %s17576_s16 = sshll.u32 %s2655_s14, 4  ;;  %s13835_s30 = scalar_lea.hbm %s17574_s11, 16  ;;  %s17602_s16 = int_to_ptr.vmem [resolvable:$true] %s17576_s16 }
 0x6fe   : > { %p13836_p7 = scmp.ne.s32.totalorder %s17574_s11, %s13835_s30  ;;  %s13839_s20 = scalar_lea.hbm %s21575_s18, 48 }
 0x6ff   : > { %p13840_p6 = scmp.lt.u32.totalorder %s17574_s11, %s21575_s18  ;;  %p13841_p8 = scmp.lt.u32.totalorder %s13839_s20, %s13835_s30 }
 0x700   : > { %p13837_p3 = pnand %p13836_p7, %p21565_p9  ;;  %p13843_p10 = scmp.lt.u32.totalorder %s13835_s30, %s17574_s11 }
 0x701   : > { %p13842_p11 = por %p13841_p8, %p13840_p6 }
 0x702   : > { %p13838_p12 = pneg %p13837_p3 }
 0x703   : > { %p13844_p13 = por %p13843_p10, %p13842_p11 }
 0x705   : > { %p13845_p4 = pnand %p13844_p13, %p13838_p12 }
 0x707   : > { %13848 = shalt.err (!%p13845_p4)
}
 0x708   : > { %s13849_s14 = scalar_lea.vmem %s17536_s21, 16  ;;  %s15344_s4 = smov [#allocation85]  }
 0x709   : > { %p13850_p0 = scmp.ne.s32.totalorder %s17536_s21, %s13849_s14  ;;  %s13853_s23 = sshll.u32 %s15344_s4, 4  ;;  %s13854_s23 = int_to_ptr.vmem [resolvable:$false] %s13853_s23 }
 0x70a   : > { %s13855_s7 = scalar_lea.vmem %s13854_s23, 32  ;;  %p13856_p7 = scmp.lt.s32.totalorder %s17536_s21, %s13854_s23 }
 0x70b   : > { %p13851_p2 = pnand %p13850_p0, %p21565_p9  ;;  %p13857_p3 = scmp.lt.s32.totalorder %s13855_s7, %s13849_s14 }
 0x70d   : > { %p13852_p5 = pneg %p13851_p2  ;;  %p13858_p6 = por %p13857_p3, %p13856_p7 }
 0x70f   : > { %p13859_p8 = pnand %p13858_p6, %p13852_p5 }
 0x711   : > { %13862 = shalt.err (!%p13859_p8)
}
 0x712   : > { %s21577_s5 = sld [smem:[#allocation360_spill]]  ;;  %s21578_s1 = sld [smem:[#allocation251_spill]] }
 0x713   : > { %s21579_s8 = sld [smem:[#allocation364_spill]]  ;;  %s2699_s14 = scalar_lea.vmem [#allocation91], %s17571_s22 }
 0x714   : > { %s21580_s17 = sld [smem:[#allocation231_spill]]  ;;  %s2707_s4 = sshll.u32 %s2699_s14, 4  ;;  %s17618_s4 = int_to_ptr.vmem [resolvable:$true] %s2707_s4 }
 0x715   : > { %11483 = dma.hbm_to_vmem [thread:$0]  (%p21565_p9), %s17574_s11, 16, %s17536_s21, %s20830_s19  }
 0x716   : > { %s11488_s15 = scalar_select %p21576_p1, %s21231_s10, 0 }
 0x718   : > { %s2656_s13 = sld [smem:[%s11487_s2 + %s11488_s15]]  ;;  %p21581_p12 = scmp.ne.s32.totalorder %s21577_s5, 0 }
 0x719   : > { %s2741_s23 = sand.u32 1, %s21578_s1   ;;  %p21582_p9 = scmp.ne.s32.totalorder %s21579_s8, 0 }
 0x71a   : > { %s11493_s30 = scalar_select %p21581_p12, [#allocation7], [#allocation122] }
 0x71b   : > { %s11494_s20 = scalar_select %p21581_p12, %s21231_s10, 0 }
 0x71c   : > { %s11499_s11 = scalar_select %p21582_p9, [#allocation7], [#allocation124] }
 0x71d   : > { %s17614_s7 = sld [smem:[%s11493_s30 + %s11494_s20]]  ;;  %s17623_s2 = scalar_lea.vmem [#allocation94], %s2741_s23 }
 0x71e   : > { %s10003_s21 = sshll.u32 %s2656_s13, 10  ;;  %s2750_s22 = sshll.u32 %s17623_s2, 4  ;;  %s17655_s22 = int_to_ptr.vmem [resolvable:$true] %s2750_s22 }
 0x71f   : > { %s17621_s19 = scalar_lea.hbm %s21580_s17, %s10003_s21  ;;  %s20832_s15 = scalar_lea.sflag [#allocation89], %s17208_s0 }
 0x720   : > { %s13863_s14 = scalar_lea.hbm %s17621_s19, 1024  ;;  %s13867_s1 = scalar_lea.hbm %s21580_s17, 3072 }
 0x721   : > { %p13864_p11 = scmp.ne.s32.totalorder %s17621_s19, %s13863_s14  ;;  %p13868_p4 = scmp.lt.u32.totalorder %s17621_s19, %s21580_s17 }
 0x722   : > { %p13869_p0 = scmp.lt.u32.totalorder %s13867_s1, %s13863_s14  ;;  %p13871_p5 = scmp.lt.u32.totalorder %s13863_s14, %s17621_s19 }
 0x723   : > { %p13865_p10 = pnand %p13864_p11, %p21576_p1 }
 0x724   : > { %p13870_p2 = por %p13869_p0, %p13868_p4 }
 0x725   : > { %p13866_p13 = pneg %p13865_p10 }
 0x726   : > { %p13872_p7 = por %p13871_p5, %p13870_p2 }
 0x728   : > { %p13873_p3 = pnand %p13872_p7, %p13866_p13 }
 0x72a   : > { %13876 = shalt.err (!%p13873_p3)
}
 0x72b   : > { %s13877_s13 = scalar_lea.vmem %s17602_s16, 1024  ;;  %s15345_s30 = smov [#allocation88]  }
 0x72c   : > { %p13878_p6 = scmp.ne.s32.totalorder %s17602_s16, %s13877_s13  ;;  %s13881_s20 = sshll.u32 %s15345_s30, 4  ;;  %s13882_s20 = int_to_ptr.vmem [resolvable:$false] %s13881_s20 }
 0x72d   : > { %s13883_s23 = scalar_lea.vmem %s13882_s20, 2048  ;;  %p13884_p11 = scmp.lt.s32.totalorder %s17602_s16, %s13882_s20 }
 0x72e   : > { %p13879_p8 = pnand %p13878_p6, %p21576_p1  ;;  %p13885_p10 = scmp.lt.s32.totalorder %s13883_s23, %s13877_s13 }
 0x730   : > { %p13880_p12 = pneg %p13879_p8  ;;  %p13886_p4 = por %p13885_p10, %p13884_p11 }
 0x732   : > { %p13887_p0 = pnand %p13886_p4, %p13880_p12 }
 0x734   : > { %13890 = shalt.err (!%p13887_p0)
}
 0x735   : > { %s21583_s21 = sld [smem:[#allocation233_spill]]  ;;  %s10005_s1 = sshll.u32 %s17614_s7, 10 }
 0x736   : > { %11489 = dma.hbm_to_vmem [thread:$0]  (%p21576_p1), %s17621_s19, 1024, %s17602_s16, %s20832_s15, %s21561_s3, %s21561_s3, %s21566_s12  }
 0x737   : > { %s11500_s28 = scalar_select %p21582_p9, %s21231_s10, 0 }
 0x738   : > { %s20835_s20 = scalar_lea.sflag [#allocation92], %s17208_s0  ;;  %p21585_p1 = scmp.ne.s32.totalorder %s21577_s5, 0 }
 0x739   : > { %s17663_s30 = sld [smem:[%s11499_s11 + %s11500_s28]] }
 0x73b   : > { %s21584_s14 = smov %s21583_s21  ;;  %s17658_s13 = scalar_lea.hbm %s21583_s21, %s10005_s1 }
 0x73c   : > { %s13891_s23 = scalar_lea.hbm %s17658_s13, 1024  ;;  %s13895_s19 = scalar_lea.hbm %s21584_s14, 3072 }
 0x73d   : > { %p13892_p12 = scmp.ne.s32.totalorder %s17658_s13, %s13891_s23  ;;  %p13896_p5 = scmp.lt.u32.totalorder %s17658_s13, %s21584_s14 }
 0x73e   : > { %p13897_p7 = scmp.lt.u32.totalorder %s13895_s19, %s13891_s23  ;;  %p13899_p6 = scmp.lt.u32.totalorder %s13891_s23, %s17658_s13 }
 0x73f   : > { %p13893_p13 = pnand %p13892_p12, %p21585_p1 }
 0x740   : > { %p13898_p3 = por %p13897_p7, %p13896_p5 }
 0x741   : > { %p13894_p2 = pneg %p13893_p13 }
 0x742   : > { %p13900_p8 = por %p13899_p6, %p13898_p3 }
 0x744   : > { %p13901_p11 = pnand %p13900_p8, %p13894_p2 }
 0x746   : > { %13904 = shalt.err (!%p13901_p11)
}
 0x747   : > { %s13905_s16 = scalar_lea.vmem %s17618_s4, 1024  ;;  %s15346_s7 = smov [#allocation91]  }
 0x748   : > { %p13906_p10 = scmp.ne.s32.totalorder %s17618_s4, %s13905_s16  ;;  %s13909_s11 = sshll.u32 %s15346_s7, 4  ;;  %s13910_s11 = int_to_ptr.vmem [resolvable:$false] %s13909_s11 }
 0x749   : > { %s13911_s2 = scalar_lea.vmem %s13910_s11, 2048  ;;  %p13912_p12 = scmp.lt.s32.totalorder %s17618_s4, %s13910_s11 }
 0x74a   : > { %p13907_p4 = pnand %p13906_p10, %p21585_p1  ;;  %p13913_p13 = scmp.lt.s32.totalorder %s13911_s2, %s13905_s16 }
 0x74c   : > { %p13908_p0 = pneg %p13907_p4  ;;  %p13914_p5 = por %p13913_p13, %p13912_p12 }
 0x74e   : > { %p13915_p7 = pnand %p13914_p5, %p13908_p0 }
 0x750   : > { %13918 = shalt.err (!%p13915_p7)
}
 0x751   : > { %s21586_s21 = sld [smem:[#allocation245_spill]]  ;;  %s21587_s28 = sld [smem:[#allocation303_spill]] }
 0x752   : > { %s21588_s1 = sld [smem:[#allocation235_spill]]  ;;  %p21590_p2 = scmp.ne.s32.totalorder %s21462_s29, 0 }
 0x753   : > { %11495 = dma.hbm_to_vmem [thread:$0]  (%p21585_p1), %s17658_s13, 1024, %s17618_s4, %s20835_s20, %s21561_s3, %s21561_s3, %s21566_s12  }
 0x754   : > { %s11505_s7 = scalar_select %p21590_p2, [#allocation7], [#allocation126] }
 0x755   : > { %s9608_s11 = sshll.u32 %s17663_s30, 4  ;;  %s20836_s13 = scalar_lea.sflag [#allocation95], %s17208_s0 }
 0x757   : > { %s2777_s23 = sand.u32 1, %s21586_s21   ;;  %s2247_s16 = sand.u32 1, %s21587_s28  }
 0x758   : > { %s21589_s19 = smov %s21588_s1  ;;  %s9610_s5 = sshll.u32 %s2777_s23, 6 }
 0x759   : > { %s17693_s2 = scalar_lea.vmem [#allocation60], %s2247_s16  ;;  %s17697_s6 = scalar_lea.hbm %s21588_s1, %s9608_s11 }
 0x75a   : > { %s2779_s14 = scalar_lea.vmem [#allocation97], %s9610_s5  ;;  %s13919_s21 = scalar_lea.hbm %s17697_s6, 16 }
 0x75b   : > { %s17699_s4 = sshll.u32 %s2779_s14, 4  ;;  %p13920_p1 = scmp.ne.s32.totalorder %s17697_s6, %s13919_s21  ;;  %s17730_s4 = int_to_ptr.vmem [resolvable:$true] %s17699_s4 }
 0x75c   : > { %s13923_s30 = scalar_lea.hbm %s21589_s19, 48  ;;  %p13924_p8 = scmp.lt.u32.totalorder %s17697_s6, %s21589_s19 }
 0x75d   : > { %p13921_p3 = pnand %p13920_p1, %p21582_p9  ;;  %p13925_p11 = scmp.lt.u32.totalorder %s13923_s30, %s13919_s21 }
 0x75e   : > { %p13927_p4 = scmp.lt.u32.totalorder %s13919_s21, %s17697_s6 }
 0x75f   : > { %p13922_p6 = pneg %p13921_p3  ;;  %p13926_p10 = por %p13925_p11, %p13924_p8 }
 0x761   : > { %p13928_p0 = por %p13927_p4, %p13926_p10 }
 0x763   : > { %p13929_p12 = pnand %p13928_p0, %p13922_p6 }
 0x765   : > { %13932 = shalt.err (!%p13929_p12)
}
 0x766   : > { %s13933_s14 = scalar_lea.vmem %s17655_s22, 16  ;;  %s15347_s28 = smov [#allocation94]  }
 0x767   : > { %p13934_p13 = scmp.ne.s32.totalorder %s17655_s22, %s13933_s14  ;;  %s13937_s1 = sshll.u32 %s15347_s28, 4  ;;  %s13938_s1 = int_to_ptr.vmem [resolvable:$false] %s13937_s1 }
 0x768   : > { %s13939_s23 = scalar_lea.vmem %s13938_s1, 32  ;;  %p13940_p1 = scmp.lt.s32.totalorder %s17655_s22, %s13938_s1 }
 0x769   : > { %p13935_p5 = pnand %p13934_p13, %p21582_p9  ;;  %p13941_p3 = scmp.lt.s32.totalorder %s13939_s23, %s13933_s14 }
 0x76b   : > { %p13936_p7 = pneg %p13935_p5  ;;  %p13942_p8 = por %p13941_p3, %p13940_p1 }
 0x76d   : > { %p13943_p11 = pnand %p13942_p8, %p13936_p7 }
 0x76f   : > { %13946 = shalt.err (!%p13943_p11)
}
 0x770   : > { %s21591_s16 = sld [smem:[#allocation320_spill]]  ;;  %s21592_s5 = sld [smem:[#allocation297_spill]] }
 0x771   : > { %s21593_s11 = sld [smem:[#allocation314_spill]]  ;;  %s21594_s21 = sld [smem:[#allocation325_spill]] }
 0x772   : > { %s21595_s30 = sld [smem:[#allocation237_spill]] }
 0x773   : > { %11501 = dma.hbm_to_vmem [thread:$0]  (%p21582_p9), %s17697_s6, 16, %s17655_s22, %s20836_s13  }
 0x774   : > { %s11506_s14 = scalar_select %p21590_p2, %s21231_s10, 0 }
 0x775   : > { %s21597_s22 = sshll.u32 %s17693_s2, 4  ;;  %s17741_s22 = int_to_ptr.vmem [resolvable:$true] %s21597_s22 }
 0x776   : > { %p21596_p6 = scmp.ne.s32.totalorder %s21591_s16, 0  ;;  %s2780_s28 = sld [smem:[%s11505_s7 + %s11506_s14]] }
 0x777   : > { %s2303_s23 = sand.u32 1, %s21592_s5   ;;  %s2347_s20 = sand.u32 1, %s21593_s11  }
 0x778   : > { %s11430_s8 = scalar_select %p21596_p6, [#allocation7], [#allocation101] }
 0x779   : > { %s11431_s1 = scalar_select %p21596_p6, %s21231_s10, 0 }
 0x77a   : > { %s9557_s6 = sshll.u32 %s2303_s23, 6  ;;  %p21598_p9 = scmp.ne.s32.totalorder %s21594_s21, 0 }
 0x77b   : > { %s17737_s15 = sld [smem:[%s11430_s8 + %s11431_s1]]  ;;  %s17745_s18 = sshll.u32 %s2347_s20, 6 }
 0x77c   : > { %s11436_s13 = scalar_select %p21598_p9, [#allocation7], [#allocation103] }
 0x77d   : > { %s10007_s17 = sshll.u32 %s2780_s28, 10  ;;  %s2305_s5 = scalar_lea.vmem [#allocation63], %s9557_s6 }
 0x77e   : > { %s17748_s7 = scalar_lea.hbm %s21595_s30, %s10007_s17  ;;  %s17750_s11 = sshll.u32 %s2305_s5, 4  ;;  %s17810_s11 = int_to_ptr.vmem [resolvable:$true] %s17750_s11 }
 0x77f   : > { %s20839_s14 = scalar_lea.sflag [#allocation98], %s17208_s0  ;;  %s13947_s8 = scalar_lea.hbm %s17748_s7, 1024 }
 0x780   : > { %p13948_p10 = scmp.ne.s32.totalorder %s17748_s7, %s13947_s8  ;;  %s13951_s2 = scalar_lea.hbm %s21595_s30, 3072 }
 0x781   : > { %p13952_p12 = scmp.lt.u32.totalorder %s17748_s7, %s21595_s30  ;;  %p13953_p13 = scmp.lt.u32.totalorder %s13951_s2, %s13947_s8 }
 0x782   : > { %p13949_p4 = pnand %p13948_p10, %p21590_p2  ;;  %p13955_p7 = scmp.lt.u32.totalorder %s13947_s8, %s17748_s7 }
 0x783   : > { %p13954_p5 = por %p13953_p13, %p13952_p12 }
 0x784   : > { %p13950_p0 = pneg %p13949_p4 }
 0x785   : > { %p13956_p1 = por %p13955_p7, %p13954_p5 }
 0x787   : > { %p13957_p3 = pnand %p13956_p1, %p13950_p0 }
 0x789   : > { %13960 = shalt.err (!%p13957_p3)
}
 0x78a   : > { %s13961_s17 = scalar_lea.vmem %s17730_s4, 1024  ;;  %s15348_s20 = smov [#allocation97]  }
 0x78b   : > { %p13962_p8 = scmp.ne.s32.totalorder %s17730_s4, %s13961_s17  ;;  %s13965_s28 = sshll.u32 %s15348_s20, 4  ;;  %s13966_s28 = int_to_ptr.vmem [resolvable:$false] %s13965_s28 }
 0x78c   : > { %s13967_s1 = scalar_lea.vmem %s13966_s28, 2048  ;;  %p13968_p10 = scmp.lt.s32.totalorder %s17730_s4, %s13966_s28 }
 0x78d   : > { %p13963_p11 = pnand %p13962_p8, %p21590_p2  ;;  %p13969_p4 = scmp.lt.s32.totalorder %s13967_s1, %s13961_s17 }
 0x78f   : > { %p13964_p9 = pneg %p13963_p11  ;;  %p13970_p12 = por %p13969_p4, %p13968_p10 }
 0x791   : > { %p13971_p13 = pnand %p13970_p12, %p13964_p9 }
 0x793   : > { %13974 = shalt.err (!%p13971_p13)
}
 0x794   : > { %s21599_s23 = sld [smem:[#allocation210_spill]]  ;;  %s9555_s5 = sshll.u32 %s17737_s15, 4 }
 0x795   : > { %11507 = dma.hbm_to_vmem [thread:$0]  (%p21590_p2), %s17748_s7, 1024, %s17730_s4, %s20839_s14, %s21561_s3, %s21561_s3, %s21566_s12  }
 0x796   : > { %s2349_s29 = scalar_lea.vmem [#allocation66], %s17745_s18 }
 0x797   : > { %s17780_s2 = sshll.u32 %s2349_s29, 4  ;;  %s17816_s2 = int_to_ptr.vmem [resolvable:$true] %s17780_s2 }
 0x79a   : > { %s21600_s6 = smov %s21599_s23  ;;  %s17777_s8 = scalar_lea.hbm %s21599_s23, %s9555_s5 }
 0x79b   : > { %s13975_s17 = scalar_lea.hbm %s17777_s8, 16  ;;  %s13979_s20 = scalar_lea.hbm %s21600_s6, 48 }
 0x79c   : > { %p13976_p9 = scmp.ne.s32.totalorder %s17777_s8, %s13975_s17  ;;  %p13980_p7 = scmp.lt.u32.totalorder %s17777_s8, %s21600_s6 }
 0x79d   : > { %p13981_p1 = scmp.lt.u32.totalorder %s13979_s20, %s13975_s17  ;;  %p13983_p2 = scmp.lt.u32.totalorder %s13975_s17, %s17777_s8 }
 0x79e   : > { %p13977_p0 = pnand %p13976_p9, %p21596_p6 }
 0x79f   : > { %p13982_p3 = por %p13981_p1, %p13980_p7 }
 0x7a0   : > { %p13978_p5 = pneg %p13977_p0 }
 0x7a1   : > { %p13984_p8 = por %p13983_p2, %p13982_p3 }
 0x7a3   : > { %p13985_p11 = pnand %p13984_p8, %p13978_p5 }
 0x7a5   : > { %13988 = shalt.err (!%p13985_p11)
}
 0x7a6   : > { %s13989_s18 = scalar_lea.vmem %s17741_s22, 16  ;;  %s15349_s15 = smov [#allocation60]  }
 0x7a7   : > { %p13990_p10 = scmp.ne.s32.totalorder %s17741_s22, %s13989_s18  ;;  %s13993_s4 = sshll.u32 %s15349_s15, 4  ;;  %s13994_s4 = int_to_ptr.vmem [resolvable:$false] %s13993_s4 }
 0x7a8   : > { %s13995_s7 = scalar_lea.vmem %s13994_s4, 32  ;;  %p13996_p13 = scmp.lt.s32.totalorder %s17741_s22, %s13994_s4 }
 0x7a9   : > { %p13991_p4 = pnand %p13990_p10, %p21596_p6  ;;  %p13997_p9 = scmp.lt.s32.totalorder %s13995_s7, %s13989_s18 }
 0x7ab   : > { %p13992_p12 = pneg %p13991_p4  ;;  %p13998_p0 = por %p13997_p9, %p13996_p13 }
 0x7ad   : > { %p13999_p7 = pnand %p13998_p0, %p13992_p12 }
 0x7af   : > { %14002 = shalt.err (!%p13999_p7)
}
 0x7b0   : > { %s21601_s28 = scalar_lea.sflag [#allocation59], %s17208_s0  ;;  %s21602_s1 = sld [smem:[#allocation329_spill]] }
 0x7b1   : > { %s21603_s23 = sld [smem:[#allocation308_spill]]  ;;  %s21604_s5 = sld [smem:[#allocation296_spill]] }
 0x7b2   : > { %s21605_s29 = sld [smem:[#allocation334_spill]]  ;;  %s21606_s17 = sld [smem:[#allocation214_spill]] }
 0x7b3   : > { %11432 = dma.hbm_to_vmem [thread:$0]  (%p21596_p6), %s17777_s8, 16, %s17741_s22, %s21601_s28  }
 0x7b4   : > { %p21607_p5 = scmp.ne.s32.totalorder %s21594_s21, 0 }
 0x7b6   : > { %s11437_s16 = scalar_select %p21607_p5, %s21231_s10, 0 }
 0x7b7   : > { %p21608_p1 = scmp.ne.s32.totalorder %s21602_s1, 0  ;;  %s2391_s4 = sand.u32 1, %s21603_s23  }
 0x7b8   : > { %s2306_s18 = sld [smem:[%s11436_s13 + %s11437_s16]]  ;;  %s2427_s22 = sand.u32 1, %s21604_s5  }
 0x7b9   : > { %s11442_s20 = scalar_select %p21608_p1, [#allocation7], [#allocation105] }
 0x7ba   : > { %s11443_s15 = scalar_select %p21608_p1, %s21231_s10, 0 }
 0x7bb   : > { %p21609_p6 = scmp.ne.s32.totalorder %s21605_s29, 0 }
 0x7bc   : > { %s17819_s7 = sld [smem:[%s11442_s20 + %s11443_s15]]  ;;  %s14007_s20 = scalar_lea.hbm %s21606_s17, 3072 }
 0x7bd   : > { %s11448_s8 = scalar_select %p21609_p6, [#allocation7], [#allocation107] }
 0x7be   : > { %s11449_s28 = scalar_select %p21609_p6, %s21231_s10, 0 }
 0x7bf   : > { %s9992_s14 = sshll.u32 %s2306_s18, 10 }
 0x7c0   : > { %s17828_s6 = scalar_lea.hbm %s21606_s17, %s9992_s14  ;;  %s17830_s13 = sld [smem:[%s11448_s8 + %s11449_s28]] }
 0x7c1   : > { %s14003_s16 = scalar_lea.hbm %s17828_s6, 1024  ;;  %p14008_p11 = scmp.lt.u32.totalorder %s17828_s6, %s21606_s17 }
 0x7c2   : > { %p14004_p3 = scmp.ne.s32.totalorder %s17828_s6, %s14003_s16  ;;  %p14009_p10 = scmp.lt.u32.totalorder %s14007_s20, %s14003_s16 }
 0x7c3   : > { %p14011_p12 = scmp.lt.u32.totalorder %s14003_s16, %s17828_s6 }
 0x7c4   : > { %p14005_p2 = pnand %p14004_p3, %p21607_p5  ;;  %p14010_p4 = por %p14009_p10, %p14008_p11 }
 0x7c6   : > { %p14006_p8 = pneg %p14005_p2  ;;  %p14012_p13 = por %p14011_p12, %p14010_p4 }
 0x7c8   : > { %p14013_p9 = pnand %p14012_p13, %p14006_p8 }
 0x7ca   : > { %14016 = shalt.err (!%p14013_p9)
}
 0x7cb   : > { %s14017_s14 = scalar_lea.vmem %s17810_s11, 1024  ;;  %s15350_s18 = smov [#allocation63]  }
 0x7cc   : > { %p14018_p0 = scmp.ne.s32.totalorder %s17810_s11, %s14017_s14  ;;  %s14021_s15 = sshll.u32 %s15350_s18, 4  ;;  %s14022_s15 = int_to_ptr.vmem [resolvable:$false] %s14021_s15 }
 0x7cd   : > { %s14023_s8 = scalar_lea.vmem %s14022_s15, 2048  ;;  %p14024_p3 = scmp.lt.s32.totalorder %s17810_s11, %s14022_s15 }
 0x7ce   : > { %p14019_p7 = pnand %p14018_p0, %p21607_p5  ;;  %p14025_p2 = scmp.lt.s32.totalorder %s14023_s8, %s14017_s14 }
 0x7d0   : > { %p14020_p6 = pneg %p14019_p7  ;;  %p14026_p11 = por %p14025_p2, %p14024_p3 }
 0x7d2   : > { %p14027_p10 = pnand %p14026_p11, %p14020_p6 }
 0x7d4   : > { %14030 = shalt.err (!%p14027_p10)
}
 0x7d5   : > { %s21610_s28 = scalar_lea.sflag [#allocation62], %s17208_s0  ;;  %s21611_s16 = sld [smem:[#allocation216_spill]] }
 0x7d6   : > { %11438 = dma.hbm_to_vmem [thread:$0]  (%p21607_p5), %s17828_s6, 1024, %s17810_s11, %s21610_s28, %s21561_s3, %s21561_s3, %s21566_s12  }
 0x7d7   : > { %s9994_s20 = sshll.u32 %s17819_s7, 10  ;;  %s17857_s14 = scalar_lea.vmem [#allocation69], %s2391_s4 }
 0x7d8   : > { %s2400_s21 = sshll.u32 %s17857_s14, 4  ;;  %s17865_s15 = sshll.u32 %s2427_s22, 6  ;;  %s17891_s21 = int_to_ptr.vmem [resolvable:$true] %s2400_s21 }
 0x7db   : > { %s17861_s18 = scalar_lea.hbm %s21611_s16, %s9994_s20  ;;  %s14035_s11 = scalar_lea.hbm %s21611_s16, 3072 }
 0x7dc   : > { %s14031_s8 = scalar_lea.hbm %s17861_s18, 1024  ;;  %p14036_p4 = scmp.lt.u32.totalorder %s17861_s18, %s21611_s16 }
 0x7dd   : > { %p14032_p6 = scmp.ne.s32.totalorder %s17861_s18, %s14031_s8  ;;  %p14037_p12 = scmp.lt.u32.totalorder %s14035_s11, %s14031_s8 }
 0x7de   : > { %p14039_p9 = scmp.lt.u32.totalorder %s14031_s8, %s17861_s18 }
 0x7df   : > { %p14033_p8 = pnand %p14032_p6, %p21608_p1  ;;  %p14038_p13 = por %p14037_p12, %p14036_p4 }
 0x7e1   : > { %p14034_p5 = pneg %p14033_p8  ;;  %p14040_p0 = por %p14039_p9, %p14038_p13 }
 0x7e3   : > { %p14041_p7 = pnand %p14040_p0, %p14034_p5 }
 0x7e5   : > { %14044 = shalt.err (!%p14041_p7)
}
 0x7e6   : > { %s14045_s6 = scalar_lea.vmem %s17816_s2, 1024  ;;  %s15351_s23 = smov [#allocation66]  }
 0x7e7   : > { %p14046_p3 = scmp.ne.s32.totalorder %s17816_s2, %s14045_s6  ;;  %s14049_s5 = sshll.u32 %s15351_s23, 4  ;;  %s14050_s5 = int_to_ptr.vmem [resolvable:$false] %s14049_s5 }
 0x7e8   : > { %s14051_s4 = scalar_lea.vmem %s14050_s5, 2048  ;;  %p14052_p10 = scmp.lt.s32.totalorder %s17816_s2, %s14050_s5 }
 0x7e9   : > { %p14047_p2 = pnand %p14046_p3, %p21608_p1  ;;  %p14053_p6 = scmp.lt.s32.totalorder %s14051_s4, %s14045_s6 }
 0x7eb   : > { %p14048_p11 = pneg %p14047_p2  ;;  %p14054_p8 = por %p14053_p6, %p14052_p10 }
 0x7ed   : > { %p14055_p4 = pnand %p14054_p8, %p14048_p11 }
 0x7ef   : > { %14058 = shalt.err (!%p14055_p4)
}
 0x7f0   : > { %s21612_s7 = scalar_lea.sflag [#allocation65], %s17208_s0  ;;  %s21613_s22 = sld [smem:[#allocation290_spill]] }
 0x7f1   : > { %s21614_s28 = sld [smem:[#allocation218_spill]]  ;;  %s9569_s1 = sshll.u32 %s17830_s13, 4 }
 0x7f2   : > { %11444 = dma.hbm_to_vmem [thread:$0]  (%p21608_p1), %s17861_s18, 1024, %s17816_s2, %s21612_s7, %s21561_s3, %s21561_s3, %s21566_s12  }
 0x7f3   : > { %s2429_s6 = scalar_lea.vmem [#allocation72], %s17865_s15  ;;  %p21616_p12 = scmp.ne.s32.totalorder %s21605_s29, 0 }
 0x7f4   : > { %s17899_s23 = sshll.u32 %s2429_s6, 4  ;;  %s17934_s23 = int_to_ptr.vmem [resolvable:$true] %s17899_s23 }
 0x7f6   : > { %s2467_s8 = sand.u32 1, %s21613_s22  }
 0x7f7   : > { %s21615_s20 = smov %s21614_s28  ;;  %s17896_s11 = scalar_lea.hbm %s21614_s28, %s9569_s1 }
 0x7f8   : > { %s14059_s5 = scalar_lea.hbm %s17896_s11, 16  ;;  %s14063_s2 = scalar_lea.hbm %s21615_s20, 48 }
 0x7f9   : > { %p14060_p5 = scmp.ne.s32.totalorder %s17896_s11, %s14059_s5  ;;  %p14064_p1 = scmp.lt.u32.totalorder %s17896_s11, %s21615_s20 }
 0x7fa   : > { %p14065_p0 = scmp.lt.u32.totalorder %s14063_s2, %s14059_s5  ;;  %p14067_p3 = scmp.lt.u32.totalorder %s14059_s5, %s17896_s11 }
 0x7fb   : > { %p14061_p13 = pnand %p14060_p5, %p21616_p12 }
 0x7fc   : > { %p14066_p7 = por %p14065_p0, %p14064_p1 }
 0x7fd   : > { %p14062_p9 = pneg %p14061_p13 }
 0x7fe   : > { %p14068_p2 = por %p14067_p3, %p14066_p7 }
 0x800   : > { %p14069_p11 = pnand %p14068_p2, %p14062_p9 }
 0x802   : > { %14072 = shalt.err (!%p14069_p11)
}
 0x803   : > { %s14073_s13 = scalar_lea.vmem %s17891_s21, 16  ;;  %s15352_s14 = smov [#allocation69]  }
 0x804   : > { %p14074_p10 = scmp.ne.s32.totalorder %s17891_s21, %s14073_s13  ;;  %s14077_s18 = sshll.u32 %s15352_s14, 4  ;;  %s14078_s18 = int_to_ptr.vmem [resolvable:$false] %s14077_s18 }
 0x805   : > { %s14079_s15 = scalar_lea.vmem %s14078_s18, 32  ;;  %p14080_p4 = scmp.lt.s32.totalorder %s17891_s21, %s14078_s18 }
 0x806   : > { %p14075_p6 = pnand %p14074_p10, %p21616_p12  ;;  %p14081_p5 = scmp.lt.s32.totalorder %s14079_s15, %s14073_s13 }
 0x808   : > { %p14076_p8 = pneg %p14075_p6  ;;  %p14082_p13 = por %p14081_p5, %p14080_p4 }
 0x80a   : > { %p14083_p1 = pnand %p14082_p13, %p14076_p8 }
 0x80c   : > { %14086 = shalt.err (!%p14083_p1)
}
 0x80d   : > { %s21617_s4 = scalar_lea.sflag [#allocation68], %s17208_s0  ;;  %s21618_s7 = sld [smem:[#allocation291_spill]] }
 0x80e   : > { %s21619_s28 = sld [smem:[#allocation284_spill]]  ;;  %s21620_s1 = sld [smem:[#allocation285_spill]] }
 0x80f   : > { %s21621_s6 = sld [smem:[#allocation278_spill]]  ;;  %s21623_s5 = sld [smem:[#allocation220_spill]] }
 0x810   : > { %11450 = dma.hbm_to_vmem [thread:$0]  (%p21616_p12), %s17896_s11, 16, %s17891_s21, %s21617_s4  }
 0x811   : > { %s9575_s13 = sshll.u32 %s2467_s8, 6 }
 0x812   : > { %s2469_s19 = scalar_lea.vmem [#allocation75], %s9575_s13 }
 0x813   : > { %p21622_p9 = scmp.ne.s32.totalorder %s21618_s7, 0  ;;  %s2477_s20 = sshll.u32 %s2469_s19, 4  ;;  %s17938_s20 = int_to_ptr.vmem [resolvable:$true] %s2477_s20 }
 0x814   : > { %s2511_s18 = sand.u32 1, %s21619_s28   ;;  %p21625_p0 = scmp.ne.s32.totalorder %s21620_s1, 0 }
 0x815   : > { %s21624_s14 = smov %s21623_s5  ;;  %s9581_s24 = sshll.u32 %s2511_s18, 6 }
 0x816   : > { %s11454_s2 = scalar_select %p21622_p9, [#allocation7], [#allocation109] }
 0x817   : > { %s11455_s29 = scalar_select %p21622_p9, %s21231_s10, 0 }
 0x818   : > { %s11460_s16 = scalar_select %p21625_p0, [#allocation7], [#allocation111] }
 0x819   : > { %s2430_s15 = sld [smem:[%s11454_s2 + %s11455_s29]]  ;;  %s2555_s8 = sand.u32 1, %s21621_s6  }
 0x81a   : > { %s11461_s17 = scalar_select %p21625_p0, %s21231_s10, 0 }
 0x81b   : > { %s2513_s4 = scalar_lea.vmem [#allocation78], %s9581_s24  ;;  %s14091_s19 = scalar_lea.hbm %s21624_s14, 3072 }
 0x81c   : > { %s17936_s21 = sld [smem:[%s11460_s16 + %s11461_s17]]  ;;  %s17944_s28 = sshll.u32 %s2513_s4, 4  ;;  %s18010_s28 = int_to_ptr.vmem [resolvable:$true] %s17944_s28 }
 0x81f   : > { %s9996_s22 = sshll.u32 %s2430_s15, 10 }
 0x820   : > { %s17942_s11 = scalar_lea.hbm %s21623_s5, %s9996_s22 }
 0x821   : > { %s14087_s2 = scalar_lea.hbm %s17942_s11, 1024  ;;  %p14092_p2 = scmp.lt.u32.totalorder %s17942_s11, %s21624_s14 }
 0x822   : > { %p14088_p12 = scmp.ne.s32.totalorder %s17942_s11, %s14087_s2  ;;  %p14093_p11 = scmp.lt.u32.totalorder %s14091_s19, %s14087_s2 }
 0x823   : > { %p14095_p6 = scmp.lt.u32.totalorder %s14087_s2, %s17942_s11 }
 0x824   : > { %p14089_p7 = pnand %p14088_p12, %p21622_p9  ;;  %p14094_p10 = por %p14093_p11, %p14092_p2 }
 0x826   : > { %p14090_p3 = pneg %p14089_p7  ;;  %p14096_p8 = por %p14095_p6, %p14094_p10 }
 0x828   : > { %p14097_p4 = pnand %p14096_p8, %p14090_p3 }
 0x82a   : > { %14100 = shalt.err (!%p14097_p4)
}
 0x82b   : > { %s14101_s24 = scalar_lea.vmem %s17934_s23, 1024  ;;  %s15353_s17 = smov [#allocation72]  }
 0x82c   : > { %p14102_p5 = scmp.ne.s32.totalorder %s17934_s23, %s14101_s24  ;;  %s14105_s16 = sshll.u32 %s15353_s17, 4  ;;  %s14106_s16 = int_to_ptr.vmem [resolvable:$false] %s14105_s16 }
 0x82d   : > { %s14107_s5 = scalar_lea.vmem %s14106_s16, 2048  ;;  %p14108_p12 = scmp.lt.s32.totalorder %s17934_s23, %s14106_s16 }
 0x82e   : > { %p14103_p13 = pnand %p14102_p5, %p21622_p9  ;;  %p14109_p7 = scmp.lt.s32.totalorder %s14107_s5, %s14101_s24 }
 0x830   : > { %p14104_p1 = pneg %p14103_p13  ;;  %p14110_p2 = por %p14109_p7, %p14108_p12 }
 0x832   : > { %p14111_p11 = pnand %p14110_p2, %p14104_p1 }
 0x834   : > { %14114 = shalt.err (!%p14111_p11)
}
 0x835   : > { %s21626_s29 = scalar_lea.sflag [#allocation71], %s17208_s0  ;;  %s21627_s13 = sld [smem:[#allocation279_spill]] }
 0x836   : > { %s21628_s18 = sld [smem:[#allocation222_spill]]  ;;  %s9997_s22 = sshll.u32 %s17936_s21, 10 }
 0x837   : > { %11456 = dma.hbm_to_vmem [thread:$0]  (%p21622_p9), %s17942_s11, 1024, %s17934_s23, %s21626_s29, %s21561_s3, %s21561_s3, %s21566_s12  }
 0x838   : > { %s17976_s7 = scalar_lea.vmem [#allocation81], %s2555_s8 }
 0x839   : > { %s2564_s2 = sshll.u32 %s17976_s7, 4  ;;  %s18017_s2 = int_to_ptr.vmem [resolvable:$true] %s2564_s2 }
 0x83b   : > { %p21629_p3 = scmp.ne.s32.totalorder %s21627_s13, 0 }
 0x83c   : > { %s17972_s4 = scalar_lea.hbm %s21628_s18, %s9997_s22  ;;  %s14119_s23 = scalar_lea.hbm %s21628_s18, 3072 }
 0x83d   : > { %s11466_s15 = scalar_select %p21629_p3, [#allocation7], [#allocation113] }
 0x83e   : > { %s14115_s19 = scalar_lea.hbm %s17972_s4, 1024  ;;  %p14120_p9 = scmp.lt.u32.totalorder %s17972_s4, %s21628_s18 }
 0x83f   : > { %p14116_p10 = scmp.ne.s32.totalorder %s17972_s4, %s14115_s19  ;;  %p14121_p4 = scmp.lt.u32.totalorder %s14119_s23, %s14115_s19 }
 0x840   : > { %p14123_p13 = scmp.lt.u32.totalorder %s14115_s19, %s17972_s4 }
 0x841   : > { %p14117_p6 = pnand %p14116_p10, %p21625_p0  ;;  %p14122_p5 = por %p14121_p4, %p14120_p9 }
 0x843   : > { %p14118_p8 = pneg %p14117_p6  ;;  %p14124_p1 = por %p14123_p13, %p14122_p5 }
 0x845   : > { %p14125_p12 = pnand %p14124_p1, %p14118_p8 }
 0x847   : > { %14128 = shalt.err (!%p14125_p12)
}
 0x848   : > { %s14129_s6 = scalar_lea.vmem %s17938_s20, 1024  ;;  %s15354_s21 = smov [#allocation75]  }
 0x849   : > { %p14130_p7 = scmp.ne.s32.totalorder %s17938_s20, %s14129_s6  ;;  %s14133_s8 = sshll.u32 %s15354_s21, 4  ;;  %s14134_s8 = int_to_ptr.vmem [resolvable:$false] %s14133_s8 }
 0x84a   : > { %s14135_s11 = scalar_lea.vmem %s14134_s8, 2048  ;;  %p14136_p10 = scmp.lt.s32.totalorder %s17938_s20, %s14134_s8 }
 0x84b   : > { %p14131_p2 = pnand %p14130_p7, %p21625_p0  ;;  %p14137_p6 = scmp.lt.s32.totalorder %s14135_s11, %s14129_s6 }
 0x84d   : > { %p14132_p11 = pneg %p14131_p2  ;;  %p14138_p9 = por %p14137_p6, %p14136_p10 }
 0x84f   : > { %p14139_p4 = pnand %p14138_p9, %p14132_p11 }
 0x851   : > { %14142 = shalt.err (!%p14139_p4)
}
 0x852   : > { %s21630_s24 = scalar_lea.sflag [#allocation74], %s17208_s0  ;;  %s21631_s17 = sld [smem:[#allocation273_spill]] }
 0x853   : > { %s21632_s16 = sld [smem:[#allocation272_spill]]  ;;  %s21633_s5 = sld [smem:[#allocation266_spill]] }
 0x854   : > { %s21634_s29 = sld [smem:[#allocation267_spill]]  ;;  %s21635_s22 = sld [smem:[#allocation224_spill]] }
 0x855   : > { %11462 = dma.hbm_to_vmem [thread:$0]  (%p21625_p0), %s17972_s4, 1024, %s17938_s20, %s21630_s24, %s21561_s3, %s21561_s3, %s21566_s12  }
 0x856   : > { %s11467_s1 = scalar_select %p21629_p3, %s21231_s10, 0 }
 0x858   : > { %p21637_p8 = scmp.ne.s32.totalorder %s21631_s17, 0  ;;  %s2514_s6 = sld [smem:[%s11466_s15 + %s11467_s1]] }
 0x859   : > { %s2591_s8 = sand.u32 1, %s21632_s16   ;;  %s2631_s4 = sand.u32 1, %s21633_s5  }
 0x85a   : > { %s21636_s19 = smov %s21635_s22  ;;  %s9589_s20 = sshll.u32 %s2591_s8, 6 }
 0x85b   : > { %s11472_s23 = scalar_select %p21637_p8, [#allocation7], [#allocation115] }
 0x85c   : > { %s11473_s21 = scalar_select %p21637_p8, %s21231_s10, 0 }
 0x85d   : > { %p21638_p0 = scmp.ne.s32.totalorder %s21634_s29, 0  ;;  %s2593_s18 = scalar_lea.vmem [#allocation84], %s9589_s20 }
 0x85e   : > { %s18020_s11 = sld [smem:[%s11472_s23 + %s11473_s21]]  ;;  %s9999_s14 = sshll.u32 %s2514_s6, 10 }
 0x85f   : > { %s11478_s24 = scalar_select %p21638_p0, [#allocation7], [#allocation117] }
 0x860   : > { %s18025_s15 = sshll.u32 %s2593_s18, 4  ;;  %s18028_s1 = scalar_lea.hbm %s21635_s22, %s9999_s14  ;;  %s18056_s15 = int_to_ptr.vmem [resolvable:$true] %s18025_s15 }
 0x861   : > { %s18030_s7 = sshll.u32 %s2631_s4, 6  ;;  %s14143_s25 = scalar_lea.hbm %s18028_s1, 1024 }
 0x862   : > { %p14144_p5 = scmp.ne.s32.totalorder %s18028_s1, %s14143_s25  ;;  %s14147_s16 = scalar_lea.hbm %s21636_s19, 3072 }
 0x863   : > { %p14148_p12 = scmp.lt.u32.totalorder %s18028_s1, %s21636_s19  ;;  %p14149_p7 = scmp.lt.u32.totalorder %s14147_s16, %s14143_s25 }
 0x864   : > { %p14145_p13 = pnand %p14144_p5, %p21629_p3  ;;  %p14151_p11 = scmp.lt.u32.totalorder %s14143_s25, %s18028_s1 }
 0x865   : > { %p14150_p2 = por %p14149_p7, %p14148_p12 }
 0x866   : > { %p14146_p1 = pneg %p14145_p13 }
 0x867   : > { %p14152_p10 = por %p14151_p11, %p14150_p2 }
 0x869   : > { %p14153_p6 = pnand %p14152_p10, %p14146_p1 }
 0x86b   : > { %14156 = shalt.err (!%p14153_p6)
}
 0x86c   : > { %s14157_s14 = scalar_lea.vmem %s18010_s28, 1024  ;;  %s15355_s18 = smov [#allocation78]  }
 0x86d   : > { %p14158_p9 = scmp.ne.s32.totalorder %s18010_s28, %s14157_s14  ;;  %s14161_s5 = sshll.u32 %s15355_s18, 4  ;;  %s14162_s5 = int_to_ptr.vmem [resolvable:$false] %s14161_s5 }
 0x86e   : > { %s14163_s22 = scalar_lea.vmem %s14162_s5, 2048  ;;  %p14164_p5 = scmp.lt.s32.totalorder %s18010_s28, %s14162_s5 }
 0x86f   : > { %p14159_p4 = pnand %p14158_p9, %p21629_p3  ;;  %p14165_p13 = scmp.lt.s32.totalorder %s14163_s22, %s14157_s14 }
 0x871   : > { %p14160_p0 = pneg %p14159_p4  ;;  %p14166_p12 = por %p14165_p13, %p14164_p5 }
 0x873   : > { %p14167_p7 = pnand %p14166_p12, %p14160_p0 }
 0x875   : > { %14170 = shalt.err (!%p14167_p7)
}
 0x876   : > { %s21639_s25 = scalar_lea.sflag [#allocation77], %s17208_s0  ;;  %s21640_s23 = sld [smem:[#allocation226_spill]] }
 0x877   : > { %11468 = dma.hbm_to_vmem [thread:$0]  (%p21629_p3), %s18028_s1, 1024, %s18010_s28, %s21639_s25, %s21561_s3, %s21561_s3, %s21566_s12  }
 0x878   : > { %s9587_s21 = sshll.u32 %s18020_s11, 4 }
 0x87c   : > { %s21641_s6 = smov %s21640_s23  ;;  %s2562_s8 = scalar_lea.hbm %s21640_s23, %s9587_s21 }
 0x87d   : > { %s14171_s20 = scalar_lea.hbm %s2562_s8, 16  ;;  %s14175_s13 = scalar_lea.hbm %s21641_s6, 48 }
 0x87e   : > { %p14172_p0 = scmp.ne.s32.totalorder %s2562_s8, %s14171_s20  ;;  %p14176_p11 = scmp.lt.u32.totalorder %s2562_s8, %s21641_s6 }
 0x87f   : > { %p14177_p10 = scmp.lt.u32.totalorder %s14175_s13, %s14171_s20  ;;  %p14179_p9 = scmp.lt.u32.totalorder %s14171_s20, %s2562_s8 }
 0x880   : > { %p14173_p1 = pnand %p14172_p0, %p21637_p8 }
 0x881   : > { %p14178_p6 = por %p14177_p10, %p14176_p11 }
 0x882   : > { %p14174_p2 = pneg %p14173_p1 }
 0x883   : > { %p14180_p4 = por %p14179_p9, %p14178_p6 }
 0x885   : > { %p14181_p5 = pnand %p14180_p4, %p14174_p2 }
 0x887   : > { %14184 = shalt.err (!%p14181_p5)
}
 0x888   : > { %s14185_s28 = scalar_lea.vmem %s18017_s2, 16  ;;  %s15356_s11 = smov [#allocation81]  }
 0x889   : > { %p14186_p3 = scmp.ne.s32.totalorder %s18017_s2, %s14185_s28  ;;  %s14189_s4 = sshll.u32 %s15356_s11, 4  ;;  %s14190_s4 = int_to_ptr.vmem [resolvable:$false] %s14189_s4 }
 0x88a   : > { %s14191_s1 = scalar_lea.vmem %s14190_s4, 32  ;;  %p14192_p7 = scmp.lt.s32.totalorder %s18017_s2, %s14190_s4 }
 0x88b   : > { %p14187_p13 = pnand %p14186_p3, %p21637_p8  ;;  %p14193_p0 = scmp.lt.s32.totalorder %s14191_s1, %s14185_s28 }
 0x88d   : > { %p14188_p12 = pneg %p14187_p13  ;;  %p14194_p1 = por %p14193_p0, %p14192_p7 }
 0x88f   : > { %p14195_p11 = pnand %p14194_p1, %p14188_p12 }
 0x891   : > { %14198 = shalt.err (!%p14195_p11)
}
 0x892   : > { %s21642_s16 = scalar_lea.sflag [#allocation80], %s17208_s0  ;;  %s21643_s14 = sld [smem:[#allocation261_spill]] }
 0x893   : > { %s21644_s18 = sld [smem:[#allocation260_spill]]  ;;  %s21645_s5 = sld [smem:[#allocation254_spill]] }
 0x894   : > { %s21646_s22 = sld [smem:[#allocation255_spill]]  ;;  %s21647_s25 = sld [smem:[#allocation228_spill]] }
 0x895   : > { %11474 = dma.hbm_to_vmem [thread:$0]  (%p21637_p8), %s2562_s8, 16, %s18017_s2, %s21642_s16  }
 0x896   : > { %p21648_p2 = scmp.ne.s32.totalorder %s21634_s29, 0  ;;  %s2633_s20 = scalar_lea.vmem [#allocation87], %s18030_s7 }
 0x897   : > { %s2641_s13 = sshll.u32 %s2633_s20, 4  ;;  %s18089_s13 = int_to_ptr.vmem [resolvable:$true] %s2641_s13 }
 0x898   : > { %s11479_s23 = scalar_select %p21648_p2, %s21231_s10, 0 }
 0x899   : > { %p21649_p10 = scmp.ne.s32.totalorder %s21643_s14, 0  ;;  %s2675_s11 = sand.u32 1, %s21644_s18  }
 0x89a   : > { %s2594_s17 = sld [smem:[%s11478_s24 + %s11479_s23]]  ;;  %s2719_s4 = sand.u32 1, %s21645_s5  }
 0x89b   : > { %s11484_s21 = scalar_select %p21649_p10, [#allocation7], [#allocation119] }
 0x89c   : > { %s11485_s28 = scalar_select %p21649_p10, %s21231_s10, 0 }
 0x89d   : > { %s9599_s6 = sshll.u32 %s2675_s11, 6  ;;  %p21650_p8 = scmp.ne.s32.totalorder %s21646_s22, 0 }
 0x89e   : > { %s18087_s1 = sld [smem:[%s11484_s21 + %s11485_s28]]  ;;  %s18093_s16 = sshll.u32 %s2719_s4, 6 }
 0x89f   : > { %s11490_s2 = scalar_select %p21650_p8, [#allocation7], [#allocation121] }
 0x8a0   : > { %s10001_s8 = sshll.u32 %s2594_s17, 10  ;;  %s2677_s7 = scalar_lea.vmem [#allocation90], %s9599_s6 }
 0x8a1   : > { %s18096_s24 = scalar_lea.hbm %s21647_s25, %s10001_s8  ;;  %s18098_s18 = sshll.u32 %s2677_s7, 4  ;;  %s18163_s18 = int_to_ptr.vmem [resolvable:$true] %s18098_s18 }
 0x8a2   : > { %s14199_s5 = scalar_lea.hbm %s18096_s24, 1024  ;;  %s14203_s23 = scalar_lea.hbm %s21647_s25, 3072 }
 0x8a3   : > { %p14200_p6 = scmp.ne.s32.totalorder %s18096_s24, %s14199_s5  ;;  %p14204_p5 = scmp.lt.u32.totalorder %s18096_s24, %s21647_s25 }
 0x8a4   : > { %p14205_p3 = scmp.lt.u32.totalorder %s14203_s23, %s14199_s5  ;;  %p14207_p12 = scmp.lt.u32.totalorder %s14199_s5, %s18096_s24 }
 0x8a5   : > { %p14201_p9 = pnand %p14200_p6, %p21648_p2 }
 0x8a6   : > { %p14206_p13 = por %p14205_p3, %p14204_p5 }
 0x8a7   : > { %p14202_p4 = pneg %p14201_p9 }
 0x8a8   : > { %p14208_p7 = por %p14207_p12, %p14206_p13 }
 0x8aa   : > { %p14209_p0 = pnand %p14208_p7, %p14202_p4 }
 0x8ac   : > { %14212 = shalt.err (!%p14209_p0)
}
 0x8ad   : > { %s14213_s6 = scalar_lea.vmem %s18056_s15, 1024  ;;  %s15357_s21 = smov [#allocation84]  }
 0x8ae   : > { %p14214_p1 = scmp.ne.s32.totalorder %s18056_s15, %s14213_s6  ;;  %s14217_s17 = sshll.u32 %s15357_s21, 4  ;;  %s14218_s17 = int_to_ptr.vmem [resolvable:$false] %s14217_s17 }
 0x8af   : > { %s14219_s20 = scalar_lea.vmem %s14218_s17, 2048  ;;  %p14220_p6 = scmp.lt.s32.totalorder %s18056_s15, %s14218_s17 }
 0x8b0   : > { %p14215_p11 = pnand %p14214_p1, %p21648_p2  ;;  %p14221_p9 = scmp.lt.s32.totalorder %s14219_s20, %s14213_s6 }
 0x8b2   : > { %p14216_p8 = pneg %p14215_p11  ;;  %p14222_p5 = por %p14221_p9, %p14220_p6 }
 0x8b4   : > { %p14223_p3 = pnand %p14222_p5, %p14216_p8 }
 0x8b6   : > { %14226 = shalt.err (!%p14223_p3)
}
 0x8b7   : > { %s21651_s28 = scalar_lea.sflag [#allocation83], %s17208_s0  ;;  %s21652_s11 = sld [smem:[#allocation230_spill]] }
 0x8b8   : > { %11480 = dma.hbm_to_vmem [thread:$0]  (%p21648_p2), %s18096_s24, 1024, %s18056_s15, %s21651_s28, %s21561_s3, %s21561_s3, %s21566_s12  }
 0x8b9   : > { %s10002_s4 = sshll.u32 %s18087_s1, 10  ;;  %s2721_s29 = scalar_lea.vmem [#allocation93], %s18093_s16 }
 0x8ba   : > { %s18127_s7 = sshll.u32 %s2721_s29, 4  ;;  %s18166_s7 = int_to_ptr.vmem [resolvable:$true] %s18127_s7 }
 0x8bd   : > { %s18124_s8 = scalar_lea.hbm %s21652_s11, %s10002_s4  ;;  %s14231_s23 = scalar_lea.hbm %s21652_s11, 3072 }
 0x8be   : > { %s14227_s5 = scalar_lea.hbm %s18124_s8, 1024  ;;  %p14232_p12 = scmp.lt.u32.totalorder %s18124_s8, %s21652_s11 }
 0x8bf   : > { %p14228_p8 = scmp.ne.s32.totalorder %s18124_s8, %s14227_s5  ;;  %p14233_p7 = scmp.lt.u32.totalorder %s14231_s23, %s14227_s5 }
 0x8c0   : > { %p14235_p2 = scmp.lt.u32.totalorder %s14227_s5, %s18124_s8 }
 0x8c1   : > { %p14229_p4 = pnand %p14228_p8, %p21649_p10  ;;  %p14234_p0 = por %p14233_p7, %p14232_p12 }
 0x8c3   : > { %p14230_p13 = pneg %p14229_p4  ;;  %p14236_p1 = por %p14235_p2, %p14234_p0 }
 0x8c5   : > { %p14237_p11 = pnand %p14236_p1, %p14230_p13 }
 0x8c7   : > { %14240 = shalt.err (!%p14237_p11)
}
 0x8c8   : > { %s14241_s15 = scalar_lea.vmem %s18089_s13, 1024  ;;  %s15358_s1 = smov [#allocation87]  }
 0x8c9   : > { %p14242_p6 = scmp.ne.s32.totalorder %s18089_s13, %s14241_s15  ;;  %s14245_s16 = sshll.u32 %s15358_s1, 4  ;;  %s14246_s16 = int_to_ptr.vmem [resolvable:$false] %s14245_s16 }
 0x8ca   : > { %s14247_s24 = scalar_lea.vmem %s14246_s16, 2048  ;;  %p14248_p3 = scmp.lt.s32.totalorder %s18089_s13, %s14246_s16 }
 0x8cb   : > { %p14243_p9 = pnand %p14242_p6, %p21649_p10  ;;  %p14249_p8 = scmp.lt.s32.totalorder %s14247_s24, %s14241_s15 }
 0x8cd   : > { %p14244_p5 = pneg %p14243_p9  ;;  %p14250_p4 = por %p14249_p8, %p14248_p3 }
 0x8cf   : > { %p14251_p12 = pnand %p14250_p4, %p14244_p5 }
 0x8d1   : > { %14254 = shalt.err (!%p14251_p12)
}
 0x8d2   : > { %s21653_s6 = scalar_lea.sflag [#allocation86], %s17208_s0  ;;  %s21654_s21 = sld [smem:[#allocation249_spill]] }
 0x8d3   : > { %s21655_s17 = sld [smem:[#allocation248_spill]]  ;;  %p21657_p13 = scmp.ne.s32.totalorder %s21646_s22, 0 }
 0x8d4   : > { %s21656_s14 = sld [smem:[#allocation232_spill]] }
 0x8d5   : > { %11486 = dma.hbm_to_vmem [thread:$0]  (%p21649_p10), %s18124_s8, 1024, %s18089_s13, %s21653_s6, %s21561_s3, %s21561_s3, %s21566_s12  }
 0x8d6   : > { %s11491_s20 = scalar_select %p21657_p13, %s21231_s10, 0 }
 0x8d7   : > { %p21659_p10 = scmp.ne.s32.totalorder %s21454_s9, 0 }
 0x8d8   : > { %p21658_p7 = scmp.ne.s32.totalorder %s21654_s21, 0  ;;  %s2678_s4 = sld [smem:[%s11490_s2 + %s11491_s20]] }
 0x8d9   : > { %s2759_s23 = sand.u32 1, %s21655_s17  }
 0x8da   : > { %s11496_s28 = scalar_select %p21658_p7, [#allocation7], [#allocation123] }
 0x8db   : > { %s11497_s29 = scalar_select %p21658_p7, %s21231_s10, 0 }
 0x8dc   : > { %s11502_s13 = scalar_select %p21659_p10, [#allocation7], [#allocation125] }
 0x8dd   : > { %s18168_s5 = sld [smem:[%s11496_s28 + %s11497_s29]]  ;;  %s14259_s24 = scalar_lea.hbm %s21656_s14, 3072 }
 0x8de   : > { %s11503_s8 = scalar_select %p21659_p10, %s21231_s10, 0 }
 0x8df   : > { %s10004_s15 = sshll.u32 %s2678_s4, 10 }
 0x8e0   : > { %s18177_s1 = scalar_lea.hbm %s21656_s14, %s10004_s15  ;;  %s18179_s2 = sld [smem:[%s11502_s13 + %s11503_s8]] }
 0x8e1   : > { %s14255_s16 = scalar_lea.hbm %s18177_s1, 1024  ;;  %p14260_p11 = scmp.lt.u32.totalorder %s18177_s1, %s21656_s14 }
 0x8e2   : > { %p14256_p0 = scmp.ne.s32.totalorder %s18177_s1, %s14255_s16  ;;  %p14261_p6 = scmp.lt.u32.totalorder %s14259_s24, %s14255_s16 }
 0x8e3   : > { %p14263_p5 = scmp.lt.u32.totalorder %s14255_s16, %s18177_s1 }
 0x8e4   : > { %p14257_p2 = pnand %p14256_p0, %p21657_p13  ;;  %p14262_p9 = por %p14261_p6, %p14260_p11 }
 0x8e6   : > { %p14258_p1 = pneg %p14257_p2  ;;  %p14264_p3 = por %p14263_p5, %p14262_p9 }
 0x8e8   : > { %p14265_p8 = pnand %p14264_p3, %p14258_p1 }
 0x8ea   : > { %14268 = shalt.err (!%p14265_p8)
}
 0x8eb   : > { %s14269_s6 = scalar_lea.vmem %s18163_s18, 1024  ;;  %s15359_s20 = smov [#allocation90]  }
 0x8ec   : > { %p14270_p4 = scmp.ne.s32.totalorder %s18163_s18, %s14269_s6  ;;  %s14273_s28 = sshll.u32 %s15359_s20, 4  ;;  %s14274_s28 = int_to_ptr.vmem [resolvable:$false] %s14273_s28 }
 0x8ed   : > { %s14275_s4 = scalar_lea.vmem %s14274_s28, 2048  ;;  %p14276_p0 = scmp.lt.s32.totalorder %s18163_s18, %s14274_s28 }
 0x8ee   : > { %p14271_p12 = pnand %p14270_p4, %p21657_p13  ;;  %p14277_p2 = scmp.lt.s32.totalorder %s14275_s4, %s14269_s6 }
 0x8f0   : > { %p14272_p10 = pneg %p14271_p12  ;;  %p14278_p11 = por %p14277_p2, %p14276_p0 }
 0x8f2   : > { %p14279_p6 = pnand %p14278_p11, %p14272_p10 }
 0x8f4   : > { %14282 = shalt.err (!%p14279_p6)
}
 0x8f5   : > { %s21660_s29 = scalar_lea.sflag [#allocation89], %s17208_s0  ;;  %s21661_s13 = sld [smem:[#allocation234_spill]] }
 0x8f6   : > { %s21663_s8 = sld [smem:[#allocation242_spill]]  ;;  %s10006_s15 = sshll.u32 %s18168_s5, 10 }
 0x8f7   : > { %11492 = dma.hbm_to_vmem [thread:$0]  (%p21657_p13), %s18177_s1, 1024, %s18163_s18, %s21660_s29, %s21561_s3, %s21561_s3, %s21566_s12  }
 0x8f8   : > { %s18206_s24 = scalar_lea.vmem [#allocation96], %s2759_s23 }
 0x8f9   : > { %s2768_s22 = sshll.u32 %s18206_s24, 4  ;;  %s18237_s22 = int_to_ptr.vmem [resolvable:$true] %s2768_s22 }
 0x8fb   : > { %s21662_s16 = smov %s21661_s13  ;;  %s18210_s6 = scalar_lea.hbm %s21661_s13, %s10006_s15 }
 0x8fc   : > { %s14283_s28 = scalar_lea.hbm %s18210_s6, 1024  ;;  %s14287_s4 = scalar_lea.hbm %s21662_s16, 3072 }
 0x8fd   : > { %p14284_p10 = scmp.ne.s32.totalorder %s18210_s6, %s14283_s28  ;;  %p14288_p13 = scmp.lt.u32.totalorder %s18210_s6, %s21662_s16 }
 0x8fe   : > { %p14289_p5 = scmp.lt.u32.totalorder %s14287_s4, %s14283_s28  ;;  %p14291_p8 = scmp.lt.u32.totalorder %s14283_s28, %s18210_s6 }
 0x8ff   : > { %p14285_p1 = pnand %p14284_p10, %p21658_p7 }
 0x900   : > { %p14290_p3 = por %p14289_p5, %p14288_p13 }
 0x901   : > { %p14286_p9 = pneg %p14285_p1 }
 0x902   : > { %p14292_p4 = por %p14291_p8, %p14290_p3 }
 0x904   : > { %p14293_p12 = pnand %p14292_p4, %p14286_p9 }
 0x906   : > { %14296 = shalt.err (!%p14293_p12)
}
 0x907   : > { %s14297_s18 = scalar_lea.vmem %s18166_s7, 1024  ;;  %s15360_s17 = smov [#allocation93]  }
 0x908   : > { %p14298_p0 = scmp.ne.s32.totalorder %s18166_s7, %s14297_s18  ;;  %s14301_s5 = sshll.u32 %s15360_s17, 4  ;;  %s14302_s5 = int_to_ptr.vmem [resolvable:$false] %s14301_s5 }
 0x909   : > { %s14303_s23 = scalar_lea.vmem %s14302_s5, 2048  ;;  %p14304_p6 = scmp.lt.s32.totalorder %s18166_s7, %s14302_s5 }
 0x90a   : > { %p14299_p2 = pnand %p14298_p0, %p21658_p7  ;;  %p14305_p10 = scmp.lt.s32.totalorder %s14303_s23, %s14297_s18 }
 0x90c   : > { %p14300_p11 = pneg %p14299_p2  ;;  %p14306_p1 = por %p14305_p10, %p14304_p6 }
 0x90e   : > { %p14307_p13 = pnand %p14306_p1, %p14300_p11 }
 0x910   : > { %14310 = shalt.err (!%p14307_p13)
}
 0x911   : > { %s21664_s1 = scalar_lea.sflag [#allocation92], %s17208_s0  ;;  %s21665_s29 = sld [smem:[#allocation236_spill]] }
 0x912   : > { %11498 = dma.hbm_to_vmem [thread:$0]  (%p21658_p7), %s18210_s6, 1024, %s18166_s7, %s21664_s1, %s21561_s3, %s21561_s3, %s21566_s12  }
 0x913   : > { %s9609_s13 = sshll.u32 %s18179_s2, 4  ;;  %s21667_s15 = sand.u32 1, %s21663_s8  }
 0x914   : > { %s18243_s28 = sshll.u32 %s21667_s15, 6  ;;  %p21668_p5 = scmp.ne.s32.totalorder %s21454_s9, 0 }
 0x917   : > { %s21666_s20 = smov %s21665_s29  ;;  %s2766_s21 = scalar_lea.hbm %s21665_s29, %s9609_s13 }
 0x918   : > { %s14311_s4 = scalar_lea.hbm %s2766_s21, 16  ;;  %s14315_s18 = scalar_lea.hbm %s21666_s20, 48 }
 0x919   : > { %p14312_p9 = scmp.ne.s32.totalorder %s2766_s21, %s14311_s4  ;;  %p14316_p4 = scmp.lt.u32.totalorder %s2766_s21, %s21666_s20 }
 0x91a   : > { %p14317_p12 = scmp.lt.u32.totalorder %s14315_s18, %s14311_s4  ;;  %p14319_p2 = scmp.lt.u32.totalorder %s14311_s4, %s2766_s21 }
 0x91b   : > { %p14313_p3 = pnand %p14312_p9, %p21668_p5 }
 0x91c   : > { %p14318_p0 = por %p14317_p12, %p14316_p4 }
 0x91d   : > { %p14314_p8 = pneg %p14313_p3 }
 0x91e   : > { %p14320_p11 = por %p14319_p2, %p14318_p0 }
 0x920   : > { %p14321_p7 = pnand %p14320_p11, %p14314_p8 }
 0x922   : > { %14324 = shalt.err (!%p14321_p7)
}
 0x923   : > { %s14325_s7 = scalar_lea.vmem %s18237_s22, 16  ;;  %s15361_s2 = smov [#allocation96]  }
 0x924   : > { %p14326_p6 = scmp.ne.s32.totalorder %s18237_s22, %s14325_s7  ;;  %s14329_s8 = sshll.u32 %s15361_s2, 4  ;;  %s14330_s8 = int_to_ptr.vmem [resolvable:$false] %s14329_s8 }
 0x925   : > { %s14331_s24 = scalar_lea.vmem %s14330_s8, 32  ;;  %p14332_p13 = scmp.lt.s32.totalorder %s18237_s22, %s14330_s8 }
 0x926   : > { %p14327_p10 = pnand %p14326_p6, %p21668_p5  ;;  %p14333_p9 = scmp.lt.s32.totalorder %s14331_s24, %s14325_s7 }
 0x928   : > { %p14328_p1 = pneg %p14327_p10  ;;  %p14334_p3 = por %p14333_p9, %p14332_p13 }
 0x92a   : > { %p14335_p4 = pnand %p14334_p3, %p14328_p1 }
 0x92c   : > { %14338 = shalt.err (!%p14335_p4)
}
 0x92d   : > { %s21669_s6 = scalar_lea.sflag [#allocation95], %s17208_s0  ;;  %s21670_s17 = sld [smem:[#allocation238_spill]] }
 0x92e   : > { %11504 = dma.hbm_to_vmem [thread:$0]  (%p21668_p5), %s2766_s21, 16, %s18237_s22, %s21669_s6  }
 0x92f   : > { %p21671_p8 = scmp.ne.s32.totalorder %s21466_s26, 0  ;;  %s2801_s1 = scalar_lea.vmem [#allocation99], %s18243_s28 }
 0x930   : > { %s2809_s29 = sshll.u32 %s2801_s1, 4  ;;  %s18265_s29 = int_to_ptr.vmem [resolvable:$true] %s2809_s29 }
 0x931   : > { %s11508_s5 = scalar_select %p21671_p8, [#allocation7], [#allocation127] }
 0x932   : > { %s22132_s10 = smov (!%p21671_p8, %s21231_s10), 0 }
 0x933   : > { %s2802_s23 = sld [smem:[%s11508_s5 + %s22132_s10]]  ;;  %s14343_s22 = scalar_lea.hbm %s21670_s17, 3072 }
 0x939   : > { %s10008_s9 = sshll.u32 %s2802_s23, 10 }
 0x93a   : > { %s18268_s13 = scalar_lea.hbm %s21670_s17, %s10008_s9 }
 0x93b   : > { %s14339_s15 = scalar_lea.hbm %s18268_s13, 1024  ;;  %p14344_p2 = scmp.lt.u32.totalorder %s18268_s13, %s21670_s17 }
 0x93c   : > { %p14340_p12 = scmp.ne.s32.totalorder %s18268_s13, %s14339_s15  ;;  %p14345_p11 = scmp.lt.u32.totalorder %s14343_s22, %s14339_s15 }
 0x93d   : > { %p14347_p6 = scmp.lt.u32.totalorder %s14339_s15, %s18268_s13 }
 0x93e   : > { %p14341_p5 = pnand %p14340_p12, %p21671_p8  ;;  %p14346_p7 = por %p14345_p11, %p14344_p2 }
 0x940   : > { %p14342_p0 = pneg %p14341_p5  ;;  %p14348_p10 = por %p14347_p6, %p14346_p7 }
 0x942   : > { %p14349_p1 = pnand %p14348_p10, %p14342_p0 }
 0x944   : > { %14352 = shalt.err (!%p14349_p1)
}
 0x945   : > { %s14353_s10 = scalar_lea.vmem %s18265_s29, 1024  ;;  %s15362_s21 = smov [#allocation99]  }
 0x946   : > { %p14354_p13 = scmp.ne.s32.totalorder %s18265_s29, %s14353_s10  ;;  %s14357_s28 = sshll.u32 %s15362_s21, 4  ;;  %s14358_s28 = int_to_ptr.vmem [resolvable:$false] %s14357_s28 }
 0x947   : > { %s14359_s4 = scalar_lea.vmem %s14358_s28, 2048  ;;  %p14360_p4 = scmp.lt.s32.totalorder %s18265_s29, %s14358_s28 }
 0x948   : > { %p14355_p9 = pnand %p14354_p13, %p21671_p8  ;;  %p14361_p12 = scmp.lt.s32.totalorder %s14359_s4, %s14353_s10 }
 0x94a   : > { %p14356_p3 = pneg %p14355_p9  ;;  %p14362_p5 = por %p14361_p12, %p14360_p4 }
 0x94c   : > { %p14363_p2 = pnand %p14362_p5, %p14356_p3 }
 0x94e   : > { %14366 = shalt.err (!%p14363_p2)
}
 0x94f   : > { %s21672_s18 = scalar_lea.sflag [#allocation98], %s17208_s0 }
 0x950   : > { %11510 = dma.hbm_to_vmem [thread:$0]  (%p21671_p8), %s18268_s13, 1024, %s18265_s29, %s21672_s18, %s21561_s3, %s21561_s3, %s21566_s12  }
 0x951 PF: > { %s21673_s7 = sld [smem:[#allocation371_spill]] }
 0x957   : > { %p21674_p0 = scmp.ne.s32.totalorder %s21673_s7, 0 }
 0x959   : > { %2821 = sbr.rel (%p21674_p0) target bundleno = 7696 (0x1e10), region = 280 }
 0x960   : > { %s21675_s2 = sld [smem:[#allocation316_spill]] }
 0x966   : > { %p9617_p11 = scmp.ne.s32.totalorder %s21675_s2, 0  ;;  %p21676_p7 = scmp.eq.s32.totalorder %s21675_s2, 0 }
 0x968   : > { %14710 = dma.done.wait (%p21676_p7), [#allocation9], 64   ;;  %p21677_p6 = pmov %p21676_p7 }
 0x96a   : > { %14712 = vsyncadd (%p21677_p6), [#allocation9], 4294967232  ;;  %p21678_p10 = pmov %p21677_p6 }
 0x96b   : > { %p21679_p1 = pmov %p21677_p6 }
 0x96c   : > { %14714 = dma.done.wait (%p21678_p10), [#allocation11], 192  }
 0x96d   : > { %14716 = vsyncadd (%p21679_p1), [#allocation11], 4294967104  ;;  %p21680_p8 = pmov %p21679_p1 }
 0x96e   : > { %p21681_p13 = pmov %p21679_p1 }
 0x96f   : > { %14718 = dma.done.wait (%p21680_p8), [#allocation14], 2688  }
 0x970   : > { %14720 = vsyncadd (%p21681_p13), [#allocation14], 4294964608  ;;  %p21682_p9 = pmov %p21679_p1 }
 0x971   : > { %p21683_p3 = pmov %p21679_p1 }
 0x972   : > { %14722 = dma.done.wait (%p21682_p9), [#allocation17], 384  }
 0x973   : > { %14724 = vsyncadd (%p21683_p3), [#allocation17], 4294966912  ;;  %p21684_p4 = pmov %p21679_p1 }
 0x974   : > { %p21685_p12 = pmov %p21679_p1 }
 0x975   : > { %14726 = dma.done.wait (%p21684_p4), [#allocation20], 1792  }
 0x976   : > { %14728 = vsyncadd (%p21685_p12), [#allocation20], 4294965504  ;;  %p21686_p5 = pmov %p21679_p1 }
 0x977   : > { %p21687_p2 = pmov %p21679_p1 }
 0x978   : > { %14730 = dma.done.wait (%p21686_p5), [#allocation23], 1040  }
 0x979   : > { %14732 = vsyncadd (%p21687_p2), [#allocation23], 4294966256  ;;  %p21688_p0 = pmov %p21679_p1 }
 0x97b   : > { %14734 = dma.done.wait (%p21688_p0), [#allocation26], 1040   ;;  %p21689_p7 = pmov %p21688_p0 }
 0x97c   : > { %p21690_p6 = pmov %p21688_p0 }
 0x97d   : > { %14736 = vsyncadd (%p21689_p7), [#allocation26], 4294966256 }
 0x97e   : > { %14738 = dma.done.wait (%p21690_p6), [#allocation29], 1040   ;;  %p21691_p10 = pmov %p21688_p0 }
 0x97f   : > { %p21692_p1 = pmov %p21688_p0 }
 0x980   : > { %14740 = vsyncadd (%p21691_p10), [#allocation29], 4294966256 }
 0x981   : > { %14742 = dma.done.wait (%p21692_p1), [#allocation32], 32   ;;  %p21693_p8 = pmov %p21688_p0 }
 0x982   : > { %p21694_p13 = pmov %p21688_p0 }
 0x983   : > { %14744 = vsyncadd (%p21693_p8), [#allocation32], 4294967264 }
 0x984   : > { %14746 = dma.done.wait (%p21694_p13), [#allocation35], 1040   ;;  %p21695_p9 = pmov %p21688_p0 }
 0x985   : > { %p21696_p3 = pmov %p21688_p0 }
 0x986   : > { %14748 = vsyncadd (%p21695_p9), [#allocation35], 4294966256 }
 0x987   : > { %14750 = dma.done.wait (%p21696_p3), [#allocation38], 1040   ;;  %p21697_p4 = pmov %p21688_p0 }
 0x988   : > { %p21698_p12 = pmov %p21688_p0 }
 0x989   : > { %14752 = vsyncadd (%p21697_p4), [#allocation38], 4294966256 }
 0x98a   : > { %14754 = dma.done.wait (%p21698_p12), [#allocation41], 32   ;;  %p21699_p5 = pmov %p21688_p0 }
 0x98b   : > { %p21700_p2 = pmov %p21688_p0 }
 0x98c   : > { %14756 = vsyncadd (%p21699_p5), [#allocation41], 4294967264 }
 0x98d   : > { %14758 = dma.done.wait (%p21700_p2), [#allocation44], 1040  }
 0x98e   : > { %14760 = vsyncadd (%p21688_p0), [#allocation44], 4294966256  ;;  %p21701_p7 = pmov %p21688_p0 }
 0x98f   : > { %p21702_p6 = pmov %p21688_p0 }
 0x990   : > { %14762 = dma.done.wait (%p21701_p7), [#allocation47], 1920  }
 0x991   : > { %14764 = vsyncadd (%p21702_p6), [#allocation47], 4294965376  ;;  %p21703_p10 = pmov %p21688_p0 }
 0x992   : > { %p21704_p1 = pmov %p21688_p0 }
 0x993   : > { %14766 = dma.done.wait (%p21703_p10), [#allocation50], 32  }
 0x994   : > { %14768 = vsyncadd (%p21704_p1), [#allocation50], 4294967264  ;;  %p21705_p8 = pmov %p21688_p0 }
 0x995   : > { %p21706_p13 = pmov %p21688_p0 }
 0x996   : > { %14770 = dma.done.wait (%p21705_p8), [#allocation53], 1040  }
 0x997   : > { %14772 = vsyncadd (%p21706_p13), [#allocation53], 4294966256  ;;  %p21707_p9 = pmov %p21688_p0 }
 0x998   : > { %p21708_p3 = pmov %p21688_p0 }
 0x999   : > { %14774 = dma.done.wait (%p21707_p9), [#allocation56], 1920  }
 0x99a   : > { %14776 = vsyncadd (%p21708_p3), [#allocation56], 4294965376  ;;  %s21709_s26 = sld [smem:[#allocation301_spill]]  ;;  %s21710_s0 = sld [smem:[#allocation319_spill]] }
 0x99b   : > { %s18364_s3 = sand.u32 1, %s21675_s2  }
 0x99c   : > { %s2956_s8 = scalar_lea.sflag [#allocation59], %s18364_s3 }
 0x9a0   : > { %s2957_s12 = sand.u32 1, %s21709_s26   ;;  %p21711_p4 = scmp.ne.s32.totalorder %s21710_s0, 0 }
 0x9a1   : > { %s18368_s24 = scalar_lea.vmem [#allocation58], %s2957_s12 }
 0x9a2   : > { %14778 = dma.done.wait (%p21711_p4), %s2956_s8, 16  }
 0x9a3   : > { %14780 = vsyncadd (%p21711_p4), %s2956_s8, 4294967280  ;;  %s21712_s6 = sld [smem:[#allocation300_spill]] }
 0x9a4   : > { %s21713_s5 = sld [smem:[#allocation322_spill]] }
 0x9a9   : > { %s2965_s23 = sand.u32 1, %s21712_s6  }
 0x9aa   : > { %s18375_s1 = scalar_lea.vmem [#allocation60], %s2965_s23  ;;  %p21714_p12 = scmp.ne.s32.totalorder %s21713_s5, 0 }
 0x9ac   : > { %14782 = dma.done.wait (%p21714_p12), %s2956_s8, 16  }
 0x9ad   : > { %14784 = vsyncadd (%p21714_p12), %s2956_s8, 4294967280  ;;  %s21715_s29 = sld [smem:[#allocation298_spill]]  ;;  %s21716_s9 = sld [smem:[#allocation324_spill]] }
 0x9ae   : > { %s2972_s15 = scalar_lea.sflag [#allocation62], %s18364_s3 }
 0x9b3   : > { %s2973_s13 = sand.u32 1, %s21715_s29   ;;  %p21717_p5 = scmp.ne.s32.totalorder %s21716_s9, 0 }
 0x9b4   : > { %s18383_s22 = scalar_lea.vmem [#allocation61], %s2973_s13 }
 0x9b5   : > { %14786 = dma.done.wait (%p21717_p5), %s2972_s15, 16  }
 0x9b6   : > { %14788 = vsyncadd (%p21717_p5), %s2972_s15, 4294967280  ;;  %s21718_s10 = sld [smem:[#allocation306_spill]]  ;;  %s21719_s21 = sld [smem:[#allocation312_spill]] }
 0x9bc   : > { %s2981_s28 = sand.u32 1, %s21718_s10   ;;  %p21720_p2 = scmp.ne.s32.totalorder %s21719_s21, 0 }
 0x9bd   : > { %s9650_s4 = sshll.u32 %s2981_s28, 6 }
 0x9be   : > { %s18390_s18 = scalar_lea.vmem [#allocation63], %s9650_s4 }
 0x9bf   : > { %14790 = dma.done.wait (%p21720_p2), %s2972_s15, 1024  }
 0x9c0   : > { %14792 = vsyncadd (%p21720_p2), %s2972_s15, 4294966272  ;;  %s21721_s7 = sld [smem:[#allocation315_spill]]  ;;  %s21722_s26 = sld [smem:[#allocation328_spill]] }
 0x9c1   : > { %s2989_s8 = scalar_lea.sflag [#allocation65], %s18364_s3 }
 0x9c6   : > { %s2990_s0 = sand.u32 1, %s21721_s7   ;;  %p21723_p0 = scmp.ne.s32.totalorder %s21722_s26, 0 }
 0x9c7   : > { %s9651_s12 = sshll.u32 %s2990_s0, 6 }
 0x9c8   : > { %s18398_s6 = scalar_lea.vmem [#allocation64], %s9651_s12 }
 0x9c9   : > { %14794 = dma.done.wait (%p21723_p0), %s2989_s8, 1024  }
 0x9ca   : > { %14796 = vsyncadd (%p21723_p0), %s2989_s8, 4294966272  ;;  %s21724_s5 = sld [smem:[#allocation313_spill]] }
 0x9cb   : > { %s21725_s23 = sld [smem:[#allocation331_spill]] }
 0x9d0   : > { %s2999_s29 = sand.u32 1, %s21724_s5  }
 0x9d1   : > { %s9652_s9 = sshll.u32 %s2999_s29, 6  ;;  %p21726_p7 = scmp.ne.s32.totalorder %s21725_s23, 0 }
 0x9d2   : > { %s18405_s13 = scalar_lea.vmem [#allocation66], %s9652_s9 }
 0x9d3   : > { %14798 = dma.done.wait (%p21726_p7), %s2989_s8, 1024  }
 0x9d4   : > { %14800 = vsyncadd (%p21726_p7), %s2989_s8, 4294966272  ;;  %s21727_s15 = sld [smem:[#allocation310_spill]]  ;;  %s21728_s10 = sld [smem:[#allocation333_spill]] }
 0x9d5   : > { %s3007_s4 = scalar_lea.sflag [#allocation68], %s18364_s3 }
 0x9da   : > { %s3008_s21 = sand.u32 1, %s21727_s15   ;;  %p21729_p6 = scmp.ne.s32.totalorder %s21728_s10, 0 }
 0x9db   : > { %s9653_s28 = sshll.u32 %s3008_s21, 6 }
 0x9dc   : > { %s18413_s7 = scalar_lea.vmem [#allocation67], %s9653_s28 }
 0x9dd   : > { %14802 = dma.done.wait (%p21729_p6), %s3007_s4, 1024  }
 0x9de   : > { %14804 = vsyncadd (%p21729_p6), %s3007_s4, 4294966272  ;;  %s21730_s26 = sld [smem:[#allocation307_spill]]  ;;  %s21731_s0 = sld [smem:[#allocation294_spill]] }
 0x9e4   : > { %s3017_s12 = sand.u32 1, %s21730_s26   ;;  %p21733_p10 = scmp.ne.s32.totalorder %s21731_s0, 0 }
 0x9e5   : > { %s18420_s5 = scalar_lea.vmem [#allocation69], %s3017_s12 }
 0x9e6   : > { %21732 = sst [smem:[#allocation312_spill]] %s18420_s5 }
 0x9e7   : > { %14806 = dma.done.wait (%p21733_p10), %s3007_s4, 16  }
 0x9e8   : > { %14808 = vsyncadd (%p21733_p10), %s3007_s4, 4294967280  ;;  %s21734_s8 = sld [smem:[#allocation305_spill]]  ;;  %s21735_s23 = sld [smem:[#allocation337_spill]] }
 0x9e9   : > { %s3024_s9 = scalar_lea.sflag [#allocation71], %s18364_s3 }
 0x9ee   : > { %s3025_s29 = sand.u32 1, %s21734_s8   ;;  %p21737_p1 = scmp.ne.s32.totalorder %s21735_s23, 0 }
 0x9ef   : > { %s18428_s15 = scalar_lea.vmem [#allocation70], %s3025_s29 }
 0x9f0   : > { %21736 = sst [smem:[#allocation249_spill]] %s18428_s15 }
 0x9f1   : > { %14810 = dma.done.wait (%p21737_p1), %s3024_s9, 16  }
 0x9f2   : > { %14812 = vsyncadd (%p21737_p1), %s3024_s9, 4294967280  ;;  %s21738_s10 = sld [smem:[#allocation295_spill]]  ;;  %s21739_s21 = sld [smem:[#allocation288_spill]] }
 0x9f8   : > { %s3033_s28 = sand.u32 1, %s21738_s10   ;;  %p21741_p8 = scmp.ne.s32.totalorder %s21739_s21, 0 }
 0x9f9   : > { %s9654_s26 = sshll.u32 %s3033_s28, 6 }
 0x9fa   : > { %s18435_s12 = scalar_lea.vmem [#allocation72], %s9654_s26 }
 0x9fb   : > { %21740 = sst [smem:[#allocation255_spill]] %s18435_s12 }
 0x9fc   : > { %14814 = dma.done.wait (%p21741_p8), %s3024_s9, 1024  }
 0x9fd   : > { %14816 = vsyncadd (%p21741_p8), %s3024_s9, 4294966272  ;;  %s21742_s4 = sld [smem:[#allocation292_spill]]  ;;  %s21743_s0 = sld [smem:[#allocation340_spill]] }
 0x9fe   : > { %s3041_s29 = scalar_lea.sflag [#allocation74], %s18364_s3 }
 0xa03   : > { %s3042_s8 = sand.u32 1, %s21742_s4   ;;  %p21745_p13 = scmp.ne.s32.totalorder %s21743_s0, 0 }
 0xa04   : > { %s18443_s11 = scalar_lea.vmem [#allocation73], %s3042_s8 }
 0xa05   : > { %21744 = sst [smem:[#allocation261_spill]] %s18443_s11 }
 0xa06   : > { %14818 = dma.done.wait (%p21745_p13), %s3041_s29, 16  }
 0xa07   : > { %14820 = vsyncadd (%p21745_p13), %s3041_s29, 4294967280  ;;  %s21746_s23 = sld [smem:[#allocation289_spill]]  ;;  %s21747_s10 = sld [smem:[#allocation282_spill]] }
 0xa0d   : > { %s3050_s28 = sand.u32 1, %s21746_s23   ;;  %p21749_p9 = scmp.ne.s32.totalorder %s21747_s10, 0 }
 0xa0e   : > { %s9655_s26 = sshll.u32 %s3050_s28, 6 }
 0xa0f   : > { %s18450_s14 = scalar_lea.vmem [#allocation75], %s9655_s26 }
 0xa10   : > { %21748 = sst [smem:[#allocation267_spill]] %s18450_s14 }
 0xa11   : > { %14822 = dma.done.wait (%p21749_p9), %s3041_s29, 1024  }
 0xa12   : > { %14824 = vsyncadd (%p21749_p9), %s3041_s29, 4294966272  ;;  %s21750_s9 = sld [smem:[#allocation286_spill]]  ;;  %s21751_s21 = sld [smem:[#allocation344_spill]] }
 0xa13   : > { %s3058_s16 = scalar_lea.sflag [#allocation77], %s18364_s3 }
 0xa18   : > { %s3059_s4 = sand.u32 1, %s21750_s9   ;;  %p21752_p3 = scmp.ne.s32.totalorder %s21751_s21, 0 }
 0xa19   : > { %s9656_s8 = sshll.u32 %s3059_s4, 6 }
 0xa1a   : > { %s18458_s17 = scalar_lea.vmem [#allocation76], %s9656_s8 }
 0xa1b   : > { %14826 = dma.done.wait (%p21752_p3), %s3058_s16, 1024  }
 0xa1c   : > { %14828 = vsyncadd (%p21752_p3), %s3058_s16, 4294966272  ;;  %s21753_s0 = sld [smem:[#allocation283_spill]]  ;;  %s21754_s23 = sld [smem:[#allocation276_spill]] }
 0xa22   : > { %s3068_s28 = sand.u32 1, %s21753_s0   ;;  %p21756_p4 = scmp.ne.s32.totalorder %s21754_s23, 0 }
 0xa23   : > { %s9657_s26 = sshll.u32 %s3068_s28, 6 }
 0xa24   : > { %s18465_s19 = scalar_lea.vmem [#allocation78], %s9657_s26 }
 0xa25   : > { %21755 = sst [smem:[#allocation273_spill]] %s18465_s19 }
 0xa26   : > { %14830 = dma.done.wait (%p21756_p4), %s3058_s16, 1024  }
 0xa27   : > { %14832 = vsyncadd (%p21756_p4), %s3058_s16, 4294966272  ;;  %s21757_s29 = sld [smem:[#allocation280_spill]]  ;;  %s3076_s8 = scalar_lea.sflag [#allocation80], %s18364_s3 }
 0xa28   : > { %s21758_s10 = sld [smem:[#allocation347_spill]] }
 0xa2d   : > { %s3077_s9 = sand.u32 1, %s21757_s29  }
 0xa2e   : > { %s9658_s4 = sshll.u32 %s3077_s9, 6  ;;  %p21760_p12 = scmp.ne.s32.totalorder %s21758_s10, 0 }
 0xa2f   : > { %s18473_s20 = scalar_lea.vmem [#allocation79], %s9658_s4 }
 0xa30   : > { %21759 = sst [smem:[#allocation276_spill]] %s18473_s20 }
 0xa31   : > { %14834 = dma.done.wait (%p21760_p12), %s3076_s8, 1024  }
 0xa32   : > { %14836 = vsyncadd (%p21760_p12), %s3076_s8, 4294966272  ;;  %s21761_s21 = sld [smem:[#allocation277_spill]]  ;;  %s21762_s0 = sld [smem:[#allocation270_spill]] }
 0xa38   : > { %s3086_s28 = sand.u32 1, %s21761_s21   ;;  %p21763_p5 = scmp.ne.s32.totalorder %s21762_s0, 0 }
 0xa39   : > { %s18480_s26 = scalar_lea.vmem [#allocation81], %s3086_s28 }
 0xa3a   : > { %14838 = dma.done.wait (%p21763_p5), %s3076_s8, 16  }
 0xa3b   : > { %14840 = vsyncadd (%p21763_p5), %s3076_s8, 4294967280  ;;  %s21764_s16 = sld [smem:[#allocation274_spill]]  ;;  %s21765_s23 = sld [smem:[#allocation350_spill]] }
 0xa3c   : > { %s3093_s9 = scalar_lea.sflag [#allocation83], %s18364_s3 }
 0xa41   : > { %s3094_s29 = sand.u32 1, %s21764_s16   ;;  %p21766_p2 = scmp.ne.s32.totalorder %s21765_s23, 0 }
 0xa42   : > { %s18488_s4 = scalar_lea.vmem [#allocation82], %s3094_s29 }
 0xa43   : > { %14842 = dma.done.wait (%p21766_p2), %s3093_s9, 16  }
 0xa44   : > { %14844 = vsyncadd (%p21766_p2), %s3093_s9, 4294967280  ;;  %s21767_s10 = sld [smem:[#allocation271_spill]]  ;;  %s21768_s21 = sld [smem:[#allocation264_spill]] }
 0xa4a   : > { %s3102_s28 = sand.u32 1, %s21767_s10   ;;  %p21769_p0 = scmp.ne.s32.totalorder %s21768_s21, 0 }
 0xa4b   : > { %s9659_s25 = sshll.u32 %s3102_s28, 6 }
 0xa4c   : > { %s18495_s27 = scalar_lea.vmem [#allocation84], %s9659_s25 }
 0xa4d   : > { %14846 = dma.done.wait (%p21769_p0), %s3093_s9, 1024  }
 0xa4e   : > { %14848 = vsyncadd (%p21769_p0), %s3093_s9, 4294966272  ;;  %s21770_s8 = sld [smem:[#allocation268_spill]]  ;;  %s21771_s0 = sld [smem:[#allocation353_spill]] }
 0xa4f   : > { %s3110_s29 = scalar_lea.sflag [#allocation86], %s18364_s3 }
 0xa54   : > { %s3111_s16 = sand.u32 1, %s21770_s8   ;;  %p21773_p7 = scmp.ne.s32.totalorder %s21771_s0, 0 }
 0xa55   : > { %s18503_s30 = scalar_lea.vmem [#allocation85], %s3111_s16 }
 0xa56   : > { %21772 = sst [smem:[#allocation264_spill]] %s18503_s30 }
 0xa57   : > { %14850 = dma.done.wait (%p21773_p7), %s3110_s29, 16  }
 0xa58   : > { %14852 = vsyncadd (%p21773_p7), %s3110_s29, 4294967280  ;;  %s21774_s23 = sld [smem:[#allocation265_spill]]  ;;  %s21775_s25 = sld [smem:[#allocation258_spill]] }
 0xa5e   : > { %s3119_s10 = sand.u32 1, %s21774_s23   ;;  %p21776_p6 = scmp.ne.s32.totalorder %s21775_s25, 0 }
 0xa5f   : > { %s9660_s28 = sshll.u32 %s3119_s10, 6 }
 0xa60   : > { %s18510_s11 = scalar_lea.vmem [#allocation87], %s9660_s28 }
 0xa61   : > { %14854 = dma.done.wait (%p21776_p6), %s3110_s29, 1024  }
 0xa62   : > { %14856 = vsyncadd (%p21776_p6), %s3110_s29, 4294966272  ;;  %s21777_s9 = sld [smem:[#allocation262_spill]]  ;;  %s21778_s21 = sld [smem:[#allocation357_spill]] }
 0xa63   : > { %s3127_s15 = scalar_lea.sflag [#allocation89], %s18364_s3 }
 0xa68   : > { %s3128_s8 = sand.u32 1, %s21777_s9   ;;  %p21779_p10 = scmp.ne.s32.totalorder %s21778_s21, 0 }
 0xa69   : > { %s9661_s16 = sshll.u32 %s3128_s8, 6 }
 0xa6a   : > { %s18518_s5 = scalar_lea.vmem [#allocation88], %s9661_s16 }
 0xa6b   : > { %14858 = dma.done.wait (%p21779_p10), %s3127_s15, 1024  }
 0xa6c   : > { %14860 = vsyncadd (%p21779_p10), %s3127_s15, 4294966272  ;;  %s21780_s0 = sld [smem:[#allocation259_spill]]  ;;  %s21781_s23 = sld [smem:[#allocation252_spill]] }
 0xa72   : > { %s3137_s10 = sand.u32 1, %s21780_s0   ;;  %p21782_p1 = scmp.ne.s32.totalorder %s21781_s23, 0 }
 0xa73   : > { %s9662_s28 = sshll.u32 %s3137_s10, 6 }
 0xa74   : > { %s18525_s14 = scalar_lea.vmem [#allocation90], %s9662_s28 }
 0xa75   : > { %14862 = dma.done.wait (%p21782_p1), %s3127_s15, 1024  }
 0xa76   : > { %14864 = vsyncadd (%p21782_p1), %s3127_s15, 4294966272  ;;  %s21783_s29 = sld [smem:[#allocation256_spill]]  ;;  %s21784_s25 = sld [smem:[#allocation361_spill]] }
 0xa77   : > { %s3145_s16 = scalar_lea.sflag [#allocation92], %s18364_s3 }
 0xa7c   : > { %s3146_s9 = sand.u32 1, %s21783_s29   ;;  %p21785_p8 = scmp.ne.s32.totalorder %s21784_s25, 0 }
 0xa7d   : > { %s9663_s8 = sshll.u32 %s3146_s9, 6 }
 0xa7e   : > { %s18533_s20 = scalar_lea.vmem [#allocation91], %s9663_s8 }
 0xa7f   : > { %14866 = dma.done.wait (%p21785_p8), %s3145_s16, 1024  }
 0xa80   : > { %14868 = vsyncadd (%p21785_p8), %s3145_s16, 4294966272  ;;  %s21786_s21 = sld [smem:[#allocation253_spill]]  ;;  %s21787_s0 = sld [smem:[#allocation246_spill]] }
 0xa86   : > { %s3155_s10 = sand.u32 1, %s21786_s21   ;;  %p21788_p13 = scmp.ne.s32.totalorder %s21787_s0, 0 }
 0xa87   : > { %s9664_s28 = sshll.u32 %s3155_s10, 6 }
 0xa88   : > { %s18540_s12 = scalar_lea.vmem [#allocation93], %s9664_s28 }
 0xa89   : > { %14870 = dma.done.wait (%p21788_p13), %s3145_s16, 1024  }
 0xa8a   : > { %14872 = vsyncadd (%p21788_p13), %s3145_s16, 4294966272  ;;  %s21789_s15 = sld [smem:[#allocation250_spill]]  ;;  %s21790_s23 = sld [smem:[#allocation365_spill]] }
 0xa8b   : > { %s3163_s9 = scalar_lea.sflag [#allocation95], %s18364_s3 }
 0xa90   : > { %s3164_s29 = sand.u32 1, %s21789_s15   ;;  %p21792_p9 = scmp.ne.s32.totalorder %s21790_s23, 0 }
 0xa91   : > { %s18548_s8 = scalar_lea.vmem [#allocation94], %s3164_s29 }
 0xa92   : > { %21791 = sst [smem:[#allocation246_spill]] %s18548_s8 }
 0xa93   : > { %14874 = dma.done.wait (%p21792_p9), %s3163_s9, 16  }
 0xa94   : > { %14876 = vsyncadd (%p21792_p9), %s3163_s9, 4294967280  ;;  %s21793_s25 = sld [smem:[#allocation247_spill]]  ;;  %s21794_s21 = sld [smem:[#allocation240_spill]] }
 0xa9a   : > { %s3172_s10 = sand.u32 1, %s21793_s25   ;;  %p21796_p3 = scmp.ne.s32.totalorder %s21794_s21, 0 }
 0xa9b   : > { %s18555_s28 = scalar_lea.vmem [#allocation96], %s3172_s10 }
 0xa9c   : > { %21795 = sst [smem:[#allocation240_spill]] %s18555_s28 }
 0xa9d   : > { %14878 = dma.done.wait (%p21796_p3), %s3163_s9, 16  }
 0xa9e   : > { %14880 = vsyncadd (%p21796_p3), %s3163_s9, 4294967280  ;;  %s21797_s16 = sld [smem:[#allocation244_spill]]  ;;  %s21798_s0 = sld [smem:[#allocation367_spill]] }
 0xa9f   : > { %s3179_s8 = scalar_lea.sflag [#allocation98], %s18364_s3 }
 0xaa4   : > { %s3180_s15 = sand.u32 1, %s21797_s16   ;;  %p21799_p4 = scmp.ne.s32.totalorder %s21798_s0, 0 }
 0xaa5   : > { %s9665_s29 = sshll.u32 %s3180_s15, 6 }
 0xaa6   : > { %s18563_s19 = scalar_lea.vmem [#allocation97], %s9665_s29 }
 0xaa7   : > { %14882 = dma.done.wait (%p21799_p4), %s3179_s8, 1024  }
 0xaa8   : > { %14884 = vsyncadd (%p21799_p4), %s3179_s8, 4294966272  ;;  %s21800_s23 = sld [smem:[#allocation241_spill]]  ;;  %s21801_s25 = sld [smem:[#allocation369_spill]] }
 0xaae   : > { %s3189_s10 = sand.u32 1, %s21800_s23   ;;  %p21802_p12 = scmp.ne.s32.totalorder %s21801_s25, 0 }
 0xaaf   : > { %s9666_s28 = sshll.u32 %s3189_s10, 6 }
 0xab0   : > { %s18570_s30 = scalar_lea.vmem [#allocation99], %s9666_s28 }
 0xab1   : > { %14886 = dma.done.wait (%p21802_p12), %s3179_s8, 1024  }
 0xab2   : > { %14888 = vsyncadd (%p21802_p12), %s3179_s8, 4294966272  ;;  %s3471_s3 = sld [smem:[#allocation7 + %s21675_s2]]  ;;  %v18578_v0 = vld [vmem:[#allocation21] sm:$0xf]  ;;  %v18580_v1 = vld [vmem:[#allocation21 + $0x4] sm:$0xf] }
 0xab3   : > { %s3479_s9 = sld [smem:[#allocation7 + %s21675_s2]]  ;;  %v18582_v2 = vld [vmem:[#allocation21 + $0x8] sm:$0xf]  ;;  %v18584_v3 = vld [vmem:[#allocation21 + $0xc] sm:$0xf]  ;;  %v18598_v10 = vld [vmem:[#allocation13 + $0x8] sm:$0xff] }
 0xab4   : > { %s21803_s21 = sld [smem:[#allocation211_spill]]  ;;  %v18586_v4 = vld [vmem:[#allocation21 + $0x10] sm:$0xf]  ;;  %v18588_v5 = vld [vmem:[#allocation21 + $0x14] sm:$0xf]  ;;  %s21804_s8 = sld [smem:[#allocation213_spill]] }
 0xab5   : > { %v18590_v6 = vld [vmem:[#allocation21 + $0x18] sm:$0xf]  ;;  %v18592_v7 = vld [vmem:[#allocation13] sm:$0xff]  ;;  %v18594_v8 = vld [vmem:[#allocation21 + $0x1c] sm:$0xf]  ;;  %s21824_s29 = sld [smem:[#allocation176_spill]] }
 0xab6   : > { %v18596_v9 = vld [vmem:[#allocation21 + $0x20] sm:$0xf]  ;;  %v18600_v11 = vld [vmem:[#allocation21 + $0x24] sm:$0xf]  ;;  %v18602_v12 = vld [vmem:[#allocation21 + $0x28] sm:$0xf] }
 0xab7   : > { %21805 = vst [vmem:[#allocation372_spill] sm:$0xff] %v18602_v12  ;;  %v18604_v13 = vld [vmem:[#allocation13 + $0x10] sm:$0xff]  ;;  %v18609_v14 = vld [vmem:[#allocation21 + $0x2c] sm:$0xf]  ;;  %v18611_v15 = vld [vmem:[#allocation21 + $0x30] sm:$0xf] }
 0xab8   : > { %p3472_p5 = scmp.lt.s32.totalorder %s3471_s3, 2  ;;  %21806 = vst [vmem:[#allocation373_spill] sm:$0xff] %v18609_v14  ;;  %21807 = vst [vmem:[#allocation374_spill] sm:$0xff] %v18611_v15  ;;  %v18613_v16 = vld [vmem:[#allocation13 + $0x18] sm:$0xff]  ;;  %v18618_v17 = vld [vmem:[#allocation21 + $0x34] sm:$0xf] }
 0xab9   : > { %p3480_p2 = scmp.lt.s32.totalorder %s3479_s9, 2  ;;  %21808 = vst [vmem:[#allocation375_spill] sm:$0xff] %v18618_v17  ;;  %v18620_v18 = vld [vmem:[#allocation19] sm:$0xf]  ;;  %v18622_v19 = vld [vmem:[#allocation19 + $0x4] sm:$0xf] }
 0xaba   : > { %s22134_s3 = smov (!%p3472_p5, %s3471_s3), 2  ;;  %21809 = vst [vmem:[#allocation376_spill] sm:$0xff] %v18620_v18  ;;  %21810 = vst [vmem:[#allocation377_spill] sm:$0xff] %v18622_v19  ;;  %v18624_v20 = vld [vmem:[#allocation19 + $0x8] sm:$0xf]  ;;  %v3566_v54 = vld [vmem:[#allocation13 + $0x20] sm:$0xff] }
 0xabb   : > { %s22136_s9 = smov (!%p3480_p2, %s3479_s9), 2  ;;  %s10009_s28 = sshll.u32 %s22134_s3, 6  ;;  %21811 = vst [vmem:[#allocation378_spill] sm:$0xff] %v18624_v20  ;;  %v18626_v21 = vld [vmem:[#allocation19 + $0xc] sm:$0xf]  ;;  %v3568_v56 = vld [vmem:[#allocation13 + $0x30] sm:$0xff] }
 0xabc   : > { %s18607_s16 = scalar_lea.vmem %s21803_s21, %s10009_s28  ;;  %s10010_s0 = sshll.u32 %s22136_s9, 6  ;;  %21812 = vst [vmem:[#allocation379_spill] sm:$0xff] %v18626_v21  ;;  %v18628_v22 = vld [vmem:[#allocation19 + $0x10] sm:$0xf]  ;;  %v18630_v23 = vld [vmem:[#allocation19 + $0x14] sm:$0xf] }
 0xabd   : > { %s18616_s15 = scalar_lea.vmem %s21804_s8, %s10010_s0  ;;  %21813 = vst [vmem:[#allocation380_spill] sm:$0xff] %v18628_v22  ;;  %21814 = vst [vmem:[#allocation381_spill] sm:$0xff] %v18630_v23  ;;  %v18632_v24 = vld [vmem:[#allocation19 + $0x18] sm:$0xf]  ;;  %v18634_v25 = vld [vmem:[#allocation19 + $0x1c] sm:$0xf]  ;;  %s21825_s25 = smov %s21824_s29 }
 0xabe   : > { %21815 = vst [vmem:[#allocation382_spill] sm:$0xff] %v18632_v24  ;;  %21816 = vst [vmem:[#allocation383_spill] sm:$0xff] %v18634_v25  ;;  %v18636_v26 = vld [vmem:[#allocation19 + $0x20] sm:$0xf]  ;;  %v18638_v27 = vld [vmem:[#allocation19 + $0x24] sm:$0xf] }
 0xabf   : > { %21817 = vst [vmem:[#allocation384_spill] sm:$0xff] %v18636_v26  ;;  %21818 = vst [vmem:[#allocation385_spill] sm:$0xff] %v18638_v27  ;;  %v18640_v28 = vld [vmem:[#allocation19 + $0x28] sm:$0xf]  ;;  %v18642_v29 = vld [vmem:[#allocation19 + $0x2c] sm:$0xf] }
 0xac0   : > { %21819 = vst [vmem:[#allocation386_spill] sm:$0xff] %v18640_v28  ;;  %21820 = vst [vmem:[#allocation387_spill] sm:$0xff] %v18642_v29  ;;  %v18644_v30 = vld [vmem:[#allocation19 + $0x30] sm:$0xf]  ;;  %v18646_v31 = vld [vmem:[#allocation19 + $0x34] sm:$0xf] }
 0xac1   : > { %21821 = vst [vmem:[#allocation388_spill] sm:$0xff] %v18644_v30  ;;  %21822 = vst [vmem:[#allocation389_spill] sm:$0xff] %v18646_v31  ;;  %v18648_v32 = vld [vmem:[#allocation15] sm:$0xf]  ;;  %v18650_v33 = vld [vmem:[#allocation15 + $0x4] sm:$0xf] }
 0xac2   : > { %v18652_v34 = vld [vmem:[#allocation15 + $0x8] sm:$0xf]  ;;  %v18654_v35 = vld [vmem:[#allocation15 + $0xc] sm:$0xf]  ;;  %v18656_v36 = vld [vmem:[#allocation15 + $0x10] sm:$0xf] }
 0xac3   : > { %21823 = vst [vmem:[#allocation390_spill] sm:$0xff] %v18652_v34  ;;  %21826 = vst [vmem:[#allocation391_spill] sm:$0xff] %v18656_v36  ;;  %v18658_v37 = vld [vmem:[#allocation15 + $0x14] sm:$0xf]  ;;  %v18660_v38 = vld [vmem:[#allocation15 + $0x18] sm:$0xf] }
 0xac4   : > { %21827 = vst [vmem:[#allocation392_spill] sm:$0xff] %v18658_v37  ;;  %21828 = vst [vmem:[#allocation393_spill] sm:$0xff] %v18660_v38  ;;  %v18662_v39 = vld [vmem:[#allocation15 + $0x1c] sm:$0xf]  ;;  %v18664_v40 = vld [vmem:[#allocation15 + $0x20] sm:$0xf] }
 0xac5   : > { %21829 = vst [vmem:[#allocation394_spill] sm:$0xff] %v18662_v39  ;;  %21830 = vst [vmem:[#allocation395_spill] sm:$0xff] %v18664_v40  ;;  %v18666_v41 = vld [vmem:[#allocation15 + $0x24] sm:$0xf]  ;;  %v18668_v42 = vld [vmem:[#allocation15 + $0x28] sm:$0xf] }
 0xac6   : > { %21831 = vst [vmem:[#allocation396_spill] sm:$0xff] %v18666_v41  ;;  %21832 = vst [vmem:[#allocation397_spill] sm:$0xff] %v18668_v42  ;;  %v18670_v43 = vld [vmem:[#allocation15 + $0x2c] sm:$0xf]  ;;  %v18672_v44 = vld [vmem:[#allocation15 + $0x30] sm:$0xf] }
 0xac7   : > { %21833 = vst [vmem:[#allocation398_spill] sm:$0xff] %v18670_v43  ;;  %21834 = vst [vmem:[#allocation399_spill] sm:$0xff] %v18672_v44  ;;  %v18674_v45 = vld [vmem:[#allocation15 + $0x34] sm:$0xf]  ;;  %v18676_v46 = vld [vmem:[#allocation16] sm:$0xf] }
 0xac8   : > { %21835 = vst [vmem:[#allocation400_spill] sm:$0xff] %v18674_v45  ;;  %21836 = vst [vmem:[#allocation401_spill] sm:$0xff] %v18676_v46  ;;  %v18678_v47 = vld [vmem:[#allocation16 + $0x4] sm:$0xf]  ;;  %v18680_v48 = vld [vmem:[#allocation12] sm:$0xf] }
 0xac9   : > { %21837 = vst [vmem:[#allocation402_spill] sm:$0xff] %v18678_v47  ;;  %v18682_v49 = vld [vmem:[#allocation12 + $0x4] sm:$0xf]  ;;  %v18685_v50 = vld [vmem:[%s21824_s29] sm:$0xf]  ;;  %v3567_v55 = vld [vmem:[#allocation13 + $0x28] sm:$0xff] }
 0xaca   : > { %21838 = vst [vmem:[#allocation403_spill] sm:$0xff] %v18685_v50  ;;  %v18688_v51 = vld [vmem:[%s21825_s25 + $0x4] sm:$0xf]  ;;  %v18692_v53 = vld [vmem:[#allocation8] sm:$0xf]  ;;  %v3569_v57 = vld [vmem:[#allocation13 + $0x38] sm:$0xff] }
 0xacb   : > { %21839 = vst [vmem:[#allocation404_spill] sm:$0xff] %v18688_v51  ;;  %v18690_v52 = vld [vmem:[#allocation10] sm:$0xf]  ;;  %v3570_v58 = vld [vmem:[#allocation13 + $0x40] sm:$0xff]  ;;  %v3571_v59 = vld [vmem:[#allocation13 + $0x48] sm:$0xff]  ;;  %3581 = sbr.rel (%p9617_p11) target bundleno = 2773 (0xad5), region = 528 }
 0xacc   : > { %21840 = vst [vmem:[#allocation405_spill] sm:$0xff] %v18690_v52  ;;  %v3572_v60 = vld [vmem:[#allocation13 + $0x50] sm:$0xff]  ;;  %v3573_v61 = vld [vmem:[#allocation13 + $0x58] sm:$0xff]  ;;  %v3574_v62 = vld [vmem:[#allocation13 + $0x60] sm:$0xff]  ;;  %s21843_s23 = sld [smem:[#allocation190_spill]] (!%p9617_p11) }
 0xacd   : > { %v3575_v63 = vld [vmem:[#allocation13 + $0x68] sm:$0xff]  ;;  %v18694_v46 = vld [vmem:[#allocation18] sm:$0xff]  ;;  %v18696_v47 = vld [vmem:[#allocation18 + $0x8] sm:$0xff] }
 0xace   : > { %21841 = vst [vmem:[#allocation406_spill] sm:$0xff] %v18694_v46  ;;  %21842 = vst [vmem:[#allocation407_spill] sm:$0xff] %v18696_v47 }
 0xad2   : > { %s21844_s3 = smov %s21843_s23  ;;  %v3582_v52 = vld [vmem:[%s21843_s23] sm:$0xff] }
 0xad3   : > { %v3583_v50 = vld [vmem:[%s21844_s3 + $0x8] sm:$0xff]  ;;  %3584 = vst [vmem:[#allocation5] sm:$0xff] %v3582_v52 }
 0xad4   : > { %3585 = vst [vmem:[#allocation5 + $0x8] sm:$0xff] %v3583_v50 }
 0xad5 PF: > { %vm3588_vm0 = vcmask 130048   ;;  %vm15364_vm1 = vmmov 0   ;;  %v18783_v31 = vld [vmem:[#allocation48 + $0x10] sm:$0xff]   ;;  %v18799_v47 = vld [vmem:[#allocation39] ss:$0 sm:$0xff] }
 0xad6   : > { %10453 = vmatprep.mubr.msk.f32.mxu0 %vm3588_vm0, %v18592_v7  ;;  %v12461_v7 = vld [vmem:[#allocation34] sm:$0xff]   ;;  %v18788_v26 = vld [vmem:[#allocation57 + $0x30] sm:$0xff]  }
 0xad7   : > { %v21867_v12 = vunpack.c.l.bf16 %v18788_v26 }
 0xada   : > { %v18702_v51 = vld [vmem:[#allocation5] sm:$0xff] }
 0xadb   : > { %21845 = vst [vmem:[#allocation408_spill] sm:$0xff] %v18702_v51  ;;  %v18704_v30 = vld [vmem:[#allocation5 + $0x8] sm:$0xff] }
 0xadc   : > { %21846 = vst [vmem:[#allocation409_spill] sm:$0xff] %v18704_v30  ;;  %v11353_v46 = vpack.c.bf16 %v18704_v30, %v18702_v51  ;;  %v18776_v30 = vld [vmem:[#allocation57 + $0x28] sm:$0xff]  }
 0xade   : > { %11354 = vmatprep.subr.bf16.mxu0 %v11353_v46 }
 0xadf   : > { %11356 = vmatpush3.bf16.msra.mxu0 %v11353_v46 }
 0xae2   : > { %10454 = vmatmul.mubr.msk.f32.vlgmr.msra.gmra.mrb[0].mxu0 %vm3588_vm0, %v18598_v10  ;;  %v20865_v10 = vmov 0.0  }
 0xae3   : > { %10456 = vmatprep.mubr.msk.f32.mxu0 %vm3588_vm0, %v18604_v13  ;;  %10474 = vmatprep.subr.bf16.mxu1 %v20865_v10  ;;  %v12462_v13 = vld [vmem:[#allocation34 + $0x8] sm:$0xff]  }
 0xae4   : > { %10518 = vmatprep.subr.bf16.mxu0 %v20865_v10  ;;  %10475 = vmatpush3.bf16.msra.mxu1 %v12461_v7 }
 0xae5   : > { %10476 = vmatprep.subr.bf16.mxu1 %v20865_v10 }
 0xae6   : > { %10457 = vmatmul.mubr.msk.f32.gmra.mrb[2].mxu0 %vm3588_vm0, %v18613_v16 }
 0xae7   : > { %10459 = vmatprep.mubr.msk.f32.mxu0 %vm3588_vm0, %v3566_v54 }
 0xae8   : > { %10477 = vmatpush3.bf16.msra.mxu1 %v12462_v13 }
 0xae9   : > { %10478 = vmatprep.subr.bf16.mxu1 %v20865_v10 }
 0xaea   : > { %10460 = vmatmul.mubr.msk.f32.gmra.mrb[4].mxu0 %vm3588_vm0, %v3567_v55 }
 0xaeb   : > { %10462 = vmatprep.mubr.msk.f32.mxu0 %vm3588_vm0, %v3568_v56 }
 0xaee   : > { %10463 = vmatmul.mubr.msk.f32.gmra.mrb[6].mxu0 %vm3588_vm0, %v3569_v57 }
 0xaef   : > { %10465 = vmatprep.mubr.msk.f32.mxu0 %vm3588_vm0, %v3570_v58 }
 0xaf2   : > { %10466 = vmatmul.mubr.msk.f32.gmra.mrb[8].mxu0 %vm3588_vm0, %v3571_v59 }
 0xaf3   : > { %10468 = vmatprep.mubr.msk.f32.mxu0 %vm3588_vm0, %v3572_v60 }
 0xaf6   : > { %10469 = vmatmul.mubr.msk.f32.gmra.mrb[10].mxu0 %vm3588_vm0, %v3573_v61 }
 0xaf7   : > { %10471 = vmatprep.mubr.msk.f32.mxu0 %vm3588_vm0, %v3574_v62 }
 0xafa   : > { %10472 = vmatmul.mubr.msk.f32.gmra.mrb[12].mxu0 %vm3588_vm0, %v3575_v63 }
 0xbb5   : > { %v10455_v16 = vpop.f32.mrb[0].mxu0 }
 0xbb6   : > { %v3697_v46 = vpop.f32.mrb[1].mxu0  ;;  %v3767_v55 = vmul.f32 %v10455_v16, %v10455_v16  ;;  %v12463_v16 = vld [vmem:[#allocation34 + $0x10] sm:$0xff]  }
 0xbb7   : > { %v3766_v50 = vmul.f32 %v3697_v46, %v3697_v46  ;;  %10479 = vmatpush3.bf16.msra.mxu1 %v12463_v16  ;;  %v12470_v16 = vld [vmem:[#allocation37 + $0x8] sm:$0xff]  }
 0xbb9   : > { %3780 = vadd.xlane.f32.xlu0 %v3766_v50  ;;  %v10458_v52 = vpop.f32.mrb[2].mxu0 }
 0xbba   : > { %v3707_v54 = vpop.f32.mrb[3].mxu0  ;;  %v3769_v57 = vmul.f32 %v10458_v52, %v10458_v52 }
 0xbbb   : > { %v3768_v56 = vmul.f32 %v3707_v54, %v3707_v54 }
 0xbbd   : > { %3782 = vadd.xlane.f32.xlu0 %v3767_v55  ;;  %3784 = vadd.xlane.f32.xlu1 %v3768_v56  ;;  %v10461_v58 = vpop.f32.mrb[4].mxu0 }
 0xbbe   : > { %v3717_v59 = vpop.f32.mrb[5].mxu0  ;;  %v3771_v61 = vmul.f32 %v10461_v58, %v10461_v58  ;;  %v21847_v58 = vmov 0.0  }
 0xbbf   : > { %v3770_v60 = vmul.f32 %v3717_v59, %v3717_v59  ;;  %10480 = vmatprep.subr.bf16.mxu1 %v21847_v58  ;;  %10490 = vmatprep.mubr.msk.bf16.mxu1 %vm15364_vm1, %v21847_v58 }
 0xbc0   : > { %10534 = vmatprep.mubr.msk.bf16.mxu0 %vm15364_vm1, %v21847_v58 }
 0xbc1   : > { %3786 = vadd.xlane.f32.xlu1 %v3769_v57  ;;  %3788 = vadd.xlane.f32.xlu0 %v3770_v60  ;;  %v10464_v62 = vpop.f32.mrb[6].mxu0  ;;  %v12464_v60 = vld [vmem:[#allocation34 + $0x18] sm:$0xff]  }
 0xbc2   : > { %v3727_v63 = vpop.f32.mrb[7].mxu0  ;;  %v3773_v13 = vmul.f32 %v10464_v62, %v10464_v62  ;;  %10481 = vmatpush3.bf16.msra.mxu1 %v12464_v60 }
 0xbc3   : > { %v3772_v7 = vmul.f32 %v3727_v63, %v3727_v63  ;;  %10482 = vmatprep.subr.bf16.mxu1 %v21847_v58 }
 0xbc5   : > { %3790 = vadd.xlane.f32.xlu1 %v3771_v61  ;;  %3792 = vadd.xlane.f32.xlu0 %v3772_v7  ;;  %v10467_v46 = vpop.f32.mrb[8].mxu0  ;;  %v12466_v7 = vld [vmem:[#allocation34 + $0x28] sm:$0xff]  }
 0xbc6   : > { %v3737_v50 = vpop.f32.mrb[9].mxu0  ;;  %v3775_v52 = vmul.f32 %v10467_v46, %v10467_v46  ;;  %v12468_v46 = vld [vmem:[#allocation34 + $0x38] sm:$0xff]  }
 0xbc7   : > { %v3774_v10 = vmul.f32 %v3737_v50, %v3737_v50  ;;  %v12469_v50 = vld [vmem:[#allocation37] sm:$0xff]  }
 0xbc8   : > { %10519 = vmatpush3.bf16.msra.mxu0 %v12469_v50 }
 0xbc9   : > { %3794 = vadd.xlane.f32.xlu1 %v3773_v13  ;;  %3796 = vadd.xlane.f32.xlu0 %v3774_v10  ;;  %v10470_v54 = vpop.f32.mrb[10].mxu0  ;;  %v12465_v10 = vld [vmem:[#allocation34 + $0x20] sm:$0xff]   ;;  %v12467_v13 = vld [vmem:[#allocation34 + $0x30] sm:$0xff]  }
 0xbca   : > { %v3747_v55 = vpop.f32.mrb[11].mxu0  ;;  %v3777_v57 = vmul.f32 %v10470_v54, %v10470_v54  ;;  %10483 = vmatpush3.bf16.msra.mxu1 %v12465_v10  ;;  %10520 = vmatprep.subr.bf16.mxu0 %v21847_v58  ;;  %v12472_v54 = vld [vmem:[#allocation37 + $0x18] sm:$0xff]   ;;  %v18758_v10 = vld [vmem:[#allocation48] sm:$0xff]  }
 0xbcb   : > { %v3776_v56 = vmul.f32 %v3747_v55, %v3747_v55  ;;  %10484 = vmatprep.subr.bf16.mxu1 %v21847_v58  ;;  %v12473_v55 = vld [vmem:[#allocation37 + $0x20] sm:$0xff]  }
 0xbcc   : > { %10521 = vmatpush3.bf16.msra.mxu0 %v12470_v16 }
 0xbcd   : > { %3798 = vadd.xlane.f32.xlu1 %v3775_v52  ;;  %3800 = vadd.xlane.f32.xlu0 %v3776_v56  ;;  %v10473_v59 = vpop.f32.mrb[12].mxu0  ;;  %v12471_v52 = vld [vmem:[#allocation37 + $0x10] sm:$0xff]   ;;  %v12474_v56 = vld [vmem:[#allocation37 + $0x28] sm:$0xff]  }
 0xbce   : > { %v3757_v61 = vpop.f32.mrb[13].mxu0  ;;  %v3779_v63 = vmul.f32 %v10473_v59, %v10473_v59  ;;  %10485 = vmatpush3.bf16.msra.mxu1 %v12466_v7  ;;  %10522 = vmatprep.subr.bf16.mxu0 %v21847_v58  ;;  %v18760_v7 = vld [vmem:[#allocation57 + $0x18] sm:$0xff]  }
 0xbcf   : > { %v3778_v62 = vmul.f32 %v3757_v61, %v3757_v61  ;;  %10486 = vmatprep.subr.bf16.mxu1 %v21847_v58  ;;  %v18751_v61 = vld [vmem:[#allocation57] sm:$0xff]  }
 0xbd0   : > { %10523 = vmatpush3.bf16.msra.mxu0 %v12471_v52 }
 0xbd1   : > { %3802 = vadd.xlane.f32.xlu1 %v3777_v57  ;;  %3804 = vadd.xlane.f32.xlu0 %v3778_v62  ;;  %v18753_v62 = vld [vmem:[#allocation57 + $0x8] sm:$0xff]  }
 0xbd2   : > { %10487 = vmatpush3.bf16.msra.mxu1 %v12467_v13  ;;  %10524 = vmatprep.subr.bf16.mxu0 %v21847_v58 }
 0xbd3   : > { %10488 = vmatprep.subr.bf16.mxu1 %v21847_v58 }
 0xbd4   : > { %10525 = vmatpush3.bf16.msra.mxu0 %v12472_v54  ;;  %v18769_v54 = vld [vmem:[#allocation57 + $0x20] sm:$0xff]  }
 0xbd5   : > { %3806 = vadd.xlane.f32.xlu1 %v3779_v63  ;;  %10526 = vmatprep.subr.bf16.mxu0 %v21847_v58  ;;  %v18756_v63 = vld [vmem:[#allocation57 + $0x10] sm:$0xff]  }
 0xbd6   : > { %10489 = vmatpush3.bf16.msra.mxu1 %v12468_v46 }
 0xbd7   : > { %10562 = vmatprep.subr.bf16.mxu1 %v21847_v58 }
 0xbd8   : > { %10527 = vmatpush3.bf16.msra.mxu0 %v12473_v55  ;;  %v18771_v55 = vld [vmem:[#allocation48 + $0x8] sm:$0xff]  }
 0xbd9   : > { %10528 = vmatprep.subr.bf16.mxu0 %v21847_v58 }
 0xbdc   : > { %10529 = vmatpush3.bf16.msra.mxu0 %v12474_v56 }
 0xbdd   : > { %10530 = vmatprep.subr.bf16.mxu0 %v21847_v58 }
 0xc46   : > { %v3781_v57 = vpop.xlane.xlu0 %3780 }
 0xc47   : > { %12509 = vrsqrt.f32 %v3781_v57  ;;  %vm3810_vm2 = vcmp.eq.f32.partialorder %v3781_v57, inf  ;;  %v3813_v29 = vand.u32 2147483648, %v3781_v57  ;;  %vm3812_vm3 = vcmp.eq.f32.partialorder %v3781_v57, 0.0 }
 0xc4a   : > { %v18746_v59 = vpop.xlane.xlu0 %3782  ;;  %v18748_v60 = vpop.xlane.xlu1 %3784 }
 0xc4b   : > { %12511 = vrsqrt.f32 %v18746_v59  ;;  %vm3817_vm4 = vcmp.eq.f32.partialorder %v18746_v59, inf  ;;  %vm3819_vm5 = vcmp.eq.f32.partialorder %v18746_v59, 0.0  ;;  %v3820_v56 = vand.u32 2147483648, %v18746_v59 }
 0xc4c   : > { %12513 = vrsqrt.f32 %v18748_v60  ;;  %vm3824_vm6 = vcmp.eq.f32.partialorder %v18748_v60, inf  ;;  %vm3826_vm7 = vcmp.eq.f32.partialorder %v18748_v60, 0.0 }
 0xc4e   : > { %v18762_v13 = vpop.xlane.xlu1 %3786  ;;  %v18764_v46 = vpop.xlane.xlu0 %3788 }
 0xc4f   : > { %12515 = vrsqrt.f32 %v18762_v13  ;;  %vm3831_vm8 = vcmp.eq.f32.partialorder %v18762_v13, inf  ;;  %vm3833_vm9 = vcmp.eq.f32.partialorder %v18762_v13, 0.0  ;;  %vm3838_vm10 = vcmp.eq.f32.partialorder %v18764_v46, inf }
 0xc50   : > { %12517 = vrsqrt.f32 %v18764_v46  ;;  %v3841_v22 = vand.u32 2147483648, %v18764_v46  ;;  %vm3840_vm11 = vcmp.eq.f32.partialorder %v18764_v46, 0.0 }
 0xc51   : > { %v12510_v28 = vpop.eup %12509 }
 0xc52   : > { %v3809_v27 = vmul.f32 %v12510_v28, %v3781_v57  ;;  %v18791_v24 = vpop.xlane.xlu1 %3790  ;;  %v18793_v16 = vpop.xlane.xlu0 %3792 }
 0xc53   : > { %12519 = vrsqrt.f32 %v18791_v24  ;;  %vm3845_vm12 = vcmp.eq.f32.partialorder %v18791_v24, inf  ;;  %v3848_v43 = vand.u32 2147483648, %v18791_v24  ;;  %vm3847_vm13 = vcmp.eq.f32.partialorder %v18791_v24, 0.0 }
 0xc54   : > { %v3811_v51 = vsel %vm3810_vm2, %v3781_v57, %v3809_v27  ;;  %12521 = vrsqrt.f32 %v18793_v16  ;;  %vm3852_vm14 = vcmp.eq.f32.partialorder %v18793_v16, inf }
 0xc55   : > { %v12512_v44 = vpop.eup %12511  ;;  %v18806_v25 = vsel %vm3812_vm3, %v3813_v29, %v3811_v51  ;;  %v3827_v29 = vand.u32 2147483648, %v18748_v60  ;;  %v3834_v51 = vand.u32 2147483648, %v18762_v13 }
 0xc56   : > { %v12514_v50 = vpop.eup %12513  ;;  %v3816_v45 = vmul.f32 %v12512_v44, %v18746_v59  ;;  %v18812_v27 = vpop.xlane.xlu1 %3794  ;;  %v3913_v28 = vmul.f32 %v18799_v47, %v18806_v25  ;;  %v18823_v44 = vld [vmem:[#allocation31] ss:$0 sm:$0xff] }
 0xc57   : > { %v18814_v57 = vpop.xlane.xlu0 %3796  ;;  %12523 = vrsqrt.f32 %v18812_v27  ;;  %v3823_v42 = vmul.f32 %v12514_v50, %v18748_v60  ;;  %vm3859_vm15 = vcmp.eq.f32.partialorder %v18812_v27, inf }
 0xc58   : > { %v3818_v52 = vsel %vm3817_vm4, %v18746_v59, %v3816_v45  ;;  %12525 = vrsqrt.f32 %v18814_v57  ;;  %v3934_v18 = vadd.f32 %v18823_v44, %v3913_v28  ;;  %vm3866_vm2 = vcmp.eq.f32.partialorder %v18814_v57, inf }
 0xc59   : > { %v12516_v23 = vpop.eup %12515  ;;  %v18838_v45 = vsel %vm3819_vm5, %v3820_v56, %v3818_v52  ;;  %v21849_v56 = vunpack.c.h.bf16 %v18751_v61  ;;  %vm3854_vm4 = vcmp.eq.f32.partialorder %v18793_v16, 0.0  ;;  %vm3861_vm5 = vcmp.eq.f32.partialorder %v18812_v27, 0.0 }
 0xc5a   : > { %v12518_v20 = vpop.eup %12517  ;;  %v3830_v21 = vmul.f32 %v12516_v23, %v18762_v13  ;;  %v18844_v50 = vpop.xlane.xlu1 %3798  ;;  %v3914_v41 = vmul.f32 %v18799_v47, %v18838_v45  ;;  %v21848_v23 = vunpack.c.l.bf16 %v18751_v61 }
 0xc5b   : > { %v18849_v19 = vpop.xlane.xlu0 %3800  ;;  %v3837_v59 = vmul.f32 %v12518_v20, %v18764_v46  ;;  %12527 = vrsqrt.f32 %v18844_v50  ;;  %v4353_v40 = vmul.f32 %v21849_v56, %v18838_v45  ;;  %v3825_v20 = vsel %vm3824_vm6, %v18748_v60, %v3823_v42 }
 0xc5c   : > { %v4352_v52 = vmul.f32 %v21848_v23, %v18806_v25  ;;  %v3935_v28 = vadd.f32 %v18823_v44, %v3914_v41  ;;  %vm3873_vm3 = vcmp.eq.f32.partialorder %v18844_v50, inf  ;;  %12529 = vrsqrt.f32 %v18849_v19 }
 0xc5d   : > { %v12520_v39 = vpop.eup %12519  ;;  %v3832_v56 = vsel %vm3831_vm8, %v18762_v13, %v3830_v21  ;;  %v3948_v41 = vmax.f32 %v3934_v18, 0.0  ;;  %v3839_v42 = vsel %vm3838_vm10, %v18764_v46, %v3837_v59  ;;  %vm3868_vm6 = vcmp.eq.f32.partialorder %v18814_v57, 0.0 }
 0xc5e   : > { %v12522_v61 = vpop.eup %12521  ;;  %v3844_v38 = vmul.f32 %v12520_v39, %v18791_v24  ;;  %v3949_v15 = vmax.f32 %v3935_v28, 0.0  ;;  %v18874_v17 = vpop.xlane.xlu1 %3802  ;;  %v4366_v36 = vpack.c.bf16 %v4353_v40, %v4352_v52  ;;  %vm3880_vm8 = vcmp.eq.f32.partialorder %v18849_v19, inf }
 0xc5f   : > { %12531 = vrsqrt.f32 %v18874_v17  ;;  %v18889_v39 = vsel %vm3826_vm7, %v3827_v29, %v3825_v20  ;;  %v3851_v40 = vmul.f32 %v12522_v61, %v18793_v16  ;;  %vm3875_vm10 = vcmp.eq.f32.partialorder %v18844_v50, 0.0  ;;  %v18929_v46 = vpop.xlane.xlu0 %3804 }
 0xc60   : > { %v3846_v21 = vsel %vm3845_vm12, %v18791_v24, %v3844_v38  ;;  %v3979_v18 = vpack.c.bf16 %v3949_v15, %v3948_v41  ;;  %v18895_v52 = vsel %vm3833_vm9, %v3834_v51, %v3832_v56  ;;  %v21850_v38 = vunpack.c.l.bf16 %v18753_v62 }
 0xc61   : > { %v12524_v59 = vpop.eup %12523  ;;  %v3915_v15 = vmul.f32 %v18799_v47, %v18889_v39  ;;  %vm3882_vm7 = vcmp.eq.f32.partialorder %v18849_v19, 0.0  ;;  %v21851_v29 = vunpack.c.h.bf16 %v18753_v62  ;;  %v3916_v13 = vmul.f32 %v18799_v47, %v18895_v52 }
 0xc62   : > { %v4354_v28 = vmul.f32 %v21850_v38, %v18889_v39  ;;  %v12526_v41 = vpop.eup %12525  ;;  %v3858_v60 = vmul.f32 %v12524_v59, %v18812_v27  ;;  %10491 = vmatmul.mubr.bf16.vlgmr.msra.gmra.mrb[0].mxu1 %v3979_v18  ;;  %v18911_v51 = vsel %vm3840_vm11, %v3841_v22, %v3839_v42  ;;  %v18913_v61 = vpop.xlane.xlu1 %3806  ;;  %v18921_v62 = vsel %vm3847_vm13, %v3848_v43, %v3846_v21 }
 0xc63   : > { %v4355_v20 = vmul.f32 %v21851_v29, %v18895_v52  ;;  %v3865_v56 = vmul.f32 %v12526_v41, %v18814_v57  ;;  %10563 = vmatpush3.bf16.msra.mxu1 %v4366_v36  ;;  %10494 = vmatprep.mubr.msk.bf16.mxu1 %vm15364_vm1, %v21847_v58  ;;  %v3936_v18 = vadd.f32 %v18823_v44, %v3915_v15  ;;  %12533 = vrsqrt.f32 %v18913_v61 }
 0xc64   : > { %vm3887_vm9 = vcmp.eq.f32.partialorder %v18874_v17, inf  ;;  %vm3889_vm11 = vcmp.eq.f32.partialorder %v18874_v17, 0.0  ;;  %v3883_v22 = vand.u32 2147483648, %v18849_v19  ;;  %10564 = vmatprep.subr.bf16.mxu1 %v21847_v58  ;;  %v3937_v36 = vadd.f32 %v18823_v44, %v3916_v13 }
 0xc65   : > { %v12528_v42 = vpop.eup %12527  ;;  %v3853_v24 = vsel %vm3852_vm14, %v18793_v16, %v3851_v40  ;;  %v3860_v43 = vsel %vm3859_vm15, %v18812_v27, %v3858_v60  ;;  %v4367_v21 = vpack.c.bf16 %v4355_v20, %v4354_v28  ;;  %v21852_v59 = vunpack.c.h.bf16 %v18756_v63 }
 0xc66   : > { %v3872_v15 = vmul.f32 %v12528_v42, %v18844_v50  ;;  %v3950_v41 = vmax.f32 %v3936_v18, 0.0  ;;  %v3951_v29 = vmax.f32 %v3937_v36, 0.0  ;;  %v21853_v13 = vunpack.c.l.bf16 %v18756_v63  ;;  %v12530_v37 = vpop.eup %12529 }
 0xc67   : > { %v4357_v38 = vmul.f32 %v21852_v59, %v18921_v62  ;;  %v3867_v40 = vsel %vm3866_vm2, %v18814_v57, %v3865_v56  ;;  %v3890_v60 = vand.u32 2147483648, %v18874_v17  ;;  %10565 = vmatpush3.bf16.msra.mxu1 %v4367_v21  ;;  %vm3901_vm12 = vcmp.eq.f32.partialorder %v18913_v61, inf }
 0xc68   : > { %v4356_v23 = vmul.f32 %v21853_v13, %v18911_v51  ;;  %12535 = vrsqrt.f32 %v18929_v46  ;;  %v3874_v28 = vsel %vm3873_vm3, %v18844_v50, %v3872_v15  ;;  %v3879_v20 = vmul.f32 %v12530_v37, %v18849_v19  ;;  %10566 = vmatprep.subr.bf16.mxu1 %v21847_v58 }
 0xc69   : > { %v3980_v63 = vpack.c.bf16 %v3951_v29, %v3950_v41  ;;  %v12532_v36 = vpop.eup %12531  ;;  %v21854_v56 = vand.u32 2147483648, %v18793_v16  ;;  %v21855_v21 = vand.u32 2147483648, %v18812_v27  ;;  %v3917_v37 = vmul.f32 %v18799_v47, %v18911_v51 }
 0xc6a   : > { %v4368_v18 = vpack.c.bf16 %v4357_v38, %v4356_v23  ;;  %v3918_v15 = vmul.f32 %v18799_v47, %v18921_v62  ;;  %v3886_v23 = vmul.f32 %v12532_v36, %v18874_v17  ;;  %v3881_v16 = vsel %vm3880_vm8, %v18849_v19, %v3879_v20 }
 0xc6b   : > { %v18959_v42 = vsel %vm3854_vm4, %v21854_v56, %v3853_v24  ;;  %v18965_v59 = vsel %vm3861_vm5, %v21855_v21, %v3860_v43  ;;  %10495 = vmatmul.mubr.bf16.gmra.mrb[4].mxu1 %v3980_v63  ;;  %v21856_v24 = vunpack.c.l.bf16 %v18760_v7  ;;  %v21857_v27 = vunpack.c.h.bf16 %v18760_v7 }
 0xc6c   : > { %10567 = vmatpush3.bf16.msra.mxu1 %v4368_v18  ;;  %vm3903_vm13 = vcmp.eq.f32.partialorder %v18913_v61, 0.0  ;;  %10498 = vmatprep.mubr.msk.bf16.mxu1 %vm15364_vm1, %v21847_v58  ;;  %v3938_v41 = vadd.f32 %v18823_v44, %v3917_v37  ;;  %v3939_v29 = vadd.f32 %v18823_v44, %v3918_v15  ;;  %v21858_v13 = vand.u32 2147483648, %v18814_v57 }
 0xc6d   : > { %v4358_v38 = vmul.f32 %v21856_v24, %v18959_v42  ;;  %v4359_v43 = vmul.f32 %v21857_v27, %v18965_v59  ;;  %v3888_v7 = vsel %vm3887_vm9, %v18874_v17, %v3886_v23  ;;  %v3904_v63 = vand.u32 2147483648, %v18913_v61  ;;  %10568 = vmatprep.subr.bf16.mxu1 %v21847_v58  ;;  %v12534_v21 = vpop.eup %12533 }
 0xc6e   : > { %v18990_v20 = vsel %vm3868_vm6, %v21858_v13, %v3867_v40  ;;  %v21859_v36 = vand.u32 2147483648, %v18844_v50  ;;  %v3953_v37 = vmax.f32 %v3939_v29, 0.0  ;;  %v21860_v57 = vunpack.c.l.bf16 %v18769_v54 }
 0xc6f   : > { %v4369_v18 = vpack.c.bf16 %v4359_v43, %v4358_v38  ;;  %v21861_v15 = vunpack.c.h.bf16 %v18769_v54  ;;  %v19011_v24 = vsel %vm3882_vm7, %v3883_v22, %v3881_v16  ;;  %v19013_v38 = vld [vmem:[#allocation48 + $0x18] sm:$0xff]   ;;  %v3900_v50 = vmul.f32 %v12534_v21, %v18913_v61 }
 0xc70   : > { %v19001_v56 = vsel %vm3875_vm10, %v21859_v36, %v3874_v28  ;;  %v4360_v40 = vmul.f32 %v21860_v57, %v18990_v20  ;;  %v3952_v28 = vmax.f32 %v3938_v41, 0.0  ;;  %v19018_v27 = vsel %vm3889_vm11, %v3890_v60, %v3888_v7  ;;  %v10076_v7 = vld [vmem:[#allocation48 + $0x20] sm:$0xff]  }
 0xc71   : > { %v4361_v23 = vmul.f32 %v21861_v15, %v19001_v56  ;;  %v3919_v43 = vmul.f32 %v18799_v47, %v18959_v42  ;;  %10569 = vmatpush3.bf16.msra.mxu1 %v4369_v18  ;;  %v21862_v54 = vunpack.c.l.bf16 %v18776_v30  ;;  %v21863_v19 = vunpack.c.h.bf16 %v18776_v30 }
 0xc72   : > { %v3920_v16 = vmul.f32 %v18799_v47, %v18965_v59  ;;  %v10050_v41 = vunpack.c.h.bf16 %v18783_v31  ;;  %v3902_v17 = vsel %vm3901_vm12, %v18913_v61, %v3900_v50  ;;  %vm3894_vm14 = vcmp.eq.f32.partialorder %v18929_v46, inf  ;;  %10570 = vmatprep.subr.bf16.mxu1 %v21847_v58  ;;  %v12536_v18 = vpop.eup %12535 }
 0xc73   : > { %v4362_v29 = vmul.f32 %v21862_v54, %v19011_v24  ;;  %v4363_v22 = vmul.f32 %v21863_v19, %v19018_v27  ;;  %v3981_v60 = vpack.c.bf16 %v3953_v37, %v3952_v28  ;;  %v10053_v13 = vunpack.c.l.bf16 %v19013_v38  ;;  %v10077_v28 = vld [vmem:[#allocation48 + $0x28] sm:$0xff]  }
 0xc74   : > { %v19039_v30 = vsel %vm3903_vm13, %v3904_v63, %v3902_v17  ;;  %v3897_v36 = vand.u32 2147483648, %v18929_v46  ;;  %v4370_v21 = vpack.c.bf16 %v4361_v23, %v4360_v40  ;;  %v3941_v57 = vadd.f32 %v18823_v44, %v3920_v16  ;;  %v10078_v23 = vld [vmem:[#allocation48 + $0x30] sm:$0xff]  }
 0xc75   : > { %v3893_v15 = vmul.f32 %v12536_v18, %v18929_v46  ;;  %vm3896_vm15 = vcmp.eq.f32.partialorder %v18929_v46, 0.0  ;;  %10499 = vmatmul.mubr.bf16.gmra.mrb[8].mxu1 %v3981_v60  ;;  %v3940_v37 = vadd.f32 %v18823_v44, %v3919_v43  ;;  %v10054_v50 = vunpack.c.h.bf16 %v19013_v38 }
 0xc76   : > { %10571 = vmatpush3.bf16.msra.mxu1 %v4370_v21  ;;  %v4371_v54 = vpack.c.bf16 %v4363_v22, %v4362_v29  ;;  %10502 = vmatprep.mubr.msk.bf16.mxu1 %vm15364_vm1, %v21847_v58  ;;  %v3921_v61 = vmul.f32 %v18799_v47, %v18990_v20  ;;  %v3922_v63 = vmul.f32 %v18799_v47, %v19001_v56  ;;  %v10057_v40 = vunpack.c.l.bf16 %v10076_v7 }
 0xc77   : > { %v3895_v43 = vsel %vm3894_vm14, %v18929_v46, %v3893_v15  ;;  %10572 = vmatprep.subr.bf16.mxu1 %v21847_v58  ;;  %v3955_v38 = vmax.f32 %v3941_v57, 0.0  ;;  %v21864_v29 = vunpack.c.h.bf16 %v18788_v26  ;;  %v21865_v22 = vunpack.c.h.bf16 %v18758_v10 }
 0xc78   : > { %v3898_v17 = vsel %vm3896_vm15, %v3897_v36, %v3895_v43  ;;  %v21866_v60 = vunpack.c.l.bf16 %v18758_v10  ;;  %v10058_v21 = vunpack.c.h.bf16 %v10076_v7  ;;  %v10061_v15 = vunpack.c.l.bf16 %v10077_v28 }
 0xc79   : > { %v4365_v19 = vmul.f32 %v21864_v29, %v19039_v30  ;;  %v19063_v16 = vmul.f32 %v21865_v22, %v18838_v45  ;;  %v3954_v57 = vmax.f32 %v3940_v37, 0.0  ;;  %v4364_v14 = vmul.f32 %v21867_v12, %v3898_v17 }
 0xc7a   : > { %v19070_v18 = vmul.f32 %v21866_v60, %v18806_v25  ;;  %v10062_v29 = vunpack.c.h.bf16 %v10077_v28  ;;  %v10065_v34 = vunpack.c.l.bf16 %v10078_v23  ;;  %10573 = vmatpush3.bf16.msra.mxu1 %v4371_v54  ;;  %v3942_v45 = vadd.f32 %v18823_v44, %v3921_v61 }
 0xc7b   : > { %v3943_v22 = vadd.f32 %v18823_v44, %v3922_v63  ;;  %v10066_v36 = vunpack.c.h.bf16 %v10078_v23  ;;  %v3982_v10 = vpack.c.bf16 %v3955_v38, %v3954_v57  ;;  %10574 = vmatprep.subr.bf16.mxu1 %v21847_v58  ;;  %v4372_v25 = vpack.c.bf16 %v4365_v19, %v4364_v14 }
 0xc7c   : > { %v4704_v46 = vpack.c.bf16 %v19063_v16, %v19070_v18  ;;  %v21868_v7 = vunpack.c.l.bf16 %v18771_v55  ;;  %v21869_v12 = vunpack.c.h.bf16 %v18771_v55  ;;  %v3923_v28 = vmul.f32 %v18799_v47, %v19011_v24  ;;  %v12485_v16 = vld [vmem:[#allocation55] sm:$0xff]   ;;  %v12486_v18 = vld [vmem:[#allocation55 + $0x8] sm:$0xff]  }
 0xc7d   : > { %v3924_v54 = vmul.f32 %v18799_v47, %v19018_v27  ;;  %v21870_v61 = vunpack.c.l.bf16 %v18783_v31  ;;  %v19099_v63 = vmul.f32 %v10050_v41, %v18921_v62  ;;  %10503 = vmatmul.mubr.bf16.gmra.mrb[12].mxu1 %v3982_v10  ;;  %v19110_v23 = vmul.f32 %v10057_v40, %v18990_v20 }
 0xc7e   : > { %v19082_v26 = vmul.f32 %v21868_v7, %v18889_v39  ;;  %v19087_v37 = vmul.f32 %v21869_v12, %v18895_v52  ;;  %v19104_v39 = vmul.f32 %v10053_v13, %v18959_v42  ;;  %v19107_v52 = vmul.f32 %v10054_v50, %v18965_v59  ;;  %10575 = vmatpush3.bf16.msra.mxu1 %v4372_v25 }
 0xc7f   : > { %v19096_v14 = vmul.f32 %v21870_v61, %v18911_v51  ;;  %10506 = vmatprep.mubr.msk.bf16.mxu1 %vm15364_vm1, %v21847_v58  ;;  %v3956_v31 = vmax.f32 %v3942_v45, 0.0  ;;  %v19117_v62 = vmul.f32 %v10058_v21, %v19001_v56  ;;  %v19120_v42 = vmul.f32 %v10061_v15, %v19011_v24  ;;  %10600 = vmatprep.subr.bf16.mxu1 %v21847_v58  ;;  %v12477_v61 = vld [vmem:[#allocation52] sm:$0xff]  }
 0xc80   : > { %v4705_v55 = vpack.c.bf16 %v19087_v37, %v19082_v26  ;;  %v3957_v41 = vmax.f32 %v3943_v22, 0.0  ;;  %v4707_v59 = vpack.c.bf16 %v19107_v52, %v19104_v39  ;;  %v19125_v20 = vmul.f32 %v10062_v29, %v19018_v27  ;;  %v12488_v26 = vld [vmem:[#allocation55 + $0x18] sm:$0xff]   ;;  %v12489_v37 = vld [vmem:[#allocation55 + $0x20] sm:$0xff]   ;;  %v12494_v52 = vld [vmem:[#allocation43 + $0x8] sm:$0xff]  }
 0xc81   : > { %v4706_v51 = vpack.c.bf16 %v19099_v63, %v19096_v14  ;;  %v19127_v13 = vmul.f32 %v10065_v34, %v3898_v17  ;;  %v4708_v50 = vpack.c.bf16 %v19117_v62, %v19110_v23  ;;  %v19133_v56 = vmul.f32 %v10066_v36, %v19039_v30  ;;  %v12490_v14 = vld [vmem:[#allocation55 + $0x28] sm:$0xff]   ;;  %v12491_v63 = vld [vmem:[#allocation55 + $0x30] sm:$0xff]   ;;  %v12493_v39 = vld [vmem:[#allocation55 + $0x38] sm:$0xff]  }
 0xc82   : > { %v4709_v24 = vpack.c.bf16 %v19125_v20, %v19120_v42  ;;  %v3983_v43 = vpack.c.bf16 %v3957_v41, %v3956_v31  ;;  %v3944_v27 = vadd.f32 %v18823_v44, %v3923_v28  ;;  %v3945_v34 = vadd.f32 %v18823_v44, %v3924_v54  ;;  %v12495_v23 = vld [vmem:[#allocation43 + $0x10] sm:$0xff]   ;;  %v12497_v62 = vld [vmem:[#allocation43 + $0x20] sm:$0xff]   ;;  %v12498_v42 = vld [vmem:[#allocation43 + $0x28] sm:$0xff]  }
 0xc83   : > { %v4710_v40 = vpack.c.bf16 %v19133_v56, %v19127_v13  ;;  %v3925_v60 = vmul.f32 %v18799_v47, %v3898_v17  ;;  %v3926_v21 = vmul.f32 %v18799_v47, %v19039_v30  ;;  %v19154_v17 = vcombine.low %v18680_v48, %v18682_v49  ;;  %v12475_v47 = vld [vmem:[#allocation37 + $0x30] sm:$0xff]   ;;  %v19162_v30 = vld [vmem:[#allocation33] ss:$0 sm:$0xff]  ;;  %v12500_v20 = vld [vmem:[#allocation43 + $0x38] sm:$0xff]  }
 0xc84   : > { %v3958_v38 = vmax.f32 %v3944_v27, 0.0  ;;  %v3959_v19 = vmax.f32 %v3945_v34, 0.0  ;;  %vm4385_vm2 = vcmask 916480   ;;  %10531 = vmatpush3.bf16.msra.mxu0 %v12475_v47  ;;  %v9697_v13 = vld [vmem:[#allocation36] ss:$0 sm:$0xff] }
 0xc85   : > { %10507 = vmatmul.mubr.bf16.gmra.mrb[16].mxu1 %v3983_v43  ;;  %v3946_v57 = vadd.f32 %v18823_v44, %v3925_v60  ;;  %v3947_v29 = vadd.f32 %v18823_v44, %v3926_v21  ;;  %10532 = vmatprep.subr.bf16.mxu0 %v21847_v58  ;;  %v12476_v44 = vld [vmem:[#allocation37 + $0x38] sm:$0xff]  }
 0xc86   : > { %10510 = vmatprep.mubr.msk.bf16.mxu1 %vm15364_vm1, %v21847_v58  ;;  %v3984_v15 = vpack.c.bf16 %v3959_v19, %v3958_v38  ;;  %v12478_v38 = vld [vmem:[#allocation52 + $0x8] sm:$0xff]  }
 0xc87   : > { %v3960_v45 = vmax.f32 %v3946_v57, 0.0  ;;  %v3961_v22 = vmax.f32 %v3947_v29, 0.0  ;;  %v12479_v57 = vld [vmem:[#allocation52 + $0x10] sm:$0xff]  }
 0xc88   : > { %10533 = vmatpush3.bf16.msra.mxu0 %v12476_v44  ;;  %v12480_v44 = vld [vmem:[#allocation52 + $0x18] sm:$0xff]  }
 0xc89   : > { %v3985_v36 = vpack.c.bf16 %v3961_v22, %v3960_v45  ;;  %10580 = vmatprep.subr.bf16.mxu0 %v21847_v58 }
 0xc8d   : > { %10511 = vmatmul.mubr.bf16.gmra.mrb[20].mxu1 %v3984_v15 }
 0xc8e   : > { %10514 = vmatprep.mubr.msk.bf16.mxu1 %vm15364_vm1, %v21847_v58 }
 0xc95   : > { %10515 = vmatmul.mubr.bf16.gmra.mrb[24].mxu1 %v3985_v36 }
 0xc96   : > { %10576 = vmatprep.mubr.msk.bf16.mxu1 %vm15364_vm1, %v21847_v58 }
 0xc9d   : > { %10577 = vmatmul.mubr.msk.bf16.vlgmr.msra.gmra.mrb[28].mxu1 %vm4385_vm2, %v19154_v17 }
 0xc9e   : > { %10616 = vmatprep.mubr.msk.bf16.mxu1 %vm15364_vm1, %v21847_v58  ;;  %10601 = vmatpush3.bf16.msra.mxu1 %v12485_v16 }
 0xc9f   : > { %10602 = vmatprep.subr.bf16.mxu1 %v21847_v58 }
 0xca2   : > { %10603 = vmatpush3.bf16.msra.mxu1 %v12486_v18 }
 0xca3   : > { %10604 = vmatprep.subr.bf16.mxu1 %v21847_v58 }
 0xd35   : > { %v4074_v10 = vpop.f32.mrb[0].mxu1 }
 0xd36   : > { %v4075_v48 = vadd.f32 %v19162_v30, %v4074_v10  ;;  %v10492_v49 = vpop.f32.mrb[1].mxu1 }
 0xd37   : > { %v4077_v25 = vpop.f32.mrb[2].mxu1 }
 0xd38   : > { %v4078_v7 = vadd.f32 %v19162_v30, %v4077_v25  ;;  %v10493_v12 = vpop.f32.mrb[3].mxu1  ;;  %v4129_v28 = vmax.f32 %v4075_v48, 0.0 }
 0xd3a   : > { %v4130_v54 = vmax.f32 %v4078_v7, 0.0  ;;  %v12481_v7 = vld [vmem:[#allocation52 + $0x20] sm:$0xff]  }
 0xd3c   : > { %v4160_v31 = vpack.c.bf16 %v4130_v54, %v4129_v28 }
 0xd3e   : > { %v4082_v41 = vpop.f32.mrb[4].mxu1  ;;  %10535 = vmatmul.mubr.bf16.vlgmr.msra.gmra.mrb[16].mxu0 %v4160_v31 }
 0xd3f   : > { %v4083_v43 = vadd.f32 %v19162_v30, %v4082_v41  ;;  %v10496_v27 = vpop.f32.mrb[5].mxu1  ;;  %10581 = vmatpush3.bf16.msra.mxu0 %v12477_v61  ;;  %10538 = vmatprep.mubr.msk.bf16.mxu0 %vm15364_vm1, %v21847_v58  ;;  %v12482_v41 = vld [vmem:[#allocation52 + $0x28] sm:$0xff]  }
 0xd40   : > { %v4085_v34 = vpop.f32.mrb[6].mxu1  ;;  %10582 = vmatprep.subr.bf16.mxu0 %v21847_v58 }
 0xd41   : > { %v4086_v19 = vadd.f32 %v19162_v30, %v4085_v34  ;;  %v10497_v60 = vpop.f32.mrb[7].mxu1  ;;  %v4131_v21 = vmax.f32 %v4083_v43, 0.0 }
 0xd43   : > { %v4132_v15 = vmax.f32 %v4086_v19, 0.0  ;;  %10583 = vmatpush3.bf16.msra.mxu0 %v12478_v38  ;;  %v12483_v19 = vld [vmem:[#allocation52 + $0x30] sm:$0xff]  }
 0xd44   : > { %10584 = vmatprep.subr.bf16.mxu0 %v21847_v58 }
 0xd45   : > { %v4161_v29 = vpack.c.bf16 %v4132_v15, %v4131_v21 }
 0xd47   : > { %10539 = vmatmul.mubr.bf16.gmra.mrb[20].mxu0 %v4161_v29 }
 0xd48   : > { %v4090_v45 = vpop.f32.mrb[8].mxu1  ;;  %10585 = vmatpush3.bf16.msra.mxu0 %v12479_v57  ;;  %10542 = vmatprep.mubr.msk.bf16.mxu0 %vm15364_vm1, %v21847_v58 }
 0xd49   : > { %v4091_v22 = vadd.f32 %v19162_v30, %v4090_v45  ;;  %v10500_v36 = vpop.f32.mrb[9].mxu1  ;;  %10586 = vmatprep.subr.bf16.mxu0 %v21847_v58  ;;  %v12484_v45 = vld [vmem:[#allocation52 + $0x38] sm:$0xff]  }
 0xd4a   : > { %v4093_v47 = vpop.f32.mrb[10].mxu1 }
 0xd4b   : > { %v4094_v10 = vadd.f32 %v19162_v30, %v4093_v47  ;;  %v10501_v48 = vpop.f32.mrb[11].mxu1  ;;  %v4133_v49 = vmax.f32 %v4091_v22, 0.0 }
 0xd4c   : > { %10587 = vmatpush3.bf16.msra.mxu0 %v12480_v44 }
 0xd4d   : > { %v4134_v25 = vmax.f32 %v4094_v10, 0.0  ;;  %10588 = vmatprep.subr.bf16.mxu0 %v21847_v58 }
 0xd4f   : > { %v4162_v12 = vpack.c.bf16 %v4134_v25, %v4133_v49 }
 0xd50   : > { %v4098_v28 = vpop.f32.mrb[12].mxu1  ;;  %10589 = vmatpush3.bf16.msra.mxu0 %v12481_v7 }
 0xd51   : > { %v4099_v54 = vadd.f32 %v19162_v30, %v4098_v28  ;;  %v10504_v61 = vpop.f32.mrb[13].mxu1  ;;  %10543 = vmatmul.mubr.bf16.gmra.mrb[24].mxu0 %v4162_v12  ;;  %10590 = vmatprep.subr.bf16.mxu0 %v21847_v58 }
 0xd52   : > { %v4101_v31 = vpop.f32.mrb[14].mxu1  ;;  %10546 = vmatprep.mubr.msk.bf16.mxu0 %vm15364_vm1, %v21847_v58 }
 0xd53   : > { %v4102_v43 = vadd.f32 %v19162_v30, %v4101_v31  ;;  %v10505_v27 = vpop.f32.mrb[15].mxu1  ;;  %v4135_v34 = vmax.f32 %v4099_v54, 0.0 }
 0xd54   : > { %10591 = vmatpush3.bf16.msra.mxu0 %v12482_v41 }
 0xd55   : > { %v4136_v38 = vmax.f32 %v4102_v43, 0.0  ;;  %10592 = vmatprep.subr.bf16.mxu0 %v21847_v58 }
 0xd57   : > { %v4163_v60 = vpack.c.bf16 %v4136_v38, %v4135_v34 }
 0xd58   : > { %v4106_v21 = vpop.f32.mrb[16].mxu1  ;;  %10593 = vmatpush3.bf16.msra.mxu0 %v12483_v19 }
 0xd59   : > { %v4107_v15 = vadd.f32 %v19162_v30, %v4106_v21  ;;  %v10508_v57 = vpop.f32.mrb[17].mxu1  ;;  %10547 = vmatmul.mubr.bf16.gmra.mrb[28].mxu0 %v4163_v60  ;;  %10594 = vmatprep.subr.bf16.mxu0 %v21847_v58 }
 0xd5a   : > { %v4109_v29 = vpop.f32.mrb[18].mxu1  ;;  %10550 = vmatprep.mubr.msk.bf16.mxu0 %vm15364_vm1, %v21847_v58 }
 0xd5b   : > { %v4110_v22 = vadd.f32 %v19162_v30, %v4109_v29  ;;  %v10509_v36 = vpop.f32.mrb[19].mxu1  ;;  %v4137_v47 = vmax.f32 %v4107_v15, 0.0  ;;  %v9706_v15 = vld [vmem:[#allocation49] ss:$0 sm:$0xff] }
 0xd5c   : > { %10595 = vmatpush3.bf16.msra.mxu0 %v12484_v45 }
 0xd5d   : > { %v4138_v44 = vmax.f32 %v4110_v22, 0.0  ;;  %10620 = vmatprep.subr.bf16.mxu0 %v21847_v58 }
 0xd5f   : > { %v4164_v10 = vpack.c.bf16 %v4138_v44, %v4137_v47 }
 0xd60   : > { %v4114_v48 = vpop.f32.mrb[20].mxu1 }
 0xd61   : > { %v4115_v49 = vadd.f32 %v19162_v30, %v4114_v48  ;;  %v10512_v25 = vpop.f32.mrb[21].mxu1  ;;  %10551 = vmatmul.mubr.bf16.gmra.mrb[32].mxu0 %v4164_v10 }
 0xd62   : > { %v4117_v7 = vpop.f32.mrb[22].mxu1  ;;  %10554 = vmatprep.mubr.msk.bf16.mxu0 %vm15364_vm1, %v21847_v58 }
 0xd63   : > { %v4118_v12 = vadd.f32 %v19162_v30, %v4117_v7  ;;  %v10513_v28 = vpop.f32.mrb[23].mxu1  ;;  %v4139_v54 = vmax.f32 %v4115_v49, 0.0 }
 0xd65   : > { %v4140_v61 = vmax.f32 %v4118_v12, 0.0 }
 0xd67   : > { %v4165_v31 = vpack.c.bf16 %v4140_v61, %v4139_v54 }
 0xd68   : > { %v4122_v41 = vpop.f32.mrb[24].mxu1 }
 0xd69   : > { %v4123_v43 = vadd.f32 %v19162_v30, %v4122_v41  ;;  %v10516_v27 = vpop.f32.mrb[25].mxu1  ;;  %10555 = vmatmul.mubr.bf16.gmra.mrb[36].mxu0 %v4165_v31 }
 0xd6a   : > { %v4125_v34 = vpop.f32.mrb[26].mxu1  ;;  %10558 = vmatprep.mubr.msk.bf16.mxu0 %vm15364_vm1, %v21847_v58 }
 0xd6b   : > { %v4126_v38 = vadd.f32 %v19162_v30, %v4125_v34  ;;  %v10517_v19 = vpop.f32.mrb[27].mxu1  ;;  %v4141_v60 = vmax.f32 %v4123_v43, 0.0 }
 0xd6d   : > { %v4142_v21 = vmax.f32 %v4126_v38, 0.0 }
 0xd6f   : > { %v4166_v57 = vpack.c.bf16 %v4142_v21, %v4141_v60 }
 0xd70   : > { %v4423_v29 = vpop.f32.mrb[28].mxu1 }
 0xd71   : > { %v4424_v45 = vadd.f32 %v9706_v15, %v4423_v29  ;;  %10559 = vmatmul.mubr.bf16.gmra.mrb[40].mxu0 %v4166_v57  ;;  %v10578_v22 = vpop.f32.mrb[29].mxu1 }
 0xd72   : > { %v4426_v36 = vpop.f32.mrb[30].mxu1  ;;  %10596 = vmatprep.mubr.msk.bf16.mxu0 %vm15364_vm1, %v21847_v58 }
 0xd73   : > { %v4427_v47 = vadd.f32 %v9706_v15, %v4426_v36  ;;  %v10579_v44 = vpop.f32.mrb[31].mxu1  ;;  %v4430_v10 = vmax.f32 %v4424_v45, 0.0 }
 0xd75   : > { %v4431_v48 = vmax.f32 %v4427_v47, 0.0 }
 0xd77   : > { %v4449_v49 = vpack.c.bf16 %v4431_v48, %v4430_v10 }
 0xd79   : > { %10597 = vmatmul.mubr.bf16.vlgmr.msra.gmra.mrb[44].mxu0 %v4449_v49 }
 0xd7a   : > { %10621 = vmatpush3.bf16.msra.mxu0 %v4704_v46  ;;  %10634 = vmatprep.mubr.msk.bf16.mxu0 %vm15364_vm1, %v21847_v58  ;;  %v12487_v46 = vld [vmem:[#allocation55 + $0x10] sm:$0xff]  }
 0xd7b   : > { %10622 = vmatprep.subr.bf16.mxu0 %v21847_v58  ;;  %10605 = vmatpush3.bf16.msra.mxu1 %v12487_v46 }
 0xd7c   : > { %10606 = vmatprep.subr.bf16.mxu1 %v21847_v58 }
 0xd7e   : > { %10623 = vmatpush3.bf16.msra.mxu0 %v4705_v55  ;;  %v12492_v55 = vld [vmem:[#allocation43] sm:$0xff]  }
 0xd7f   : > { %10624 = vmatprep.subr.bf16.mxu0 %v21847_v58  ;;  %10607 = vmatpush3.bf16.msra.mxu1 %v12488_v26 }
 0xd80   : > { %10608 = vmatprep.subr.bf16.mxu1 %v21847_v58 }
 0xd82   : > { %10625 = vmatpush3.bf16.msra.mxu0 %v4706_v51  ;;  %v12496_v51 = vld [vmem:[#allocation43 + $0x18] sm:$0xff]  }
 0xd83   : > { %10626 = vmatprep.subr.bf16.mxu0 %v21847_v58  ;;  %10609 = vmatpush3.bf16.msra.mxu1 %v12489_v37 }
 0xd84   : > { %10610 = vmatprep.subr.bf16.mxu1 %v21847_v58 }
 0xd86   : > { %10627 = vmatpush3.bf16.msra.mxu0 %v4707_v59  ;;  %v12499_v59 = vld [vmem:[#allocation43 + $0x30] sm:$0xff]  }
 0xd87   : > { %10628 = vmatprep.subr.bf16.mxu0 %v21847_v58  ;;  %10611 = vmatpush3.bf16.msra.mxu1 %v12490_v14 }
 0xd88   : > { %10612 = vmatprep.subr.bf16.mxu1 %v21847_v58 }
 0xd8a   : > { %10629 = vmatpush3.bf16.msra.mxu0 %v4708_v50 }
 0xd8b   : > { %10630 = vmatprep.subr.bf16.mxu0 %v21847_v58  ;;  %10613 = vmatpush3.bf16.msra.mxu1 %v12491_v63 }
 0xd8c   : > { %10614 = vmatprep.subr.bf16.mxu1 %v21847_v58 }
 0xd8e   : > { %10631 = vmatpush3.bf16.msra.mxu0 %v4709_v24 }
 0xd8f   : > { %10632 = vmatprep.subr.bf16.mxu0 %v21847_v58  ;;  %10615 = vmatpush3.bf16.msra.mxu1 %v12493_v39 }
 0xd90   : > { %10658 = vmatprep.subr.bf16.mxu1 %v21847_v58 }
 0xd92   : > { %10633 = vmatpush3.bf16.msra.mxu0 %v4710_v40 }
 0xd93   : > { %10638 = vmatprep.subr.bf16.mxu0 %v21847_v58 }
 0xd95   : > { %10635 = vmatmul.mubr.msk.bf16.vlgmr.msra.gmra.mrb[48].mxu0 %vm4385_vm2, %v18692_v53 }
 0xd96   : > { %10654 = vmatprep.mubr.msk.bf16.mxu0 %vm15364_vm1, %v21847_v58  ;;  %10639 = vmatpush3.bf16.msra.mxu0 %v12492_v55 }
 0xd97   : > { %10640 = vmatprep.subr.bf16.mxu0 %v21847_v58 }
 0xd9a   : > { %10641 = vmatpush3.bf16.msra.mxu0 %v12494_v52 }
 0xd9b   : > { %10642 = vmatprep.subr.bf16.mxu0 %v21847_v58 }
 0xd9e   : > { %10643 = vmatpush3.bf16.msra.mxu0 %v12495_v23 }
 0xd9f   : > { %10644 = vmatprep.subr.bf16.mxu0 %v21847_v58 }
 0xda2   : > { %10645 = vmatpush3.bf16.msra.mxu0 %v12496_v51 }
 0xda3   : > { %10646 = vmatprep.subr.bf16.mxu0 %v21847_v58 }
 0xda6   : > { %10647 = vmatpush3.bf16.msra.mxu0 %v12497_v62 }
 0xda7   : > { %10648 = vmatprep.subr.bf16.mxu0 %v21847_v58 }
 0xdaa   : > { %10649 = vmatpush3.bf16.msra.mxu0 %v12498_v42 }
 0xdab   : > { %10650 = vmatprep.subr.bf16.mxu0 %v21847_v58 }
 0xdae   : > { %10651 = vmatpush3.bf16.msra.mxu0 %v12499_v59 }
 0xdaf   : > { %10652 = vmatprep.subr.bf16.mxu0 %v21847_v58 }
 0xdb2   : > { %10653 = vmatpush3.bf16.msra.mxu0 %v12500_v20 }
 0xe11   : > { %v4255_v50 = vpop.f32.mrb[16].mxu0 }
 0xe12   : > { %v19249_v56 = vadd.f32 %v9697_v13, %v4255_v50  ;;  %v10536_v24 = vpop.f32.mrb[17].mxu0 }
 0xe13   : > { %v4258_v40 = vpop.f32.mrb[18].mxu0 }
 0xe14   : > { %v4310_v30 = vmax.f32 %v19249_v56, 0.0  ;;  %v19252_v25 = vadd.f32 %v9697_v13, %v4258_v40  ;;  %v10537_v7 = vpop.f32.mrb[19].mxu0 }
 0xe16   : > { %v4311_v12 = vmax.f32 %v19252_v25, 0.0  ;;  %4993 = vst [vmem:[#allocation3] sm:$0xff] (!%p9617_p11), %v4310_v30 }
 0xe18   : > { %4994 = vst [vmem:[#allocation3 + $0x8] sm:$0xff] (!%p9617_p11), %v4311_v12 }
 0xe1a   : > { %v4263_v28 = vpop.f32.mrb[20].mxu0 }
 0xe1b   : > { %v19255_v54 = vadd.f32 %v9697_v13, %v4263_v28  ;;  %v10540_v61 = vpop.f32.mrb[21].mxu0 }
 0xe1c   : > { %v4266_v31 = vpop.f32.mrb[22].mxu0 }
 0xe1d   : > { %v4312_v41 = vmax.f32 %v19255_v54, 0.0  ;;  %v19258_v43 = vadd.f32 %v9697_v13, %v4266_v31  ;;  %v10541_v27 = vpop.f32.mrb[23].mxu0 }
 0xe1f   : > { %v4313_v34 = vmax.f32 %v19258_v43, 0.0  ;;  %4995 = vst [vmem:[#allocation3 + $0x10] sm:$0xff] (!%p9617_p11), %v4312_v41 }
 0xe21   : > { %4996 = vst [vmem:[#allocation3 + $0x18] sm:$0xff] (!%p9617_p11), %v4313_v34 }
 0xe24   : > { %v4271_v38 = vpop.f32.mrb[24].mxu0 }
 0xe25   : > { %v19261_v19 = vadd.f32 %v9697_v13, %v4271_v38  ;;  %v10544_v60 = vpop.f32.mrb[25].mxu0 }
 0xe26   : > { %v4274_v21 = vpop.f32.mrb[26].mxu0  ;;  %v9709_v60 = vld [vmem:[#allocation51] ss:$0 sm:$0xff] }
 0xe27   : > { %v4314_v15 = vmax.f32 %v19261_v19, 0.0  ;;  %v19264_v57 = vadd.f32 %v9697_v13, %v4274_v21  ;;  %v10545_v29 = vpop.f32.mrb[27].mxu0 }
 0xe29   : > { %v4315_v45 = vmax.f32 %v19264_v57, 0.0  ;;  %4997 = vst [vmem:[#allocation3 + $0x20] sm:$0xff] (!%p9617_p11), %v4314_v15 }
 0xe2b   : > { %4998 = vst [vmem:[#allocation3 + $0x28] sm:$0xff] (!%p9617_p11), %v4315_v45 }
 0xe2c   : > { %v4279_v22 = vpop.f32.mrb[28].mxu0 }
 0xe2d   : > { %v19267_v36 = vadd.f32 %v9697_v13, %v4279_v22  ;;  %v10548_v47 = vpop.f32.mrb[29].mxu0 }
 0xe2e   : > { %v4282_v44 = vpop.f32.mrb[30].mxu0 }
 0xe2f   : > { %v4316_v10 = vmax.f32 %v19267_v36, 0.0  ;;  %v19270_v48 = vadd.f32 %v9697_v13, %v4282_v44  ;;  %v10549_v49 = vpop.f32.mrb[31].mxu0 }
 0xe31   : > { %v4317_v16 = vmax.f32 %v19270_v48, 0.0  ;;  %4999 = vst [vmem:[#allocation3 + $0x30] sm:$0xff] (!%p9617_p11), %v4316_v10 }
 0xe33   : > { %5000 = vst [vmem:[#allocation3 + $0x38] sm:$0xff] (!%p9617_p11), %v4317_v16 }
 0xe34   : > { %v4287_v18 = vpop.f32.mrb[32].mxu0 }
 0xe35   : > { %v19273_v46 = vadd.f32 %v9697_v13, %v4287_v18  ;;  %v10552_v26 = vpop.f32.mrb[33].mxu0 }
 0xe36   : > { %v4290_v37 = vpop.f32.mrb[34].mxu0 }
 0xe37   : > { %v4318_v14 = vmax.f32 %v19273_v46, 0.0  ;;  %v19276_v63 = vadd.f32 %v9697_v13, %v4290_v37  ;;  %v10553_v55 = vpop.f32.mrb[35].mxu0 }
 0xe38   : > { %v9727_v55 = vld [vmem:[#allocation40] ss:$0 sm:$0xff] }
 0xe39   : > { %v4319_v39 = vmax.f32 %v19276_v63, 0.0  ;;  %5001 = vst [vmem:[#allocation3 + $0x40] sm:$0xff] (!%p9617_p11), %v4318_v14 }
 0xe3b   : > { %5002 = vst [vmem:[#allocation3 + $0x48] sm:$0xff] (!%p9617_p11), %v4319_v39 }
 0xe3c   : > { %v4295_v52 = vpop.f32.mrb[36].mxu0 }
 0xe3d   : > { %v19279_v23 = vadd.f32 %v9697_v13, %v4295_v52  ;;  %v10556_v51 = vpop.f32.mrb[37].mxu0 }
 0xe3e   : > { %v4298_v62 = vpop.f32.mrb[38].mxu0 }
 0xe3f   : > { %v4320_v42 = vmax.f32 %v19279_v23, 0.0  ;;  %v19282_v59 = vadd.f32 %v9697_v13, %v4298_v62  ;;  %v10557_v20 = vpop.f32.mrb[39].mxu0 }
 0xe41   : > { %v4321_v50 = vmax.f32 %v19282_v59, 0.0  ;;  %5003 = vst [vmem:[#allocation3 + $0x50] sm:$0xff] (!%p9617_p11), %v4320_v42 }
 0xe43   : > { %5004 = vst [vmem:[#allocation3 + $0x58] sm:$0xff] (!%p9617_p11), %v4321_v50 }
 0xe44   : > { %v4303_v24 = vpop.f32.mrb[40].mxu0 }
 0xe45   : > { %v19285_v40 = vadd.f32 %v9697_v13, %v4303_v24  ;;  %v10560_v7 = vpop.f32.mrb[41].mxu0 }
 0xe46   : > { %v4306_v28 = vpop.f32.mrb[42].mxu0 }
 0xe47   : > { %v4322_v61 = vmax.f32 %v19285_v40, 0.0  ;;  %v19288_v31 = vadd.f32 %v9697_v13, %v4306_v28  ;;  %v10561_v27 = vpop.f32.mrb[43].mxu0  ;;  %v12501_v28 = vld [vmem:[#allocation46] sm:$0xff]  }
 0xe48   : > { %v12502_v27 = vld [vmem:[#allocation46 + $0x8] sm:$0xff]  }
 0xe49   : > { %v4323_v38 = vmax.f32 %v19288_v31, 0.0  ;;  %5005 = vst [vmem:[#allocation3 + $0x60] sm:$0xff] (!%p9617_p11), %v4322_v61 }
 0xe4b   : > { %5006 = vst [vmem:[#allocation3 + $0x68] sm:$0xff] (!%p9617_p11), %v4323_v38 }
 0xe4c   : > { %v4538_v21 = vpop.f32.mrb[44].mxu0 }
 0xe4d   : > { %v4539_v29 = vadd.f32 %v9709_v60, %v4538_v21  ;;  %v10598_v22 = vpop.f32.mrb[45].mxu0  ;;  %v12504_v21 = vld [vmem:[#allocation46 + $0x18] sm:$0xff]  }
 0xe4e   : > { %v4541_v47 = vpop.f32.mrb[46].mxu0  ;;  %v12506_v22 = vld [vmem:[#allocation46 + $0x28] sm:$0xff]  }
 0xe4f   : > { %v4542_v44 = vadd.f32 %v9709_v60, %v4541_v47  ;;  %v10599_v49 = vpop.f32.mrb[47].mxu0  ;;  %v4545_v18 = vmax.f32 %v4539_v29, 0.0  ;;  %v12503_v60 = vld [vmem:[#allocation46 + $0x10] sm:$0xff]   ;;  %v12505_v29 = vld [vmem:[#allocation46 + $0x20] sm:$0xff]  }
 0xe50   : > { %v12507_v47 = vld [vmem:[#allocation46 + $0x30] sm:$0xff]   ;;  %v9718_v49 = vld [vmem:[#allocation54] ss:$0 sm:$0xff] }
 0xe51   : > { %v4546_v26 = vmax.f32 %v4542_v44, 0.0  ;;  %v12508_v44 = vld [vmem:[#allocation46 + $0x38] sm:$0xff]  }
 0xe53   : > { %v4564_v37 = vpack.c.bf16 %v4546_v26, %v4545_v18 }
 0xe55   : > { %10617 = vmatmul.mubr.bf16.vlgmr.msra.gmra.mrb[32].mxu1 %v4564_v37 }
 0xe56   : > { %10674 = vmatprep.mubr.msk.bf16.mxu1 %vm15364_vm1, %v21847_v58  ;;  %10659 = vmatpush3.bf16.msra.mxu1 %v12501_v28 }
 0xe57   : > { %10660 = vmatprep.subr.bf16.mxu1 %v21847_v58 }
 0xe5a   : > { %10661 = vmatpush3.bf16.msra.mxu1 %v12502_v27 }
 0xe5b   : > { %10662 = vmatprep.subr.bf16.mxu1 %v21847_v58 }
 0xe5e   : > { %10663 = vmatpush3.bf16.msra.mxu1 %v12503_v60 }
 0xe5f   : > { %10664 = vmatprep.subr.bf16.mxu1 %v21847_v58 }
 0xe62   : > { %10665 = vmatpush3.bf16.msra.mxu1 %v12504_v21 }
 0xe63   : > { %10666 = vmatprep.subr.bf16.mxu1 %v21847_v58 }
 0xe66   : > { %10667 = vmatpush3.bf16.msra.mxu1 %v12505_v29  ;;  %v9738_v29 = vld [vmem:[#allocation45] ss:$0 sm:$0xff] }
 0xe67   : > { %10668 = vmatprep.subr.bf16.mxu1 %v21847_v58 }
 0xe68   : > { %v4755_v13 = vpop.f32.mrb[48].mxu0 }
 0xe69   : > { %v4756_v52 = vadd.f32 %v9727_v55, %v4755_v13  ;;  %v10636_v51 = vpop.f32.mrb[49].mxu0 }
 0xe6a   : > { %v4758_v62 = vpop.f32.mrb[50].mxu0  ;;  %10669 = vmatpush3.bf16.msra.mxu1 %v12506_v22 }
 0xe6b   : > { %v4761_v20 = vmax.f32 %v4756_v52, 0.0  ;;  %v10637_v24 = vpop.f32.mrb[51].mxu0  ;;  %10670 = vmatprep.subr.bf16.mxu1 %v21847_v58 }
 0xe6d   : > { %v4779_v7 = vpack.c.bf16 %v4761_v20, %v4761_v20  ;;  %v9729_v20 = vld [vmem:[#allocation42] ss:$0 sm:$0xff] }
 0xe6e   : > { %10671 = vmatpush3.bf16.msra.mxu1 %v12507_v47 }
 0xe6f   : > { %10655 = vmatmul.mubr.bf16.vlgmr.msra.gmra.mrb[52].mxu0 %v4779_v7  ;;  %10672 = vmatprep.subr.bf16.mxu1 %v21847_v58 }
 0xe72   : > { %10673 = vmatpush3.bf16.msra.mxu1 %v12508_v44 }
 0xf28   : > { %v4653_v18 = vpop.f32.mrb[32].mxu1 }
 0xf29   : > { %v19300_v26 = vadd.f32 %v9718_v49, %v4653_v18  ;;  %v10618_v37 = vpop.f32.mrb[33].mxu1 }
 0xf2a   : > { %v4656_v55 = vpop.f32.mrb[34].mxu1 }
 0xf2b   : > { %v4660_v13 = vmax.f32 %v19300_v26, 0.0  ;;  %v19303_v52 = vadd.f32 %v9718_v49, %v4656_v55  ;;  %v10619_v51 = vpop.f32.mrb[35].mxu1 }
 0xf2d   : > { %v4661_v62 = vmax.f32 %v19303_v52, 0.0  ;;  %4991 = vst [vmem:[#allocation2] sm:$0xff] (!%p9617_p11), %v4660_v13 }
 0xf2f   : > { %4992 = vst [vmem:[#allocation2 + $0x8] sm:$0xff] (!%p9617_p11), %v4661_v62 }
 0xf42   : > { %v4868_v24 = vpop.f32.mrb[52].mxu0 }
 0xf43   : > { %v4869_v7 = vadd.f32 %v9729_v20, %v4868_v24  ;;  %v10656_v28 = vpop.f32.mrb[53].mxu0 }
 0xf44   : > { %v4871_v27 = vpop.f32.mrb[54].mxu0 }
 0xf45   : > { %v4874_v58 = vmax.f32 %v4869_v7, 0.0  ;;  %v10657_v60 = vpop.f32.mrb[55].mxu0 }
 0xf47   : > { %v4892_v21 = vpack.c.bf16 %v4874_v58, %v4874_v58 }
 0xf49   : > { %10675 = vmatmul.mubr.bf16.vlgmr.msra.gmra.mrb[36].mxu1 %v4892_v21 }
0x1019   : > { %4990 = sbr.rel (%p9617_p11) target bundleno = 4130 (0x1022), region = 532 }
0x101c   : > { %v4981_v22 = vpop.f32.mrb[36].mxu1 }
0x101d   : > { %v19306_v47 = vadd.f32 %v9738_v29, %v4981_v22  ;;  %v10676_v44 = vpop.f32.mrb[37].mxu1 }
0x101e   : > { %v4984_v18 = vpop.f32.mrb[38].mxu1 }
0x101f   : > { %v4987_v49 = vmax.f32 %v19306_v47, 0.0  ;;  %v10677_v37 = vpop.f32.mrb[39].mxu1 }
0x1021   : > { %5007 = vst [vmem:[#allocation4] sm:$0xff] %v4987_v49 }
0x1022 PF: > { %v21872_v55 = vmov 0.0   ;;  %v12537_v51 = vld [vmem:[%s18398_s6] sm:$0xff]   ;;  %v12538_v20 = vld [vmem:[%s18398_s6 + $0x8] sm:$0xff]   ;;  %v12539_v24 = vld [vmem:[%s18398_s6 + $0x10] sm:$0xff]   ;;  %v9772_v40 = vcombine.low %v18578_v0, %v18580_v1  ;;  %v9774_v0 = vcombine.low %v18586_v4, %v18588_v5  ;;  %v9775_v1 = vcombine.low %v18590_v6, %v18594_v8 }
0x1023   : > { %10678 = vmatprep.subr.bf16.mxu0 %v21872_v55  ;;  %10698 = vmatprep.subr.bf16.mxu1 %v21872_v55  ;;  %v12544_v7 = vld [vmem:[%s18405_s13] sm:$0xff]   ;;  %v12546_v28 = vld [vmem:[%s18405_s13 + $0x8] sm:$0xff]   ;;  %v12540_v27 = vld [vmem:[%s18398_s6 + $0x18] sm:$0xff]   ;;  %vm5882_vm3 = vcmask 1043456   ;;  %v9776_v6 = vcombine.low %v18596_v9, %v18600_v11  ;;  %vm5860_vm4 = vcmask 64512  }
0x1024   : > { %10694 = vmatprep.mubr.msk.bf16.mxu0 %vm15364_vm1, %v21872_v55  ;;  %10714 = vmatprep.mubr.msk.bf16.mxu1 %vm15364_vm1, %v21872_v55  ;;  %v12548_v58 = vld [vmem:[%s18405_s13 + $0x10] sm:$0xff]   ;;  %v12541_v60 = vld [vmem:[%s18398_s6 + $0x20] sm:$0xff]   ;;  %v12550_v21 = vld [vmem:[%s18405_s13 + $0x18] sm:$0xff]  }
0x1025   : > { %10679 = vmatpush3.bf16.msra.mxu0 %v12537_v51  ;;  %10699 = vmatpush3.bf16.msra.mxu1 %v12544_v7  ;;  %v12542_v29 = vld [vmem:[%s18398_s6 + $0x28] sm:$0xff]   ;;  %v12543_v22 = vld [vmem:[%s18398_s6 + $0x30] sm:$0xff]   ;;  %v5008_v44 = vld [vmem:[#allocation2] sm:$0xff] }
0x1026   : > { %10680 = vmatprep.subr.bf16.mxu0 %v21872_v55  ;;  %10700 = vmatprep.subr.bf16.mxu1 %v21872_v55  ;;  %v12552_v18 = vld [vmem:[%s18405_s13 + $0x20] sm:$0xff]   ;;  %v19375_v51 = vadd.f32 %v5008_v44, %v4660_v13  ;;  %v12545_v7 = vld [vmem:[%s18398_s6 + $0x38] sm:$0xff]   ;;  %v12556_v13 = vld [vmem:[%s18405_s13 + $0x30] sm:$0xff]  }
0x1027   : > { %v5009_v37 = vld [vmem:[#allocation2 + $0x8] sm:$0xff]  ;;  %v12560_v44 = vld [vmem:[%s18413_s7 + $0x38] sm:$0xff]   ;;  %v12563_v47 = vld [vmem:[%s18390_s18 + $0x10] sm:$0xff]  }
0x1028   : > { %v12547_v52 = vld [vmem:[%s18413_s7] sm:$0xff]   ;;  %v5018_v43 = vld [vmem:[#allocation3 + $0x30] sm:$0xff]  ;;  %v5020_v57 = vld [vmem:[#allocation3 + $0x40] sm:$0xff] }
0x1029   : > { %10681 = vmatpush3.bf16.msra.mxu0 %v12538_v20  ;;  %10701 = vmatpush3.bf16.msra.mxu1 %v12546_v28  ;;  %v19379_v20 = vadd.f32 %v5009_v37, %v4661_v62  ;;  %v12558_v62 = vld [vmem:[%s18405_s13 + $0x38] sm:$0xff]   ;;  %v12549_v28 = vld [vmem:[%s18413_s7 + $0x8] sm:$0xff]   ;;  %v12561_v37 = vld [vmem:[%s18390_s18] sm:$0xff]  }
0x102a   : > { %10682 = vmatprep.subr.bf16.mxu0 %v21872_v55  ;;  %10702 = vmatprep.subr.bf16.mxu1 %v21872_v55  ;;  %v5022_v48 = vld [vmem:[#allocation3 + $0x50] sm:$0xff]  ;;  %v5024_v63 = vld [vmem:[#allocation3 + $0x60] sm:$0xff]  ;;  %v21873_v8 = vld [vmem:[#allocation390_spill] sm:$0xff] }
0x102b   : > { %v19387_v26 = vpack.c.bf16 %v19379_v20, %v19375_v51  ;;  %v21876_v9 = vld [vmem:[#allocation392_spill] sm:$0xff]  ;;  %v21877_v11 = vld [vmem:[#allocation391_spill] sm:$0xff] }
0x102d   : > { %10683 = vmatpush3.bf16.msra.mxu0 %v12539_v24  ;;  %10703 = vmatpush3.bf16.msra.mxu1 %v12548_v58  ;;  %v12554_v24 = vld [vmem:[%s18405_s13 + $0x28] sm:$0xff]   ;;  %v12553_v58 = vld [vmem:[%s18413_s7 + $0x18] sm:$0xff]  }
0x102e   : > { %10684 = vmatprep.subr.bf16.mxu0 %v21872_v55  ;;  %10704 = vmatprep.subr.bf16.mxu1 %v21872_v55 }
0x1031   : > { %10685 = vmatpush3.bf16.msra.mxu0 %v12540_v27  ;;  %10705 = vmatpush3.bf16.msra.mxu1 %v12550_v21  ;;  %v12551_v27 = vld [vmem:[%s18413_s7 + $0x10] sm:$0xff]   ;;  %v12557_v21 = vld [vmem:[%s18413_s7 + $0x28] sm:$0xff]  }
0x1032   : > { %10686 = vmatprep.subr.bf16.mxu0 %v21872_v55  ;;  %10706 = vmatprep.subr.bf16.mxu1 %v21872_v55 }
0x1035   : > { %10687 = vmatpush3.bf16.msra.mxu0 %v12541_v60  ;;  %10707 = vmatpush3.bf16.msra.mxu1 %v12552_v18  ;;  %v12555_v60 = vld [vmem:[%s18413_s7 + $0x20] sm:$0xff]  }
0x1036   : > { %10688 = vmatprep.subr.bf16.mxu0 %v21872_v55  ;;  %10708 = vmatprep.subr.bf16.mxu1 %v21872_v55 }
0x1039   : > { %10689 = vmatpush3.bf16.msra.mxu0 %v12542_v29  ;;  %10709 = vmatpush3.bf16.msra.mxu1 %v12554_v24  ;;  %v12559_v29 = vld [vmem:[%s18413_s7 + $0x30] sm:$0xff]  }
0x103a   : > { %10690 = vmatprep.subr.bf16.mxu0 %v21872_v55  ;;  %10710 = vmatprep.subr.bf16.mxu1 %v21872_v55 }
0x103d   : > { %10691 = vmatpush3.bf16.msra.mxu0 %v12543_v22  ;;  %10711 = vmatpush3.bf16.msra.mxu1 %v12556_v13  ;;  %v5040_v22 = vld [vmem:[#allocation4] sm:$0xff]  ;;  %v12565_v13 = vld [vmem:[%s18390_s18 + $0x20] sm:$0xff]  }
0x103e   : > { %10692 = vmatprep.subr.bf16.mxu0 %v21872_v55  ;;  %10712 = vmatprep.subr.bf16.mxu1 %v21872_v55  ;;  %v19417_v18 = vadd.f32 %v5040_v22, %v4987_v49  ;;  %v12564_v49 = vld [vmem:[%s18390_s18 + $0x18] sm:$0xff]  }
0x103f   : > { %v5014_v22 = vld [vmem:[#allocation3 + $0x10] sm:$0xff] }
0x1040   : > { %v19423_v24 = vpack.c.bf16 %v19417_v18, %v19417_v18  ;;  %v19458_v56 = vadd.f32 %v5014_v22, %v4312_v41  ;;  %v9773_v22 = vcombine.low %v18582_v2, %v18584_v3 }
0x1041   : > { %10693 = vmatpush3.bf16.msra.mxu0 %v12545_v7  ;;  %10713 = vmatpush3.bf16.msra.mxu1 %v12558_v62  ;;  %v12562_v7 = vld [vmem:[%s18390_s18 + $0x8] sm:$0xff]   ;;  %v12567_v62 = vld [vmem:[%s18390_s18 + $0x30] sm:$0xff]  }
0x1042   : > { %10718 = vmatprep.subr.bf16.mxu0 %v21872_v55  ;;  %10738 = vmatprep.subr.bf16.mxu1 %v21872_v55 }
0x1044   : > { %10695 = vmatmul.mubr.bf16.vlgmr.msra.gmra.mrb[56].mxu0 %v19387_v26  ;;  %10715 = vmatmul.mubr.bf16.vlgmr.msra.gmra.mrb[40].mxu1 %v19387_v26 }
0x1045   : > { %10719 = vmatpush3.bf16.msra.mxu0 %v12547_v52  ;;  %10734 = vmatprep.mubr.msk.bf16.mxu0 %vm15364_vm1, %v21872_v55  ;;  %v12566_v52 = vld [vmem:[%s18390_s18 + $0x28] sm:$0xff]  }
0x1046   : > { %10720 = vmatprep.subr.bf16.mxu0 %v21872_v55  ;;  %10740 = vmatprep.mubr.msk.bf16.mxu1 %vm15364_vm1, %v21872_v55 }
0x1049   : > { %10721 = vmatpush3.bf16.msra.mxu0 %v12549_v28  ;;  %v12568_v28 = vld [vmem:[%s18390_s18 + $0x38] sm:$0xff]   ;;  %s21917_s18 = sld [smem:[#allocation240_spill]] }
0x104a   : > { %10722 = vmatprep.subr.bf16.mxu0 %v21872_v55 }
0x104d   : > { %10723 = vmatpush3.bf16.msra.mxu0 %v12551_v27  ;;  %v5012_v27 = vld [vmem:[#allocation3] sm:$0xff] }
0x104e   : > { %10724 = vmatprep.subr.bf16.mxu0 %v21872_v55 }
0x1051   : > { %10725 = vmatpush3.bf16.msra.mxu0 %v12553_v58  ;;  %v5013_v58 = vld [vmem:[#allocation3 + $0x8] sm:$0xff] }
0x1052   : > { %10726 = vmatprep.subr.bf16.mxu0 %v21872_v55 }
0x1055   : > { %10727 = vmatpush3.bf16.msra.mxu0 %v12555_v60  ;;  %v19445_v60 = vadd.f32 %v5012_v27, %v4310_v30 }
0x1056   : > { %10728 = vmatprep.subr.bf16.mxu0 %v21872_v55 }
0x1059   : > { %10729 = vmatpush3.bf16.msra.mxu0 %v12557_v21  ;;  %v19449_v21 = vadd.f32 %v5013_v58, %v4311_v12  ;;  %v5016_v12 = vld [vmem:[#allocation3 + $0x20] sm:$0xff] }
0x105a   : > { %10730 = vmatprep.subr.bf16.mxu0 %v21872_v55 }
0x105d   : > { %10731 = vmatpush3.bf16.msra.mxu0 %v12559_v29  ;;  %v5043_v29 = vpack.c.bf16 %v19449_v21, %v19445_v60 }
0x105e   : > { %10732 = vmatprep.subr.bf16.mxu0 %v21872_v55 }
0x1061   : > { %10733 = vmatpush3.bf16.msra.mxu0 %v12560_v44  ;;  %v5015_v44 = vld [vmem:[#allocation3 + $0x18] sm:$0xff] }
0x1062   : > { %10768 = vmatprep.subr.bf16.mxu0 %v21872_v55  ;;  %v19462_v30 = vadd.f32 %v5015_v44, %v4313_v34  ;;  %v5019_v34 = vld [vmem:[#allocation3 + $0x38] sm:$0xff] }
0x1063   : > { %v19486_v19 = vadd.f32 %v5019_v34, %v4317_v16  ;;  %v5023_v16 = vld [vmem:[#allocation3 + $0x58] sm:$0xff]  ;;  %v21878_v34 = vld [vmem:[#allocation375_spill] sm:$0xff] }
0x1064   : > { %10735 = vmatmul.mubr.bf16.vlgmr.msra.gmra.mrb[60].mxu0 %v19423_v24  ;;  %v5044_v25 = vpack.c.bf16 %v19462_v30, %v19458_v56  ;;  %v19510_v46 = vadd.f32 %v5023_v16, %v4321_v50  ;;  %v21883_v16 = vld [vmem:[#allocation376_spill] sm:$0xff] }
0x1065   : > { %10769 = vmatpush3.bf16.msra.mxu0 %v12561_v37  ;;  %10784 = vmatprep.mubr.msk.bf16.mxu0 %vm15364_vm1, %v21872_v55  ;;  %v5017_v37 = vld [vmem:[#allocation3 + $0x28] sm:$0xff] }
0x1066   : > { %10770 = vmatprep.subr.bf16.mxu0 %v21872_v55  ;;  %v19474_v54 = vadd.f32 %v5017_v37, %v4315_v45  ;;  %v5021_v45 = vld [vmem:[#allocation3 + $0x48] sm:$0xff] }
0x1067   : > { %v19498_v36 = vadd.f32 %v5021_v45, %v4319_v39  ;;  %v5025_v39 = vld [vmem:[#allocation3 + $0x68] sm:$0xff]  ;;  %v21881_v45 = vld [vmem:[#allocation393_spill] sm:$0xff] }
0x1068   : > { %v19522_v23 = vadd.f32 %v5025_v39, %v4323_v38  ;;  %v21875_v37 = vld [vmem:[#allocation372_spill] sm:$0xff]  ;;  %v21885_v39 = vld [vmem:[#allocation395_spill] sm:$0xff] }
0x1069   : > { %10771 = vmatpush3.bf16.msra.mxu0 %v12562_v7  ;;  %v19470_v7 = vadd.f32 %v5016_v12, %v4314_v15  ;;  %v9808_v12 = vcombine.low %v18648_v32, %v18650_v33  ;;  %v9809_v32 = vcombine.low %v21873_v8, %v18654_v35  ;;  %v21874_v33 = vld [vmem:[#allocation373_spill] sm:$0xff]  ;;  %v21880_v35 = vld [vmem:[#allocation394_spill] sm:$0xff] }
0x106a   : > { %10772 = vmatprep.subr.bf16.mxu0 %v21872_v55 }
0x106b   : > { %v5045_v41 = vpack.c.bf16 %v19474_v54, %v19470_v7 }
0x106d   : > { %10773 = vmatpush3.bf16.msra.mxu0 %v12563_v47  ;;  %v19482_v47 = vadd.f32 %v5018_v43, %v4316_v10  ;;  %v9810_v43 = vcombine.low %v21877_v11, %v21876_v9 }
0x106e   : > { %10774 = vmatprep.subr.bf16.mxu0 %v21872_v55 }
0x106f   : > { %v5046_v15 = vpack.c.bf16 %v19486_v19, %v19482_v47 }
0x1071   : > { %10775 = vmatpush3.bf16.msra.mxu0 %v12564_v49  ;;  %v19494_v49 = vadd.f32 %v5020_v57, %v4318_v14 }
0x1072   : > { %10776 = vmatprep.subr.bf16.mxu0 %v21872_v55 }
0x1073   : > { %v5047_v10 = vpack.c.bf16 %v19498_v36, %v19494_v49 }
0x1075   : > { %10777 = vmatpush3.bf16.msra.mxu0 %v12565_v13  ;;  %v19506_v13 = vadd.f32 %v5022_v48, %v4320_v42  ;;  %v21882_v48 = vld [vmem:[#allocation377_spill] sm:$0xff] }
0x1076   : > { %10778 = vmatprep.subr.bf16.mxu0 %v21872_v55 }
0x1077   : > { %v5048_v14 = vpack.c.bf16 %v19510_v46, %v19506_v13 }
0x1079   : > { %10779 = vmatpush3.bf16.msra.mxu0 %v12566_v52  ;;  %v19518_v52 = vadd.f32 %v5024_v63, %v4322_v61  ;;  %v21884_v63 = vld [vmem:[#allocation396_spill] sm:$0xff] }
0x107a   : > { %10780 = vmatprep.subr.bf16.mxu0 %v21872_v55 }
0x107b   : > { %v5049_v42 = vpack.c.bf16 %v19522_v23, %v19518_v52 }
0x107d   : > { %10781 = vmatpush3.bf16.msra.mxu0 %v12567_v62 }
0x107e   : > { %10782 = vmatprep.subr.bf16.mxu0 %v21872_v55 }
0x1081   : > { %10783 = vmatpush3.bf16.msra.mxu0 %v12568_v28 }
0x1082   : > { %10842 = vmatprep.subr.bf16.mxu0 %v21872_v55 }
0x1084   : > { %10785 = vmatmul.mubr.bf16.vlgmr.msra.gmra.mrb[64].mxu0 %v5043_v29 }
0x1085   : > { %10788 = vmatprep.mubr.msk.bf16.mxu0 %vm15364_vm1, %v21872_v55 }
0x108c   : > { %10789 = vmatmul.mubr.bf16.gmra.mrb[68].mxu0 %v5044_v25 }
0x108d   : > { %10792 = vmatprep.mubr.msk.bf16.mxu0 %vm15364_vm1, %v21872_v55 }
0x1094   : > { %10793 = vmatmul.mubr.bf16.gmra.mrb[72].mxu0 %v5045_v41  ;;  %v9777_v41 = vcombine.low %v21875_v37, %v21874_v33  ;;  %v21898_v33 = vld [vmem:[#allocation387_spill] sm:$0xff]  ;;  %v21899_v37 = vld [vmem:[#allocation386_spill] sm:$0xff] }
0x1095   : > { %10796 = vmatprep.mubr.msk.bf16.mxu0 %vm15364_vm1, %v21872_v55 }
0x109c   : > { %10797 = vmatmul.mubr.bf16.gmra.mrb[76].mxu0 %v5046_v15  ;;  %v21879_v15 = vld [vmem:[#allocation374_spill] sm:$0xff] }
0x109d   : > { %10800 = vmatprep.mubr.msk.bf16.mxu0 %vm15364_vm1, %v21872_v55  ;;  %v9778_v57 = vcombine.low %v21879_v15, %v21878_v34  ;;  %v21900_v15 = vld [vmem:[#allocation389_spill] sm:$0xff] }
0x10a4   : > { %10801 = vmatmul.mubr.bf16.gmra.mrb[80].mxu0 %v5047_v10  ;;  %v9811_v10 = vcombine.low %v21881_v45, %v21880_v35 }
0x10a5   : > { %10804 = vmatprep.mubr.msk.bf16.mxu0 %vm15364_vm1, %v21872_v55 }
0x10ac   : > { %10805 = vmatmul.mubr.bf16.gmra.mrb[84].mxu0 %v5048_v14  ;;  %v9794_v14 = vcombine.low %v21883_v16, %v21882_v48  ;;  %v12569_v48 = vld [vmem:[%s18607_s16] sm:$0xff]  }
0x10ad   : > { %10808 = vmatprep.mubr.msk.bf16.mxu0 %vm15364_vm1, %v21872_v55 }
0x10b4   : > { %10809 = vmatmul.mubr.bf16.gmra.mrb[88].mxu0 %v5049_v42  ;;  %v9812_v42 = vcombine.low %v21885_v39, %v21884_v63  ;;  %v12570_v39 = vld [vmem:[%s18607_s16 + $0x8] sm:$0xff]  }
0x10b5   : > { %10844 = vmatprep.mubr.msk.bf16.mxu0 %vm15364_vm1, %v21872_v55 }
0x1117   : > { %v5197_v59 = vpop.f32.mrb[56].mxu0  ;;  %v5287_v61 = vpop.f32.mrb[40].mxu1 }
0x1118   : > { %v10696_v50 = vpop.f32.mrb[57].mxu0  ;;  %v10716_v31 = vpop.f32.mrb[41].mxu1 }
0x1119   : > { %v5200_v62 = vpop.f32.mrb[58].mxu0  ;;  %v5290_v38 = vpop.f32.mrb[42].mxu1  ;;  %v21887_v50 = vld [vmem:[#allocation378_spill] sm:$0xff]  ;;  %v21891_v31 = vld [vmem:[#allocation380_spill] sm:$0xff] }
0x111a   : > { %v5204_v28 = vpack.c.bf16 %v5200_v62, %v5197_v59  ;;  %v10697_v27 = vpop.f32.mrb[59].mxu0  ;;  %v5294_v58 = vpack.c.bf16 %v5290_v38, %v5287_v61  ;;  %v10717_v29 = vpop.f32.mrb[43].mxu1  ;;  %v21886_v59 = vld [vmem:[#allocation379_spill] sm:$0xff]  ;;  %v21890_v61 = vld [vmem:[#allocation381_spill] sm:$0xff] }
0x111b   : > { %v9795_v62 = vcombine.low %v21887_v50, %v21886_v59  ;;  %v21889_v27 = vld [vmem:[#allocation397_spill] sm:$0xff]  ;;  %v9796_v38 = vcombine.low %v21891_v31, %v21890_v61  ;;  %v21893_v29 = vld [vmem:[#allocation399_spill] sm:$0xff] }
0x111c   : > { %10739 = vmatpush3.bf16.msra.mxu1 %v5204_v28  ;;  %v21888_v28 = vld [vmem:[#allocation398_spill] sm:$0xff] }
0x111d   : > { %10812 = vmatprep.subr.bf16.mxu1 %v21872_v55 }
0x111f   : > { %10741 = vmatmul.mubr.msk.bf16.vlgmr.msra.gmra.mrb[44].mxu1 %vm3588_vm0, %v9772_v40  ;;  %v9813_v40 = vcombine.low %v21889_v27, %v21888_v28  ;;  %v12571_v28 = vld [vmem:[%s18607_s16 + $0x10] sm:$0xff]  }
0x1120   : > { %10744 = vmatprep.mubr.msk.bf16.mxu1 %vm15364_vm1, %v21872_v55  ;;  %10813 = vmatpush3.bf16.msra.mxu1 %v5294_v58  ;;  %v21892_v58 = vld [vmem:[#allocation400_spill] sm:$0xff] }
0x1121   : > { %10872 = vmatprep.subr.bf16.mxu1 %v21872_v55 }
0x1127   : > { %10745 = vmatmul.mubr.msk.bf16.gmra.mrb[48].mxu1 %vm3588_vm0, %v9773_v22  ;;  %v9814_v22 = vcombine.low %v21893_v29, %v21892_v58 }
0x1128   : > { %10748 = vmatprep.mubr.msk.bf16.mxu1 %vm15364_vm1, %v21872_v55 }
0x112f   : > { %10749 = vmatmul.mubr.msk.bf16.gmra.mrb[52].mxu1 %vm3588_vm0, %v9774_v0  ;;  %v21894_v0 = vld [vmem:[#allocation383_spill] sm:$0xff] }
0x1130   : > { %10752 = vmatprep.mubr.msk.bf16.mxu1 %vm15364_vm1, %v21872_v55 }
0x1137   : > { %v5377_v2 = vpop.f32.mrb[60].mxu0  ;;  %10753 = vmatmul.mubr.msk.bf16.gmra.mrb[56].mxu1 %vm3588_vm0, %v9775_v1  ;;  %v21895_v1 = vld [vmem:[#allocation382_spill] sm:$0xff] }
0x1138   : > { %v5383_v3 = vpack.c.bf16 %v5377_v2, %v5377_v2  ;;  %v10736_v44 = vpop.f32.mrb[61].mxu0  ;;  %10756 = vmatprep.mubr.msk.bf16.mxu1 %vm15364_vm1, %v21872_v55  ;;  %v9797_v2 = vcombine.low %v21895_v1, %v21894_v0  ;;  %v12573_v1 = vld [vmem:[%s18607_s16 + $0x20] sm:$0xff]  }
0x1139   : > { %v5380_v25 = vpop.f32.mrb[62].mxu0 }
0x113a   : > { %v5884_v4 = vsel %vm5882_vm3, %v5383_v3, 0  ;;  %v10737_v5 = vpop.f32.mrb[63].mxu0  ;;  %v21896_v25 = vld [vmem:[#allocation385_spill] sm:$0xff] }
0x113b   : > { %10843 = vmatpush3.bf16.msra.mxu0 %v5884_v4  ;;  %v21897_v4 = vld [vmem:[#allocation384_spill] sm:$0xff] }
0x113c   : > { %10916 = vmatprep.subr.bf16.mxu0 %v21872_v55  ;;  %v9798_v5 = vcombine.low %v21897_v4, %v21896_v25  ;;  %v12575_v25 = vld [vmem:[%s18607_s16 + $0x30] sm:$0xff]   ;;  %v12576_v4 = vld [vmem:[%s18607_s16 + $0x38] sm:$0xff]  }
0x113e   : > { %10845 = vmatmul.mubr.msk.bf16.vlgmr.msra.gmra.mrb[92].mxu0 %vm5860_vm4, %v9808_v12 }
0x113f   : > { %10757 = vmatmul.mubr.msk.bf16.gmra.mrb[60].mxu1 %vm3588_vm0, %v9776_v6  ;;  %10848 = vmatprep.mubr.msk.bf16.mxu0 %vm15364_vm1, %v21872_v55 }
0x1140   : > { %10760 = vmatprep.mubr.msk.bf16.mxu1 %vm15364_vm1, %v21872_v55 }
0x1146   : > { %10849 = vmatmul.mubr.msk.bf16.gmra.mrb[96].mxu0 %vm5860_vm4, %v9809_v32 }
0x1147   : > { %10761 = vmatmul.mubr.msk.bf16.gmra.mrb[64].mxu1 %vm3588_vm0, %v9777_v41  ;;  %10852 = vmatprep.mubr.msk.bf16.mxu0 %vm15364_vm1, %v21872_v55  ;;  %v9799_v41 = vcombine.low %v21899_v37, %v21898_v33  ;;  %v12580_v33 = vld [vmem:[%s18616_s15 + $0x18] sm:$0xff]  }
0x1148   : > { %10764 = vmatprep.mubr.msk.bf16.mxu1 %vm15364_vm1, %v21872_v55 }
0x114e   : > { %10853 = vmatmul.mubr.msk.bf16.gmra.mrb[100].mxu0 %vm5860_vm4, %v9810_v43 }
0x114f   : > { %10765 = vmatmul.mubr.msk.bf16.gmra.mrb[68].mxu1 %vm3588_vm0, %v9778_v57  ;;  %10856 = vmatprep.mubr.msk.bf16.mxu0 %vm15364_vm1, %v21872_v55  ;;  %v21901_v57 = vld [vmem:[#allocation388_spill] sm:$0xff] }
0x1150   : > { %10814 = vmatprep.mubr.msk.bf16.mxu1 %vm15364_vm1, %v21872_v55  ;;  %v9800_v35 = vcombine.low %v21901_v57, %v21900_v15 }
0x1156   : > { %10857 = vmatmul.mubr.msk.bf16.gmra.mrb[104].mxu0 %vm5860_vm4, %v9811_v10 }
0x1157   : > { %10815 = vmatmul.mubr.msk.bf16.vlgmr.msra.gmra.mrb[72].mxu1 %vm3588_vm0, %v9794_v14  ;;  %10860 = vmatprep.mubr.msk.bf16.mxu0 %vm15364_vm1, %v21872_v55  ;;  %v19622_v3 = vpop.f32.mrb[64].mxu0 }
0x1158   : > { %10818 = vmatprep.mubr.msk.bf16.mxu1 %vm15364_vm1, %v21872_v55  ;;  %v10786_v44 = vpop.f32.mrb[65].mxu0  ;;  %10873 = vmatpush3.bf16.msra.mxu1 %v12569_v48 }
0x1159   : > { %v19626_v12 = vpop.f32.mrb[66].mxu0  ;;  %10874 = vmatprep.subr.bf16.mxu1 %v21872_v55  ;;  %v12574_v44 = vld [vmem:[%s18607_s16 + $0x28] sm:$0xff]  }
0x115a   : > { %v10787_v6 = vpop.f32.mrb[67].mxu0 }
0x115b   : > { %v12578_v6 = vld [vmem:[%s18616_s15 + $0x8] sm:$0xff]  }
0x115c   : > { %10875 = vmatpush3.bf16.msra.mxu1 %v12570_v39 }
0x115d   : > { %10876 = vmatprep.subr.bf16.mxu1 %v21872_v55 }
0x115e   : > { %10861 = vmatmul.mubr.msk.bf16.gmra.mrb[108].mxu0 %vm5860_vm4, %v9812_v42 }
0x115f   : > { %10819 = vmatmul.mubr.msk.bf16.gmra.mrb[76].mxu1 %vm3588_vm0, %v9795_v62  ;;  %10864 = vmatprep.mubr.msk.bf16.mxu0 %vm15364_vm1, %v21872_v55  ;;  %v19631_v8 = vpop.f32.mrb[68].mxu0 }
0x1160   : > { %10822 = vmatprep.mubr.msk.bf16.mxu1 %vm15364_vm1, %v21872_v55  ;;  %v10790_v32 = vpop.f32.mrb[69].mxu0  ;;  %10877 = vmatpush3.bf16.msra.mxu1 %v12571_v28 }
0x1161   : > { %v19635_v9 = vpop.f32.mrb[70].mxu0  ;;  %10878 = vmatprep.subr.bf16.mxu1 %v21872_v55  ;;  %v12579_v32 = vld [vmem:[%s18616_s15 + $0x10] sm:$0xff]  }
0x1162   : > { %v10791_v11 = vpop.f32.mrb[71].mxu0 }
0x1166   : > { %10865 = vmatmul.mubr.msk.bf16.gmra.mrb[112].mxu0 %vm5860_vm4, %v9813_v40 }
0x1167   : > { %10823 = vmatmul.mubr.msk.bf16.gmra.mrb[80].mxu1 %vm3588_vm0, %v9796_v38  ;;  %10868 = vmatprep.mubr.msk.bf16.mxu0 %vm15364_vm1, %v21872_v55  ;;  %v19640_v43 = vpop.f32.mrb[72].mxu0  ;;  %v12572_v38 = vld [vmem:[%s18607_s16 + $0x18] sm:$0xff]  }
0x1168   : > { %10826 = vmatprep.mubr.msk.bf16.mxu1 %vm15364_vm1, %v21872_v55  ;;  %v10794_v34 = vpop.f32.mrb[73].mxu0  ;;  %10879 = vmatpush3.bf16.msra.mxu1 %v12572_v38 }
0x1169   : > { %v19644_v45 = vpop.f32.mrb[74].mxu0  ;;  %10880 = vmatprep.subr.bf16.mxu1 %v21872_v55 }
0x116a   : > { %v10795_v10 = vpop.f32.mrb[75].mxu0 }
0x116b   : > { %v12582_v10 = vld [vmem:[%s18616_s15 + $0x28] sm:$0xff]  }
0x116c   : > { %10881 = vmatpush3.bf16.msra.mxu1 %v12573_v1 }
0x116d   : > { %10882 = vmatprep.subr.bf16.mxu1 %v21872_v55 }
0x116e   : > { %10869 = vmatmul.mubr.msk.bf16.gmra.mrb[116].mxu0 %vm5860_vm4, %v9814_v22 }
0x116f   : > { %10827 = vmatmul.mubr.msk.bf16.gmra.mrb[84].mxu1 %vm3588_vm0, %v9797_v2  ;;  %10932 = vmatprep.mubr.msk.bf16.mxu0 %vm15364_vm1, %v21872_v55  ;;  %v19651_v16 = vpop.f32.mrb[76].mxu0 }
0x1170   : > { %10830 = vmatprep.mubr.msk.bf16.mxu1 %vm15364_vm1, %v21872_v55  ;;  %v10798_v14 = vpop.f32.mrb[77].mxu0  ;;  %10883 = vmatpush3.bf16.msra.mxu1 %v12574_v44 }
0x1171   : > { %v19653_v63 = vpop.f32.mrb[78].mxu0  ;;  %10884 = vmatprep.subr.bf16.mxu1 %v21872_v55 }
0x1172   : > { %v10799_v42 = vpop.f32.mrb[79].mxu0 }
0x1174   : > { %10885 = vmatpush3.bf16.msra.mxu1 %v12575_v25 }
0x1175   : > { %10886 = vmatprep.subr.bf16.mxu1 %v21872_v55 }
0x1177   : > { %10831 = vmatmul.mubr.msk.bf16.gmra.mrb[88].mxu1 %vm3588_vm0, %v9798_v5  ;;  %v19657_v59 = vpop.f32.mrb[80].mxu0  ;;  %v12577_v5 = vld [vmem:[%s18616_s15] sm:$0xff]  }
0x1178   : > { %10834 = vmatprep.mubr.msk.bf16.mxu1 %vm15364_vm1, %v21872_v55  ;;  %v10802_v50 = vpop.f32.mrb[81].mxu0  ;;  %10887 = vmatpush3.bf16.msra.mxu1 %v12576_v4 }
0x1179   : > { %v19659_v62 = vpop.f32.mrb[82].mxu0  ;;  %10960 = vmatprep.subr.bf16.mxu1 %v21872_v55  ;;  %10917 = vmatpush3.bf16.msra.mxu0 %v12577_v5 }
0x117a   : > { %v10803_v27 = vpop.f32.mrb[83].mxu0  ;;  %10918 = vmatprep.subr.bf16.mxu0 %v21872_v55 }
0x117d   : > { %10919 = vmatpush3.bf16.msra.mxu0 %v12578_v6 }
0x117e   : > { %10920 = vmatprep.subr.bf16.mxu0 %v21872_v55 }
0x117f   : > { %10835 = vmatmul.mubr.msk.bf16.gmra.mrb[92].mxu1 %vm3588_vm0, %v9799_v41  ;;  %v19663_v40 = vpop.f32.mrb[84].mxu0 }
0x1180   : > { %10838 = vmatprep.mubr.msk.bf16.mxu1 %vm15364_vm1, %v21872_v55  ;;  %v10806_v61 = vpop.f32.mrb[85].mxu0 }
0x1181   : > { %v19665_v31 = vpop.f32.mrb[86].mxu0  ;;  %10921 = vmatpush3.bf16.msra.mxu0 %v12579_v32 }
0x1182   : > { %v10807_v58 = vpop.f32.mrb[87].mxu0  ;;  %10922 = vmatprep.subr.bf16.mxu0 %v21872_v55 }
0x1185   : > { %10923 = vmatpush3.bf16.msra.mxu0 %v12580_v33 }
0x1186   : > { %10924 = vmatprep.subr.bf16.mxu0 %v21872_v55 }
0x1187   : > { %10839 = vmatmul.mubr.msk.bf16.gmra.mrb[96].mxu1 %vm3588_vm0, %v9800_v35  ;;  %v19669_v29 = vpop.f32.mrb[88].mxu0  ;;  %v12581_v35 = vld [vmem:[%s18616_s15 + $0x20] sm:$0xff]  }
0x1188   : > { %10888 = vmatprep.mubr.msk.bf16.mxu1 %vm15364_vm1, %v21872_v55  ;;  %v10810_v22 = vpop.f32.mrb[89].mxu0 }
0x1189   : > { %v19671_v0 = vpop.f32.mrb[90].mxu0  ;;  %10925 = vmatpush3.bf16.msra.mxu0 %v12581_v35 }
0x118a   : > { %v10811_v2 = vpop.f32.mrb[91].mxu0  ;;  %10926 = vmatprep.subr.bf16.mxu0 %v21872_v55 }
0x118d   : > { %10927 = vmatpush3.bf16.msra.mxu0 %v12582_v10 }
0x118e   : > { %10928 = vmatprep.subr.bf16.mxu0 %v21872_v55 }
0x11f2   : > { %v5474_v37 = vpop.f32.mrb[44].mxu1 }
0x11f3   : > { %v10742_v41 = vpop.f32.mrb[45].mxu1  ;;  %v19689_v11 = vadd.f32 %v19622_v3, %v5474_v37 }
0x11f4   : > { %v5477_v34 = vpop.f32.mrb[46].mxu1 }
0x11f5   : > { %v10743_v15 = vpop.f32.mrb[47].mxu1  ;;  %v19692_v57 = vadd.f32 %v19626_v12, %v5477_v34 }
0x11fa   : > { %v5482_v48 = vpop.f32.mrb[48].mxu1 }
0x11fb   : > { %v10746_v14 = vpop.f32.mrb[49].mxu1  ;;  %v19699_v39 = vadd.f32 %v19631_v8, %v5482_v48 }
0x11fc   : > { %v5485_v3 = vpop.f32.mrb[50].mxu1 }
0x11fd   : > { %v10747_v42 = vpop.f32.mrb[51].mxu1  ;;  %v19702_v50 = vadd.f32 %v19635_v9, %v5485_v3 }
0x1202   : > { %v5490_v12 = vpop.f32.mrb[52].mxu1 }
0x1203   : > { %v10750_v28 = vpop.f32.mrb[53].mxu1  ;;  %v19706_v27 = vadd.f32 %v19640_v43, %v5490_v12 }
0x1204   : > { %v5493_v61 = vpop.f32.mrb[54].mxu1 }
0x1205   : > { %v10751_v38 = vpop.f32.mrb[55].mxu1  ;;  %v19709_v58 = vadd.f32 %v19644_v45, %v5493_v61 }
0x120a   : > { %v5498_v8 = vpop.f32.mrb[56].mxu1 }
0x120b   : > { %v10754_v22 = vpop.f32.mrb[57].mxu1  ;;  %v19712_v1 = vadd.f32 %v19651_v16, %v5498_v8 }
0x120c   : > { %v5501_v9 = vpop.f32.mrb[58].mxu1 }
0x120d   : > { %v10755_v2 = vpop.f32.mrb[59].mxu1  ;;  %v19715_v44 = vadd.f32 %v19653_v63, %v5501_v9 }
0x1211   : > { %v5920_v25 = vpop.f32.mrb[92].mxu0 }
0x1212   : > { %v5506_v4 = vpop.f32.mrb[60].mxu1  ;;  %v10846_v5 = vpop.f32.mrb[93].mxu0 }
0x1213   : > { %v10758_v43 = vpop.f32.mrb[61].mxu1  ;;  %v19718_v6 = vadd.f32 %v19657_v59, %v5506_v4  ;;  %v5923_v32 = vpop.f32.mrb[94].mxu0 }
0x1214   : > { %v5509_v45 = vpop.f32.mrb[62].mxu1  ;;  %v10847_v33 = vpop.f32.mrb[95].mxu0 }
0x1215   : > { %v10759_v37 = vpop.f32.mrb[63].mxu1  ;;  %v19721_v41 = vadd.f32 %v19659_v62, %v5509_v45 }
0x1216   : > { %v19741_v37 = vld [vmem:[%s18368_s24] ss:$0 sm:$0xff]  ;;  %s21912_s24 = sld [smem:[#allocation312_spill]] }
0x1219   : > { %v5928_v16 = vpop.f32.mrb[96].mxu0 }
0x121a   : > { %v5514_v34 = vpop.f32.mrb[64].mxu1  ;;  %v10850_v15 = vpop.f32.mrb[97].mxu0 }
0x121b   : > { %v10762_v35 = vpop.f32.mrb[65].mxu1  ;;  %v19724_v63 = vadd.f32 %v19663_v40, %v5514_v34  ;;  %v5931_v10 = vpop.f32.mrb[98].mxu0 }
0x121c   : > { %v5517_v48 = vpop.f32.mrb[66].mxu1  ;;  %v10851_v14 = vpop.f32.mrb[99].mxu0 }
0x121d   : > { %v10763_v3 = vpop.f32.mrb[67].mxu1  ;;  %v19727_v59 = vadd.f32 %v19665_v31, %v5517_v48 }
0x1221   : > { %v5936_v42 = vpop.f32.mrb[100].mxu0 }
0x1222   : > { %v5522_v12 = vpop.f32.mrb[68].mxu1  ;;  %v10854_v28 = vpop.f32.mrb[101].mxu0 }
0x1223   : > { %v10766_v62 = vpop.f32.mrb[69].mxu1  ;;  %v19730_v61 = vadd.f32 %v19669_v29, %v5522_v12  ;;  %v5939_v38 = vpop.f32.mrb[102].mxu0 }
0x1224   : > { %v5525_v8 = vpop.f32.mrb[70].mxu1  ;;  %v10855_v22 = vpop.f32.mrb[103].mxu0 }
0x1225   : > { %v10767_v40 = vpop.f32.mrb[71].mxu1  ;;  %v19733_v9 = vadd.f32 %v19671_v0, %v5525_v8 }
0x1229   : > { %v19735_v2 = vpop.f32.mrb[104].mxu0 }
0x122a   : > { %v5756_v4 = vpop.f32.mrb[72].mxu1  ;;  %v10858_v31 = vpop.f32.mrb[105].mxu0 }
0x122b   : > { %v5811_v5 = vadd.f32 %v5756_v4, %v19689_v11  ;;  %v10816_v43 = vpop.f32.mrb[73].mxu1  ;;  %v19738_v45 = vpop.f32.mrb[106].mxu0 }
0x122c   : > { %v5759_v33 = vpop.f32.mrb[74].mxu1  ;;  %v10859_v29 = vpop.f32.mrb[107].mxu0 }
0x122d   : > { %v5812_v34 = vadd.f32 %v5759_v33, %v19692_v57  ;;  %v5975_v15 = vadd.f32 %v5920_v25, %v5811_v5  ;;  %v10817_v35 = vpop.f32.mrb[75].mxu1 }
0x122f   : > { %v5996_v0 = vadd.f32 %v19741_v37, %v5975_v15  ;;  %v5976_v48 = vadd.f32 %v5923_v32, %v5812_v34 }
0x1231   : > { %v5997_v14 = vadd.f32 %v19741_v37, %v5976_v48  ;;  %v19746_v3 = vpop.f32.mrb[108].mxu0  ;;  %v6010_v28 = vmax.f32 %v5996_v0, 0.0 }
0x1232   : > { %v5764_v12 = vpop.f32.mrb[76].mxu1  ;;  %v10862_v11 = vpop.f32.mrb[109].mxu0 }
0x1233   : > { %v6011_v62 = vmax.f32 %v5997_v14, 0.0  ;;  %v5813_v8 = vadd.f32 %v5764_v12, %v19699_v39  ;;  %v10820_v22 = vpop.f32.mrb[77].mxu1  ;;  %v5955_v40 = vpop.f32.mrb[110].mxu0 }
0x1234   : > { %v5767_v4 = vpop.f32.mrb[78].mxu1  ;;  %v10863_v31 = vpop.f32.mrb[111].mxu0 }
0x1235   : > { %v6041_v57 = vpack.c.bf16 %v6011_v62, %v6010_v28  ;;  %v5814_v25 = vadd.f32 %v5767_v4, %v19702_v50  ;;  %v5977_v5 = vadd.f32 %v5928_v16, %v5813_v8  ;;  %v10821_v43 = vpop.f32.mrb[79].mxu1 }
0x1237   : > { %v5998_v32 = vadd.f32 %v19741_v37, %v5977_v5  ;;  %v5978_v33 = vadd.f32 %v5931_v10, %v5814_v25  ;;  %10889 = vmatmul.mubr.bf16.vlgmr.msra.gmra.mrb[100].mxu1 %v6041_v57 }
0x1238   : > { %10892 = vmatprep.mubr.msk.bf16.mxu1 %vm15364_vm1, %v21872_v55 }
0x1239   : > { %v5999_v29 = vadd.f32 %v19741_v37, %v5978_v33  ;;  %v5960_v34 = vpop.f32.mrb[112].mxu0  ;;  %v6012_v35 = vmax.f32 %v5998_v32, 0.0 }
0x123a   : > { %v5772_v39 = vpop.f32.mrb[80].mxu1  ;;  %v10866_v15 = vpop.f32.mrb[113].mxu0 }
0x123b   : > { %v6013_v0 = vmax.f32 %v5999_v29, 0.0  ;;  %v5815_v48 = vadd.f32 %v5772_v39, %v19706_v27  ;;  %v10824_v14 = vpop.f32.mrb[81].mxu1  ;;  %v5963_v50 = vpop.f32.mrb[114].mxu0 }
0x123c   : > { %v5775_v16 = vpop.f32.mrb[82].mxu1  ;;  %v10867_v12 = vpop.f32.mrb[115].mxu0 }
0x123d   : > { %v5816_v11 = vadd.f32 %v5775_v16, %v19709_v58  ;;  %v5979_v10 = vadd.f32 %v5936_v42, %v5815_v48  ;;  %v6042_v28 = vpack.c.bf16 %v6013_v0, %v6012_v35  ;;  %v10825_v62 = vpop.f32.mrb[83].mxu1 }
0x123f   : > { %v6000_v8 = vadd.f32 %v19741_v37, %v5979_v10  ;;  %v5980_v22 = vadd.f32 %v5939_v38, %v5816_v11  ;;  %10893 = vmatmul.mubr.bf16.gmra.mrb[104].mxu1 %v6042_v28 }
0x1240   : > { %10896 = vmatprep.mubr.msk.bf16.mxu1 %vm15364_vm1, %v21872_v55 }
0x1241   : > { %v6001_v4 = vadd.f32 %v19741_v37, %v5980_v22  ;;  %v5968_v31 = vpop.f32.mrb[116].mxu0  ;;  %v6014_v25 = vmax.f32 %v6000_v8, 0.0 }
0x1242   : > { %v5780_v27 = vpop.f32.mrb[84].mxu1  ;;  %v10870_v57 = vpop.f32.mrb[117].mxu0 }
0x1243   : > { %v6015_v5 = vmax.f32 %v6001_v4, 0.0  ;;  %v5817_v43 = vadd.f32 %v5780_v27, %v19712_v1  ;;  %v10828_v58 = vpop.f32.mrb[85].mxu1  ;;  %v5971_v42 = vpop.f32.mrb[118].mxu0 }
0x1244   : > { %v5783_v32 = vpop.f32.mrb[86].mxu1  ;;  %v10871_v33 = vpop.f32.mrb[119].mxu0 }
0x1245   : > { %v5818_v29 = vadd.f32 %v5783_v32, %v19715_v44  ;;  %v5981_v38 = vadd.f32 %v19735_v2, %v5817_v43  ;;  %v6043_v39 = vpack.c.bf16 %v6015_v5, %v6014_v25  ;;  %v10829_v15 = vpop.f32.mrb[87].mxu1 }
0x1247   : > { %v6002_v35 = vadd.f32 %v19741_v37, %v5981_v38  ;;  %v5982_v0 = vadd.f32 %v19738_v45, %v5818_v29  ;;  %10897 = vmatmul.mubr.bf16.gmra.mrb[108].mxu1 %v6043_v39 }
0x1248   : > { %10900 = vmatprep.mubr.msk.bf16.mxu1 %vm15364_vm1, %v21872_v55 }
0x1249   : > { %v6003_v1 = vadd.f32 %v19741_v37, %v5982_v0  ;;  %v6016_v14 = vmax.f32 %v6002_v35, 0.0 }
0x124a   : > { %v5788_v48 = vpop.f32.mrb[88].mxu1 }
0x124b   : > { %v6017_v16 = vmax.f32 %v6003_v1, 0.0  ;;  %v5819_v12 = vadd.f32 %v5788_v48, %v19718_v6  ;;  %v10832_v44 = vpop.f32.mrb[89].mxu1 }
0x124c   : > { %v5791_v11 = vpop.f32.mrb[90].mxu1 }
0x124d   : > { %v5820_v2 = vadd.f32 %v5791_v11, %v19721_v41  ;;  %v5983_v10 = vadd.f32 %v19746_v3, %v5819_v12  ;;  %v6044_v28 = vpack.c.bf16 %v6017_v16, %v6016_v14  ;;  %v10833_v62 = vpop.f32.mrb[91].mxu1 }
0x124f   : > { %v6004_v45 = vadd.f32 %v19741_v37, %v5983_v10  ;;  %v5984_v8 = vadd.f32 %v5955_v40, %v5820_v2  ;;  %10901 = vmatmul.mubr.bf16.gmra.mrb[112].mxu1 %v6044_v28 }
0x1250   : > { %10904 = vmatprep.mubr.msk.bf16.mxu1 %vm15364_vm1, %v21872_v55 }
0x1251   : > { %v6005_v22 = vadd.f32 %v19741_v37, %v5984_v8  ;;  %v6018_v27 = vmax.f32 %v6004_v45, 0.0 }
0x1252   : > { %v5796_v4 = vpop.f32.mrb[92].mxu1 }
0x1253   : > { %v6019_v6 = vmax.f32 %v6005_v22, 0.0  ;;  %v5821_v57 = vadd.f32 %v5796_v4, %v19724_v63  ;;  %v10836_v25 = vpop.f32.mrb[93].mxu1 }
0x1254   : > { %v5799_v41 = vpop.f32.mrb[94].mxu1 }
0x1255   : > { %v5822_v3 = vadd.f32 %v5799_v41, %v19727_v59  ;;  %v5985_v5 = vadd.f32 %v5960_v34, %v5821_v57  ;;  %v6045_v43 = vpack.c.bf16 %v6019_v6, %v6018_v27  ;;  %v10837_v58 = vpop.f32.mrb[95].mxu1 }
0x1257   : > { %v6006_v40 = vadd.f32 %v19741_v37, %v5985_v5  ;;  %v5986_v32 = vadd.f32 %v5963_v50, %v5822_v3  ;;  %10905 = vmatmul.mubr.bf16.gmra.mrb[116].mxu1 %v6045_v43 }
0x1258   : > { %10908 = vmatprep.mubr.msk.bf16.mxu1 %vm15364_vm1, %v21872_v55 }
0x1259   : > { %v6007_v33 = vadd.f32 %v19741_v37, %v5986_v32  ;;  %v6020_v38 = vmax.f32 %v6006_v40, 0.0 }
0x125a   : > { %v5804_v29 = vpop.f32.mrb[96].mxu1 }
0x125b   : > { %v6021_v39 = vmax.f32 %v6007_v33, 0.0  ;;  %v5823_v63 = vadd.f32 %v5804_v29, %v19730_v61  ;;  %v10840_v15 = vpop.f32.mrb[97].mxu1 }
0x125c   : > { %v5807_v59 = vpop.f32.mrb[98].mxu1 }
0x125d   : > { %v5824_v34 = vadd.f32 %v5807_v59, %v19733_v9  ;;  %v5987_v35 = vadd.f32 %v5968_v31, %v5823_v63  ;;  %v6046_v0 = vpack.c.bf16 %v6021_v39, %v6020_v38  ;;  %v10841_v50 = vpop.f32.mrb[99].mxu1  ;;  %v12583_v9 = vld [vmem:[%s18616_s15 + $0x30] sm:$0xff]   ;;  %v12584_v31 = vld [vmem:[%s18616_s15 + $0x38] sm:$0xff]  }
0x125e   : > { %10929 = vmatpush3.bf16.msra.mxu0 %v12583_v9 }
0x125f   : > { %v6008_v1 = vadd.f32 %v19741_v37, %v5987_v35  ;;  %v5988_v48 = vadd.f32 %v5971_v42, %v5824_v34  ;;  %10909 = vmatmul.mubr.bf16.gmra.mrb[120].mxu1 %v6046_v0  ;;  %10930 = vmatprep.subr.bf16.mxu0 %v21872_v55  ;;  %v19794_v42 = vld [vmem:[%s18375_s1] ss:$0 sm:$0xff]  ;;  %s21913_s1 = sld [smem:[#allocation249_spill]] }
0x1260   : > { %10912 = vmatprep.mubr.msk.bf16.mxu1 %vm15364_vm1, %v21872_v55 }
0x1261   : > { %v6009_v14 = vadd.f32 %v19741_v37, %v5988_v48  ;;  %v6022_v61 = vmax.f32 %v6008_v1, 0.0 }
0x1262   : > { %10931 = vmatpush3.bf16.msra.mxu0 %v12584_v31 }
0x1263   : > { %v6023_v16 = vmax.f32 %v6009_v14, 0.0  ;;  %10996 = vmatprep.subr.bf16.mxu0 %v21872_v55 }
0x1265   : > { %v6047_v12 = vpack.c.bf16 %v6023_v16, %v6022_v61 }
0x1267   : > { %10913 = vmatmul.mubr.bf16.gmra.mrb[124].mxu1 %v6047_v12 }
0x1268   : > { %10974 = vmatprep.mubr.msk.bf16.mxu1 %vm15364_vm1, %v21872_v55 }
0x130a   : > { %v6136_v44 = vpop.f32.mrb[100].mxu1 }
0x130b   : > { %v6137_v37 = vadd.f32 %v19794_v42, %v6136_v44  ;;  %v10890_v11 = vpop.f32.mrb[101].mxu1 }
0x130c   : > { %v6139_v2 = vpop.f32.mrb[102].mxu1 }
0x130d   : > { %v6140_v10 = vadd.f32 %v19794_v42, %v6139_v2  ;;  %v10891_v28 = vpop.f32.mrb[103].mxu1  ;;  %v6191_v62 = vmax.f32 %v6137_v37, 0.0 }
0x130f   : > { %v6192_v45 = vmax.f32 %v6140_v10, 0.0 }
0x1311   : > { %v6222_v8 = vpack.c.bf16 %v6192_v45, %v6191_v62 }
0x1312   : > { %v6144_v22 = vpop.f32.mrb[104].mxu1 }
0x1313   : > { %v6145_v4 = vadd.f32 %v19794_v42, %v6144_v22  ;;  %v10894_v27 = vpop.f32.mrb[105].mxu1  ;;  %10933 = vmatmul.mubr.bf16.vlgmr.msra.gmra.mrb[120].mxu0 %v6222_v8 }
0x1314   : > { %v6147_v6 = vpop.f32.mrb[106].mxu1  ;;  %10936 = vmatprep.mubr.msk.bf16.mxu0 %vm15364_vm1, %v21872_v55 }
0x1315   : > { %v6148_v57 = vadd.f32 %v19794_v42, %v6147_v6  ;;  %v10895_v25 = vpop.f32.mrb[107].mxu1  ;;  %v6193_v41 = vmax.f32 %v6145_v4, 0.0 }
0x1317   : > { %v6194_v3 = vmax.f32 %v6148_v57, 0.0 }
0x1319   : > { %v6223_v5 = vpack.c.bf16 %v6194_v3, %v6193_v41 }
0x131a   : > { %v6152_v43 = vpop.f32.mrb[108].mxu1 }
0x131b   : > { %v6153_v58 = vadd.f32 %v19794_v42, %v6152_v43  ;;  %v10898_v40 = vpop.f32.mrb[109].mxu1  ;;  %10937 = vmatmul.mubr.bf16.gmra.mrb[124].mxu0 %v6223_v5 }
0x131c   : > { %v6155_v32 = vpop.f32.mrb[110].mxu1  ;;  %10940 = vmatprep.mubr.msk.bf16.mxu0 %vm15364_vm1, %v21872_v55 }
0x131d   : > { %v6156_v33 = vadd.f32 %v19794_v42, %v6155_v32  ;;  %v10899_v29 = vpop.f32.mrb[111].mxu1  ;;  %v6195_v38 = vmax.f32 %v6153_v58, 0.0 }
0x131e   : > { %v12586_v29 = vld [vmem:[%s18540_s12 + $0x8] sm:$0xff]  }
0x131f   : > { %v6196_v39 = vmax.f32 %v6156_v33, 0.0  ;;  %v12585_v33 = vld [vmem:[%s18540_s12] sm:$0xff]  }
0x1320   : > { %10997 = vmatpush3.bf16.msra.mxu0 %v12585_v33 }
0x1321   : > { %v6224_v63 = vpack.c.bf16 %v6196_v39, %v6195_v38  ;;  %10998 = vmatprep.subr.bf16.mxu0 %v21872_v55  ;;  %v12588_v38 = vld [vmem:[%s18540_s12 + $0x18] sm:$0xff]   ;;  %v12589_v39 = vld [vmem:[%s18540_s12 + $0x20] sm:$0xff]  }
0x1322   : > { %v6160_v15 = vpop.f32.mrb[112].mxu1 }
0x1323   : > { %v6161_v59 = vadd.f32 %v19794_v42, %v6160_v15  ;;  %v10902_v34 = vpop.f32.mrb[113].mxu1  ;;  %10941 = vmatmul.mubr.bf16.gmra.mrb[128].mxu0 %v6224_v63  ;;  %v12590_v63 = vld [vmem:[%s18540_s12 + $0x28] sm:$0xff]   ;;  %v12591_v15 = vld [vmem:[%s18540_s12 + $0x30] sm:$0xff]  }
0x1324   : > { %v6163_v35 = vpop.f32.mrb[114].mxu1  ;;  %10944 = vmatprep.mubr.msk.bf16.mxu0 %vm15364_vm1, %v21872_v55  ;;  %10999 = vmatpush3.bf16.msra.mxu0 %v12586_v29  ;;  %v12598_v34 = vld [vmem:[%s18518_s5] sm:$0xff]  }
0x1325   : > { %v6164_v0 = vadd.f32 %v19794_v42, %v6163_v35  ;;  %v10903_v50 = vpop.f32.mrb[115].mxu1  ;;  %v6197_v1 = vmax.f32 %v6161_v59, 0.0  ;;  %11000 = vmatprep.subr.bf16.mxu0 %v21872_v55  ;;  %v12592_v59 = vld [vmem:[%s18540_s12 + $0x38] sm:$0xff]   ;;  %v12600_v35 = vld [vmem:[%s18518_s5 + $0x8] sm:$0xff]  }
0x1326   : > { %v19850_v50 = vld [vmem:[%s18383_s22] ss:$0 sm:$0xff]  ;;  %s21916_s22 = sld [smem:[#allocation261_spill]] }
0x1327   : > { %v6198_v48 = vmax.f32 %v6164_v0, 0.0  ;;  %v12602_v0 = vld [vmem:[%s18518_s5 + $0x10] sm:$0xff]  }
0x1329   : > { %v6225_v14 = vpack.c.bf16 %v6198_v48, %v6197_v1 }
0x132a   : > { %v6168_v61 = vpop.f32.mrb[116].mxu1 }
0x132b   : > { %v6169_v16 = vadd.f32 %v19794_v42, %v6168_v61  ;;  %v10906_v12 = vpop.f32.mrb[117].mxu1  ;;  %10945 = vmatmul.mubr.bf16.gmra.mrb[132].mxu0 %v6225_v14 }
0x132c   : > { %v6171_v9 = vpop.f32.mrb[118].mxu1  ;;  %10948 = vmatprep.mubr.msk.bf16.mxu0 %vm15364_vm1, %v21872_v55 }
0x132d   : > { %v6172_v31 = vadd.f32 %v19794_v42, %v6171_v9  ;;  %v10907_v44 = vpop.f32.mrb[119].mxu1  ;;  %v6199_v37 = vmax.f32 %v6169_v16, 0.0 }
0x132f   : > { %v6200_v11 = vmax.f32 %v6172_v31, 0.0 }
0x1331   : > { %v6226_v2 = vpack.c.bf16 %v6200_v11, %v6199_v37 }
0x1332   : > { %v6176_v10 = vpop.f32.mrb[120].mxu1 }
0x1333   : > { %v6177_v28 = vadd.f32 %v19794_v42, %v6176_v10  ;;  %v10910_v62 = vpop.f32.mrb[121].mxu1  ;;  %10949 = vmatmul.mubr.bf16.gmra.mrb[136].mxu0 %v6226_v2 }
0x1334   : > { %v6179_v45 = vpop.f32.mrb[122].mxu1  ;;  %10952 = vmatprep.mubr.msk.bf16.mxu0 %vm15364_vm1, %v21872_v55 }
0x1335   : > { %v6180_v8 = vadd.f32 %v19794_v42, %v6179_v45  ;;  %v10911_v22 = vpop.f32.mrb[123].mxu1  ;;  %v6201_v4 = vmax.f32 %v6177_v28, 0.0 }
0x1337   : > { %v6202_v27 = vmax.f32 %v6180_v8, 0.0 }
0x1339   : > { %v6227_v6 = vpack.c.bf16 %v6202_v27, %v6201_v4 }
0x133a   : > { %v6184_v57 = vpop.f32.mrb[124].mxu1 }
0x133b   : > { %v6185_v25 = vadd.f32 %v19794_v42, %v6184_v57  ;;  %v10914_v41 = vpop.f32.mrb[125].mxu1  ;;  %10953 = vmatmul.mubr.bf16.gmra.mrb[140].mxu0 %v6227_v6 }
0x133c   : > { %v6187_v3 = vpop.f32.mrb[126].mxu1  ;;  %10956 = vmatprep.mubr.msk.bf16.mxu0 %vm15364_vm1, %v21872_v55 }
0x133d   : > { %v6188_v5 = vadd.f32 %v19794_v42, %v6187_v3  ;;  %v10915_v43 = vpop.f32.mrb[127].mxu1  ;;  %v6203_v58 = vmax.f32 %v6185_v25, 0.0  ;;  %v12587_v42 = vld [vmem:[%s18540_s12 + $0x10] sm:$0xff]  }
0x133e   : > { %11001 = vmatpush3.bf16.msra.mxu0 %v12587_v42 }
0x133f   : > { %v6204_v40 = vmax.f32 %v6188_v5, 0.0  ;;  %11002 = vmatprep.subr.bf16.mxu0 %v21872_v55 }
0x1341   : > { %v6228_v32 = vpack.c.bf16 %v6204_v40, %v6203_v58 }
0x1342   : > { %11003 = vmatpush3.bf16.msra.mxu0 %v12588_v38 }
0x1343   : > { %10957 = vmatmul.mubr.bf16.gmra.mrb[144].mxu0 %v6228_v32  ;;  %11004 = vmatprep.subr.bf16.mxu0 %v21872_v55 }
0x1344   : > { %11012 = vmatprep.mubr.msk.bf16.mxu0 %vm15364_vm1, %v21872_v55 }
0x1346   : > { %11005 = vmatpush3.bf16.msra.mxu0 %v12589_v39 }
0x1347   : > { %11006 = vmatprep.subr.bf16.mxu0 %v21872_v55 }
0x134a   : > { %11007 = vmatpush3.bf16.msra.mxu0 %v12590_v63 }
0x134b   : > { %11008 = vmatprep.subr.bf16.mxu0 %v21872_v55 }
0x134e   : > { %11009 = vmatpush3.bf16.msra.mxu0 %v12591_v15 }
0x134f   : > { %11010 = vmatprep.subr.bf16.mxu0 %v21872_v55 }
0x1352   : > { %11011 = vmatpush3.bf16.msra.mxu0 %v12592_v59 }
0x1353   : > { %11036 = vmatprep.subr.bf16.mxu0 %v21872_v55 }
0x1355   : > { %11013 = vmatmul.mubr.bf16.vlgmr.msra.gmra.mrb[148].mxu0 %v19423_v24 }
0x1356   : > { %11052 = vmatprep.mubr.msk.bf16.mxu0 %vm15364_vm1, %v21872_v55  ;;  %11037 = vmatpush3.bf16.msra.mxu0 %v12598_v34 }
0x1357   : > { %11038 = vmatprep.subr.bf16.mxu0 %v21872_v55 }
0x135a   : > { %11039 = vmatpush3.bf16.msra.mxu0 %v12600_v35 }
0x135b   : > { %11040 = vmatprep.subr.bf16.mxu0 %v21872_v55 }
0x135e   : > { %11041 = vmatpush3.bf16.msra.mxu0 %v12602_v0 }
0x135f   : > { %11042 = vmatprep.subr.bf16.mxu0 %v21872_v55 }
0x13e6   : > { %v6317_v1 = vpop.f32.mrb[120].mxu0 }
0x13e7   : > { %v6318_v48 = vadd.f32 %v19850_v50, %v6317_v1  ;;  %v10934_v14 = vpop.f32.mrb[121].mxu0 }
0x13e8   : > { %v6320_v61 = vpop.f32.mrb[122].mxu0 }
0x13e9   : > { %v6372_v16 = vmax.f32 %v6318_v48, 0.0  ;;  %v6321_v12 = vadd.f32 %v19850_v50, %v6320_v61  ;;  %v10935_v9 = vpop.f32.mrb[123].mxu0 }
0x13eb   : > { %v7838_v31 = vadd.f32 %v6372_v16, %v19445_v60  ;;  %v6373_v44 = vmax.f32 %v6321_v12, 0.0 }
0x13ed   : > { %7855 = vst [vmem:[#allocation3] sm:$0xff] %v7838_v31  ;;  %v19855_v37 = vpack.c.bf16 %v6373_v44, %v6372_v16  ;;  %v7839_v11 = vadd.f32 %v6373_v44, %v19449_v21 }
0x13ee   : > { %v6325_v2 = vpop.f32.mrb[124].mxu0 }
0x13ef   : > { %7856 = vst [vmem:[#allocation3 + $0x8] sm:$0xff] %v7839_v11  ;;  %v6326_v10 = vadd.f32 %v19850_v50, %v6325_v2  ;;  %v10938_v28 = vpop.f32.mrb[125].mxu0  ;;  %10961 = vmatpush3.bf16.msra.mxu1 %v19855_v37 }
0x13f0   : > { %v6328_v62 = vpop.f32.mrb[126].mxu0  ;;  %10962 = vmatprep.subr.bf16.mxu1 %v21872_v55 }
0x13f1   : > { %v6374_v45 = vmax.f32 %v6326_v10, 0.0  ;;  %v6329_v8 = vadd.f32 %v19850_v50, %v6328_v62  ;;  %v10939_v60 = vpop.f32.mrb[127].mxu0 }
0x13f3   : > { %v7840_v22 = vadd.f32 %v6374_v45, %v19458_v56  ;;  %v6375_v4 = vmax.f32 %v6329_v8, 0.0 }
0x13f5   : > { %7857 = vst [vmem:[#allocation3 + $0x10] sm:$0xff] %v7840_v22  ;;  %v19863_v27 = vpack.c.bf16 %v6375_v4, %v6374_v45  ;;  %v7841_v21 = vadd.f32 %v6375_v4, %v19462_v30 }
0x13f6   : > { %v6333_v6 = vpop.f32.mrb[128].mxu0 }
0x13f7   : > { %7858 = vst [vmem:[#allocation3 + $0x18] sm:$0xff] %v7841_v21  ;;  %v6334_v57 = vadd.f32 %v19850_v50, %v6333_v6  ;;  %v10942_v25 = vpop.f32.mrb[129].mxu0  ;;  %10963 = vmatpush3.bf16.msra.mxu1 %v19863_v27 }
0x13f8   : > { %v6336_v41 = vpop.f32.mrb[130].mxu0  ;;  %10964 = vmatprep.subr.bf16.mxu1 %v21872_v55 }
0x13f9   : > { %v6376_v3 = vmax.f32 %v6334_v57, 0.0  ;;  %v6337_v5 = vadd.f32 %v19850_v50, %v6336_v41  ;;  %v10943_v56 = vpop.f32.mrb[131].mxu0 }
0x13fa   : > { %v12596_v56 = vld [vmem:[%s18525_s14 + $0x18] sm:$0xff]  }
0x13fb   : > { %v7842_v43 = vadd.f32 %v6376_v3, %v19470_v7  ;;  %v6377_v58 = vmax.f32 %v6337_v5, 0.0  ;;  %v12595_v5 = vld [vmem:[%s18525_s14 + $0x10] sm:$0xff]  }
0x13fd   : > { %7859 = vst [vmem:[#allocation3 + $0x20] sm:$0xff] %v7842_v43  ;;  %v19871_v40 = vpack.c.bf16 %v6377_v58, %v6376_v3  ;;  %v7843_v30 = vadd.f32 %v6377_v58, %v19474_v54  ;;  %v12594_v3 = vld [vmem:[%s18525_s14 + $0x8] sm:$0xff]   ;;  %v12597_v43 = vld [vmem:[%s18525_s14 + $0x20] sm:$0xff]  }
0x13fe   : > { %v6341_v32 = vpop.f32.mrb[132].mxu0  ;;  %v12599_v58 = vld [vmem:[%s18525_s14 + $0x28] sm:$0xff]  }
0x13ff   : > { %7860 = vst [vmem:[#allocation3 + $0x28] sm:$0xff] %v7843_v30  ;;  %v6342_v33 = vadd.f32 %v19850_v50, %v6341_v32  ;;  %v10946_v29 = vpop.f32.mrb[133].mxu0  ;;  %10965 = vmatpush3.bf16.msra.mxu1 %v19871_v40  ;;  %v12601_v30 = vld [vmem:[%s18525_s14 + $0x30] sm:$0xff]   ;;  %v12604_v32 = vld [vmem:[%s18518_s5 + $0x18] sm:$0xff]  }
0x1400   : > { %v6344_v42 = vpop.f32.mrb[134].mxu0  ;;  %10966 = vmatprep.subr.bf16.mxu1 %v21872_v55  ;;  %11043 = vmatpush3.bf16.msra.mxu0 %v12604_v32  ;;  %v12608_v29 = vld [vmem:[%s18518_s5 + $0x28] sm:$0xff]   ;;  %v12627_v32 = vld [vmem:[%s18510_s11 + $0x10] sm:$0xff]  }
0x1401   : > { %v6378_v38 = vmax.f32 %v6342_v33, 0.0  ;;  %v6345_v39 = vadd.f32 %v19850_v50, %v6344_v42  ;;  %v10947_v7 = vpop.f32.mrb[135].mxu0  ;;  %11044 = vmatprep.subr.bf16.mxu0 %v21872_v55  ;;  %v12606_v33 = vld [vmem:[%s18518_s5 + $0x20] sm:$0xff]   ;;  %v12610_v42 = vld [vmem:[%s18518_s5 + $0x30] sm:$0xff]  }
0x1403   : > { %v7844_v63 = vadd.f32 %v6378_v38, %v19482_v47  ;;  %v6379_v15 = vmax.f32 %v6345_v39, 0.0  ;;  %v12612_v39 = vld [vmem:[%s18518_s5 + $0x38] sm:$0xff]  }
0x1404   : > { %11045 = vmatpush3.bf16.msra.mxu0 %v12606_v33  ;;  %v12628_v33 = vld [vmem:[%s18510_s11 + $0x18] sm:$0xff]  }
0x1405   : > { %7861 = vst [vmem:[#allocation3 + $0x30] sm:$0xff] %v7844_v63  ;;  %v19879_v59 = vpack.c.bf16 %v6379_v15, %v6378_v38  ;;  %v7845_v54 = vadd.f32 %v6379_v15, %v19486_v19  ;;  %11046 = vmatprep.subr.bf16.mxu0 %v21872_v55  ;;  %v12603_v38 = vld [vmem:[%s18525_s14 + $0x38] sm:$0xff]  }
0x1406   : > { %v6349_v34 = vpop.f32.mrb[136].mxu0 }
0x1407   : > { %7862 = vst [vmem:[#allocation3 + $0x38] sm:$0xff] %v7845_v54  ;;  %v6350_v35 = vadd.f32 %v19850_v50, %v6349_v34  ;;  %v10950_v0 = vpop.f32.mrb[137].mxu0  ;;  %10967 = vmatpush3.bf16.msra.mxu1 %v19879_v59 }
0x1408   : > { %v6352_v1 = vpop.f32.mrb[138].mxu0  ;;  %10968 = vmatprep.subr.bf16.mxu1 %v21872_v55  ;;  %11047 = vmatpush3.bf16.msra.mxu0 %v12608_v29  ;;  %v21904_v0 = vld [vmem:[#allocation402_spill] sm:$0xff]  ;;  %v12629_v29 = vld [vmem:[%s18510_s11 + $0x20] sm:$0xff]  }
0x1409   : > { %v6380_v48 = vmax.f32 %v6350_v35, 0.0  ;;  %v6353_v14 = vadd.f32 %v19850_v50, %v6352_v1  ;;  %v10951_v47 = vpop.f32.mrb[139].mxu0  ;;  %11048 = vmatprep.subr.bf16.mxu0 %v21872_v55  ;;  %v21905_v1 = vld [vmem:[#allocation401_spill] sm:$0xff] }
0x140b   : > { %v7846_v61 = vadd.f32 %v6380_v48, %v19494_v49  ;;  %v6381_v16 = vmax.f32 %v6353_v14, 0.0 }
0x140c   : > { %11049 = vmatpush3.bf16.msra.mxu0 %v12610_v42  ;;  %v12630_v42 = vld [vmem:[%s18510_s11 + $0x28] sm:$0xff]  }
0x140d   : > { %7863 = vst [vmem:[#allocation3 + $0x40] sm:$0xff] %v7846_v61  ;;  %v19887_v12 = vpack.c.bf16 %v6381_v16, %v6380_v48  ;;  %v7847_v19 = vadd.f32 %v6381_v16, %v19498_v36  ;;  %11050 = vmatprep.subr.bf16.mxu0 %v21872_v55  ;;  %v9876_v48 = vcombine.low %v21905_v1, %v21904_v0  ;;  %v12605_v61 = vld [vmem:[%s18533_s20] sm:$0xff]  }
0x140e   : > { %v6357_v9 = vpop.f32.mrb[140].mxu0 }
0x140f   : > { %7864 = vst [vmem:[#allocation3 + $0x48] sm:$0xff] %v7847_v19  ;;  %v6358_v31 = vadd.f32 %v19850_v50, %v6357_v9  ;;  %v10954_v44 = vpop.f32.mrb[141].mxu0  ;;  %10969 = vmatpush3.bf16.msra.mxu1 %v19887_v12  ;;  %v12607_v9 = vld [vmem:[%s18533_s20 + $0x8] sm:$0xff]  }
0x1410   : > { %v6360_v11 = vpop.f32.mrb[142].mxu0  ;;  %10970 = vmatprep.subr.bf16.mxu1 %v21872_v55  ;;  %11051 = vmatpush3.bf16.msra.mxu0 %v12612_v39  ;;  %v12611_v44 = vld [vmem:[%s18533_s20 + $0x18] sm:$0xff]  }
0x1411   : > { %v6382_v2 = vmax.f32 %v6358_v31, 0.0  ;;  %v6361_v10 = vadd.f32 %v19850_v50, %v6360_v11  ;;  %v10955_v49 = vpop.f32.mrb[143].mxu0  ;;  %11076 = vmatprep.subr.bf16.mxu0 %v21872_v55  ;;  %v12609_v31 = vld [vmem:[%s18533_s20 + $0x10] sm:$0xff]   ;;  %v12613_v11 = vld [vmem:[%s18533_s20 + $0x20] sm:$0xff]  }
0x1413   : > { %v7848_v28 = vadd.f32 %v6382_v2, %v19506_v13  ;;  %v6383_v62 = vmax.f32 %v6361_v10, 0.0  ;;  %11053 = vmatmul.mubr.bf16.vlgmr.msra.gmra.mrb[152].mxu0 %v19387_v26  ;;  %v12615_v10 = vld [vmem:[%s18533_s20 + $0x30] sm:$0xff]  }
0x1414   : > { %11078 = vmatprep.mubr.msk.bf16.mxu0 %vm15364_vm1, %v21872_v55 }
0x1415   : > { %7865 = vst [vmem:[#allocation3 + $0x50] sm:$0xff] %v7848_v28  ;;  %v19895_v45 = vpack.c.bf16 %v6383_v62, %v6382_v2  ;;  %v7849_v36 = vadd.f32 %v6383_v62, %v19510_v46  ;;  %v12614_v2 = vld [vmem:[%s18533_s20 + $0x28] sm:$0xff]  }
0x1416   : > { %v6365_v8 = vpop.f32.mrb[144].mxu0 }
0x1417   : > { %7866 = vst [vmem:[#allocation3 + $0x58] sm:$0xff] %v7849_v36  ;;  %v6366_v60 = vadd.f32 %v19850_v50, %v6365_v8  ;;  %v10958_v22 = vpop.f32.mrb[145].mxu0  ;;  %10971 = vmatpush3.bf16.msra.mxu1 %v19895_v45  ;;  %v12616_v36 = vld [vmem:[%s18533_s20 + $0x38] sm:$0xff]   ;;  %s21910_s20 = sld [smem:[#allocation276_spill]] }
0x1418   : > { %v6368_v4 = vpop.f32.mrb[146].mxu0  ;;  %10972 = vmatprep.subr.bf16.mxu1 %v21872_v55  ;;  %v12617_v22 = vld [vmem:[%s18495_s27] sm:$0xff]  }
0x1419   : > { %v6384_v21 = vmax.f32 %v6366_v60, 0.0  ;;  %v6369_v6 = vadd.f32 %v19850_v50, %v6368_v4  ;;  %v10959_v13 = vpop.f32.mrb[147].mxu0  ;;  %v12593_v50 = vld [vmem:[%s18525_s14] sm:$0xff]   ;;  %s21909_s14 = sld [smem:[#allocation255_spill]] }
0x141b   : > { %v7850_v57 = vadd.f32 %v6384_v21, %v19518_v52  ;;  %v6385_v25 = vmax.f32 %v6369_v6, 0.0  ;;  %v21903_v52 = vld [vmem:[#allocation403_spill] sm:$0xff] }
0x141d   : > { %7867 = vst [vmem:[#allocation3 + $0x60] sm:$0xff] %v7850_v57  ;;  %v19903_v41 = vpack.c.bf16 %v6385_v25, %v6384_v21  ;;  %v7851_v46 = vadd.f32 %v6385_v25, %v19522_v23  ;;  %v12618_v21 = vld [vmem:[%s18495_s27 + $0x8] sm:$0xff]   ;;  %v12619_v57 = vld [vmem:[%s18495_s27 + $0x10] sm:$0xff]  }
0x141f   : > { %7868 = vst [vmem:[#allocation3 + $0x68] sm:$0xff] %v7851_v46  ;;  %10973 = vmatpush3.bf16.msra.mxu1 %v19903_v41  ;;  %v12620_v46 = vld [vmem:[%s18495_s27 + $0x18] sm:$0xff]  }
0x1420   : > { %10978 = vmatprep.subr.bf16.mxu1 %v21872_v55 }
0x1422   : > { %10975 = vmatmul.mubr.msk.bf16.vlgmr.msra.gmra.mrb[128].mxu1 %vm4385_vm2, %v19154_v17  ;;  %v21902_v17 = vld [vmem:[#allocation404_spill] sm:$0xff] }
0x1423   : > { %10979 = vmatpush3.bf16.msra.mxu1 %v19855_v37  ;;  %10992 = vmatprep.mubr.msk.bf16.mxu1 %vm15364_vm1, %v21872_v55  ;;  %v9842_v23 = vcombine.low %v21903_v52, %v21902_v17  ;;  %v12621_v17 = vld [vmem:[%s18495_s27 + $0x20] sm:$0xff]  }
0x1424   : > { %10980 = vmatprep.subr.bf16.mxu1 %v21872_v55 }
0x1427   : > { %10981 = vmatpush3.bf16.msra.mxu1 %v19863_v27 }
0x1428   : > { %10982 = vmatprep.subr.bf16.mxu1 %v21872_v55  ;;  %v6631_v7 = vpop.f32.mrb[148].mxu0 }
0x1429   : > { %v6637_v63 = vpack.c.bf16 %v6631_v7, %v6631_v7  ;;  %v11014_v15 = vpop.f32.mrb[149].mxu0 }
0x142a   : > { %v6634_v54 = vpop.f32.mrb[150].mxu0 }
0x142b   : > { %10983 = vmatpush3.bf16.msra.mxu1 %v19871_v40  ;;  %v6916_v34 = vsel %vm5882_vm3, %v6637_v63, 0  ;;  %v11015_v35 = vpop.f32.mrb[151].mxu0 }
0x142c   : > { %10984 = vmatprep.subr.bf16.mxu1 %v21872_v55  ;;  %11077 = vmatpush3.bf16.msra.mxu0 %v6916_v34 }
0x142d   : > { %11102 = vmatprep.subr.bf16.mxu0 %v21872_v55 }
0x142f   : > { %10985 = vmatpush3.bf16.msra.mxu1 %v19879_v59  ;;  %11079 = vmatmul.mubr.msk.bf16.vlgmr.msra.gmra.mrb[156].mxu0 %vm5860_vm4, %v9876_v48  ;;  %v9878_v48 = vld [vmem:[%s18480_s26] ss:$0 sm:$0xff] }
0x1430   : > { %10986 = vmatprep.subr.bf16.mxu1 %v21872_v55  ;;  %11118 = vmatprep.mubr.msk.bf16.mxu0 %vm15364_vm1, %v21872_v55 }
0x1433   : > { %10987 = vmatpush3.bf16.msra.mxu1 %v19887_v12 }
0x1434   : > { %10988 = vmatprep.subr.bf16.mxu1 %v21872_v55 }
0x1437   : > { %10989 = vmatpush3.bf16.msra.mxu1 %v19895_v45 }
0x1438   : > { %10990 = vmatprep.subr.bf16.mxu1 %v21872_v55 }
0x143b   : > { %10991 = vmatpush3.bf16.msra.mxu1 %v19903_v41 }
0x143c   : > { %11016 = vmatprep.subr.bf16.mxu1 %v21872_v55 }
0x143e   : > { %10993 = vmatmul.mubr.msk.bf16.vlgmr.msra.gmra.mrb[132].mxu1 %vm4385_vm2, %v9842_v23  ;;  %v12622_v23 = vld [vmem:[%s18495_s27 + $0x28] sm:$0xff]  }
0x143f   : > { %11017 = vmatpush3.bf16.msra.mxu1 %v12593_v50  ;;  %11032 = vmatprep.mubr.msk.bf16.mxu1 %vm15364_vm1, %v21872_v55 }
0x1440   : > { %11018 = vmatprep.subr.bf16.mxu1 %v21872_v55 }
0x1443   : > { %11019 = vmatpush3.bf16.msra.mxu1 %v12594_v3 }
0x1444   : > { %11020 = vmatprep.subr.bf16.mxu1 %v21872_v55 }
0x1447   : > { %11021 = vmatpush3.bf16.msra.mxu1 %v12595_v5 }
0x1448   : > { %11022 = vmatprep.subr.bf16.mxu1 %v21872_v55 }
0x144b   : > { %11023 = vmatpush3.bf16.msra.mxu1 %v12596_v56  ;;  %v12623_v56 = vld [vmem:[%s18495_s27 + $0x30] sm:$0xff]  }
0x144c   : > { %11024 = vmatprep.subr.bf16.mxu1 %v21872_v55 }
0x144f   : > { %11025 = vmatpush3.bf16.msra.mxu1 %v12597_v43  ;;  %v12624_v43 = vld [vmem:[%s18495_s27 + $0x38] sm:$0xff]   ;;  %s21906_s27 = sld [smem:[#allocation264_spill]] }
0x1450   : > { %11026 = vmatprep.subr.bf16.mxu1 %v21872_v55 }
0x1453   : > { %11027 = vmatpush3.bf16.msra.mxu1 %v12599_v58  ;;  %v12625_v58 = vld [vmem:[%s18510_s11] sm:$0xff]  }
0x1454   : > { %11028 = vmatprep.subr.bf16.mxu1 %v21872_v55  ;;  %11103 = vmatpush3.bf16.msra.mxu0 %v12625_v58 }
0x1455   : > { %11104 = vmatprep.subr.bf16.mxu0 %v21872_v55 }
0x1457   : > { %11029 = vmatpush3.bf16.msra.mxu1 %v12601_v30  ;;  %v12626_v30 = vld [vmem:[%s18510_s11 + $0x8] sm:$0xff]  }
0x1458   : > { %11030 = vmatprep.subr.bf16.mxu1 %v21872_v55  ;;  %11105 = vmatpush3.bf16.msra.mxu0 %v12626_v30  ;;  %v12643_v30 = vld [vmem:[%s18458_s17 + $0x10] sm:$0xff]  }
0x1459   : > { %11106 = vmatprep.subr.bf16.mxu0 %v21872_v55 }
0x145b   : > { %11031 = vmatpush3.bf16.msra.mxu1 %v12603_v38 }
0x145c   : > { %11056 = vmatprep.subr.bf16.mxu1 %v21872_v55  ;;  %11107 = vmatpush3.bf16.msra.mxu0 %v12627_v32  ;;  %v12645_v32 = vld [vmem:[%s18458_s17 + $0x18] sm:$0xff]  }
0x145d   : > { %11108 = vmatprep.subr.bf16.mxu0 %v21872_v55 }
0x1460   : > { %11109 = vmatpush3.bf16.msra.mxu0 %v12628_v33  ;;  %v12647_v33 = vld [vmem:[%s18458_s17 + $0x20] sm:$0xff]  }
0x1461   : > { %11110 = vmatprep.subr.bf16.mxu0 %v21872_v55 }
0x1464   : > { %11111 = vmatpush3.bf16.msra.mxu0 %v12629_v29  ;;  %v12649_v29 = vld [vmem:[%s18458_s17 + $0x28] sm:$0xff]  }
0x1465   : > { %11112 = vmatprep.subr.bf16.mxu0 %v21872_v55 }
0x1468   : > { %11113 = vmatpush3.bf16.msra.mxu0 %v12630_v42  ;;  %v12651_v42 = vld [vmem:[%s18458_s17 + $0x30] sm:$0xff]  }
0x1469   : > { %11114 = vmatprep.subr.bf16.mxu0 %v21872_v55 }
0x14e6   : > { %v6809_v4 = vpop.f32.mrb[152].mxu0 }
0x14e7   : > { %v11054_v6 = vpop.f32.mrb[153].mxu0 }
0x14e8   : > { %v6812_v13 = vpop.f32.mrb[154].mxu0 }
0x14e9   : > { %v11055_v25 = vpop.f32.mrb[155].mxu0 }
0x14f5   : > { %v6491_v26 = vpop.f32.mrb[128].mxu1 }
0x14f6   : > { %v10976_v14 = vpop.f32.mrb[129].mxu1 }
0x14f7   : > { %v6494_v47 = vpop.f32.mrb[130].mxu1 }
0x14f8   : > { %v6498_v16 = vpack.c.bf16 %v6494_v47, %v6491_v26  ;;  %v10977_v19 = vpop.f32.mrb[131].mxu1 }
0x14fa   : > { %11033 = vmatmul.mubr.bf16.vlgmr.msra.gmra.mrb[136].mxu1 %v6498_v16 }
0x14fb   : > { %11057 = vmatpush3.bf16.msra.mxu1 %v12605_v61  ;;  %11072 = vmatprep.mubr.msk.bf16.mxu1 %vm15364_vm1, %v21872_v55 }
0x14fc   : > { %11058 = vmatprep.subr.bf16.mxu1 %v21872_v55 }
0x14ff   : > { %11059 = vmatpush3.bf16.msra.mxu1 %v12607_v9 }
0x1500   : > { %11060 = vmatprep.subr.bf16.mxu1 %v21872_v55 }
0x1502   : > { %v6952_v52 = vpop.f32.mrb[156].mxu0 }
0x1503   : > { %11061 = vmatpush3.bf16.msra.mxu1 %v12609_v31  ;;  %v11080_v50 = vpop.f32.mrb[157].mxu0 }
0x1504   : > { %11062 = vmatprep.subr.bf16.mxu1 %v21872_v55  ;;  %v6955_v3 = vpop.f32.mrb[158].mxu0 }
0x1505   : > { %v11081_v5 = vpop.f32.mrb[159].mxu0 }
0x1507   : > { %11063 = vmatpush3.bf16.msra.mxu1 %v12611_v44 }
0x1508   : > { %11064 = vmatprep.subr.bf16.mxu1 %v21872_v55 }
0x150b   : > { %11065 = vmatpush3.bf16.msra.mxu1 %v12613_v11  ;;  %v12631_v11 = vld [vmem:[%s18510_s11 + $0x30] sm:$0xff]  }
0x150c   : > { %11066 = vmatprep.subr.bf16.mxu1 %v21872_v55  ;;  %11115 = vmatpush3.bf16.msra.mxu0 %v12631_v11 }
0x150d   : > { %11116 = vmatprep.subr.bf16.mxu0 %v21872_v55 }
0x150f   : > { %11067 = vmatpush3.bf16.msra.mxu1 %v12614_v2  ;;  %v12632_v2 = vld [vmem:[%s18510_s11 + $0x38] sm:$0xff]   ;;  %s21907_s11 = sld [smem:[#allocation273_spill]] }
0x1510   : > { %11068 = vmatprep.subr.bf16.mxu1 %v21872_v55  ;;  %11117 = vmatpush3.bf16.msra.mxu0 %v12632_v2 }
0x1511   : > { %v6541_v49 = vpop.f32.mrb[132].mxu1  ;;  %11128 = vmatprep.subr.bf16.mxu0 %v21872_v55 }
0x1512   : > { %v10994_v28 = vpop.f32.mrb[133].mxu1 }
0x1513   : > { %11069 = vmatpush3.bf16.msra.mxu1 %v12615_v10  ;;  %v6544_v62 = vpop.f32.mrb[134].mxu1  ;;  %v9879_v10 = vld [vmem:[%s18488_s4] ss:$0 sm:$0xff] }
0x1514   : > { %11070 = vmatprep.subr.bf16.mxu1 %v21872_v55  ;;  %v6548_v8 = vpack.c.bf16 %v6544_v62, %v6541_v49  ;;  %v10995_v60 = vpop.f32.mrb[135].mxu1 }
0x1515   : > { %v12634_v50 = vld [vmem:[%s21907_s11 + $0x8] sm:$0xff]   ;;  %v12637_v5 = vld [vmem:[%s21907_s11 + $0x20] sm:$0xff]   ;;  %v12642_v58 = vld [vmem:[%s21907_s11 + $0x38] sm:$0xff]  }
0x1517   : > { %11071 = vmatpush3.bf16.msra.mxu1 %v12616_v36 }
0x1518   : > { %11082 = vmatprep.subr.bf16.mxu1 %v21872_v55 }
0x151a   : > { %11073 = vmatmul.mubr.bf16.vlgmr.msra.gmra.mrb[140].mxu1 %v6548_v8 }
0x151b   : > { %11083 = vmatpush3.bf16.msra.mxu1 %v12617_v22  ;;  %11098 = vmatprep.mubr.msk.bf16.mxu1 %vm15364_vm1, %v21872_v55 }
0x151c   : > { %11084 = vmatprep.subr.bf16.mxu1 %v21872_v55 }
0x151f   : > { %11085 = vmatpush3.bf16.msra.mxu1 %v12618_v21 }
0x1520   : > { %11086 = vmatprep.subr.bf16.mxu1 %v21872_v55 }
0x1523   : > { %11087 = vmatpush3.bf16.msra.mxu1 %v12619_v57 }
0x1524   : > { %11088 = vmatprep.subr.bf16.mxu1 %v21872_v55 }
0x1527   : > { %11089 = vmatpush3.bf16.msra.mxu1 %v12620_v46 }
0x1528   : > { %11090 = vmatprep.subr.bf16.mxu1 %v21872_v55 }
0x152b   : > { %11091 = vmatpush3.bf16.msra.mxu1 %v12621_v17 }
0x152c   : > { %11092 = vmatprep.subr.bf16.mxu1 %v21872_v55 }
0x152f   : > { %11093 = vmatpush3.bf16.msra.mxu1 %v12622_v23  ;;  %v12633_v23 = vld [vmem:[%s21907_s11] sm:$0xff]  }
0x1530   : > { %11094 = vmatprep.subr.bf16.mxu1 %v21872_v55 }
0x1533   : > { %11095 = vmatpush3.bf16.msra.mxu1 %v12623_v56  ;;  %v12638_v56 = vld [vmem:[%s21907_s11 + $0x28] sm:$0xff]  }
0x1534   : > { %11096 = vmatprep.subr.bf16.mxu1 %v21872_v55 }
0x1537   : > { %11097 = vmatpush3.bf16.msra.mxu1 %v12624_v43  ;;  %v12640_v43 = vld [vmem:[%s21907_s11 + $0x30] sm:$0xff]  }
0x1538   : > { %11122 = vmatprep.subr.bf16.mxu1 %v21872_v55 }
0x15cd   : > { %v6720_v38 = vpop.f32.mrb[136].mxu1 }
0x15ce   : > { %v11034_v39 = vpop.f32.mrb[137].mxu1  ;;  %v6810_v7 = vadd.f32 %v6809_v4, %v6720_v38  ;;  %v12653_v38 = vld [vmem:[%s18458_s17 + $0x38] sm:$0xff]  }
0x15cf   : > { %v6723_v63 = vpop.f32.mrb[138].mxu1 }
0x15d0   : > { %v11035_v15 = vpop.f32.mrb[139].mxu1  ;;  %v6813_v54 = vadd.f32 %v6812_v13, %v6723_v63 }
0x15ed   : > { %v6898_v34 = vpop.f32.mrb[140].mxu1 }
0x15ee   : > { %v6905_v35 = vadd.f32 %v6898_v34, %v6810_v7  ;;  %v11074_v0 = vpop.f32.mrb[141].mxu1  ;;  %v12658_v34 = vld [vmem:[%s21909_s14 + $0x8] sm:$0xff]  }
0x15ef   : > { %v6901_v1 = vpop.f32.mrb[142].mxu1  ;;  %v12644_v0 = vld [vmem:[%s21910_s20] sm:$0xff]  }
0x15f0   : > { %v6906_v26 = vadd.f32 %v6901_v1, %v6813_v54  ;;  %v6959_v14 = vadd.f32 %v6952_v52, %v6905_v35  ;;  %v11075_v47 = vpop.f32.mrb[143].mxu1  ;;  %v12657_v54 = vld [vmem:[%s21909_s14] sm:$0xff]   ;;  %v12659_v35 = vld [vmem:[%s21909_s14 + $0x10] sm:$0xff]  }
0x15f1   : > { %v12646_v47 = vld [vmem:[%s21910_s20 + $0x8] sm:$0xff]  }
0x15f2   : > { %v6968_v61 = vadd.f32 %v9878_v48, %v6959_v14  ;;  %v6960_v16 = vadd.f32 %v6955_v3, %v6906_v26  ;;  %v12636_v3 = vld [vmem:[%s21907_s11 + $0x18] sm:$0xff]  }
0x15f4   : > { %v6969_v19 = vadd.f32 %v9878_v48, %v6960_v16  ;;  %v6970_v9 = vmax.f32 %v6968_v61, 0.0  ;;  %v12648_v61 = vld [vmem:[%s21910_s20 + $0x10] sm:$0xff]   ;;  %v12650_v16 = vld [vmem:[%s21910_s20 + $0x18] sm:$0xff]  }
0x15f6   : > { %v6971_v31 = vmax.f32 %v6969_v19, 0.0  ;;  %v12652_v19 = vld [vmem:[%s21910_s20 + $0x20] sm:$0xff]  }
0x15f8   : > { %v6989_v44 = vpack.c.bf16 %v6971_v31, %v6970_v9  ;;  %v12654_v9 = vld [vmem:[%s21910_s20 + $0x28] sm:$0xff]   ;;  %v12655_v31 = vld [vmem:[%s21910_s20 + $0x30] sm:$0xff]  }
0x15fa   : > { %11099 = vmatmul.mubr.bf16.vlgmr.msra.gmra.mrb[144].mxu1 %v6989_v44  ;;  %v12656_v44 = vld [vmem:[%s21910_s20 + $0x38] sm:$0xff]  }
0x15fb   : > { %11124 = vmatprep.mubr.msk.bf16.mxu1 %vm15364_vm1, %v21872_v55 }
0x16cd   : > { %v7078_v49 = vpop.f32.mrb[144].mxu1 }
0x16ce   : > { %v7079_v28 = vadd.f32 %v9879_v10, %v7078_v49  ;;  %v11100_v62 = vpop.f32.mrb[145].mxu1 }
0x16cf   : > { %v7081_v36 = vpop.f32.mrb[146].mxu1  ;;  %v12661_v62 = vld [vmem:[%s21909_s14 + $0x20] sm:$0xff]  }
0x16d0   : > { %v7082_v8 = vadd.f32 %v9879_v10, %v7081_v36  ;;  %v11101_v60 = vpop.f32.mrb[147].mxu1  ;;  %v7085_v22 = vmax.f32 %v7079_v28, 0.0  ;;  %v12660_v10 = vld [vmem:[%s21909_s14 + $0x18] sm:$0xff]  }
0x16d1   : > { %v12663_v60 = vld [vmem:[%s21909_s14 + $0x30] sm:$0xff]  }
0x16d2   : > { %v7086_v4 = vmax.f32 %v7082_v8, 0.0  ;;  %v12662_v8 = vld [vmem:[%s21909_s14 + $0x28] sm:$0xff]  }
0x16d4   : > { %v7104_v21 = vpack.c.bf16 %v7086_v4, %v7085_v22  ;;  %v12664_v22 = vld [vmem:[%s21909_s14 + $0x38] sm:$0xff]  }
0x16d6   : > { %11119 = vmatmul.mubr.bf16.vlgmr.msra.gmra.mrb[160].mxu0 %v7104_v21 }
0x16d7   : > { %11129 = vmatpush3.bf16.msra.mxu0 %v19855_v37  ;;  %11142 = vmatprep.mubr.msk.bf16.mxu0 %vm15364_vm1, %v21872_v55  ;;  %v12639_v37 = vld [vmem:[%s18458_s17] sm:$0xff]  }
0x16d8   : > { %11130 = vmatprep.subr.bf16.mxu0 %v21872_v55 }
0x16db   : > { %11131 = vmatpush3.bf16.msra.mxu0 %v19863_v27  ;;  %v12641_v27 = vld [vmem:[%s18458_s17 + $0x8] sm:$0xff]   ;;  %s21911_s17 = sld [smem:[#allocation267_spill]] }
0x16dc   : > { %11132 = vmatprep.subr.bf16.mxu0 %v21872_v55 }
0x16df   : > { %11133 = vmatpush3.bf16.msra.mxu0 %v19871_v40  ;;  %v9888_v40 = vld [vmem:[%s21906_s27] ss:$0 sm:$0xff] }
0x16e0   : > { %11134 = vmatprep.subr.bf16.mxu0 %v21872_v55 }
0x16e1   : > { %v12673_v4 = vld [vmem:[%s21911_s17] sm:$0xff]   ;;  %v12674_v21 = vld [vmem:[%s21911_s17 + $0x8] sm:$0xff]  }
0x16e3   : > { %11135 = vmatpush3.bf16.msra.mxu0 %v19879_v59 }
0x16e4   : > { %11136 = vmatprep.subr.bf16.mxu0 %v21872_v55 }
0x16e7   : > { %11137 = vmatpush3.bf16.msra.mxu0 %v19887_v12 }
0x16e8   : > { %11138 = vmatprep.subr.bf16.mxu0 %v21872_v55 }
0x16eb   : > { %11139 = vmatpush3.bf16.msra.mxu0 %v19895_v45 }
0x16ec   : > { %11140 = vmatprep.subr.bf16.mxu0 %v21872_v55 }
0x16ef   : > { %11141 = vmatpush3.bf16.msra.mxu0 %v19903_v41 }
0x16f0   : > { %11166 = vmatprep.subr.bf16.mxu0 %v21872_v55 }
0x16f2   : > { %11143 = vmatmul.mubr.msk.bf16.vlgmr.msra.gmra.mrb[164].mxu0 %vm4385_vm2, %v18692_v53 }
0x16f3   : > { %11182 = vmatprep.mubr.msk.bf16.mxu0 %vm15364_vm1, %v21872_v55  ;;  %11167 = vmatpush3.bf16.msra.mxu0 %v12639_v37  ;;  %v12675_v37 = vld [vmem:[%s21911_s17 + $0x10] sm:$0xff]  }
0x16f4   : > { %11168 = vmatprep.subr.bf16.mxu0 %v21872_v55 }
0x16f7   : > { %11169 = vmatpush3.bf16.msra.mxu0 %v12641_v27  ;;  %v12676_v27 = vld [vmem:[%s21911_s17 + $0x18] sm:$0xff]  }
0x16f8   : > { %11170 = vmatprep.subr.bf16.mxu0 %v21872_v55 }
0x16fb   : > { %11171 = vmatpush3.bf16.msra.mxu0 %v12643_v30  ;;  %v12668_v30 = vld [vmem:[%s18563_s19 + $0x18] sm:$0xff]  }
0x16fc   : > { %11172 = vmatprep.subr.bf16.mxu0 %v21872_v55 }
0x16ff   : > { %11173 = vmatpush3.bf16.msra.mxu0 %v12645_v32  ;;  %v12669_v32 = vld [vmem:[%s18563_s19 + $0x20] sm:$0xff]  }
0x1700   : > { %11174 = vmatprep.subr.bf16.mxu0 %v21872_v55 }
0x1703   : > { %11175 = vmatpush3.bf16.msra.mxu0 %v12647_v33  ;;  %v12670_v33 = vld [vmem:[%s18563_s19 + $0x28] sm:$0xff]  }
0x1704   : > { %11176 = vmatprep.subr.bf16.mxu0 %v21872_v55 }
0x1707   : > { %11177 = vmatpush3.bf16.msra.mxu0 %v12649_v29  ;;  %v12671_v29 = vld [vmem:[%s18563_s19 + $0x30] sm:$0xff]  }
0x1708   : > { %11178 = vmatprep.subr.bf16.mxu0 %v21872_v55 }
0x170b   : > { %11179 = vmatpush3.bf16.msra.mxu0 %v12651_v42  ;;  %v12672_v42 = vld [vmem:[%s18563_s19 + $0x38] sm:$0xff]  }
0x170c   : > { %11180 = vmatprep.subr.bf16.mxu0 %v21872_v55 }
0x170f   : > { %11181 = vmatpush3.bf16.msra.mxu0 %v12653_v38  ;;  %v21914_v38 = vld [vmem:[#allocation406_spill] sm:$0xff] }
0x1710   : > { %11206 = vmatprep.subr.bf16.mxu0 %v21872_v55 }
0x1712   : > { %11183 = vmatmul.mubr.bf16.vlgmr.msra.gmra.mrb[168].mxu0 %v19423_v24 }
0x1713   : > { %11222 = vmatprep.mubr.msk.bf16.mxu0 %vm15364_vm1, %v21872_v55  ;;  %11207 = vmatpush3.bf16.msra.mxu0 %v12657_v54 }
0x1714   : > { %11208 = vmatprep.subr.bf16.mxu0 %v21872_v55 }
0x1717   : > { %11209 = vmatpush3.bf16.msra.mxu0 %v12658_v34 }
0x1718   : > { %11210 = vmatprep.subr.bf16.mxu0 %v21872_v55 }
0x171b   : > { %11211 = vmatpush3.bf16.msra.mxu0 %v12659_v35  ;;  %v12681_v35 = vld [vmem:[%s18570_s30] sm:$0xff]  }
0x171c   : > { %11212 = vmatprep.subr.bf16.mxu0 %v21872_v55 }
0x171f   : > { %11213 = vmatpush3.bf16.msra.mxu0 %v12660_v10 }
0x1720   : > { %11214 = vmatprep.subr.bf16.mxu0 %v21872_v55 }
0x1723   : > { %11215 = vmatpush3.bf16.msra.mxu0 %v12661_v62  ;;  %v9933_v62 = vld [vmem:[%s21916_s22] ss:$0 sm:$0xff] }
0x1724   : > { %11216 = vmatprep.subr.bf16.mxu0 %v21872_v55 }
0x1727   : > { %11217 = vmatpush3.bf16.msra.mxu0 %v12662_v8 }
0x1728   : > { %11218 = vmatprep.subr.bf16.mxu0 %v21872_v55 }
0x172b   : > { %11219 = vmatpush3.bf16.msra.mxu0 %v12663_v60 }
0x172c   : > { %11220 = vmatprep.subr.bf16.mxu0 %v21872_v55 }
0x172f   : > { %11221 = vmatpush3.bf16.msra.mxu0 %v12664_v22 }
0x1730   : > { %11246 = vmatprep.subr.bf16.mxu0 %v21872_v55 }
0x17a9   : > { %v7193_v59 = vpop.f32.mrb[160].mxu0 }
0x17aa   : > { %v7194_v12 = vadd.f32 %v9888_v40, %v7193_v59  ;;  %v11120_v45 = vpop.f32.mrb[161].mxu0  ;;  %v12678_v59 = vld [vmem:[%s21911_s17 + $0x28] sm:$0xff]  }
0x17ab   : > { %v7196_v41 = vpop.f32.mrb[162].mxu0 }
0x17ac   : > { %v7200_v6 = vmax.f32 %v7194_v12, 0.0  ;;  %v7197_v53 = vadd.f32 %v9888_v40, %v7196_v41  ;;  %v11121_v13 = vpop.f32.mrb[163].mxu0  ;;  %v12677_v40 = vld [vmem:[%s21911_s17 + $0x20] sm:$0xff]  }
0x17ae   : > { %v20049_v57 = vadd.f32 %v7200_v6, %v19375_v51  ;;  %v7201_v25 = vmax.f32 %v7197_v53, 0.0  ;;  %v21908_v51 = vld [vmem:[#allocation405_spill] sm:$0xff] }
0x17b0   : > { %7853 = vst [vmem:[#allocation2] sm:$0xff] %v20049_v57  ;;  %v7202_v46 = vpack.c.bf16 %v7201_v25, %v7200_v6  ;;  %v20053_v17 = vadd.f32 %v7201_v25, %v19379_v20  ;;  %v12635_v20 = vld [vmem:[%s21907_s11 + $0x10] sm:$0xff]   ;;  %v9923_v25 = vld [vmem:[%s21912_s24] ss:$0 sm:$0xff] }
0x17b2   : > { %7854 = vst [vmem:[#allocation2 + $0x8] sm:$0xff] %v20053_v17  ;;  %v7870_v52 = vpack.c.bf16 %v20053_v17, %v20049_v57  ;;  %11123 = vmatpush3.bf16.msra.mxu1 %v7202_v46 }
0x17b3   : > { %11146 = vmatprep.subr.bf16.mxu1 %v21872_v55 }
0x17b5   : > { %11125 = vmatmul.mubr.msk.bf16.vlgmr.msra.gmra.mrb[148].mxu1 %vm3588_vm0, %v21908_v51 }
0x17b6   : > { %11147 = vmatpush3.bf16.msra.mxu1 %v12633_v23  ;;  %11162 = vmatprep.mubr.msk.bf16.mxu1 %vm15364_vm1, %v21872_v55 }
0x17b7   : > { %11148 = vmatprep.subr.bf16.mxu1 %v21872_v55 }
0x17ba   : > { %11149 = vmatpush3.bf16.msra.mxu1 %v12634_v50 }
0x17bb   : > { %11150 = vmatprep.subr.bf16.mxu1 %v21872_v55 }
0x17be   : > { %11151 = vmatpush3.bf16.msra.mxu1 %v12635_v20 }
0x17bf   : > { %11152 = vmatprep.subr.bf16.mxu1 %v21872_v55 }
0x17c2   : > { %11153 = vmatpush3.bf16.msra.mxu1 %v12636_v3 }
0x17c3   : > { %11154 = vmatprep.subr.bf16.mxu1 %v21872_v55 }
0x17c5   : > { %v7329_v39 = vpop.f32.mrb[164].mxu0 }
0x17c6   : > { %11155 = vmatpush3.bf16.msra.mxu1 %v12637_v5  ;;  %v11144_v7 = vpop.f32.mrb[165].mxu0  ;;  %v7335_v11 = vpack.c.bf16 %v7329_v39, %v7329_v39  ;;  %v12665_v5 = vld [vmem:[%s18563_s19] sm:$0xff]   ;;  %v12679_v39 = vld [vmem:[%s21911_s17 + $0x30] sm:$0xff]  }
0x17c7   : > { %11156 = vmatprep.subr.bf16.mxu1 %v21872_v55  ;;  %v7332_v63 = vpop.f32.mrb[166].mxu0  ;;  %v12680_v7 = vld [vmem:[%s21911_s17 + $0x38] sm:$0xff]  }
0x17c8   : > { %v11145_v15 = vpop.f32.mrb[167].mxu0  ;;  %v9924_v63 = vld [vmem:[%s21913_s1] ss:$0 sm:$0xff] }
0x17ca   : > { %11157 = vmatpush3.bf16.msra.mxu1 %v12638_v56 }
0x17cb   : > { %11158 = vmatprep.subr.bf16.mxu1 %v21872_v55 }
0x17ce   : > { %11159 = vmatpush3.bf16.msra.mxu1 %v12640_v43  ;;  %v12666_v43 = vld [vmem:[%s18563_s19 + $0x8] sm:$0xff]  }
0x17cf   : > { %11160 = vmatprep.subr.bf16.mxu1 %v21872_v55 }
0x17d2   : > { %11161 = vmatpush3.bf16.msra.mxu1 %v12642_v58  ;;  %v12667_v58 = vld [vmem:[%s18563_s19 + $0x10] sm:$0xff]   ;;  %s21915_s19 = sld [smem:[#allocation246_spill]] }
0x17d3   : > { %11186 = vmatprep.subr.bf16.mxu1 %v21872_v55 }
0x17e5   : > { %v7506_v2 = vpop.f32.mrb[168].mxu0 }
0x17e6   : > { %v11184_v49 = vpop.f32.mrb[169].mxu0 }
0x17e7   : > { %v7509_v28 = vpop.f32.mrb[170].mxu0 }
0x17e8   : > { %v11185_v36 = vpop.f32.mrb[171].mxu0 }
0x1888   : > { %v7288_v24 = vpop.f32.mrb[148].mxu1 }
0x1889   : > { %v7294_v1 = vpack.c.bf16 %v7288_v24, %v7288_v24  ;;  %v11126_v48 = vpop.f32.mrb[149].mxu1 }
0x188a   : > { %v7291_v26 = vpop.f32.mrb[150].mxu1  ;;  %v12684_v48 = vld [vmem:[%s18570_s30 + $0x18] sm:$0xff]  }
0x188b   : > { %11163 = vmatmul.mubr.bf16.vlgmr.msra.gmra.mrb[152].mxu1 %v7294_v1  ;;  %v11127_v14 = vpop.f32.mrb[151].mxu1  ;;  %v12683_v1 = vld [vmem:[%s18570_s30 + $0x10] sm:$0xff]   ;;  %v12685_v26 = vld [vmem:[%s18570_s30 + $0x20] sm:$0xff]  }
0x188c   : > { %11187 = vmatpush3.bf16.msra.mxu1 %v12644_v0  ;;  %11202 = vmatprep.mubr.msk.bf16.mxu1 %vm15364_vm1, %v21872_v55  ;;  %v12682_v0 = vld [vmem:[%s18570_s30 + $0x8] sm:$0xff]  }
0x188d   : > { %11188 = vmatprep.subr.bf16.mxu1 %v21872_v55  ;;  %v12686_v14 = vld [vmem:[%s18570_s30 + $0x28] sm:$0xff]  }
0x1890   : > { %11189 = vmatpush3.bf16.msra.mxu1 %v12646_v47  ;;  %v12687_v47 = vld [vmem:[%s18570_s30 + $0x30] sm:$0xff]  }
0x1891   : > { %11190 = vmatprep.subr.bf16.mxu1 %v21872_v55 }
0x1894   : > { %11191 = vmatpush3.bf16.msra.mxu1 %v12648_v61  ;;  %v9942_v61 = vld [vmem:[%s21915_s19] ss:$0 sm:$0xff] }
0x1895   : > { %11192 = vmatprep.subr.bf16.mxu1 %v21872_v55 }
0x1898   : > { %11193 = vmatpush3.bf16.msra.mxu1 %v12650_v16 }
0x1899   : > { %11194 = vmatprep.subr.bf16.mxu1 %v21872_v55 }
0x189c   : > { %11195 = vmatpush3.bf16.msra.mxu1 %v12652_v19  ;;  %v12688_v19 = vld [vmem:[%s18570_s30 + $0x38] sm:$0xff]   ;;  %s21921_s30 = sld [smem:[#allocation316_spill]] }
0x189d   : > { %11196 = vmatprep.subr.bf16.mxu1 %v21872_v55 }
0x18a0   : > { %11197 = vmatpush3.bf16.msra.mxu1 %v12654_v9 }
0x18a1   : > { %11198 = vmatprep.subr.bf16.mxu1 %v21872_v55 }
0x18a2   : > { %p9962_p11 = scmp.ne.s32.totalorder %s21921_s30, 2 }
0x18a3   : > { %s21922_s6 = sld [smem:[#allocation239_spill]] (!%p9962_p11) }
0x18a4   : > { %11199 = vmatpush3.bf16.msra.mxu1 %v12655_v31 }
0x18a5   : > { %11200 = vmatprep.subr.bf16.mxu1 %v21872_v55 }
0x18a8   : > { %11201 = vmatpush3.bf16.msra.mxu1 %v12656_v44 }
0x18a9   : > { %11226 = vmatprep.subr.bf16.mxu1 %v21872_v55 }
0x18ab   : > { %11203 = vmatmul.mubr.bf16.vlgmr.msra.gmra.mrb[156].mxu1 %v7335_v11 }
0x18ac   : > { %11242 = vmatprep.mubr.msk.bf16.mxu1 %vm15364_vm1, %v21872_v55  ;;  %11227 = vmatpush3.bf16.msra.mxu1 %v12673_v4 }
0x18ad   : > { %11228 = vmatprep.subr.bf16.mxu1 %v21872_v55 }
0x18b0   : > { %11229 = vmatpush3.bf16.msra.mxu1 %v12674_v21 }
0x18b1   : > { %11230 = vmatprep.subr.bf16.mxu1 %v21872_v55 }
0x18b4   : > { %11231 = vmatpush3.bf16.msra.mxu1 %v12675_v37 }
0x18b5   : > { %11232 = vmatprep.subr.bf16.mxu1 %v21872_v55 }
0x18b8   : > { %11233 = vmatpush3.bf16.msra.mxu1 %v12676_v27 }
0x18b9   : > { %11234 = vmatprep.subr.bf16.mxu1 %v21872_v55 }
0x18bc   : > { %11235 = vmatpush3.bf16.msra.mxu1 %v12677_v40 }
0x18bd   : > { %11236 = vmatprep.subr.bf16.mxu1 %v21872_v55 }
0x18c0   : > { %11237 = vmatpush3.bf16.msra.mxu1 %v12678_v59 }
0x18c1   : > { %11238 = vmatprep.subr.bf16.mxu1 %v21872_v55 }
0x18c4   : > { %11239 = vmatpush3.bf16.msra.mxu1 %v12679_v39  ;;  %v12696_v39 = vld [vmem:[#allocation24 + $0x38] sm:$0xff] (!%p9962_p11)  }
0x18c5   : > { %11240 = vmatprep.subr.bf16.mxu1 %v21872_v55 }
0x18c8   : > { %11241 = vmatpush3.bf16.msra.mxu1 %v12680_v7  ;;  %v12702_v7 = vld [vmem:[#allocation27 + $0x28] sm:$0xff] (!%p9962_p11)  }
0x18c9   : > { %11266 = vmatprep.subr.bf16.mxu1 %v21872_v55 }
0x195e   : > { %v7418_v12 = vpop.f32.mrb[152].mxu1 }
0x195f   : > { %v11164_v45 = vpop.f32.mrb[153].mxu1  ;;  %v7507_v41 = vadd.f32 %v7506_v2, %v7418_v12 }
0x1960   : > { %v7421_v6 = vpop.f32.mrb[154].mxu1 }
0x1961   : > { %v11165_v53 = vpop.f32.mrb[155].mxu1  ;;  %v21918_v6 = vld [vmem:[#allocation408_spill] sm:$0xff] }
0x197e   : > { %v7594_v13 = vpop.f32.mrb[156].mxu1 }
0x197f   : > { %v7600_v46 = vadd.f32 %v7594_v13, %v7507_v41  ;;  %v11204_v23 = vpop.f32.mrb[157].mxu1  ;;  %v21919_v13 = vld [vmem:[#allocation409_spill] sm:$0xff] }
0x1980   : > { %v7597_v51 = vpop.f32.mrb[158].mxu1  ;;  %v21920_v23 = vld [vmem:[#allocation407_spill] sm:$0xff] }
0x1981   : > { %v7608_v50 = vadd.f32 %v9923_v25, %v7600_v46  ;;  %v11205_v20 = vpop.f32.mrb[159].mxu1 }
0x1982   : > { %v15365_v20 = vmov (!%p9962_p11), 0.0  }
0x1983   : > { %v7609_v3 = vmax.f32 %v7608_v50, 0.0  ;;  %v12689_v50 = vld [vmem:[#allocation24] sm:$0xff] (!%p9962_p11)  }
0x1985   : > { %v7627_v56 = vpack.c.bf16 %v7609_v3, %v7609_v3  ;;  %v12690_v3 = vld [vmem:[#allocation24 + $0x8] sm:$0xff] (!%p9962_p11)  }
0x1987   : > { %11223 = vmatmul.mubr.bf16.vlgmr.msra.gmra.mrb[172].mxu0 %v7627_v56  ;;  %v12697_v56 = vld [vmem:[#allocation27] sm:$0xff] (!%p9962_p11)  }
0x1988   : > { %11247 = vmatpush3.bf16.msra.mxu0 %v12665_v5  ;;  %11262 = vmatprep.mubr.msk.bf16.mxu0 %vm15364_vm1, %v21872_v55  ;;  %v12691_v5 = vld [vmem:[#allocation24 + $0x10] sm:$0xff] (!%p9962_p11)  }
0x1989   : > { %11248 = vmatprep.subr.bf16.mxu0 %v21872_v55 }
0x198c   : > { %11249 = vmatpush3.bf16.msra.mxu0 %v12666_v43  ;;  %v12692_v43 = vld [vmem:[#allocation24 + $0x18] sm:$0xff] (!%p9962_p11)  }
0x198d   : > { %11250 = vmatprep.subr.bf16.mxu0 %v21872_v55 }
0x1990   : > { %11251 = vmatpush3.bf16.msra.mxu0 %v12667_v58  ;;  %v12698_v58 = vld [vmem:[#allocation27 + $0x8] sm:$0xff] (!%p9962_p11)  }
0x1991   : > { %11252 = vmatprep.subr.bf16.mxu0 %v21872_v55 }
0x1994   : > { %11253 = vmatpush3.bf16.msra.mxu0 %v12668_v30  ;;  %v12693_v30 = vld [vmem:[#allocation24 + $0x20] sm:$0xff] (!%p9962_p11)  }
0x1995   : > { %11254 = vmatprep.subr.bf16.mxu0 %v21872_v55 }
0x1998   : > { %11255 = vmatpush3.bf16.msra.mxu0 %v12669_v32  ;;  %v12699_v32 = vld [vmem:[#allocation27 + $0x10] sm:$0xff] (!%p9962_p11)  }
0x1999   : > { %11256 = vmatprep.subr.bf16.mxu0 %v21872_v55 }
0x199c   : > { %11257 = vmatpush3.bf16.msra.mxu0 %v12670_v33  ;;  %v12694_v33 = vld [vmem:[#allocation24 + $0x28] sm:$0xff] (!%p9962_p11)  }
0x199d   : > { %11258 = vmatprep.subr.bf16.mxu0 %v21872_v55 }
0x19a0   : > { %11259 = vmatpush3.bf16.msra.mxu0 %v12671_v29  ;;  %v12700_v29 = vld [vmem:[#allocation27 + $0x18] sm:$0xff] (!%p9962_p11)  }
0x19a1   : > { %11260 = vmatprep.subr.bf16.mxu0 %v21872_v55 }
0x19a4   : > { %11261 = vmatpush3.bf16.msra.mxu0 %v12672_v42  ;;  %v12695_v42 = vld [vmem:[#allocation24 + $0x30] sm:$0xff] (!%p9962_p11)  }
0x19a7   : > { %11263 = vmatmul.mubr.bf16.vlgmr.msra.gmra.mrb[176].mxu0 %v7870_v52 }
0x19a8   : > { %11290 = vmatprep.mubr.msk.f32.mxu0 %vm3588_vm0, %v21914_v38  ;;  %v12701_v38 = vld [vmem:[#allocation27 + $0x20] sm:$0xff] (!%p9962_p11)  }
0x1a5a   : > { %v7716_v15 = vpop.f32.mrb[172].mxu0 }
0x1a5b   : > { %v7717_v54 = vadd.f32 %v9924_v63, %v7716_v15  ;;  %v11224_v57 = vpop.f32.mrb[173].mxu0  ;;  %v12703_v15 = vld [vmem:[#allocation27 + $0x30] sm:$0xff] (!%p9962_p11)  }
0x1a5c   : > { %v7719_v17 = vpop.f32.mrb[174].mxu0  ;;  %v12705_v57 = vld [vmem:[#allocation30] sm:$0xff] (!%p9962_p11)  }
0x1a5d   : > { %v7722_v52 = vmax.f32 %v7717_v54, 0.0  ;;  %v11225_v34 = vpop.f32.mrb[175].mxu0  ;;  %v12704_v54 = vld [vmem:[#allocation27 + $0x38] sm:$0xff] (!%p9962_p11)   ;;  %v12706_v17 = vld [vmem:[#allocation30 + $0x8] sm:$0xff] (!%p9962_p11)  }
0x1a5e   : > { %v12708_v34 = vld [vmem:[#allocation30 + $0x18] sm:$0xff] (!%p9962_p11)  }
0x1a5f   : > { %v7740_v24 = vpack.c.bf16 %v7722_v52, %v7722_v52  ;;  %v12707_v52 = vld [vmem:[#allocation30 + $0x10] sm:$0xff] (!%p9962_p11)  }
0x1a61   : > { %11243 = vmatmul.mubr.bf16.vlgmr.msra.gmra.mrb[160].mxu1 %v7740_v24  ;;  %v12710_v24 = vld [vmem:[#allocation30 + $0x28] sm:$0xff] (!%p9962_p11)  }
0x1a62   : > { %11267 = vmatpush3.bf16.msra.mxu1 %v12681_v35  ;;  %11282 = vmatprep.mubr.msk.bf16.mxu1 %vm15364_vm1, %v21872_v55  ;;  %vm15366_vm1 = vmmov (!%p9962_p11), 0   ;;  %v12709_v35 = vld [vmem:[#allocation30 + $0x20] sm:$0xff] (!%p9962_p11)  }
0x1a63   : > { %11268 = vmatprep.subr.bf16.mxu1 %v21872_v55 }
0x1a66   : > { %11269 = vmatpush3.bf16.msra.mxu1 %v12682_v0  ;;  %v9963_v0 = vld [vmem:[#allocation22] ss:$0 sm:$0xff] (!%p9962_p11) }
0x1a67   : > { %11270 = vmatprep.subr.bf16.mxu1 %v21872_v55 }
0x1a6a   : > { %11271 = vmatpush3.bf16.msra.mxu1 %v12683_v1 }
0x1a6b   : > { %11272 = vmatprep.subr.bf16.mxu1 %v21872_v55 }
0x1a6e   : > { %11273 = vmatpush3.bf16.msra.mxu1 %v12684_v48 }
0x1a6f   : > { %11274 = vmatprep.subr.bf16.mxu1 %v21872_v55 }
0x1a72   : > { %11275 = vmatpush3.bf16.msra.mxu1 %v12685_v26 }
0x1a73   : > { %11276 = vmatprep.subr.bf16.mxu1 %v21872_v55 }
0x1a76   : > { %11277 = vmatpush3.bf16.msra.mxu1 %v12686_v14 }
0x1a77   : > { %11278 = vmatprep.subr.bf16.mxu1 %v21872_v55 }
0x1a7a   : > { %v7976_v16 = vpop.f32.mrb[176].mxu0  ;;  %11279 = vmatpush3.bf16.msra.mxu1 %v12687_v47 }
0x1a7b   : > { %v7977_v9 = vadd.f32 %v9942_v61, %v7976_v16  ;;  %v11264_v31 = vpop.f32.mrb[177].mxu0  ;;  %11280 = vmatprep.subr.bf16.mxu1 %v21872_v55  ;;  %v9951_v55 = vld [vmem:[%s21917_s18] ss:$0 sm:$0xff] }
0x1a7c   : > { %v7979_v44 = vpop.f32.mrb[178].mxu0  ;;  %v9972_v31 = vld [vmem:[#allocation25] ss:$0 sm:$0xff] (!%p9962_p11) }
0x1a7d   : > { %v7980_v11 = vadd.f32 %v9942_v61, %v7979_v44  ;;  %v11265_v2 = vpop.f32.mrb[179].mxu0  ;;  %v7983_v10 = vmax.f32 %v7977_v9, 0.0  ;;  %v12712_v9 = vld [vmem:[#allocation30 + $0x38] sm:$0xff] (!%p9962_p11)  }
0x1a7e   : > { %11281 = vmatpush3.bf16.msra.mxu1 %v12688_v19  ;;  %v12711_v19 = vld [vmem:[#allocation30 + $0x30] sm:$0xff] (!%p9962_p11)  }
0x1a7f   : > { %v7984_v49 = vmax.f32 %v7980_v11, 0.0  ;;  %11313 = vmatprep.subr.bf16.mxu1 (!%p9962_p11), %v15365_v20 }
0x1a81   : > { %v7985_v28 = vpack.c.bf16 %v7984_v49, %v7983_v10 }
0x1a83   : > { %11283 = vmatmul.mubr.bf16.vlgmr.msra.gmra.mrb[164].mxu1 %v7985_v28 }
0x1a84   : > { %11329 = vmatprep.mubr.msk.bf16.mxu1 (!%p9962_p11), %vm15366_vm1, %v15365_v20  ;;  %11314 = vmatpush3.bf16.msra.mxu1 (!%p9962_p11), %v12697_v56 }
0x1a85   : > { %11315 = vmatprep.subr.bf16.mxu1 (!%p9962_p11), %v15365_v20 }
0x1a88   : > { %11316 = vmatpush3.bf16.msra.mxu1 (!%p9962_p11), %v12698_v58 }
0x1a89   : > { %11317 = vmatprep.subr.bf16.mxu1 (!%p9962_p11), %v15365_v20 }
0x1a8c   : > { %11318 = vmatpush3.bf16.msra.mxu1 (!%p9962_p11), %v12699_v32 }
0x1a8d   : > { %11319 = vmatprep.subr.bf16.mxu1 (!%p9962_p11), %v15365_v20 }
0x1a90   : > { %11320 = vmatpush3.bf16.msra.mxu1 (!%p9962_p11), %v12700_v29 }
0x1a91   : > { %11321 = vmatprep.subr.bf16.mxu1 (!%p9962_p11), %v15365_v20 }
0x1a94   : > { %11322 = vmatpush3.bf16.msra.mxu1 (!%p9962_p11), %v12701_v38 }
0x1a95   : > { %11323 = vmatprep.subr.bf16.mxu1 (!%p9962_p11), %v15365_v20 }
0x1a98   : > { %11324 = vmatpush3.bf16.msra.mxu1 (!%p9962_p11), %v12702_v7 }
0x1a99   : > { %11325 = vmatprep.subr.bf16.mxu1 (!%p9962_p11), %v15365_v20 }
0x1a9c   : > { %11326 = vmatpush3.bf16.msra.mxu1 (!%p9962_p11), %v12703_v15 }
0x1a9d   : > { %11327 = vmatprep.subr.bf16.mxu1 (!%p9962_p11), %v15365_v20 }
0x1aa0   : > { %11328 = vmatpush3.bf16.msra.mxu1 (!%p9962_p11), %v12704_v54 }
0x1b34   : > { %v7829_v36 = vpop.f32.mrb[160].mxu1 }
0x1b35   : > { %v7830_v8 = vadd.f32 %v9933_v62, %v7829_v36  ;;  %v11244_v60 = vpop.f32.mrb[161].mxu1  ;;  %v9981_v36 = vld [vmem:[#allocation28] ss:$0 sm:$0xff] (!%p9962_p11) }
0x1b36   : > { %v7832_v22 = vpop.f32.mrb[162].mxu1 }
0x1b37   : > { %v7835_v4 = vmax.f32 %v7830_v8, 0.0  ;;  %v11245_v21 = vpop.f32.mrb[163].mxu1 }
0x1b39   : > { %v20190_v37 = vadd.f32 %v7835_v4, %v19417_v18 }
0x1b3b   : > { %7869 = vst [vmem:[#allocation4] sm:$0xff] %v20190_v37  ;;  %v8204_v63 = vpack.c.bf16 (!%p9962_p11), %v20190_v37, %v20190_v37 }
0x1b56   : > { %v8091_v27 = vpop.f32.mrb[164].mxu1 }
0x1b57   : > { %v8092_v40 = vadd.f32 %v9951_v55, %v8091_v27  ;;  %v11284_v59 = vpop.f32.mrb[165].mxu1 }
0x1b58   : > { %v8094_v12 = vpop.f32.mrb[166].mxu1 }
0x1b59   : > { %v8095_v45 = vadd.f32 %v9951_v55, %v8094_v12  ;;  %v11285_v41 = vpop.f32.mrb[167].mxu1  ;;  %v8098_v53 = vadd.f32 %v8092_v40, %v21918_v6 }
0x1b5b   : > { %v8099_v25 = vadd.f32 %v8095_v45, %v21919_v13 }
0x1b5d   : > { %v11357_v46 = vpack.c.bf16 %v8099_v25, %v8098_v53 }
0x1b5f   : > { %11358 = vmatprep.subr.bf16.mxu0 %v11357_v46 }
0x1b60   : > { %11360 = vmatpush3.bf16.msra.mxu0 %v11357_v46 }
0x1b61   : > { %11293 = vmatprep.subr.bf16.mxu0 (!%p9962_p11), %v15365_v20 }
0x1b63   : > { %11291 = vmatmul.mubr.msk.f32.vlgmr.msra.gmra.mrb[14].mxu0 %vm3588_vm0, %v21920_v23 }
0x1b64   : > { %11294 = vmatpush3.bf16.msra.mxu0 (!%p9962_p11), %v12689_v50  ;;  %11309 = vmatprep.mubr.msk.bf16.mxu0 (!%p9962_p11), %vm15366_vm1, %v15365_v20 }
0x1b65   : > { %11295 = vmatprep.subr.bf16.mxu0 (!%p9962_p11), %v15365_v20 }
0x1b68   : > { %11296 = vmatpush3.bf16.msra.mxu0 (!%p9962_p11), %v12690_v3 }
0x1b69   : > { %11297 = vmatprep.subr.bf16.mxu0 (!%p9962_p11), %v15365_v20 }
0x1b6c   : > { %11298 = vmatpush3.bf16.msra.mxu0 (!%p9962_p11), %v12691_v5 }
0x1b6d   : > { %11299 = vmatprep.subr.bf16.mxu0 (!%p9962_p11), %v15365_v20 }
0x1b70   : > { %11300 = vmatpush3.bf16.msra.mxu0 (!%p9962_p11), %v12692_v43 }
0x1b71   : > { %11301 = vmatprep.subr.bf16.mxu0 (!%p9962_p11), %v15365_v20 }
0x1b74   : > { %11302 = vmatpush3.bf16.msra.mxu0 (!%p9962_p11), %v12693_v30 }
0x1b75   : > { %11303 = vmatprep.subr.bf16.mxu0 (!%p9962_p11), %v15365_v20 }
0x1b78   : > { %11304 = vmatpush3.bf16.msra.mxu0 (!%p9962_p11), %v12694_v33 }
0x1b79   : > { %11305 = vmatprep.subr.bf16.mxu0 (!%p9962_p11), %v15365_v20 }
0x1b7c   : > { %11306 = vmatpush3.bf16.msra.mxu0 (!%p9962_p11), %v12695_v42 }
0x1b7d   : > { %11307 = vmatprep.subr.bf16.mxu0 (!%p9962_p11), %v15365_v20 }
0x1b80   : > { %11308 = vmatpush3.bf16.msra.mxu0 (!%p9962_p11), %v12696_v39 }
0x1b81   : > { %11333 = vmatprep.subr.bf16.mxu0 (!%p9962_p11), %v15365_v20 }
0x1b83   : > { %11310 = vmatmul.mubr.bf16.vlgmr.msra.gmra.mrb[0].mxu0 (!%p9962_p11), %v8204_v63 }
0x1b84   : > { %11349 = vmatprep.mubr.msk.bf16.mxu0 (!%p9962_p11), %vm15366_vm1, %v15365_v20  ;;  %11334 = vmatpush3.bf16.msra.mxu0 (!%p9962_p11), %v12705_v57 }
0x1b85   : > { %11335 = vmatprep.subr.bf16.mxu0 (!%p9962_p11), %v15365_v20 }
0x1b88   : > { %11336 = vmatpush3.bf16.msra.mxu0 (!%p9962_p11), %v12706_v17 }
0x1b89   : > { %11337 = vmatprep.subr.bf16.mxu0 (!%p9962_p11), %v15365_v20 }
0x1b8c   : > { %11338 = vmatpush3.bf16.msra.mxu0 (!%p9962_p11), %v12707_v52 }
0x1b8d   : > { %11339 = vmatprep.subr.bf16.mxu0 (!%p9962_p11), %v15365_v20 }
0x1b90   : > { %11340 = vmatpush3.bf16.msra.mxu0 (!%p9962_p11), %v12708_v34 }
0x1b91   : > { %11341 = vmatprep.subr.bf16.mxu0 (!%p9962_p11), %v15365_v20 }
0x1b94   : > { %11342 = vmatpush3.bf16.msra.mxu0 (!%p9962_p11), %v12709_v35 }
0x1b95   : > { %11343 = vmatprep.subr.bf16.mxu0 (!%p9962_p11), %v15365_v20 }
0x1b98   : > { %11344 = vmatpush3.bf16.msra.mxu0 (!%p9962_p11), %v12710_v24 }
0x1b99   : > { %11345 = vmatprep.subr.bf16.mxu0 (!%p9962_p11), %v15365_v20 }
0x1b9c   : > { %11346 = vmatpush3.bf16.msra.mxu0 (!%p9962_p11), %v12711_v19 }
0x1b9d   : > { %11347 = vmatprep.subr.bf16.mxu0 (!%p9962_p11), %v15365_v20 }
0x1ba0   : > { %11348 = vmatpush3.bf16.msra.mxu0 (!%p9962_p11), %v12712_v9 }
0x1c32   : > { %8186 = sbr.rel (%p9962_p11) target bundleno = 7696 (0x1e10), region = 536 }
0x1c36   : > { %v11292_v18 = vpop.f32.mrb[14].mxu0 }
0x1c37   : > { %8182 = vst [vmem:[#allocation5 + $0x8] sm:$0xff] %v11292_v18  ;;  %v8172_v51 = vpop.f32.mrb[15].mxu0 }
0x1c38   : > { %8181 = vst [vmem:[#allocation5] sm:$0xff] %v8172_v51 }
0x1c56   : > { %v8293_v1 = vpop.f32.mrb[0].mxu0 }
0x1c57   : > { %v8294_v48 = vadd.f32 %v9963_v0, %v8293_v1  ;;  %v11311_v26 = vpop.f32.mrb[1].mxu0 }
0x1c58   : > { %v8296_v14 = vpop.f32.mrb[2].mxu0 }
0x1c59   : > { %v8299_v47 = vmax.f32 %v8294_v48, 0.0  ;;  %v11312_v61 = vpop.f32.mrb[3].mxu0 }
0x1c5b   : > { %v8317_v16 = vpack.c.bf16 %v8299_v47, %v8299_v47 }
0x1c5d   : > { %11330 = vmatmul.mubr.bf16.vlgmr.msra.gmra.mrb[0].mxu1 %v8317_v16 }
0x1d30   : > { %v8406_v44 = vpop.f32.mrb[0].mxu1 }
0x1d31   : > { %v8407_v11 = vadd.f32 %v9972_v31, %v8406_v44  ;;  %v11331_v2 = vpop.f32.mrb[1].mxu1 }
0x1d32   : > { %v8409_v10 = vpop.f32.mrb[2].mxu1 }
0x1d33   : > { %v8412_v49 = vmax.f32 %v8407_v11, 0.0  ;;  %v11332_v28 = vpop.f32.mrb[3].mxu1 }
0x1d35   : > { %v8430_v62 = vpack.c.bf16 %v8412_v49, %v8412_v49 }
0x1d37   : > { %11350 = vmatmul.mubr.bf16.vlgmr.msra.gmra.mrb[4].mxu0 %v8430_v62 }
0x1e0a   : > { %v8519_v8 = vpop.f32.mrb[4].mxu0 }
0x1e0b   : > { %v8520_v60 = vadd.f32 %v9981_v36, %v8519_v8  ;;  %v11351_v22 = vpop.f32.mrb[5].mxu0 }
0x1e0c   : > { %v8522_v4 = vpop.f32.mrb[6].mxu0 }
0x1e0d   : > { %v8525_v21 = vmax.f32 %v8520_v60, 0.0  ;;  %v11352_v37 = vpop.f32.mrb[7].mxu0 }
0x1e0f   : > { %8526 = vst [vmem:[%s21922_s6] sm:$0xff] %v8525_v21 }
0x1e10 PF: > { %s21923_s10 = sld [smem:[#allocation317_spill]]  ;;  %s21924_s0 = sld [smem:[#allocation241_spill]] }
0x1e11   : > { %s21925_s5 = sld [smem:[#allocation242_spill]]  ;;  %s21926_s12 = sld [smem:[#allocation370_spill]] }
0x1e12   : > { %s21927_s22 = sld [smem:[#allocation244_spill]]  ;;  %s21928_s26 = sld [smem:[#allocation245_spill]] }
0x1e13   : > { %s21929_s4 = sld [smem:[#allocation368_spill]]  ;;  %s21930_s28 = sld [smem:[#allocation247_spill]] }
0x1e14   : > { %s21931_s2 = sld [smem:[#allocation248_spill]]  ;;  %s21932_s21 = sld [smem:[#allocation366_spill]] }
0x1e15   : > { %s21933_s7 = sld [smem:[#allocation250_spill]]  ;;  %s21934_s11 = sld [smem:[#allocation251_spill]] }
0x1e16   : > { %s21935_s23 = sld [smem:[#allocation243_spill]]  ;;  %s21936_s15 = sld [smem:[#allocation253_spill]] }
0x1e17   : > { %s21937_s18 = sld [smem:[#allocation254_spill]]  ;;  %s21938_s16 = sld [smem:[#allocation363_spill]] }
0x1e18   : > { %p205_p0 = scmp.ge.s32.totalorder %s21923_s10, 5   ;;  %s21939_s10 = sld [smem:[#allocation256_spill]] }
0x1e19   : > { %s21940_s9 = sld [smem:[#allocation257_spill]]  ;;  %s21941_s1 = sld [smem:[#allocation362_spill]] }
0x1e1a   : > { %s21942_s29 = sld [smem:[#allocation259_spill]]  ;;  %s21943_s8 = sld [smem:[#allocation260_spill]] }
0x1e1b   : > { %s21944_s27 = sld [smem:[#allocation359_spill]]  ;;  %s21945_s14 = sld [smem:[#allocation262_spill]] }
0x1e1c   : > { %s21946_s20 = sld [smem:[#allocation263_spill]]  ;;  %s21947_s17 = sld [smem:[#allocation358_spill]] }
0x1e1d   : > { %21948 = sst [smem:[#allocation240_spill]] %s21932_s21  ;;  %s21949_s24 = sld [smem:[#allocation265_spill]] }
0x1e1e   : > { %21950 = sst [smem:[#allocation241_spill]] %s21933_s7  ;;  %s21951_s19 = sld [smem:[#allocation266_spill]] }
0x1e1f   : > { %21952 = sst [smem:[#allocation242_spill]] %s21934_s11  ;;  %s21953_s30 = sld [smem:[#allocation355_spill]] }
0x1e20   : > { %21954 = sst [smem:[#allocation243_spill]] %s21935_s23  ;;  %s21955_s6 = sld [smem:[#allocation268_spill]] }
0x1e21   : > { %21956 = sst [smem:[#allocation244_spill]] %s21936_s15  ;;  %s21957_s3 = sld [smem:[#allocation269_spill]] }
0x1e22   : > { %21958 = sst [smem:[#allocation245_spill]] %s21937_s18  ;;  %s21959_s25 = sld [smem:[#allocation354_spill]] }
0x1e23   : > { %21960 = sst [smem:[#allocation246_spill]] %s21938_s16  ;;  %s21961_s13 = sld [smem:[#allocation271_spill]] }
0x1e24   : > { %21962 = sst [smem:[#allocation247_spill]] %s21939_s10  ;;  %s21963_s21 = sld [smem:[#allocation272_spill]] }
0x1e25   : > { %21964 = sst [smem:[#allocation248_spill]] %s21940_s9  ;;  %s21965_s7 = sld [smem:[#allocation352_spill]] }
0x1e26   : > { %21966 = sst [smem:[#allocation249_spill]] %s21941_s1  ;;  %s21967_s11 = sld [smem:[#allocation274_spill]] }
0x1e27   : > { %21968 = sst [smem:[#allocation250_spill]] %s21942_s29  ;;  %s21969_s23 = sld [smem:[#allocation275_spill]] }
0x1e28   : > { %21970 = sst [smem:[#allocation251_spill]] %s21943_s8  ;;  %s21971_s15 = sld [smem:[#allocation351_spill]] }
0x1e29   : > { %21972 = sst [smem:[#allocation252_spill]] %s21944_s27  ;;  %s21973_s18 = sld [smem:[#allocation277_spill]] }
0x1e2a   : > { %21974 = sst [smem:[#allocation253_spill]] %s21945_s14  ;;  %s21975_s16 = sld [smem:[#allocation278_spill]] }
0x1e2b   : > { %21976 = sst [smem:[#allocation254_spill]] %s21946_s20  ;;  %s21977_s10 = sld [smem:[#allocation349_spill]] }
0x1e2c   : > { %21978 = sst [smem:[#allocation255_spill]] %s21947_s17  ;;  %s21979_s9 = sld [smem:[#allocation280_spill]] }
0x1e2d   : > { %21980 = sst [smem:[#allocation256_spill]] %s21949_s24  ;;  %s21981_s1 = sld [smem:[#allocation281_spill]] }
0x1e2e   : > { %21982 = sst [smem:[#allocation257_spill]] %s21951_s19  ;;  %s21983_s29 = sld [smem:[#allocation348_spill]] }
0x1e2f   : > { %21984 = sst [smem:[#allocation258_spill]] %s21953_s30  ;;  %s21985_s20 = sld [smem:[#allocation283_spill]] }
0x1e30   : > { %21986 = sst [smem:[#allocation259_spill]] %s21955_s6  ;;  %s21987_s27 = sld [smem:[#allocation284_spill]] }
0x1e31   : > { %21988 = sst [smem:[#allocation260_spill]] %s21957_s3  ;;  %s21989_s17 = sld [smem:[#allocation346_spill]] }
0x1e32   : > { %21990 = sst [smem:[#allocation261_spill]] %s21959_s25  ;;  %s21991_s14 = sld [smem:[#allocation286_spill]] }
0x1e33   : > { %21992 = sst [smem:[#allocation262_spill]] %s21961_s13  ;;  %s21993_s8 = sld [smem:[#allocation287_spill]] }
0x1e34   : > { %21994 = sst [smem:[#allocation263_spill]] %s21963_s21  ;;  %s21995_s24 = sld [smem:[#allocation345_spill]] }
0x1e35   : > { %21996 = sst [smem:[#allocation264_spill]] %s21965_s7  ;;  %s21997_s19 = sld [smem:[#allocation289_spill]] }
0x1e36   : > { %21998 = sst [smem:[#allocation265_spill]] %s21967_s11  ;;  %s21999_s30 = sld [smem:[#allocation290_spill]] }
0x1e37   : > { %22000 = sst [smem:[#allocation266_spill]] %s21969_s23  ;;  %s22001_s6 = sld [smem:[#allocation342_spill]] }
0x1e38   : > { %22002 = sst [smem:[#allocation267_spill]] %s21971_s15  ;;  %s22003_s3 = sld [smem:[#allocation292_spill]] }
0x1e39   : > { %22004 = sst [smem:[#allocation268_spill]] %s21973_s18  ;;  %s22005_s25 = sld [smem:[#allocation293_spill]] }
0x1e3a   : > { %22006 = sst [smem:[#allocation269_spill]] %s21975_s16  ;;  %s22007_s13 = sld [smem:[#allocation341_spill]] }
0x1e3b   : > { %22008 = sst [smem:[#allocation270_spill]] %s21977_s10  ;;  %s22009_s21 = sld [smem:[#allocation295_spill]] }
0x1e3c   : > { %22010 = sst [smem:[#allocation271_spill]] %s21979_s9  ;;  %s22011_s7 = sld [smem:[#allocation296_spill]] }
0x1e3d   : > { %22012 = sst [smem:[#allocation272_spill]] %s21981_s1  ;;  %s22013_s9 = sld [smem:[#allocation339_spill]] }
0x1e3e   : > { %22014 = sst [smem:[#allocation273_spill]] %s21983_s29  ;;  %s22017_s15 = sld [smem:[#allocation304_spill]] }
0x1e3f   : > { %s22015_s23 = sld [smem:[#allocation305_spill]]  ;;  %22016 = sst [smem:[#allocation274_spill]] %s21985_s20 }
0x1e40   : > { %22018 = sst [smem:[#allocation275_spill]] %s21987_s27  ;;  %s22019_s29 = sld [smem:[#allocation338_spill]] }
0x1e41   : > { %22020 = sst [smem:[#allocation276_spill]] %s21989_s17  ;;  %s22021_s16 = sld [smem:[#allocation307_spill]] }
0x1e42   : > { %22022 = sst [smem:[#allocation277_spill]] %s21991_s14  ;;  %s22023_s10 = sld [smem:[#allocation308_spill]] }
0x1e43   : > { %22024 = sst [smem:[#allocation278_spill]] %s21993_s8  ;;  %s22025_s11 = sld [smem:[#allocation336_spill]] }
0x1e44   : > { %22026 = sst [smem:[#allocation279_spill]] %s21995_s24  ;;  %s22027_s1 = sld [smem:[#allocation310_spill]] }
0x1e45   : > { %22028 = sst [smem:[#allocation280_spill]] %s21997_s19  ;;  %s22029_s8 = sld [smem:[#allocation311_spill]] }
0x1e46   : > { %22030 = sst [smem:[#allocation281_spill]] %s21999_s30  ;;  %s22031_s18 = sld [smem:[#allocation335_spill]] }
0x1e47   : > { %22032 = sst [smem:[#allocation282_spill]] %s22001_s6  ;;  %s22033_s19 = sld [smem:[#allocation313_spill]] }
0x1e48   : > { %22034 = sst [smem:[#allocation283_spill]] %s22003_s3  ;;  %s22035_s6 = sld [smem:[#allocation314_spill]] }
0x1e49   : > { %22036 = sst [smem:[#allocation284_spill]] %s22005_s25  ;;  %s22037_s25 = sld [smem:[#allocation332_spill]] }
0x1e4a   : > { %22038 = sst [smem:[#allocation285_spill]] %s22007_s13  ;;  %s22039_s20 = sld [smem:[#allocation315_spill]] }
0x1e4b   : > { %22040 = sst [smem:[#allocation286_spill]] %s22009_s21  ;;  %s22041_s17 = sld [smem:[#allocation309_spill]] }
0x1e4c   : > { %22042 = sst [smem:[#allocation287_spill]] %s22011_s7  ;;  %s22043_s3 = sld [smem:[#allocation330_spill]] }
0x1e4d   : > { %22044 = sst [smem:[#allocation288_spill]] %s22013_s9  ;;  %s22045_s27 = sld [smem:[#allocation306_spill]] }
0x1e4e   : > { %22046 = sst [smem:[#allocation289_spill]] %s22015_s23  ;;  %s22049_s13 = sld [smem:[#allocation327_spill]] }
0x1e4f   : > { %s22047_s14 = sld [smem:[#allocation297_spill]]  ;;  %22048 = sst [smem:[#allocation290_spill]] %s22017_s15 }
0x1e50   : > { %22050 = sst [smem:[#allocation291_spill]] %s22019_s29  ;;  %s22051_s24 = sld [smem:[#allocation298_spill]] }
0x1e51   : > { %22052 = sst [smem:[#allocation292_spill]] %s22021_s16  ;;  %s22053_s30 = sld [smem:[#allocation299_spill]] }
0x1e52   : > { %22054 = sst [smem:[#allocation293_spill]] %s22023_s10  ;;  %s22055_s21 = sld [smem:[#allocation326_spill]] }
0x1e53   : > { %22056 = sst [smem:[#allocation294_spill]] %s22025_s11  ;;  %s22057_s7 = sld [smem:[#allocation300_spill]] }
0x1e54   : > { %22058 = sst [smem:[#allocation295_spill]] %s22027_s1  ;;  %s22061_s23 = sld [smem:[#allocation323_spill]] }
0x1e55   : > { %s22059_s9 = sld [smem:[#allocation303_spill]]  ;;  %22060 = sst [smem:[#allocation296_spill]] %s22029_s8 }
0x1e56   : > { %22062 = sst [smem:[#allocation297_spill]] %s22031_s18  ;;  %s22063_s15 = sld [smem:[#allocation301_spill]] }
0x1e57   : > { %22064 = sst [smem:[#allocation298_spill]] %s22033_s19  ;;  %s22065_s29 = sld [smem:[#allocation302_spill]] }
0x1e58   : > { %22066 = sst [smem:[#allocation299_spill]] %s22035_s6  ;;  %s22067_s16 = sld [smem:[#allocation321_spill]] }
0x1e59   : > { %22068 = sst [smem:[#allocation300_spill]] %s22037_s25 }
0x1e5a   : > { %s22069_s10 = sld [smem:[#allocation317_spill]]  ;;  %22070 = sst [smem:[#allocation301_spill]] %s22039_s20 }
0x1e5b   : > { %22071 = sst [smem:[#allocation302_spill]] %s22041_s17 }
0x1e5c   : > { %22072 = sst [smem:[#allocation303_spill]] %s22043_s3 }
0x1e5d   : > { %22073 = sst [smem:[#allocation304_spill]] %s22045_s27 }
0x1e5e   : > { %22074 = sst [smem:[#allocation305_spill]] %s22047_s14 }
0x1e5f   : > { %22075 = sst [smem:[#allocation306_spill]] %s22051_s24 }
0x1e60   : > { %22076 = sst [smem:[#allocation307_spill]] %s22053_s30 }
0x1e61   : > { %22077 = sst [smem:[#allocation308_spill]] %s22055_s21 }
0x1e62   : > { %22078 = sst [smem:[#allocation309_spill]] %s22057_s7  ;;  %207 = sbr.rel (!%p205_p0) target bundleno = 267 (0x10b), region = 856 }
0x1e63   : > { %22079 = sst [smem:[#allocation310_spill]] %s22059_s9 }
0x1e64   : > { %22080 = sst [smem:[#allocation311_spill]] %s22061_s23 }
0x1e65   : > { %22081 = sst [smem:[#allocation312_spill]] %s22063_s15 }
0x1e66   : > { %22082 = sst [smem:[#allocation313_spill]] %s22065_s29 }
0x1e67   : > { %22083 = sst [smem:[#allocation314_spill]] %s22067_s16 }
0x1e68   : > { %22084 = sst [smem:[#allocation315_spill]] %s22069_s10 }
0x1e69   :  { %8538 = vsyncpa [#allocation9], 1 }
0x1e6a   :  { %8540 = vsyncpa [#allocation9 + $0x1], 1 }
0x1e6b   :  { %8541 = vsyncpa [#allocation11], 1 }
0x1e6c   :  { %8542 = vsyncpa [#allocation14], 1 }
0x1e6d   :  { %8543 = vsyncpa [#allocation17], 1 }
0x1e6e   :  { %8544 = vsyncpa [#allocation20], 1 }
0x1e6f   :  { %8545 = vsyncpa [#allocation23], 1 }
0x1e70   :  { %8546 = vsyncpa [#allocation26], 1 }
0x1e71   :  { %8547 = vsyncpa [#allocation29], 1 }
0x1e72   :  { %8548 = vsyncpa [#allocation32], 1 }
0x1e73   :  { %8549 = vsyncpa [#allocation35], 1 }
0x1e74   :  { %8550 = vsyncpa [#allocation38], 1 }
0x1e75   :  { %8551 = vsyncpa [#allocation41], 1 }
0x1e76   :  { %8552 = vsyncpa [#allocation44], 1 }
0x1e77   :  { %8553 = vsyncpa [#allocation47], 1 }
0x1e78   :  { %8554 = vsyncpa [#allocation50], 1 }
0x1e79   :  { %8555 = vsyncpa [#allocation53], 1 }
0x1e7a   :  { %8556 = vsyncpa [#allocation56], 1 }
0x1e7b   :  { %8557 = vsyncpa [#allocation59], 1 }
0x1e7c   :  { %8559 = vsyncpa [#allocation59 + $0x1], 1 }
0x1e7d   :  { %8560 = vsyncpa [#allocation62], 1 }
0x1e7e   :  { %8562 = vsyncpa [#allocation62 + $0x1], 1 }
0x1e7f   :  { %8563 = vsyncpa [#allocation65], 1 }
0x1e80   :  { %8565 = vsyncpa [#allocation65 + $0x1], 1 }
0x1e81   :  { %8566 = vsyncpa [#allocation68], 1 }
0x1e82   :  { %8568 = vsyncpa [#allocation68 + $0x1], 1 }
0x1e83   :  { %8569 = vsyncpa [#allocation71], 1 }
0x1e84   :  { %8571 = vsyncpa [#allocation71 + $0x1], 1 }
0x1e85   :  { %8572 = vsyncpa [#allocation74], 1 }
0x1e86   :  { %8574 = vsyncpa [#allocation74 + $0x1], 1 }
0x1e87   :  { %8575 = vsyncpa [#allocation77], 1 }
0x1e88   :  { %8577 = vsyncpa [#allocation77 + $0x1], 1 }
0x1e89   :  { %8578 = vsyncpa [#allocation80], 1 }
0x1e8a   :  { %8580 = vsyncpa [#allocation80 + $0x1], 1 }
0x1e8b   :  { %8581 = vsyncpa [#allocation83], 1 }
0x1e8c   :  { %8583 = vsyncpa [#allocation83 + $0x1], 1 }
0x1e8d   :  { %8584 = vsyncpa [#allocation86], 1 }
0x1e8e   :  { %8586 = vsyncpa [#allocation86 + $0x1], 1 }
0x1e8f   :  { %8587 = vsyncpa [#allocation89], 1 }
0x1e90   :  { %8589 = vsyncpa [#allocation89 + $0x1], 1 }
0x1e91   :  { %8590 = vsyncpa [#allocation92], 1 }
0x1e92   :  { %8592 = vsyncpa [#allocation92 + $0x1], 1 }
0x1e93   :  { %8593 = vsyncpa [#allocation95], 1 }
0x1e94   :  { %8595 = vsyncpa [#allocation95 + $0x1], 1 }
0x1e95   :  { %8596 = vsyncpa [#allocation98], 1 }
0x1e96   :  { %8598 = vsyncpa [#allocation98 + $0x1], 1 }

</bundles_post_ra>
